<compile_context>
chip_gen: v7x
topology: tpu7x:2x2x1
jax: 0.10.0
libtpu: 0.0.40
codegen_flags: <defaults>
</compile_context>

<pallas_src>
import functools

import jax
import jax.numpy as jnp
from jax import lax
from jax.experimental import pallas as pl
from jax.experimental.pallas import tpu as pltpu


_PAD = 128  # lane margin around the flattened H*W axis; must be >= W_img + 1


# ---------------------------------------------------------------------------
# Fused Pallas kernel (one batch element per grid step)
# ---------------------------------------------------------------------------
def _fused_decoder_kernel(x_ref, w1_ref, w2_ref, wp3_ref, c12_ref, gmat_ref,
                          b3_ref, o_ref, xpad, dpad1, dpad2, *,
                          w_img, groups, eps, neg_slope):
    """All three decoder layers for one batch element, everything in VMEM.

    x_ref   : (2nf, HW)    layer-1 input, zero-dilated to the 2x grid
    w1_ref  : (9, nf, 2nf) per-tap matrices of ConvT1 (flipped, conv form)
    w2_ref  : (9, nf, nf)  per-tap matrices of ConvT2
    wp3_ref : (4nc, 4nf)   sub-pixel (phase) matrices of ConvT3
    c12_ref : (2, nf, 4)   packed [bias, gamma, beta, 0] for layers 1 and 2
    gmat_ref: (nf, nf)     0/1 same-group matrix for GroupNorm(16)
    b3_ref  : (4nc, 1)     layer-3 bias, one row per (phase, out-channel)
    o_ref   : (4nc, HW)    layer-3 output, phase-major (lane-dense)
    xpad/dpad1/dpad2 : (C, HW + 2*_PAD) VMEM scratch with zeroed margins so
                       every 3x3 tap is a static window load (no HBM im2col).
    """
    hw = x_ref.shape[1]
    nf = w1_ref.shape[1]

    def fill_padded(pad_ref, val):
        c = pad_ref.shape[0]
        pad_ref[:, pl.ds(0, _PAD)] = jnp.zeros((c, _PAD), jnp.float32)
        pad_ref[:, pl.ds(_PAD + hw, _PAD)] = jnp.zeros((c, _PAD), jnp.float32)
        pad_ref[:, pl.ds(_PAD, hw)] = val

    def tap(pad_ref, dy, dx, col):
        """Image shifted by (dy, dx) on the flattened lane axis; OOB -> 0."""
        t = pad_ref[:, pl.ds(_PAD + dy * w_img + dx, hw)]
        if dx == 1:          # column wrap at the right image edge
            t = jnp.where(col < w_img - 1, t, 0.0)
        elif dx == -1:       # column wrap at the left image edge
            t = jnp.where(col > 0, t, 0.0)
        return t

    def conv3x3(pad_ref, w_ref):
        cin, cout = pad_ref.shape[0], w_ref.shape[1]
        col = lax.broadcasted_iota(jnp.int32, (cin, hw), 1) & (w_img - 1)
        acc = jnp.zeros((cout, hw), jnp.float32)
        k = 0
        for dy in (-1, 0, 1):
            for dx in (-1, 0, 1):
                acc += jnp.dot(w_ref[k], tap(pad_ref, dy, dx, col),
                               preferred_element_type=jnp.float32)
                k += 1
        return acc

    def gn_lrelu(y, c_vec):
        bias, gamma, beta = c_vec[:, 0:1], c_vec[:, 1:2], c_vec[:, 2:3]
        y = y + bias
        cnt = jnp.float32((nf // groups) * hw)
        # Two-pass GroupNorm: lane-reduce over HW, aggregate within groups via
        # a tiny (nf, nf) 0/1 matmul, subtract the mean *before* squaring.
        gsum = jnp.dot(gmat_ref[...], jnp.sum(y, axis=1, keepdims=True),
                       preferred_element_type=jnp.float32)
        yc = y - gsum / cnt
        gvar = jnp.dot(gmat_ref[...], jnp.sum(yc * yc, axis=1, keepdims=True),
                       preferred_element_type=jnp.float32) / cnt
        yn = yc * (lax.rsqrt(gvar + eps) * gamma) + beta
        return jnp.where(yn >= 0, yn, neg_slope * yn)

    # upc1: ConvT(2nf->nf, s=2) as a 3x3 conv over the pre-dilated input
    #       + GroupNorm(16) + LeakyReLU(0.2).   (full HW per program, so no
    #       partial-sum finalize is needed)
    fill_padded(xpad, x_ref[...])
    d1 = gn_lrelu(conv3x3(xpad, w1_ref), c12_ref[0])

    # upc2: ConvT(nf->nf, s=1) + GroupNorm(16) + LeakyReLU(0.2); taps come
    #       straight from the VMEM-resident d1 (no HBM round trip).
    fill_padded(dpad1, d1)
    d2 = gn_lrelu(conv3x3(dpad1, w2_ref), c12_ref[1])

    # upc3: ConvT(nf->nc, s=2) via sub-pixel phases: no dilation zeros, no
    #       degenerate (1, 9nf) MXU matvec.  One (4nc, 4nf)@(4nf, HW) dot.
    fill_padded(dpad2, d2)
    col3 = lax.broadcasted_iota(jnp.int32, (nf, hw), 1) & (w_img - 1)
    taps3 = [tap(dpad2, a, b, col3) for a in (0, 1) for b in (0, 1)]
    t_all = jnp.concatenate(taps3, axis=0)                    # (4nf, HW)
    o_ref[...] = (jnp.dot(wp3_ref[...], t_all,
                          preferred_element_type=jnp.float32)
                  + b3_ref[...]).astype(o_ref.dtype)


# ---------------------------------------------------------------------------
# Weight relayout helpers (XLA glue, tiny)
# ---------------------------------------------------------------------------
def _tap_weights(wt):
    """ConvTranspose2d weight (Cin, Cout, 3, 3) -> (9, Cout, Cin): per-tap
    matrices of the equivalent correlation, tap index k = (dy+1)*3 + (dx+1)."""
    wf = jnp.flip(wt, axis=(2, 3))                            # (Cin, Cout, 3, 3)
    return jnp.transpose(wf, (2, 3, 1, 0)).reshape(9, wt.shape[1], wt.shape[0])


def _phase_weights(wt3):
    """Stride-2 ConvT weight (Cin, nc, 3, 3) -> (4*nc, 4*Cin) sub-pixel matrix.
    Row r = (2*py+px)*nc + cout, column c = (2*a+b)*Cin + cin holds the
    coefficient multiplying input pixel (i+a, j+b) for output (2i+py, 2j+px)."""
    cin, nc = wt3.shape[0], wt3.shape[1]
    wf = jnp.flip(wt3, axis=(2, 3))                           # flipped kernel
    kidx = {(0, 0): 1, (1, 0): 0, (1, 1): 2}                  # (phase, offset) -> tap
    rows = []
    for py in (0, 1):
        for px in (0, 1):
            for co in range(nc):
                cols = []
                for a in (0, 1):
                    for b in (0, 1):
                        if (py, a) in kidx and (px, b) in kidx:
                            cols.append(wf[:, co, kidx[(py, a)], kidx[(px, b)]])
                        else:
                            cols.append(jnp.zeros((cin,), wt3.dtype))
                rows.append(jnp.concatenate(cols))
    return jnp.stack(rows)                                    # (4*nc, 4*Cin)


# ---------------------------------------------------------------------------
# decoder_D forward (Pallas) and pure-JAX reference
# ---------------------------------------------------------------------------
def decoder_D_forward(params, x_nchw):
    groups, eps, slope = 16, 1e-5, 0.2
    n, c_in, h, w = x_nchw.shape
    nf = params["w1"].shape[1]
    nc = params["w3"].shape[1]
    ho, wo = 2 * h, 2 * w                   # spatial size after upc1 / into upc3
    hw = ho * wo
    assert wo & (wo - 1) == 0, "lane column masks assume the image width is a power of 2"

    x = x_nchw.astype(jnp.float32)
    # Stride-2 layer 1 as a stride-1 conv over the zero-dilated input.  Only the
    # (x4 with zeros) activation crosses HBM -- no 9x im2col cols anymore.
    xd = jnp.zeros((n, c_in, ho, wo), jnp.float32).at[:, :, ::2, ::2].set(x)
    xd = xd.reshape(n, c_in, hw)

    w1t = _tap_weights(params["w1"])                          # (9, nf, 2nf)
    w2t = _tap_weights(params["w2"])                          # (9, nf, nf)
    wp3 = _phase_weights(params["w3"])                        # (4nc, 4nf)
    zeros = jnp.zeros_like(params["b1"])
    c12 = jnp.stack([
        jnp.stack([params["b1"], params["g1"], params["be1"], zeros], axis=1),
        jnp.stack([params["b2"], params["g2"], params["be2"], zeros], axis=1)])
    b3 = jnp.tile(params["b3"], 4).reshape(4 * nc, 1)         # bias per phase row
    gmat = params["gmat"]

    kernel = functools.partial(_fused_decoder_kernel, w_img=wo, groups=groups,
                               eps=eps, neg_slope=slope)
    pw = hw + 2 * _PAD

    flops = n * (2 * 9 * hw * (nf * c_in + nf * nf) + 2 * hw * (4 * nc) * (4 * nf))
    bytes_accessed = 4 * (xd.size + w1t.size + w2t.size + wp3.size + c12.size +
                          gmat.size + b3.size + n * 4 * nc * hw)

    phases = pl.pallas_call(
        kernel,
        out_shape=jax.ShapeDtypeStruct((n, 4 * nc, hw), jnp.float32),
        grid_spec=pltpu.PrefetchScalarGridSpec(
            num_scalar_prefetch=0,
            grid=(n,),
            in_specs=[
                pl.BlockSpec((None, c_in, hw), lambda b: (b, 0, 0)),
                pl.BlockSpec((9, nf, c_in), lambda b: (0, 0, 0)),
                pl.BlockSpec((9, nf, nf), lambda b: (0, 0, 0)),
                pl.BlockSpec((4 * nc, 4 * nf), lambda b: (0, 0)),
                pl.BlockSpec((2, nf, 4), lambda b: (0, 0, 0)),
                pl.BlockSpec((nf, nf), lambda b: (0, 0)),
                pl.BlockSpec((4 * nc, 1), lambda b: (0, 0)),
            ],
            out_specs=pl.BlockSpec((None, 4 * nc, hw), lambda b: (b, 0, 0)),
            scratch_shapes=[pltpu.VMEM((c_in, pw), jnp.float32),
                            pltpu.VMEM((nf, pw), jnp.float32),
                            pltpu.VMEM((nf, pw), jnp.float32)]),
        compiler_params=pltpu.CompilerParams(
            dimension_semantics=("parallel",)),
        cost_estimate=pl.CostEstimate(flops=int(flops),
                                      transcendentals=int(2 * nf * n),
                                      bytes_accessed=int(bytes_accessed)),
    )(xd, w1t, w2t, wp3, c12, gmat, b3)

    # Interleave the four sub-pixel phases into the final NCHW image (tiny).
    out = phases.reshape(n, 2, 2, nc, ho, wo).transpose(0, 3, 4, 1, 5, 2)
    return out.reshape(n, nc, 2 * ho, 2 * wo)


def decoder_D_reference(params, x):
    def convt(x, wt, b, stride, op):
        w = jnp.transpose(jnp.flip(wt, axis=(2, 3)), (1, 0, 2, 3))  # OIHW
        y = jax.lax.conv_general_dilated(
            x, w, window_strides=(1, 1),
            padding=((1, 1 + op), (1, 1 + op)),
            lhs_dilation=(stride, stride),
            dimension_numbers=("NCHW", "OIHW", "NCHW"),
            precision=jax.lax.Precision.HIGHEST)
        return y + b.reshape(1, -1, 1, 1)

    def gn_lrelu(y, gamma, beta, groups=16, eps=1e-5, slope=0.2):
        n, c, hh, ww = y.shape
        yg = y.reshape(n, groups, (c // groups) * hh * ww)
        mean = yg.mean(axis=2, keepdims=True)
        var = jnp.mean((yg - mean) ** 2, axis=2, keepdims=True)
        yn = ((yg - mean) / jnp.sqrt(var + eps)).reshape(n, c, hh, ww)
        yn = yn * gamma.reshape(1, c, 1, 1) + beta.reshape(1, c, 1, 1)
        return jnp.where(yn >= 0, yn, slope * yn)

    d1 = gn_lrelu(convt(x, params["w1"], params["b1"], 2, 1),
                  params["g1"], params["be1"])
    d2 = gn_lrelu(convt(d1, params["w2"], params["b2"], 1, 0),
                  params["g2"], params["be2"])
    return convt(d2, params["w3"], params["b3"], 2, 1)


# ---------------------------------------------------------------------------
# Deterministic parameter init (shapes from decoder_D.__init__, nc=1, nf=32)
# ---------------------------------------------------------------------------
def init_decoder_params(key, nc=1, nf=32):
    k1, k2, k3 = jax.random.split(key, 3)

    def conv_t(k, cin, cout):
        kw, kb = jax.random.split(k)
        bound = (cout * 9) ** -0.5
        wt = jax.random.uniform(kw, (cin, cout, 3, 3), jnp.float32, -bound, bound)
        b = jax.random.uniform(kb, (cout,), jnp.float32, -bound, bound)
        return wt, b

    w1, b1 = conv_t(k1, 2 * nf, nf)
    w2, b2 = conv_t(k2, nf, nf)
    w3, b3 = conv_t(k3, nf, nc)
    gid = jnp.arange(nf) // (nf // 16)
    gmat = (gid[:, None] == gid[None, :]).astype(jnp.float32)  # (nf, nf)
    return dict(
        w1=w1, b1=b1, g1=jnp.ones((nf,), jnp.float32), be1=jnp.zeros((nf,), jnp.float32),
        w2=w2, b2=b2, g2=jnp.ones((nf,), jnp.float32), be2=jnp.zeros((nf,), jnp.float32),
        w3=w3, b3=b3, gmat=gmat)


if __name__ == "__main__":
    nc, nf = 1, 32
    batch, H, W = 2, 16, 16

    key = jax.random.PRNGKey(0)
    kx, kp = jax.random.split(key)
    x = jax.random.normal(kx, (batch, 2 * nf, H, W), jnp.float32)
    params = init_decoder_params(kp, nc=nc, nf=nf)

    out = jax.block_until_ready(jax.jit(decoder_D_forward)(params, x))
    assert out.shape == (batch, nc, 4 * H, 4 * W), out.shape

    ref = jax.block_until_ready(decoder_D_reference(params, x))
    assert bool(jnp.allclose(out, ref, atol=3e-3, rtol=3e-3)), (
        float(jnp.max(jnp.abs(out - ref))))

    print("KERNEL_OK")
</pallas_src>

<mosaic_0001>
module attributes {stable_mosaic.version = 11 : i64} {
  func.func @_fused_decoder_kernel(%arg0: i32, %arg1: memref<1x64x1024xf32, #tpu.memory_space<vmem>>, %arg2: memref<9x32x64xf32, #tpu.memory_space<vmem>>, %arg3: memref<9x32x32xf32, #tpu.memory_space<vmem>>, %arg4: memref<4x128xf32, #tpu.memory_space<vmem>>, %arg5: memref<2x32x4xf32, #tpu.memory_space<vmem>>, %arg6: memref<32x32xf32, #tpu.memory_space<vmem>>, %arg7: memref<4x1xf32, #tpu.memory_space<vmem>>, %arg8: memref<1x4x1024xf32, #tpu.memory_space<vmem>>, %arg9: memref<64x1280xf32, #tpu.memory_space<vmem>>, %arg10: memref<32x1280xf32, #tpu.memory_space<vmem>>, %arg11: memref<32x1280xf32, #tpu.memory_space<vmem>>) attributes {dimension_semantics = [#tpu.dimension_semantics<parallel>], iteration_bounds = array<i64: 2>, scalar_prefetch = 0 : i64, scratch_operands = 3 : i64, tpu.core_type = #tpu.core_type<tc>, window_params = [{transform_indices = @transform_0, window_bounds = array<i64: 1, 64, 1024>}, {pipeline_mode = #tpu.pipeline_mode<synchronous>, transform_indices = @transform_1, window_bounds = array<i64: 9, 32, 64>}, {pipeline_mode = #tpu.pipeline_mode<synchronous>, transform_indices = @transform_2, window_bounds = array<i64: 9, 32, 32>}, {pipeline_mode = #tpu.pipeline_mode<synchronous>, transform_indices = @transform_3, window_bounds = array<i64: 4, 128>}, {pipeline_mode = #tpu.pipeline_mode<synchronous>, transform_indices = @transform_4, window_bounds = array<i64: 2, 32, 4>}, {pipeline_mode = #tpu.pipeline_mode<synchronous>, transform_indices = @transform_5, window_bounds = array<i64: 32, 32>}, {pipeline_mode = #tpu.pipeline_mode<synchronous>, transform_indices = @transform_6, window_bounds = array<i64: 4, 1>}, {transform_indices = @transform_7, window_bounds = array<i64: 1, 4, 1024>}]} {
    %c0 = arith.constant 0 : index
    %c0_0 = arith.constant 0 : index
    %c0_1 = arith.constant 0 : index
    %0 = vector.load %arg1[%c0, %c0_0, %c0_1] : memref<1x64x1024xf32, #tpu.memory_space<vmem>>, vector<1x64x1024xf32>
    %1 = vector.shape_cast %0 : vector<1x64x1024xf32> to vector<64x1024xf32>
    %cst = arith.constant 0.000000e+00 : f32
    %2 = vector.broadcast %cst : f32 to vector<64x128xf32>
    %c0_2 = arith.constant 0 : index
    %c0_3 = arith.constant 0 : index
    %3 = vector.load %arg9[%c0_2, %c0_3] : memref<64x1280xf32, #tpu.memory_space<vmem>>, vector<64x128xf32>
    tpu.vector_store %arg9[%c0_2, %c0_3], %2 {strides = array<i32>} : memref<64x1280xf32, #tpu.memory_space<vmem>>, vector<64x128xf32>,
    %cst_4 = arith.constant 0.000000e+00 : f32
    %4 = vector.broadcast %cst_4 : f32 to vector<64x128xf32>
    %c0_5 = arith.constant 0 : index
    %c1152 = arith.constant 1152 : index
    %5 = vector.load %arg9[%c0_5, %c1152] : memref<64x1280xf32, #tpu.memory_space<vmem>>, vector<64x128xf32>
    tpu.vector_store %arg9[%c0_5, %c1152], %4 {strides = array<i32>} : memref<64x1280xf32, #tpu.memory_space<vmem>>, vector<64x128xf32>,
    %c0_6 = arith.constant 0 : index
    %c128 = arith.constant 128 : index
    %6 = vector.load %arg9[%c0_6, %c128] : memref<64x1280xf32, #tpu.memory_space<vmem>>, vector<64x1024xf32>
    tpu.vector_store %arg9[%c0_6, %c128], %1 {strides = array<i32>} : memref<64x1280xf32, #tpu.memory_space<vmem>>, vector<64x1024xf32>,
    %7 = tpu.iota {dimensions = array<i32: 1>} : vector<64x1024xi32>
    %c31_i32 = arith.constant 31 : i32
    %8 = vector.broadcast %c31_i32 : i32 to vector<64x1024xi32>
    %9 = arith.andi %7, %8 : vector<64x1024xi32>
    %cst_7 = arith.constant 0.000000e+00 : f32
    %10 = vector.broadcast %cst_7 : f32 to vector<32x1024xf32>
    %c0_8 = arith.constant 0 : index
    %c0_9 = arith.constant 0 : index
    %c0_10 = arith.constant 0 : index
    %11 = vector.load %arg2[%c0_8, %c0_9, %c0_10] : memref<9x32x64xf32, #tpu.memory_space<vmem>>, vector<1x32x64xf32>
    %12 = vector.shape_cast %11 : vector<1x32x64xf32> to vector<32x64xf32>
    %c0_11 = arith.constant 0 : index
    %c95 = arith.constant 95 : index
    %13 = vector.load %arg9[%c0_11, %c95] : memref<64x1280xf32, #tpu.memory_space<vmem>>, vector<64x1024xf32>
    %c0_i32 = arith.constant 0 : i32
    %14 = vector.broadcast %c0_i32 : i32 to vector<64x1024xi32>
    %15 = arith.cmpi sgt, %9, %14 : vector<64x1024xi32>
    %cst_12 = arith.constant 0.000000e+00 : f32
    %16 = vector.broadcast %cst_12 : f32 to vector<64x1024xf32>
    %17 = arith.select %15, %13, %16 : vector<64x1024xi1>, vector<64x1024xf32>
    %cst_13 = arith.constant dense<0.000000e+00> : vector<32x1024xf32>
    %18 = tpu.matmul %12, %17, %cst_13 {dimension_numbers = #tpu.dot_dimension_numbers<[1], [0], [0], [1], [0, 0, 1, 1], [], []>} : vector<32x64xf32>, vector<64x1024xf32>, vector<32x1024xf32> -> vector<32x1024xf32>
    %19 = arith.addf %10, %18 : vector<32x1024xf32>
    %c1 = arith.constant 1 : index
    %c0_14 = arith.constant 0 : index
    %c0_15 = arith.constant 0 : index
    %20 = vector.load %arg2[%c1, %c0_14, %c0_15] : memref<9x32x64xf32, #tpu.memory_space<vmem>>, vector<1x32x64xf32>
    %21 = vector.shape_cast %20 : vector<1x32x64xf32> to vector<32x64xf32>
    %c0_16 = arith.constant 0 : index
    %c96 = arith.constant 96 : index
    %22 = vector.load %arg9[%c0_16, %c96] : memref<64x1280xf32, #tpu.memory_space<vmem>>, vector<64x1024xf32>
    %cst_17 = arith.constant dense<0.000000e+00> : vector<32x1024xf32>
    %23 = tpu.matmul %21, %22, %cst_17 {dimension_numbers = #tpu.dot_dimension_numbers<[1], [0], [0], [1], [0, 0, 1, 1], [], []>} : vector<32x64xf32>, vector<64x1024xf32>, vector<32x1024xf32> -> vector<32x1024xf32>
    %24 = arith.addf %19, %23 : vector<32x1024xf32>
    %c2 = arith.constant 2 : index
    %c0_18 = arith.constant 0 : index
    %c0_19 = arith.constant 0 : index
    %25 = vector.load %arg2[%c2, %c0_18, %c0_19] : memref<9x32x64xf32, #tpu.memory_space<vmem>>, vector<1x32x64xf32>
    %26 = vector.shape_cast %25 : vector<1x32x64xf32> to vector<32x64xf32>
    %c0_20 = arith.constant 0 : index
    %c97 = arith.constant 97 : index
    %27 = vector.load %arg9[%c0_20, %c97] : memref<64x1280xf32, #tpu.memory_space<vmem>>, vector<64x1024xf32>
    %c31_i32_21 = arith.constant 31 : i32
    %28 = vector.broadcast %c31_i32_21 : i32 to vector<64x1024xi32>
    %29 = arith.cmpi slt, %9, %28 : vector<64x1024xi32>
    %cst_22 = arith.constant 0.000000e+00 : f32
    %30 = vector.broadcast %cst_22 : f32 to vector<64x1024xf32>
    %31 = arith.select %29, %27, %30 : vector<64x1024xi1>, vector<64x1024xf32>
    %cst_23 = arith.constant dense<0.000000e+00> : vector<32x1024xf32>
    %32 = tpu.matmul %26, %31, %cst_23 {dimension_numbers = #tpu.dot_dimension_numbers<[1], [0], [0], [1], [0, 0, 1, 1], [], []>} : vector<32x64xf32>, vector<64x1024xf32>, vector<32x1024xf32> -> vector<32x1024xf32>
    %33 = arith.addf %24, %32 : vector<32x1024xf32>
    %c3 = arith.constant 3 : index
    %c0_24 = arith.constant 0 : index
    %c0_25 = arith.constant 0 : index
    %34 = vector.load %arg2[%c3, %c0_24, %c0_25] : memref<9x32x64xf32, #tpu.memory_space<vmem>>, vector<1x32x64xf32>
    %35 = vector.shape_cast %34 : vector<1x32x64xf32> to vector<32x64xf32>
    %c0_26 = arith.constant 0 : index
    %c127 = arith.constant 127 : index
    %36 = vector.load %arg9[%c0_26, %c127] : memref<64x1280xf32, #tpu.memory_space<vmem>>, vector<64x1024xf32>
    %c0_i32_27 = arith.constant 0 : i32
    %37 = vector.broadcast %c0_i32_27 : i32 to vector<64x1024xi32>
    %38 = arith.cmpi sgt, %9, %37 : vector<64x1024xi32>
    %cst_28 = arith.constant 0.000000e+00 : f32
    %39 = vector.broadcast %cst_28 : f32 to vector<64x1024xf32>
    %40 = arith.select %38, %36, %39 : vector<64x1024xi1>, vector<64x1024xf32>
    %cst_29 = arith.constant dense<0.000000e+00> : vector<32x1024xf32>
    %41 = tpu.matmul %35, %40, %cst_29 {dimension_numbers = #tpu.dot_dimension_numbers<[1], [0], [0], [1], [0, 0, 1, 1], [], []>} : vector<32x64xf32>, vector<64x1024xf32>, vector<32x1024xf32> -> vector<32x1024xf32>
    %42 = arith.addf %33, %41 : vector<32x1024xf32>
    %c4 = arith.constant 4 : index
    %c0_30 = arith.constant 0 : index
    %c0_31 = arith.constant 0 : index
    %43 = vector.load %arg2[%c4, %c0_30, %c0_31] : memref<9x32x64xf32, #tpu.memory_space<vmem>>, vector<1x32x64xf32>
    %44 = vector.shape_cast %43 : vector<1x32x64xf32> to vector<32x64xf32>
    %c0_32 = arith.constant 0 : index
    %c128_33 = arith.constant 128 : index
    %45 = vector.load %arg9[%c0_32, %c128_33] : memref<64x1280xf32, #tpu.memory_space<vmem>>, vector<64x1024xf32>
    %cst_34 = arith.constant dense<0.000000e+00> : vector<32x1024xf32>
    %46 = tpu.matmul %44, %45, %cst_34 {dimension_numbers = #tpu.dot_dimension_numbers<[1], [0], [0], [1], [0, 0, 1, 1], [], []>} : vector<32x64xf32>, vector<64x1024xf32>, vector<32x1024xf32> -> vector<32x1024xf32>
    %47 = arith.addf %42, %46 : vector<32x1024xf32>
    %c5 = arith.constant 5 : index
    %c0_35 = arith.constant 0 : index
    %c0_36 = arith.constant 0 : index
    %48 = vector.load %arg2[%c5, %c0_35, %c0_36] : memref<9x32x64xf32, #tpu.memory_space<vmem>>, vector<1x32x64xf32>
    %49 = vector.shape_cast %48 : vector<1x32x64xf32> to vector<32x64xf32>
    %c0_37 = arith.constant 0 : index
    %c129 = arith.constant 129 : index
    %50 = vector.load %arg9[%c0_37, %c129] : memref<64x1280xf32, #tpu.memory_space<vmem>>, vector<64x1024xf32>
    %c31_i32_38 = arith.constant 31 : i32
    %51 = vector.broadcast %c31_i32_38 : i32 to vector<64x1024xi32>
    %52 = arith.cmpi slt, %9, %51 : vector<64x1024xi32>
    %cst_39 = arith.constant 0.000000e+00 : f32
    %53 = vector.broadcast %cst_39 : f32 to vector<64x1024xf32>
    %54 = arith.select %52, %50, %53 : vector<64x1024xi1>, vector<64x1024xf32>
    %cst_40 = arith.constant dense<0.000000e+00> : vector<32x1024xf32>
    %55 = tpu.matmul %49, %54, %cst_40 {dimension_numbers = #tpu.dot_dimension_numbers<[1], [0], [0], [1], [0, 0, 1, 1], [], []>} : vector<32x64xf32>, vector<64x1024xf32>, vector<32x1024xf32> -> vector<32x1024xf32>
    %56 = arith.addf %47, %55 : vector<32x1024xf32>
    %c6 = arith.constant 6 : index
    %c0_41 = arith.constant 0 : index
    %c0_42 = arith.constant 0 : index
    %57 = vector.load %arg2[%c6, %c0_41, %c0_42] : memref<9x32x64xf32, #tpu.memory_space<vmem>>, vector<1x32x64xf32>
    %58 = vector.shape_cast %57 : vector<1x32x64xf32> to vector<32x64xf32>
    %c0_43 = arith.constant 0 : index
    %c159 = arith.constant 159 : index
    %59 = vector.load %arg9[%c0_43, %c159] : memref<64x1280xf32, #tpu.memory_space<vmem>>, vector<64x1024xf32>
    %c0_i32_44 = arith.constant 0 : i32
    %60 = vector.broadcast %c0_i32_44 : i32 to vector<64x1024xi32>
    %61 = arith.cmpi sgt, %9, %60 : vector<64x1024xi32>
    %cst_45 = arith.constant 0.000000e+00 : f32
    %62 = vector.broadcast %cst_45 : f32 to vector<64x1024xf32>
    %63 = arith.select %61, %59, %62 : vector<64x1024xi1>, vector<64x1024xf32>
    %cst_46 = arith.constant dense<0.000000e+00> : vector<32x1024xf32>
    %64 = tpu.matmul %58, %63, %cst_46 {dimension_numbers = #tpu.dot_dimension_numbers<[1], [0], [0], [1], [0, 0, 1, 1], [], []>} : vector<32x64xf32>, vector<64x1024xf32>, vector<32x1024xf32> -> vector<32x1024xf32>
    %65 = arith.addf %56, %64 : vector<32x1024xf32>
    %c7 = arith.constant 7 : index
    %c0_47 = arith.constant 0 : index
    %c0_48 = arith.constant 0 : index
    %66 = vector.load %arg2[%c7, %c0_47, %c0_48] : memref<9x32x64xf32, #tpu.memory_space<vmem>>, vector<1x32x64xf32>
    %67 = vector.shape_cast %66 : vector<1x32x64xf32> to vector<32x64xf32>
    %c0_49 = arith.constant 0 : index
    %c160 = arith.constant 160 : index
    %68 = vector.load %arg9[%c0_49, %c160] : memref<64x1280xf32, #tpu.memory_space<vmem>>, vector<64x1024xf32>
    %cst_50 = arith.constant dense<0.000000e+00> : vector<32x1024xf32>
    %69 = tpu.matmul %67, %68, %cst_50 {dimension_numbers = #tpu.dot_dimension_numbers<[1], [0], [0], [1], [0, 0, 1, 1], [], []>} : vector<32x64xf32>, vector<64x1024xf32>, vector<32x1024xf32> -> vector<32x1024xf32>
    %70 = arith.addf %65, %69 : vector<32x1024xf32>
    %c8 = arith.constant 8 : index
    %c0_51 = arith.constant 0 : index
    %c0_52 = arith.constant 0 : index
    %71 = vector.load %arg2[%c8, %c0_51, %c0_52] : memref<9x32x64xf32, #tpu.memory_space<vmem>>, vector<1x32x64xf32>
    %72 = vector.shape_cast %71 : vector<1x32x64xf32> to vector<32x64xf32>
    %c0_53 = arith.constant 0 : index
    %c161 = arith.constant 161 : index
    %73 = vector.load %arg9[%c0_53, %c161] : memref<64x1280xf32, #tpu.memory_space<vmem>>, vector<64x1024xf32>
    %c31_i32_54 = arith.constant 31 : i32
    %74 = vector.broadcast %c31_i32_54 : i32 to vector<64x1024xi32>
    %75 = arith.cmpi slt, %9, %74 : vector<64x1024xi32>
    %cst_55 = arith.constant 0.000000e+00 : f32
    %76 = vector.broadcast %cst_55 : f32 to vector<64x1024xf32>
    %77 = arith.select %75, %73, %76 : vector<64x1024xi1>, vector<64x1024xf32>
    %cst_56 = arith.constant dense<0.000000e+00> : vector<32x1024xf32>
    %78 = tpu.matmul %72, %77, %cst_56 {dimension_numbers = #tpu.dot_dimension_numbers<[1], [0], [0], [1], [0, 0, 1, 1], [], []>} : vector<32x64xf32>, vector<64x1024xf32>, vector<32x1024xf32> -> vector<32x1024xf32>
    %79 = arith.addf %70, %78 : vector<32x1024xf32>
    %c0_57 = arith.constant 0 : index
    %c0_58 = arith.constant 0 : index
    %c0_59 = arith.constant 0 : index
    %80 = vector.load %arg5[%c0_57, %c0_58, %c0_59] : memref<2x32x4xf32, #tpu.memory_space<vmem>>, vector<1x32x4xf32>
    %81 = vector.shape_cast %80 : vector<1x32x4xf32> to vector<32x4xf32>
    %82 = vector.extract_strided_slice %81 {offsets = [0, 0], sizes = [32, 1], strides = [1, 1]} : vector<32x4xf32> to vector<32x1xf32>
    %83 = vector.extract_strided_slice %81 {offsets = [0, 1], sizes = [32, 1], strides = [1, 1]} : vector<32x4xf32> to vector<32x1xf32>
    %84 = vector.extract_strided_slice %81 {offsets = [0, 2], sizes = [32, 1], strides = [1, 1]} : vector<32x4xf32> to vector<32x1xf32>
    %85 = vector.broadcast %82 : vector<32x1xf32> to vector<32x1024xf32>
    %86 = arith.addf %79, %85 : vector<32x1024xf32>
    %c0_60 = arith.constant 0 : index
    %c0_61 = arith.constant 0 : index
    %87 = vector.load %arg6[%c0_60, %c0_61] : memref<32x32xf32, #tpu.memory_space<vmem>>, vector<32x32xf32>
    %cst_62 = arith.constant dense<0.000000e+00> : vector<32xf32>
    %88 = vector.multi_reduction <add>, %86, %cst_62 [1] : vector<32x1024xf32> to vector<32xf32>
    %89 = vector.shape_cast %88 : vector<32xf32> to vector<32x1xf32>
    %cst_63 = arith.constant dense<0.000000e+00> : vector<32x1xf32>
    %90 = tpu.matmul %87, %89, %cst_63 {dimension_numbers = #tpu.dot_dimension_numbers<[1], [0], [0], [1], [0, 0, 1, 1], [], []>} : vector<32x32xf32>, vector<32x1xf32>, vector<32x1xf32> -> vector<32x1xf32>
    %cst_64 = arith.constant 2.048000e+03 : f32
    %91 = vector.broadcast %cst_64 : f32 to vector<32x1xf32>
    %92 = arith.divf %90, %91 : vector<32x1xf32>
    %93 = vector.broadcast %92 : vector<32x1xf32> to vector<32x1024xf32>
    %94 = arith.subf %86, %93 : vector<32x1024xf32>
    %c0_65 = arith.constant 0 : index
    %c0_66 = arith.constant 0 : index
    %95 = vector.load %arg6[%c0_65, %c0_66] : memref<32x32xf32, #tpu.memory_space<vmem>>, vector<32x32xf32>
    %96 = arith.mulf %94, %94 : vector<32x1024xf32>
    %cst_67 = arith.constant dense<0.000000e+00> : vector<32xf32>
    %97 = vector.multi_reduction <add>, %96, %cst_67 [1] : vector<32x1024xf32> to vector<32xf32>
    %98 = vector.shape_cast %97 : vector<32xf32> to vector<32x1xf32>
    %cst_68 = arith.constant dense<0.000000e+00> : vector<32x1xf32>
    %99 = tpu.matmul %95, %98, %cst_68 {dimension_numbers = #tpu.dot_dimension_numbers<[1], [0], [0], [1], [0, 0, 1, 1], [], []>} : vector<32x32xf32>, vector<32x1xf32>, vector<32x1xf32> -> vector<32x1xf32>
    %cst_69 = arith.constant 2.048000e+03 : f32
    %100 = vector.broadcast %cst_69 : f32 to vector<32x1xf32>
    %101 = arith.divf %99, %100 : vector<32x1xf32>
    %cst_70 = arith.constant 9.99999974E-6 : f32
    %102 = vector.broadcast %cst_70 : f32 to vector<32x1xf32>
    %103 = arith.addf %101, %102 : vector<32x1xf32>
    %104 = math.rsqrt %103 : vector<32x1xf32>
    %105 = arith.mulf %104, %83 : vector<32x1xf32>
    %106 = vector.broadcast %105 : vector<32x1xf32> to vector<32x1024xf32>
    %107 = arith.mulf %94, %106 : vector<32x1024xf32>
    %108 = vector.broadcast %84 : vector<32x1xf32> to vector<32x1024xf32>
    %109 = arith.addf %107, %108 : vector<32x1024xf32>
    %cst_71 = arith.constant 0.000000e+00 : f32
    %110 = vector.broadcast %cst_71 : f32 to vector<32x1024xf32>
    %111 = arith.cmpf oge, %109, %110 : vector<32x1024xf32>
    %cst_72 = arith.constant 2.000000e-01 : f32
    %112 = vector.broadcast %cst_72 : f32 to vector<32x1024xf32>
    %113 = arith.mulf %112, %109 : vector<32x1024xf32>
    %114 = arith.select %111, %109, %113 : vector<32x1024xi1>, vector<32x1024xf32>
    %cst_73 = arith.constant 0.000000e+00 : f32
    %115 = vector.broadcast %cst_73 : f32 to vector<32x128xf32>
    %c0_74 = arith.constant 0 : index
    %c0_75 = arith.constant 0 : index
    %116 = vector.load %arg10[%c0_74, %c0_75] : memref<32x1280xf32, #tpu.memory_space<vmem>>, vector<32x128xf32>
    tpu.vector_store %arg10[%c0_74, %c0_75], %115 {strides = array<i32>} : memref<32x1280xf32, #tpu.memory_space<vmem>>, vector<32x128xf32>,
    %cst_76 = arith.constant 0.000000e+00 : f32
    %117 = vector.broadcast %cst_76 : f32 to vector<32x128xf32>
    %c0_77 = arith.constant 0 : index
    %c1152_78 = arith.constant 1152 : index
    %118 = vector.load %arg10[%c0_77, %c1152_78] : memref<32x1280xf32, #tpu.memory_space<vmem>>, vector<32x128xf32>
    tpu.vector_store %arg10[%c0_77, %c1152_78], %117 {strides = array<i32>} : memref<32x1280xf32, #tpu.memory_space<vmem>>, vector<32x128xf32>,
    %c0_79 = arith.constant 0 : index
    %c128_80 = arith.constant 128 : index
    %119 = vector.load %arg10[%c0_79, %c128_80] : memref<32x1280xf32, #tpu.memory_space<vmem>>, vector<32x1024xf32>
    tpu.vector_store %arg10[%c0_79, %c128_80], %114 {strides = array<i32>} : memref<32x1280xf32, #tpu.memory_space<vmem>>, vector<32x1024xf32>,
    %120 = tpu.iota {dimensions = array<i32: 1>} : vector<32x1024xi32>
    %c31_i32_81 = arith.constant 31 : i32
    %121 = vector.broadcast %c31_i32_81 : i32 to vector<32x1024xi32>
    %122 = arith.andi %120, %121 : vector<32x1024xi32>
    %cst_82 = arith.constant 0.000000e+00 : f32
    %123 = vector.broadcast %cst_82 : f32 to vector<32x1024xf32>
    %c0_83 = arith.constant 0 : index
    %c0_84 = arith.constant 0 : index
    %c0_85 = arith.constant 0 : index
    %124 = vector.load %arg3[%c0_83, %c0_84, %c0_85] : memref<9x32x32xf32, #tpu.memory_space<vmem>>, vector<1x32x32xf32>
    %125 = vector.shape_cast %124 : vector<1x32x32xf32> to vector<32x32xf32>
    %c0_86 = arith.constant 0 : index
    %c95_87 = arith.constant 95 : index
    %126 = vector.load %arg10[%c0_86, %c95_87] : memref<32x1280xf32, #tpu.memory_space<vmem>>, vector<32x1024xf32>
    %c0_i32_88 = arith.constant 0 : i32
    %127 = vector.broadcast %c0_i32_88 : i32 to vector<32x1024xi32>
    %128 = arith.cmpi sgt, %122, %127 : vector<32x1024xi32>
    %cst_89 = arith.constant 0.000000e+00 : f32
    %129 = vector.broadcast %cst_89 : f32 to vector<32x1024xf32>
    %130 = arith.select %128, %126, %129 : vector<32x1024xi1>, vector<32x1024xf32>
    %cst_90 = arith.constant dense<0.000000e+00> : vector<32x1024xf32>
    %131 = tpu.matmul %125, %130, %cst_90 {dimension_numbers = #tpu.dot_dimension_numbers<[1], [0], [0], [1], [0, 0, 1, 1], [], []>} : vector<32x32xf32>, vector<32x1024xf32>, vector<32x1024xf32> -> vector<32x1024xf32>
    %132 = arith.addf %123, %131 : vector<32x1024xf32>
    %c1_91 = arith.constant 1 : index
    %c0_92 = arith.constant 0 : index
    %c0_93 = arith.constant 0 : index
    %133 = vector.load %arg3[%c1_91, %c0_92, %c0_93] : memref<9x32x32xf32, #tpu.memory_space<vmem>>, vector<1x32x32xf32>
    %134 = vector.shape_cast %133 : vector<1x32x32xf32> to vector<32x32xf32>
    %c0_94 = arith.constant 0 : index
    %c96_95 = arith.constant 96 : index
    %135 = vector.load %arg10[%c0_94, %c96_95] : memref<32x1280xf32, #tpu.memory_space<vmem>>, vector<32x1024xf32>
    %cst_96 = arith.constant dense<0.000000e+00> : vector<32x1024xf32>
    %136 = tpu.matmul %134, %135, %cst_96 {dimension_numbers = #tpu.dot_dimension_numbers<[1], [0], [0], [1], [0, 0, 1, 1], [], []>} : vector<32x32xf32>, vector<32x1024xf32>, vector<32x1024xf32> -> vector<32x1024xf32>
    %137 = arith.addf %132, %136 : vector<32x1024xf32>
    %c2_97 = arith.constant 2 : index
    %c0_98 = arith.constant 0 : index
    %c0_99 = arith.constant 0 : index
    %138 = vector.load %arg3[%c2_97, %c0_98, %c0_99] : memref<9x32x32xf32, #tpu.memory_space<vmem>>, vector<1x32x32xf32>
    %139 = vector.shape_cast %138 : vector<1x32x32xf32> to vector<32x32xf32>
    %c0_100 = arith.constant 0 : index
    %c97_101 = arith.constant 97 : index
    %140 = vector.load %arg10[%c0_100, %c97_101] : memref<32x1280xf32, #tpu.memory_space<vmem>>, vector<32x1024xf32>
    %c31_i32_102 = arith.constant 31 : i32
    %141 = vector.broadcast %c31_i32_102 : i32 to vector<32x1024xi32>
    %142 = arith.cmpi slt, %122, %141 : vector<32x1024xi32>
    %cst_103 = arith.constant 0.000000e+00 : f32
    %143 = vector.broadcast %cst_103 : f32 to vector<32x1024xf32>
    %144 = arith.select %142, %140, %143 : vector<32x1024xi1>, vector<32x1024xf32>
    %cst_104 = arith.constant dense<0.000000e+00> : vector<32x1024xf32>
    %145 = tpu.matmul %139, %144, %cst_104 {dimension_numbers = #tpu.dot_dimension_numbers<[1], [0], [0], [1], [0, 0, 1, 1], [], []>} : vector<32x32xf32>, vector<32x1024xf32>, vector<32x1024xf32> -> vector<32x1024xf32>
    %146 = arith.addf %137, %145 : vector<32x1024xf32>
    %c3_105 = arith.constant 3 : index
    %c0_106 = arith.constant 0 : index
    %c0_107 = arith.constant 0 : index
    %147 = vector.load %arg3[%c3_105, %c0_106, %c0_107] : memref<9x32x32xf32, #tpu.memory_space<vmem>>, vector<1x32x32xf32>
    %148 = vector.shape_cast %147 : vector<1x32x32xf32> to vector<32x32xf32>
    %c0_108 = arith.constant 0 : index
    %c127_109 = arith.constant 127 : index
    %149 = vector.load %arg10[%c0_108, %c127_109] : memref<32x1280xf32, #tpu.memory_space<vmem>>, vector<32x1024xf32>
    %c0_i32_110 = arith.constant 0 : i32
    %150 = vector.broadcast %c0_i32_110 : i32 to vector<32x1024xi32>
    %151 = arith.cmpi sgt, %122, %150 : vector<32x1024xi32>
    %cst_111 = arith.constant 0.000000e+00 : f32
    %152 = vector.broadcast %cst_111 : f32 to vector<32x1024xf32>
    %153 = arith.select %151, %149, %152 : vector<32x1024xi1>, vector<32x1024xf32>
    %cst_112 = arith.constant dense<0.000000e+00> : vector<32x1024xf32>
    %154 = tpu.matmul %148, %153, %cst_112 {dimension_numbers = #tpu.dot_dimension_numbers<[1], [0], [0], [1], [0, 0, 1, 1], [], []>} : vector<32x32xf32>, vector<32x1024xf32>, vector<32x1024xf32> -> vector<32x1024xf32>
    %155 = arith.addf %146, %154 : vector<32x1024xf32>
    %c4_113 = arith.constant 4 : index
    %c0_114 = arith.constant 0 : index
    %c0_115 = arith.constant 0 : index
    %156 = vector.load %arg3[%c4_113, %c0_114, %c0_115] : memref<9x32x32xf32, #tpu.memory_space<vmem>>, vector<1x32x32xf32>
    %157 = vector.shape_cast %156 : vector<1x32x32xf32> to vector<32x32xf32>
    %c0_116 = arith.constant 0 : index
    %c128_117 = arith.constant 128 : index
    %158 = vector.load %arg10[%c0_116, %c128_117] : memref<32x1280xf32, #tpu.memory_space<vmem>>, vector<32x1024xf32>
    %cst_118 = arith.constant dense<0.000000e+00> : vector<32x1024xf32>
    %159 = tpu.matmul %157, %158, %cst_118 {dimension_numbers = #tpu.dot_dimension_numbers<[1], [0], [0], [1], [0, 0, 1, 1], [], []>} : vector<32x32xf32>, vector<32x1024xf32>, vector<32x1024xf32> -> vector<32x1024xf32>
    %160 = arith.addf %155, %159 : vector<32x1024xf32>
    %c5_119 = arith.constant 5 : index
    %c0_120 = arith.constant 0 : index
    %c0_121 = arith.constant 0 : index
    %161 = vector.load %arg3[%c5_119, %c0_120, %c0_121] : memref<9x32x32xf32, #tpu.memory_space<vmem>>, vector<1x32x32xf32>
    %162 = vector.shape_cast %161 : vector<1x32x32xf32> to vector<32x32xf32>
    %c0_122 = arith.constant 0 : index
    %c129_123 = arith.constant 129 : index
    %163 = vector.load %arg10[%c0_122, %c129_123] : memref<32x1280xf32, #tpu.memory_space<vmem>>, vector<32x1024xf32>
    %c31_i32_124 = arith.constant 31 : i32
    %164 = vector.broadcast %c31_i32_124 : i32 to vector<32x1024xi32>
    %165 = arith.cmpi slt, %122, %164 : vector<32x1024xi32>
    %cst_125 = arith.constant 0.000000e+00 : f32
    %166 = vector.broadcast %cst_125 : f32 to vector<32x1024xf32>
    %167 = arith.select %165, %163, %166 : vector<32x1024xi1>, vector<32x1024xf32>
    %cst_126 = arith.constant dense<0.000000e+00> : vector<32x1024xf32>
    %168 = tpu.matmul %162, %167, %cst_126 {dimension_numbers = #tpu.dot_dimension_numbers<[1], [0], [0], [1], [0, 0, 1, 1], [], []>} : vector<32x32xf32>, vector<32x1024xf32>, vector<32x1024xf32> -> vector<32x1024xf32>
    %169 = arith.addf %160, %168 : vector<32x1024xf32>
    %c6_127 = arith.constant 6 : index
    %c0_128 = arith.constant 0 : index
    %c0_129 = arith.constant 0 : index
    %170 = vector.load %arg3[%c6_127, %c0_128, %c0_129] : memref<9x32x32xf32, #tpu.memory_space<vmem>>, vector<1x32x32xf32>
    %171 = vector.shape_cast %170 : vector<1x32x32xf32> to vector<32x32xf32>
    %c0_130 = arith.constant 0 : index
    %c159_131 = arith.constant 159 : index
    %172 = vector.load %arg10[%c0_130, %c159_131] : memref<32x1280xf32, #tpu.memory_space<vmem>>, vector<32x1024xf32>
    %c0_i32_132 = arith.constant 0 : i32
    %173 = vector.broadcast %c0_i32_132 : i32 to vector<32x1024xi32>
    %174 = arith.cmpi sgt, %122, %173 : vector<32x1024xi32>
    %cst_133 = arith.constant 0.000000e+00 : f32
    %175 = vector.broadcast %cst_133 : f32 to vector<32x1024xf32>
    %176 = arith.select %174, %172, %175 : vector<32x1024xi1>, vector<32x1024xf32>
    %cst_134 = arith.constant dense<0.000000e+00> : vector<32x1024xf32>
    %177 = tpu.matmul %171, %176, %cst_134 {dimension_numbers = #tpu.dot_dimension_numbers<[1], [0], [0], [1], [0, 0, 1, 1], [], []>} : vector<32x32xf32>, vector<32x1024xf32>, vector<32x1024xf32> -> vector<32x1024xf32>
    %178 = arith.addf %169, %177 : vector<32x1024xf32>
    %c7_135 = arith.constant 7 : index
    %c0_136 = arith.constant 0 : index
    %c0_137 = arith.constant 0 : index
    %179 = vector.load %arg3[%c7_135, %c0_136, %c0_137] : memref<9x32x32xf32, #tpu.memory_space<vmem>>, vector<1x32x32xf32>
    %180 = vector.shape_cast %179 : vector<1x32x32xf32> to vector<32x32xf32>
    %c0_138 = arith.constant 0 : index
    %c160_139 = arith.constant 160 : index
    %181 = vector.load %arg10[%c0_138, %c160_139] : memref<32x1280xf32, #tpu.memory_space<vmem>>, vector<32x1024xf32>
    %cst_140 = arith.constant dense<0.000000e+00> : vector<32x1024xf32>
    %182 = tpu.matmul %180, %181, %cst_140 {dimension_numbers = #tpu.dot_dimension_numbers<[1], [0], [0], [1], [0, 0, 1, 1], [], []>} : vector<32x32xf32>, vector<32x1024xf32>, vector<32x1024xf32> -> vector<32x1024xf32>
    %183 = arith.addf %178, %182 : vector<32x1024xf32>
    %c8_141 = arith.constant 8 : index
    %c0_142 = arith.constant 0 : index
    %c0_143 = arith.constant 0 : index
    %184 = vector.load %arg3[%c8_141, %c0_142, %c0_143] : memref<9x32x32xf32, #tpu.memory_space<vmem>>, vector<1x32x32xf32>
    %185 = vector.shape_cast %184 : vector<1x32x32xf32> to vector<32x32xf32>
    %c0_144 = arith.constant 0 : index
    %c161_145 = arith.constant 161 : index
    %186 = vector.load %arg10[%c0_144, %c161_145] : memref<32x1280xf32, #tpu.memory_space<vmem>>, vector<32x1024xf32>
    %c31_i32_146 = arith.constant 31 : i32
    %187 = vector.broadcast %c31_i32_146 : i32 to vector<32x1024xi32>
    %188 = arith.cmpi slt, %122, %187 : vector<32x1024xi32>
    %cst_147 = arith.constant 0.000000e+00 : f32
    %189 = vector.broadcast %cst_147 : f32 to vector<32x1024xf32>
    %190 = arith.select %188, %186, %189 : vector<32x1024xi1>, vector<32x1024xf32>
    %cst_148 = arith.constant dense<0.000000e+00> : vector<32x1024xf32>
    %191 = tpu.matmul %185, %190, %cst_148 {dimension_numbers = #tpu.dot_dimension_numbers<[1], [0], [0], [1], [0, 0, 1, 1], [], []>} : vector<32x32xf32>, vector<32x1024xf32>, vector<32x1024xf32> -> vector<32x1024xf32>
    %192 = arith.addf %183, %191 : vector<32x1024xf32>
    %c1_149 = arith.constant 1 : index
    %c0_150 = arith.constant 0 : index
    %c0_151 = arith.constant 0 : index
    %193 = vector.load %arg5[%c1_149, %c0_150, %c0_151] : memref<2x32x4xf32, #tpu.memory_space<vmem>>, vector<1x32x4xf32>
    %194 = vector.shape_cast %193 : vector<1x32x4xf32> to vector<32x4xf32>
    %195 = vector.extract_strided_slice %194 {offsets = [0, 0], sizes = [32, 1], strides = [1, 1]} : vector<32x4xf32> to vector<32x1xf32>
    %196 = vector.extract_strided_slice %194 {offsets = [0, 1], sizes = [32, 1], strides = [1, 1]} : vector<32x4xf32> to vector<32x1xf32>
    %197 = vector.extract_strided_slice %194 {offsets = [0, 2], sizes = [32, 1], strides = [1, 1]} : vector<32x4xf32> to vector<32x1xf32>
    %198 = vector.broadcast %195 : vector<32x1xf32> to vector<32x1024xf32>
    %199 = arith.addf %192, %198 : vector<32x1024xf32>
    %c0_152 = arith.constant 0 : index
    %c0_153 = arith.constant 0 : index
    %200 = vector.load %arg6[%c0_152, %c0_153] : memref<32x32xf32, #tpu.memory_space<vmem>>, vector<32x32xf32>
    %cst_154 = arith.constant dense<0.000000e+00> : vector<32xf32>
    %201 = vector.multi_reduction <add>, %199, %cst_154 [1] : vector<32x1024xf32> to vector<32xf32>
    %202 = vector.shape_cast %201 : vector<32xf32> to vector<32x1xf32>
    %cst_155 = arith.constant dense<0.000000e+00> : vector<32x1xf32>
    %203 = tpu.matmul %200, %202, %cst_155 {dimension_numbers = #tpu.dot_dimension_numbers<[1], [0], [0], [1], [0, 0, 1, 1], [], []>} : vector<32x32xf32>, vector<32x1xf32>, vector<32x1xf32> -> vector<32x1xf32>
    %cst_156 = arith.constant 2.048000e+03 : f32
    %204 = vector.broadcast %cst_156 : f32 to vector<32x1xf32>
    %205 = arith.divf %203, %204 : vector<32x1xf32>
    %206 = vector.broadcast %205 : vector<32x1xf32> to vector<32x1024xf32>
    %207 = arith.subf %199, %206 : vector<32x1024xf32>
    %c0_157 = arith.constant 0 : index
    %c0_158 = arith.constant 0 : index
    %208 = vector.load %arg6[%c0_157, %c0_158] : memref<32x32xf32, #tpu.memory_space<vmem>>, vector<32x32xf32>
    %209 = arith.mulf %207, %207 : vector<32x1024xf32>
    %cst_159 = arith.constant dense<0.000000e+00> : vector<32xf32>
    %210 = vector.multi_reduction <add>, %209, %cst_159 [1] : vector<32x1024xf32> to vector<32xf32>
    %211 = vector.shape_cast %210 : vector<32xf32> to vector<32x1xf32>
    %cst_160 = arith.constant dense<0.000000e+00> : vector<32x1xf32>
    %212 = tpu.matmul %208, %211, %cst_160 {dimension_numbers = #tpu.dot_dimension_numbers<[1], [0], [0], [1], [0, 0, 1, 1], [], []>} : vector<32x32xf32>, vector<32x1xf32>, vector<32x1xf32> -> vector<32x1xf32>
    %cst_161 = arith.constant 2.048000e+03 : f32
    %213 = vector.broadcast %cst_161 : f32 to vector<32x1xf32>
    %214 = arith.divf %212, %213 : vector<32x1xf32>
    %cst_162 = arith.constant 9.99999974E-6 : f32
    %215 = vector.broadcast %cst_162 : f32 to vector<32x1xf32>
    %216 = arith.addf %214, %215 : vector<32x1xf32>
    %217 = math.rsqrt %216 : vector<32x1xf32>
    %218 = arith.mulf %217, %196 : vector<32x1xf32>
    %219 = vector.broadcast %218 : vector<32x1xf32> to vector<32x1024xf32>
    %220 = arith.mulf %207, %219 : vector<32x1024xf32>
    %221 = vector.broadcast %197 : vector<32x1xf32> to vector<32x1024xf32>
    %222 = arith.addf %220, %221 : vector<32x1024xf32>
    %cst_163 = arith.constant 0.000000e+00 : f32
    %223 = vector.broadcast %cst_163 : f32 to vector<32x1024xf32>
    %224 = arith.cmpf oge, %222, %223 : vector<32x1024xf32>
    %cst_164 = arith.constant 2.000000e-01 : f32
    %225 = vector.broadcast %cst_164 : f32 to vector<32x1024xf32>
    %226 = arith.mulf %225, %222 : vector<32x1024xf32>
    %227 = arith.select %224, %222, %226 : vector<32x1024xi1>, vector<32x1024xf32>
    %cst_165 = arith.constant 0.000000e+00 : f32
    %228 = vector.broadcast %cst_165 : f32 to vector<32x128xf32>
    %c0_166 = arith.constant 0 : index
    %c0_167 = arith.constant 0 : index
    %229 = vector.load %arg11[%c0_166, %c0_167] : memref<32x1280xf32, #tpu.memory_space<vmem>>, vector<32x128xf32>
    tpu.vector_store %arg11[%c0_166, %c0_167], %228 {strides = array<i32>} : memref<32x1280xf32, #tpu.memory_space<vmem>>, vector<32x128xf32>,
    %cst_168 = arith.constant 0.000000e+00 : f32
    %230 = vector.broadcast %cst_168 : f32 to vector<32x128xf32>
    %c0_169 = arith.constant 0 : index
    %c1152_170 = arith.constant 1152 : index
    %231 = vector.load %arg11[%c0_169, %c1152_170] : memref<32x1280xf32, #tpu.memory_space<vmem>>, vector<32x128xf32>
    tpu.vector_store %arg11[%c0_169, %c1152_170], %230 {strides = array<i32>} : memref<32x1280xf32, #tpu.memory_space<vmem>>, vector<32x128xf32>,
    %c0_171 = arith.constant 0 : index
    %c128_172 = arith.constant 128 : index
    %232 = vector.load %arg11[%c0_171, %c128_172] : memref<32x1280xf32, #tpu.memory_space<vmem>>, vector<32x1024xf32>
    tpu.vector_store %arg11[%c0_171, %c128_172], %227 {strides = array<i32>} : memref<32x1280xf32, #tpu.memory_space<vmem>>, vector<32x1024xf32>,
    %233 = tpu.iota {dimensions = array<i32: 1>} : vector<32x1024xi32>
    %c31_i32_173 = arith.constant 31 : i32
    %234 = vector.broadcast %c31_i32_173 : i32 to vector<32x1024xi32>
    %235 = arith.andi %233, %234 : vector<32x1024xi32>
    %c0_174 = arith.constant 0 : index
    %c128_175 = arith.constant 128 : index
    %236 = vector.load %arg11[%c0_174, %c128_175] : memref<32x1280xf32, #tpu.memory_space<vmem>>, vector<32x1024xf32>
    %c0_176 = arith.constant 0 : index
    %c129_177 = arith.constant 129 : index
    %237 = vector.load %arg11[%c0_176, %c129_177] : memref<32x1280xf32, #tpu.memory_space<vmem>>, vector<32x1024xf32>
    %c31_i32_178 = arith.constant 31 : i32
    %238 = vector.broadcast %c31_i32_178 : i32 to vector<32x1024xi32>
    %239 = arith.cmpi slt, %235, %238 : vector<32x1024xi32>
    %cst_179 = arith.constant 0.000000e+00 : f32
    %240 = vector.broadcast %cst_179 : f32 to vector<32x1024xf32>
    %241 = arith.select %239, %237, %240 : vector<32x1024xi1>, vector<32x1024xf32>
    %c0_180 = arith.constant 0 : index
    %c160_181 = arith.constant 160 : index
    %242 = vector.load %arg11[%c0_180, %c160_181] : memref<32x1280xf32, #tpu.memory_space<vmem>>, vector<32x1024xf32>
    %c0_182 = arith.constant 0 : index
    %c161_183 = arith.constant 161 : index
    %243 = vector.load %arg11[%c0_182, %c161_183] : memref<32x1280xf32, #tpu.memory_space<vmem>>, vector<32x1024xf32>
    %c31_i32_184 = arith.constant 31 : i32
    %244 = vector.broadcast %c31_i32_184 : i32 to vector<32x1024xi32>
    %245 = arith.cmpi slt, %235, %244 : vector<32x1024xi32>
    %cst_185 = arith.constant 0.000000e+00 : f32
    %246 = vector.broadcast %cst_185 : f32 to vector<32x1024xf32>
    %247 = arith.select %245, %243, %246 : vector<32x1024xi1>, vector<32x1024xf32>
    %248 = tpu.concatenate %236, %241, %242, %247 in 0 : vector<32x1024xf32>, vector<32x1024xf32>, vector<32x1024xf32>, vector<32x1024xf32> -> vector<128x1024xf32>
    %c0_186 = arith.constant 0 : index
    %c0_187 = arith.constant 0 : index
    %249 = vector.load %arg4[%c0_186, %c0_187] : memref<4x128xf32, #tpu.memory_space<vmem>>, vector<4x128xf32>
    %cst_188 = arith.constant dense<0.000000e+00> : vector<4x1024xf32>
    %250 = tpu.matmul %249, %248, %cst_188 {dimension_numbers = #tpu.dot_dimension_numbers<[1], [0], [0], [1], [0, 0, 1, 1], [], []>} : vector<4x128xf32>, vector<128x1024xf32>, vector<4x1024xf32> -> vector<4x1024xf32>
    %c0_189 = arith.constant 0 : index
    %c0_190 = arith.constant 0 : index
    %251 = vector.load %arg7[%c0_189, %c0_190] : memref<4x1xf32, #tpu.memory_space<vmem>>, vector<4x1xf32>
    %252 = vector.broadcast %251 : vector<4x1xf32> to vector<4x1024xf32>
    %253 = arith.addf %250, %252 : vector<4x1024xf32>
    %c0_191 = arith.constant 0 : index
    %c0_192 = arith.constant 0 : index
    %c0_193 = arith.constant 0 : index
    %254 = vector.load %arg8[%c0_191, %c0_192, %c0_193] : memref<1x4x1024xf32, #tpu.memory_space<vmem>>, vector<1x4x1024xf32>
    %255 = vector.shape_cast %254 : vector<1x4x1024xf32> to vector<4x1024xf32>
    %256 = vector.shape_cast %253 : vector<4x1024xf32> to vector<1x4x1024xf32>
    tpu.vector_store %arg8[%c0_191, %c0_192, %c0_193], %256 {strides = array<i32>} : memref<1x4x1024xf32, #tpu.memory_space<vmem>>, vector<1x4x1024xf32>,
    return
  }
  func.func @transform_0(%arg0: i32) -> (i32, i32, i32) {
    %c0_i32 = arith.constant 0 : i32
    %c0_i32_0 = arith.constant 0 : i32
    %c0_i32_1 = arith.constant 0 : i32
    return %arg0, %c0_i32, %c0_i32_0 : i32, i32, i32
  }
  func.func @transform_1(%arg0: i32) -> (i32, i32, i32) {
    %c0_i32 = arith.constant 0 : i32
    %c0_i32_0 = arith.constant 0 : i32
    %c0_i32_1 = arith.constant 0 : i32
    %c0_i32_2 = arith.constant 0 : i32
    return %c0_i32, %c0_i32_0, %c0_i32_1 : i32, i32, i32
  }
  func.func @transform_2(%arg0: i32) -> (i32, i32, i32) {
    %c0_i32 = arith.constant 0 : i32
    %c0_i32_0 = arith.constant 0 : i32
    %c0_i32_1 = arith.constant 0 : i32
    %c0_i32_2 = arith.constant 0 : i32
    return %c0_i32, %c0_i32_0, %c0_i32_1 : i32, i32, i32
  }
  func.func @transform_3(%arg0: i32) -> (i32, i32) {
    %c0_i32 = arith.constant 0 : i32
    %c0_i32_0 = arith.constant 0 : i32
    %c0_i32_1 = arith.constant 0 : i32
    return %c0_i32, %c0_i32_0 : i32, i32
  }
  func.func @transform_4(%arg0: i32) -> (i32, i32, i32) {
    %c0_i32 = arith.constant 0 : i32
    %c0_i32_0 = arith.constant 0 : i32
    %c0_i32_1 = arith.constant 0 : i32
    %c0_i32_2 = arith.constant 0 : i32
    return %c0_i32, %c0_i32_0, %c0_i32_1 : i32, i32, i32
  }
  func.func @transform_5(%arg0: i32) -> (i32, i32) {
    %c0_i32 = arith.constant 0 : i32
    %c0_i32_0 = arith.constant 0 : i32
    %c0_i32_1 = arith.constant 0 : i32
    return %c0_i32, %c0_i32_0 : i32, i32
  }
  func.func @transform_6(%arg0: i32) -> (i32, i32) {
    %c0_i32 = arith.constant 0 : i32
    %c0_i32_0 = arith.constant 0 : i32
    %c0_i32_1 = arith.constant 0 : i32
    return %c0_i32, %c0_i32_0 : i32, i32
  }
  func.func @transform_7(%arg0: i32) -> (i32, i32, i32) {
    %c0_i32 = arith.constant 0 : i32
    %c0_i32_0 = arith.constant 0 : i32
    %c0_i32_1 = arith.constant 0 : i32
    return %arg0, %c0_i32, %c0_i32_0 : i32, i32, i32
  }
}

</mosaic_0001>

<bundles_post_ra>
// kernel: tile.7
= control target key start
LH: loop header
LB: loop body
LE: loop exit
PB: predicated region body
PF: predicated region fallthrough
CT: control target
= control target key end

     0   :  { %s20_s0 = inlined_call_operand.<no memory space> [shape: f32[], index: 0, kind: input, shape index: {}]   ;;  %s21_s1 = inlined_call_operand.vmem [shape: f32[4,1], index: 1, kind: output, shape index: {}]  }
   0x1   :  { %v2_v0 = vstv %s20_s0 }
   0x2   :  { %3 = vst [vmem:[%s21_s1] sm:$0xf] %v2_v0 }

// kernel: decoder_D_forward.1
= control target key start
LH: loop header
LB: loop body
LE: loop exit
PB: predicated region body
PF: predicated region fallthrough
CT: control target
= control target key end

     0   :  { %s19883_s24 = smov 0   ;;  %s27918_s0 = inlined_call_operand.vmem [shape: f32[2,64,1024], index: 0, kind: input, shape index: {}]   ;;  %s27919_s1 = inlined_call_operand.vmem [shape: f32[9,32,64], index: 1, kind: input, shape index: {}]   ;;  %s27920_s2 = inlined_call_operand.vmem [shape: f32[9,32,32], index: 2, kind: input, shape index: {}]   ;;  %s27921_s3 = inlined_call_operand.vmem [shape: f32[4,128], index: 3, kind: input, shape index: {}]   ;;  %s27922_s4 = inlined_call_operand.vmem [shape: f32[2,32,4], index: 4, kind: input, shape index: {}]   ;;  %s27923_s5 = inlined_call_operand.vmem [shape: f32[32,32], index: 5, kind: input, shape index: {}]   ;;  %s27924_s6 = inlined_call_operand.vmem [shape: f32[4,1], index: 6, kind: input, shape index: {}]   ;;  %s27925_s7 = inlined_call_operand.vmem [shape: f32[2,4,1024], index: 7, kind: output, shape index: {}]  }
   0x1 LB: > { %s14173_s25 = sadd.s32 4294967295, %s19830_s24   ;;  %p14177_p0 = scmp.ge.s32.totalorder %s19830_s24, 1  ;;  %s19830_s24 = sphi %s19883_s24, %s17_s24  }
   0x2   : > { %p237_p1 = scmp.lt.s32.totalorder %s19830_s24, 3 }
   0x4   : > { %p238_p2 = pnand %p14177_p0, %p237_p1 }
   0x6   : > { %241 = sbr.rel (%p238_p2) target bundleno = 4203 (0x106b), region = 48 }
   0xd   : > { %p269_p3 = scmp.lt.s32.totalorder %s14173_s25, 1  ;;  %v27940_v0 = vmov 0.0   ;;  %s19833_s26 = smov 32   ;;  %vm27991_vm0 = vcmask 261120   ;;  %vm27992_vm1 = vcmask 523264   ;;  %vm27978_vm2 = vcmask 269312  }
   0xe   : > { %1288 = vmatprep.mubr.f32.mxu0 %v27940_v0  ;;  %1377 = vmatprep.mubr.f32.mxu1 %v27940_v0  ;;  %s19834_s8 = smov 33   ;;  %s19835_s9 = smov 31  }
   0xf   : > { %s29216_s25 = smov (!%p269_p3, %s14173_s25), 1  ;;  %17162 = vrot.lane.b32.xlu1 %v27940_v0, %s19833_s26  ;;  %s19836_s18 = smov 1  }
  0x10   : > { %s15196_s27 = sshll.u32 %s29216_s25, 9  ;;  %s19837_s10 = smov 127  }
  0x11   : > { %s19901_s30 = scalar_lea.vmem %s27918_s0, %s15196_s27  ;;  %s19838_s20 = smov 97  }
  0x12   : > { %v281_v1 = vld [vmem:[%s19901_s30 + $0x10] sm:$0xff]  ;;  %v282_v2 = vld [vmem:[%s19901_s30 + $0x18] sm:$0xff]  ;;  %v279_v3 = vld [vmem:[%s19901_s30] sm:$0xff]  ;;  %s19839_s17 = smov 96   ;;  %s19840_s16 = smov 95  }
  0x13   : > { %v19906_v4 = vpack.i.bf16 %v282_v2, %v281_v1  ;;  %v280_v5 = vld [vmem:[%s19901_s30 + $0x8] sm:$0xff]  ;;  %v295_v6 = vld [vmem:[%s19901_s30 + $0x80] sm:$0xff]  ;;  %v289_v13 = vld [vmem:[%s19901_s30 + $0x50] sm:$0xff] }
  0x14   : > { %v296_v7 = vld [vmem:[%s19901_s30 + $0x88] sm:$0xff]  ;;  %v19911_v8 = vpack.i.bf16 %v280_v5, %v279_v3  ;;  %v287_v9 = vld [vmem:[%s19901_s30 + $0x40] sm:$0xff]  ;;  %v290_v14 = vld [vmem:[%s19901_s30 + $0x58] sm:$0xff] }
  0x15   : > { %v288_v10 = vld [vmem:[%s19901_s30 + $0x48] sm:$0xff]  ;;  %17177 = vrot.lane.b32.xlu1 %v19906_v4, %s19833_s26  ;;  %v19917_v11 = vpack.i.bf16 %v296_v7, %v295_v6  ;;  %v19929_v15 = vpack.i.bf16 %v290_v14, %v289_v13  ;;  %v305_v16 = vld [vmem:[%s19901_s30 + $0xd0] sm:$0xff]  ;;  %v306_v17 = vld [vmem:[%s19901_s30 + $0xd8] sm:$0xff] }
  0x16   : > { %17167 = vrot.lane.b32.xlu0 %v19911_v8, %s19833_s26  ;;  %v19921_v12 = vpack.i.bf16 %v288_v10, %v287_v9  ;;  %v303_v18 = vld [vmem:[%s19901_s30 + $0xc0] sm:$0xff]  ;;  %v304_v19 = vld [vmem:[%s19901_s30 + $0xc8] sm:$0xff]  ;;  %v19937_v20 = vpack.i.bf16 %v306_v17, %v305_v16  ;;  %v297_v24 = vld [vmem:[%s19901_s30 + $0x90] sm:$0xff] }
  0x17   : > { %v19941_v21 = vpack.i.bf16 %v304_v19, %v303_v18  ;;  %v319_v22 = vld [vmem:[%s19901_s30 + $0x140] sm:$0xff]  ;;  %v320_v23 = vld [vmem:[%s19901_s30 + $0x148] sm:$0xff]  ;;  %v298_v25 = vld [vmem:[%s19901_s30 + $0x98] sm:$0xff] }
  0x18   : > { %v19949_v26 = vpack.i.bf16 %v320_v23, %v319_v22  ;;  %v19953_v27 = vpack.i.bf16 %v298_v25, %v297_v24  ;;  %v313_v28 = vld [vmem:[%s19901_s30 + $0x110] sm:$0xff]  ;;  %v314_v29 = vld [vmem:[%s19901_s30 + $0x118] sm:$0xff]  ;;  %v311_v30 = vld [vmem:[%s19901_s30 + $0x100] sm:$0xff] }
  0x19   : > { %17187 = vrot.lane.b32.xlu1 %v19917_v11, %s19833_s26  ;;  %v312_v31 = vld [vmem:[%s19901_s30 + $0x108] sm:$0xff]  ;;  %v19961_v32 = vpack.i.bf16 %v314_v29, %v313_v28  ;;  %v327_v34 = vld [vmem:[%s19901_s30 + $0x180] sm:$0xff]  ;;  %v321_v37 = vld [vmem:[%s19901_s30 + $0x150] sm:$0xff] }
  0x1a   : > { %17172 = vrot.lane.b32.xlu0 %v19921_v12, %s19833_s26  ;;  %v19965_v33 = vpack.i.bf16 %v312_v31, %v311_v30  ;;  %v328_v35 = vld [vmem:[%s19901_s30 + $0x188] sm:$0xff]  ;;  %v322_v38 = vld [vmem:[%s19901_s30 + $0x158] sm:$0xff]  ;;  %v291_v40 = vld [vmem:[%s19901_s30 + $0x60] sm:$0xff] }
  0x1b   : > { %v19971_v36 = vpack.i.bf16 %v328_v35, %v327_v34  ;;  %v19981_v39 = vpack.i.bf16 %v322_v38, %v321_v37  ;;  %v292_v41 = vld [vmem:[%s19901_s30 + $0x68] sm:$0xff]  ;;  %v335_v42 = vld [vmem:[%s19901_s30 + $0x1c0] sm:$0xff]  ;;  %v337_v46 = vld [vmem:[%s19901_s30 + $0x1d0] sm:$0xff] }
  0x1c   : > { %v336_v43 = vld [vmem:[%s19901_s30 + $0x1c8] sm:$0xff]  ;;  %v19989_v44 = vpack.i.bf16 %v292_v41, %v291_v40  ;;  %v338_v47 = vld [vmem:[%s19901_s30 + $0x1d8] sm:$0xff]  ;;  %v283_v48 = vld [vmem:[%s19901_s30 + $0x20] sm:$0xff] }
  0x1d   : > { %17197 = vrot.lane.b32.xlu1 %v27940_v0, %s19833_s26  ;;  %v19993_v45 = vpack.i.bf16 %v336_v43, %v335_v42  ;;  %v284_v49 = vld [vmem:[%s19901_s30 + $0x28] sm:$0xff]  ;;  %v20001_v50 = vpack.i.bf16 %v338_v47, %v337_v46  ;;  %v293_v52 = vld [vmem:[%s19901_s30 + $0x70] sm:$0xff]  ;;  %v294_v53 = vld [vmem:[%s19901_s30 + $0x78] sm:$0xff] }
  0x1e   : > { %17182 = vrot.lane.b32.xlu0 %v19929_v15, %s19833_s26  ;;  %v20005_v51 = vpack.i.bf16 %v284_v49, %v283_v48  ;;  %v329_v54 = vld [vmem:[%s19901_s30 + $0x190] sm:$0xff]  ;;  %v330_v55 = vld [vmem:[%s19901_s30 + $0x198] sm:$0xff]  ;;  %v20013_v56 = vpack.i.bf16 %v294_v53, %v293_v52  ;;  %v307_v58 = vld [vmem:[%s19901_s30 + $0xe0] sm:$0xff] }
  0x1f   : > { %v20017_v57 = vpack.i.bf16 %v330_v55, %v329_v54  ;;  %v308_v59 = vld [vmem:[%s19901_s30 + $0xe8] sm:$0xff]  ;;  %v285_v60 = vld [vmem:[%s19901_s30 + $0x30] sm:$0xff]  ;;  %v286_v61 = vld [vmem:[%s19901_s30 + $0x38] sm:$0xff] }
  0x20   : > { %v20025_v62 = vpack.i.bf16 %v308_v59, %v307_v58  ;;  %v20029_v63 = vpack.i.bf16 %v286_v61, %v285_v60  ;;  %v309_v1 = vld [vmem:[%s19901_s30 + $0xf0] sm:$0xff]  ;;  %v310_v2 = vld [vmem:[%s19901_s30 + $0xf8] sm:$0xff]  ;;  %v299_v3 = vld [vmem:[%s19901_s30 + $0xa0] sm:$0xff] }
  0x21   : > { %17207 = vrot.lane.b32.xlu1 %v19937_v20, %s19833_s26  ;;  %v300_v5 = vld [vmem:[%s19901_s30 + $0xa8] sm:$0xff]  ;;  %v20037_v6 = vpack.i.bf16 %v310_v2, %v309_v1  ;;  %v323_v9 = vld [vmem:[%s19901_s30 + $0x160] sm:$0xff]  ;;  %v301_v13 = vld [vmem:[%s19901_s30 + $0xb0] sm:$0xff] }
  0x22   : > { %17192 = vrot.lane.b32.xlu0 %v19941_v21, %s19833_s26  ;;  %v20041_v7 = vpack.i.bf16 %v300_v5, %v299_v3  ;;  %v324_v10 = vld [vmem:[%s19901_s30 + $0x168] sm:$0xff]  ;;  %v302_v14 = vld [vmem:[%s19901_s30 + $0xb8] sm:$0xff]  ;;  %v325_v18 = vld [vmem:[%s19901_s30 + $0x170] sm:$0xff] }
  0x23   : > { %v20049_v16 = vpack.i.bf16 %v324_v10, %v323_v9  ;;  %v20053_v17 = vpack.i.bf16 %v302_v14, %v301_v13  ;;  %v326_v19 = vld [vmem:[%s19901_s30 + $0x178] sm:$0xff]  ;;  %v315_v22 = vld [vmem:[%s19901_s30 + $0x120] sm:$0xff]  ;;  %v316_v23 = vld [vmem:[%s19901_s30 + $0x128] sm:$0xff] }
  0x24   : > { %v20061_v24 = vpack.i.bf16 %v326_v19, %v325_v18  ;;  %v20065_v25 = vpack.i.bf16 %v316_v23, %v315_v22  ;;  %v339_v28 = vld [vmem:[%s19901_s30 + $0x1e0] sm:$0xff]  ;;  %v340_v29 = vld [vmem:[%s19901_s30 + $0x1e8] sm:$0xff]  ;;  %v317_v30 = vld [vmem:[%s19901_s30 + $0x130] sm:$0xff] }
  0x25   : > { %17217 = vrot.lane.b32.xlu1 %v19949_v26, %s19833_s26  ;;  %v318_v31 = vld [vmem:[%s19901_s30 + $0x138] sm:$0xff]  ;;  %v20073_v34 = vpack.i.bf16 %v340_v29, %v339_v28  ;;  %v331_v37 = vld [vmem:[%s19901_s30 + $0x1a0] sm:$0xff]  ;;  %v332_v38 = vld [vmem:[%s19901_s30 + $0x1a8] sm:$0xff] }
  0x26   : > { %17202 = vrot.lane.b32.xlu0 %v19953_v27, %s19833_s26  ;;  %v20077_v35 = vpack.i.bf16 %v318_v31, %v317_v30  ;;  %v20085_v40 = vpack.i.bf16 %v332_v38, %v331_v37  ;;  %v341_v41 = vld [vmem:[%s19901_s30 + $0x1f0] sm:$0xff]  ;;  %v342_v42 = vld [vmem:[%s19901_s30 + $0x1f8] sm:$0xff] }
  0x27   : > { %v20091_v43 = vpack.i.bf16 %v342_v42, %v341_v41  ;;  %v333_v46 = vld [vmem:[%s19901_s30 + $0x1b0] sm:$0xff]  ;;  %v334_v47 = vld [vmem:[%s19901_s30 + $0x1b8] sm:$0xff] }
  0x28   : > { %v20101_v48 = vpack.i.bf16 %v334_v47, %v333_v46 }
  0x29   : > { %17227 = vrot.lane.b32.xlu1 %v19961_v32, %s19833_s26 }
  0x2a   : > { %17212 = vrot.lane.b32.xlu0 %v19965_v33, %s19833_s26 }
  0x2d   : > { %17237 = vrot.lane.b32.xlu1 %v19971_v36, %s19833_s26 }
  0x2e   : > { %17222 = vrot.lane.b32.xlu0 %v27940_v0, %s19833_s26 }
  0x31   : > { %17247 = vrot.lane.b32.xlu1 %v27940_v0, %s19833_s26 }
  0x32   : > { %17232 = vrot.lane.b32.xlu0 %v19981_v39, %s19833_s26 }
  0x35   : > { %17257 = vrot.lane.b32.xlu1 %v19989_v44, %s19833_s26 }
  0x36   : > { %17242 = vrot.lane.b32.xlu0 %v19993_v45, %s19833_s26 }
  0x39   : > { %17267 = vrot.lane.b32.xlu1 %v20001_v50, %s19833_s26 }
  0x3a   : > { %17252 = vrot.lane.b32.xlu0 %v20005_v51, %s19833_s26 }
  0x3d   : > { %17277 = vrot.lane.b32.xlu1 %v20013_v56, %s19833_s26 }
  0x3e   : > { %17262 = vrot.lane.b32.xlu0 %v20017_v57, %s19833_s26 }
  0x41   : > { %17287 = vrot.lane.b32.xlu1 %v20025_v62, %s19833_s26 }
  0x42   : > { %17272 = vrot.lane.b32.xlu0 %v20029_v63, %s19833_s26 }
  0x45   : > { %17297 = vrot.lane.b32.xlu1 %v20037_v6, %s19833_s26 }
  0x46   : > { %17282 = vrot.lane.b32.xlu0 %v20041_v7, %s19833_s26 }
  0x49   : > { %17307 = vrot.lane.b32.xlu1 %v20049_v16, %s19833_s26 }
  0x4a   : > { %17292 = vrot.lane.b32.xlu0 %v20053_v17, %s19833_s26 }
  0x4d   : > { %17317 = vrot.lane.b32.xlu1 %v20061_v24, %s19833_s26 }
  0x4e   : > { %17302 = vrot.lane.b32.xlu0 %v20065_v25, %s19833_s26 }
  0x51   : > { %17327 = vrot.lane.b32.xlu1 %v20073_v34, %s19833_s26 }
  0x52   : > { %17312 = vrot.lane.b32.xlu0 %v20077_v35, %s19833_s26 }
  0x55   : > { %17337 = vrot.lane.b32.xlu1 %v19921_v12, %s19834_s8 }
  0x56   : > { %17322 = vrot.lane.b32.xlu0 %v20085_v40, %s19833_s26 }
  0x59   : > { %17347 = vrot.lane.b32.xlu1 %v20091_v43, %s19833_s26 }
  0x5a   : > { %17332 = vrot.lane.b32.xlu0 %v19911_v8, %s19834_s8 }
  0x5d   : > { %17357 = vrot.lane.b32.xlu1 %v19906_v4, %s19834_s8 }
  0x5e   : > { %17342 = vrot.lane.b32.xlu0 %v20101_v48, %s19833_s26 }
  0x61   : > { %17367 = vrot.lane.b32.xlu1 %v19917_v11, %s19834_s8 }
  0x62   : > { %17352 = vrot.lane.b32.xlu0 %v27940_v0, %s19834_s8 }
  0x65   : > { %17377 = vrot.lane.b32.xlu1 %v27940_v0, %s19834_s8 }
  0x66   : > { %17362 = vrot.lane.b32.xlu0 %v19929_v15, %s19834_s8 }
  0x69   : > { %17387 = vrot.lane.b32.xlu1 %v19937_v20, %s19834_s8 }
  0x6a   : > { %17372 = vrot.lane.b32.xlu0 %v19941_v21, %s19834_s8 }
  0x6d   : > { %17397 = vrot.lane.b32.xlu1 %v19949_v26, %s19834_s8 }
  0x6e   : > { %17382 = vrot.lane.b32.xlu0 %v19953_v27, %s19834_s8 }
  0x71   : > { %17407 = vrot.lane.b32.xlu1 %v19961_v32, %s19834_s8 }
  0x72   : > { %17392 = vrot.lane.b32.xlu0 %v19965_v33, %s19834_s8 }
  0x75   : > { %17417 = vrot.lane.b32.xlu1 %v19971_v36, %s19834_s8 }
  0x76   : > { %17402 = vrot.lane.b32.xlu0 %v27940_v0, %s19834_s8 }
  0x79   : > { %17427 = vrot.lane.b32.xlu1 %v27940_v0, %s19834_s8 }
  0x7a   : > { %17412 = vrot.lane.b32.xlu0 %v19981_v39, %s19834_s8 }
  0x7d   : > { %17437 = vrot.lane.b32.xlu1 %v19989_v44, %s19834_s8 }
  0x7e   : > { %17422 = vrot.lane.b32.xlu0 %v19993_v45, %s19834_s8 }
  0x81   : > { %17447 = vrot.lane.b32.xlu1 %v20001_v50, %s19834_s8  ;;  %v17163_v49 = vpop.permute.xlu1 %17162 }
  0x82   : > { %17432 = vrot.lane.b32.xlu0 %v20005_v51, %s19834_s8  ;;  %v17164_v54 = vunpack.i.l.bf16 %v17163_v49  ;;  %v17165_v61 = vunpack.i.h.bf16 %v17163_v49 }
  0x85   : > { %17457 = vrot.lane.b32.xlu1 %v20013_v56, %s19834_s8 }
  0x86   : > { %17442 = vrot.lane.b32.xlu0 %v20017_v57, %s19834_s8 }
  0x87   : > { %v20147_v52 = vpop.permute.xlu1 %17177 }
  0x88   : > { %v17168_v53 = vpop.permute.xlu0 %17167  ;;  %v17180_v3 = vunpack.i.h.bf16 %v20147_v52  ;;  %v17179_v5 = vunpack.i.l.bf16 %v20147_v52 }
  0x89   : > { %17467 = vrot.lane.b32.xlu1 %v20025_v62, %s19834_s8  ;;  %v17170_v55 = vunpack.i.h.bf16 %v17168_v53  ;;  %v17169_v58 = vunpack.i.l.bf16 %v17168_v53 }
  0x8a   : > { %17452 = vrot.lane.b32.xlu0 %v20029_v63, %s19834_s8  ;;  %v1086_v37 = vsel %vm27991_vm0, %v17179_v5, %v17180_v3 }
  0x8b   : > { %v20153_v59 = vpop.permute.xlu1 %17187  ;;  %v1084_v10 = vsel %vm27991_vm0, %v17169_v58, %v17170_v55  ;;  %v1083_v14 = vsel %vm27991_vm0, %v17164_v54, %v17169_v58  ;;  %v1085_v38 = vsel %vm27991_vm0, %v17170_v55, %v17179_v5 }
  0x8c   : > { %v17173_v60 = vpop.permute.xlu0 %17172  ;;  %v17190_v30 = vunpack.i.h.bf16 %v20153_v59  ;;  %v17189_v31 = vunpack.i.l.bf16 %v20153_v59 }
  0x8d   : > { %v17175_v1 = vunpack.i.h.bf16 %v17173_v60  ;;  %v17174_v2 = vunpack.i.l.bf16 %v17173_v60  ;;  %17477 = vrot.lane.b32.xlu1 %v20037_v6, %s19834_s8 }
  0x8e   : > { %17462 = vrot.lane.b32.xlu0 %v20041_v7, %s19834_s8 }
  0x8f   : > { %v17198_v9 = vpop.permute.xlu1 %17197  ;;  %v1092_v13 = vsel %vm27991_vm0, %v17174_v2, %v17175_v1  ;;  %v1091_v18 = vsel %vm27991_vm0, %v17165_v61, %v17174_v2 }
  0x90   : > { %v20165_v19 = vpop.permute.xlu0 %17182  ;;  %v15286_v22 = vpack.c.bf16 %v1092_v13, %v1084_v10  ;;  %v15288_v23 = vpack.c.bf16 %v1091_v18, %v1083_v14  ;;  %v17200_v41 = vunpack.i.h.bf16 %v17198_v9  ;;  %v17199_v42 = vunpack.i.l.bf16 %v17198_v9 }
  0x91   : > { %v17185_v28 = vunpack.i.h.bf16 %v20165_v19  ;;  %v17184_v29 = vunpack.i.l.bf16 %v20165_v19  ;;  %17487 = vrot.lane.b32.xlu1 %v20049_v16, %s19834_s8 }
  0x92   : > { %17472 = vrot.lane.b32.xlu0 %v20053_v17, %s19834_s8  ;;  %15287 = vmatprep.subr.bf16.mxu0 %v15286_v22  ;;  %v1099_v9 = vsel %vm27991_vm0, %v17199_v42, %v17189_v31 }
  0x93   : > { %15289 = vmatpush1.bf16.msra.mxu0 %v15288_v23  ;;  %v20179_v46 = vpop.permute.xlu1 %17207  ;;  %v1094_v47 = vsel %vm27991_vm0, %v17184_v29, %v17185_v28  ;;  %v1093_v49 = vsel %vm27991_vm0, %v17175_v1, %v17184_v29  ;;  %v1100_v1 = vsel %vm27991_vm0, %v17189_v31, %v17190_v30 }
  0x94   : > { %v17210_v53 = vunpack.i.h.bf16 %v20179_v46  ;;  %v17193_v54 = vpop.permute.xlu0 %17192  ;;  %v15302_v58 = vpack.c.bf16 %v1094_v47, %v1086_v37  ;;  %v15304_v59 = vpack.c.bf16 %v1093_v49, %v1085_v38  ;;  %v17209_v55 = vunpack.i.l.bf16 %v20179_v46 }
  0x95   : > { %v17195_v60 = vunpack.i.h.bf16 %v17193_v54  ;;  %v17194_v61 = vunpack.i.l.bf16 %v17193_v54  ;;  %17497 = vrot.lane.b32.xlu1 %v20061_v24, %s19834_s8 }
  0x96   : > { %17482 = vrot.lane.b32.xlu0 %v20065_v25, %s19834_s8  ;;  %15303 = vmatprep.subr.bf16.mxu1 %v15302_v58  ;;  %v1110_v22 = vsel %vm27991_vm0, %v17209_v55, %v17210_v53 }
  0x97   : > { %15305 = vmatpush1.bf16.msra.mxu1 %v15304_v59  ;;  %v20191_v2 = vpop.permute.xlu1 %17217  ;;  %v1108_v5 = vsel %vm27991_vm0, %v17194_v61, %v17195_v60  ;;  %v1107_v10 = vsel %vm27991_vm0, %v17200_v41, %v17194_v61  ;;  %v1109_v47 = vsel %vm27991_vm0, %v17195_v60, %v17209_v55 }
  0x98   : > { %v20197_v13 = vpop.permute.xlu0 %17202  ;;  %v15290_v14 = vpack.c.bf16 %v1108_v5, %v1100_v1  ;;  %v15292_v18 = vpack.c.bf16 %v1107_v10, %v1099_v9  ;;  %v17220_v23 = vunpack.i.h.bf16 %v20191_v2  ;;  %v17219_v29 = vunpack.i.l.bf16 %v20191_v2 }
  0x99   : > { %v17205_v37 = vunpack.i.h.bf16 %v20197_v13  ;;  %v17204_v38 = vunpack.i.l.bf16 %v20197_v13  ;;  %17507 = vrot.lane.b32.xlu1 %v20073_v34, %s19834_s8 }
  0x9a   : > { %17492 = vrot.lane.b32.xlu0 %v20077_v35, %s19834_s8  ;;  %15291 = vmatprep.subr.bf16.mxu0 %v15290_v14  ;;  %v1124_v2 = vsel %vm27991_vm0, %v17219_v29, %v17220_v23 }
  0x9b   : > { %15293 = vmatpush1.bf16.msra.mxu0 %v15292_v18  ;;  %v20210_v31 = vpop.permute.xlu1 %17227  ;;  %v1102_v41 = vsel %vm27991_vm0, %v17204_v38, %v17205_v37  ;;  %v1101_v42 = vsel %vm27991_vm0, %v17190_v30, %v17204_v38 }
  0x9c   : > { %v17213_v49 = vpop.permute.xlu0 %17212  ;;  %v15306_v54 = vpack.c.bf16 %v1110_v22, %v1102_v41  ;;  %v15308_v58 = vpack.c.bf16 %v1109_v47, %v1101_v42  ;;  %v17230_v10 = vunpack.i.h.bf16 %v20210_v31  ;;  %v17229_v14 = vunpack.i.l.bf16 %v20210_v31 }
  0x9d   : > { %v17215_v59 = vunpack.i.h.bf16 %v17213_v49  ;;  %v17214_v61 = vunpack.i.l.bf16 %v17213_v49  ;;  %17517 = vrot.lane.b32.xlu1 %v20091_v43, %s19834_s8 }
  0x9e   : > { %17502 = vrot.lane.b32.xlu0 %v20085_v40, %s19834_s8  ;;  %15307 = vmatprep.subr.bf16.mxu1 %v15306_v54 }
  0x9f   : > { %15309 = vmatpush1.bf16.msra.mxu1 %v15308_v58  ;;  %v20222_v1 = vpop.permute.xlu1 %17237  ;;  %v1116_v30 = vsel %vm27991_vm0, %v17214_v61, %v17215_v59  ;;  %v1117_v58 = vsel %vm27991_vm0, %v17215_v59, %v17229_v14 }
  0xa0   : > { %v17223_v60 = vpop.permute.xlu0 %17222  ;;  %v15294_v55 = vpack.c.bf16 %v1124_v2, %v1116_v30  ;;  %v17240_v49 = vunpack.i.h.bf16 %v20222_v1  ;;  %v17239_v54 = vunpack.i.l.bf16 %v20222_v1 }
  0xa1   : > { %v17225_v5 = vunpack.i.h.bf16 %v17223_v60  ;;  %v17224_v9 = vunpack.i.l.bf16 %v17223_v60  ;;  %17527 = vrot.lane.b32.xlu1 %v19921_v12, %s19835_s9 }
  0xa2   : > { %17512 = vrot.lane.b32.xlu0 %v20101_v48, %s19834_s8  ;;  %15295 = vmatprep.subr.bf16.mxu0 %v15294_v55  ;;  %v1132_v59 = vsel %vm27991_vm0, %v17239_v54, %v17240_v49 }
  0xa3   : > { %v17248_v18 = vpop.permute.xlu1 %17247  ;;  %v1115_v22 = vsel %vm27991_vm0, %v17224_v9, %v17214_v61  ;;  %v1123_v38 = vsel %vm27991_vm0, %v17225_v5, %v17219_v29  ;;  %v1118_v29 = vsel %vm27991_vm0, %v17229_v14, %v17230_v10 }
  0xa4   : > { %v20233_v41 = vpop.permute.xlu0 %17232  ;;  %v15296_v42 = vpack.c.bf16 %v1123_v38, %v1115_v22  ;;  %v17250_v61 = vunpack.i.h.bf16 %v17248_v18  ;;  %v17249_v2 = vunpack.i.l.bf16 %v17248_v18 }
  0xa5   : > { %v17235_v47 = vunpack.i.h.bf16 %v20233_v41  ;;  %v17234_v12 = vunpack.i.l.bf16 %v20233_v41  ;;  %17537 = vrot.lane.b32.xlu1 %v19906_v4, %s19835_s9 }
  0xa6   : > { %17522 = vrot.lane.b32.xlu0 %v19911_v8, %s19835_s9  ;;  %15297 = vmatpush1.bf16.msra.mxu0 %v15296_v42  ;;  %v1131_v38 = vsel %vm27991_vm0, %v17249_v2, %v17239_v54 }
  0xa7   : > { %v20247_v30 = vpop.permute.xlu1 %17257  ;;  %v1126_v4 = vsel %vm27991_vm0, %v17234_v12, %v17235_v47  ;;  %v1125_v1 = vsel %vm27991_vm0, %v17220_v23, %v17234_v12 }
  0xa8   : > { %v17243_v60 = vpop.permute.xlu0 %17242  ;;  %v15310_v55 = vpack.c.bf16 %v1126_v4, %v1118_v29  ;;  %v15312_v8 = vpack.c.bf16 %v1125_v1, %v1117_v58  ;;  %v17260_v5 = vunpack.i.h.bf16 %v20247_v30  ;;  %v17259_v14 = vunpack.i.l.bf16 %v20247_v30 }
  0xa9   : > { %v17245_v9 = vunpack.i.h.bf16 %v17243_v60  ;;  %v17244_v22 = vunpack.i.l.bf16 %v17243_v60  ;;  %17547 = vrot.lane.b32.xlu1 %v19917_v11, %s19835_s9 }
  0xaa   : > { %17532 = vrot.lane.b32.xlu0 %v27940_v0, %s19835_s9  ;;  %15311 = vmatprep.subr.bf16.mxu1 %v15310_v55  ;;  %v1096_v30 = vsel %vm27991_vm0, %v17259_v14, %v17260_v5  ;;  %v1095_v54 = vsel %vm27991_vm0, %v17185_v28, %v17259_v14 }
  0xab   : > { %15313 = vmatpush1.bf16.msra.mxu1 %v15312_v8  ;;  %v20260_v23 = vpop.permute.xlu1 %17267  ;;  %v1140_v18 = vsel %vm27991_vm0, %v17244_v22, %v17245_v9  ;;  %v1139_v42 = vsel %vm27991_vm0, %v17250_v61, %v17244_v22 }
  0xac   : > { %v17253_v12 = vpop.permute.xlu0 %17252  ;;  %v15298_v29 = vpack.c.bf16 %v1140_v18, %v1132_v59  ;;  %v15300_v11 = vpack.c.bf16 %v1139_v42, %v1131_v38  ;;  %v17270_v58 = vunpack.i.h.bf16 %v20260_v23  ;;  %v17269_v61 = vunpack.i.l.bf16 %v20260_v23 }
  0xad   : > { %v17255_v4 = vunpack.i.h.bf16 %v17253_v12  ;;  %v17254_v1 = vunpack.i.l.bf16 %v17253_v12  ;;  %17557 = vrot.lane.b32.xlu1 %v27940_v0, %s19835_s9 }
  0xae   : > { %17542 = vrot.lane.b32.xlu0 %v19929_v15, %s19835_s9  ;;  %15299 = vmatprep.subr.bf16.mxu0 %v15298_v29  ;;  %v20284_v15 = vld [vmem:[%s27919_s1 + $0x20] sm:$0xff] }
  0xaf   : > { %v1087_v2 = vsel %vm27991_vm0, %v17180_v3, %v17254_v1  ;;  %15301 = vmatpush1.bf16.msra.mxu0 %v15300_v11  ;;  %v17278_v60 = vpop.permute.xlu1 %17277  ;;  %v1088_v55 = vsel %vm27991_vm0, %v17254_v1, %v17255_v4  ;;  %v1142_v3 = vsel %vm27991_vm0, %v17269_v61, %v17270_v58 }
  0xb0   : > { %v20279_v8 = vpop.permute.xlu0 %17262  ;;  %v15318_v22 = vpack.c.bf16 %v1096_v30, %v1088_v55  ;;  %v15320_v19 = vpack.c.bf16 %v1095_v54, %v1087_v2  ;;  %v17280_v28 = vunpack.i.h.bf16 %v17278_v60  ;;  %v17279_v14 = vunpack.i.l.bf16 %v17278_v60 }
  0xb1   : > { %v17265_v59 = vunpack.i.h.bf16 %v20279_v8  ;;  %v17264_v52 = vunpack.i.l.bf16 %v20279_v8  ;;  %17567 = vrot.lane.b32.xlu1 %v19937_v20, %s19835_s9  ;;  %v1141_v20 = vsel %vm27991_vm0, %v17245_v9, %v17269_v61 }
  0xb2   : > { %17552 = vrot.lane.b32.xlu0 %v19941_v21, %s19835_s9  ;;  %15319 = vmatprep.subr.bf16.mxu0 %v15318_v22  ;;  %v20306_v21 = vld [vmem:[%s27919_s1 + $0x28] sm:$0xff]  ;;  %v1097_v9 = vsel %vm27991_vm0, %v17260_v5, %v17279_v14 }
  0xb3   : > { %14186 = vmatmul.mubr.msk.f32.vlgmr.msra.gmra.mrb[0].mxu0 %vm27992_vm1, %v20284_v15  ;;  %v17288_v18 = vpop.permute.xlu1 %17287  ;;  %v1134_v38 = vsel %vm27991_vm0, %v17264_v52, %v17265_v59  ;;  %v1133_v42 = vsel %vm27991_vm0, %v17240_v49, %v17264_v52  ;;  %v1098_v49 = vsel %vm27991_vm0, %v17279_v14, %v17280_v28 }
  0xb4   : > { %15321 = vmatpush1.bf16.msra.mxu0 %v15320_v19  ;;  %v17273_v12 = vpop.permute.xlu0 %17272  ;;  %v15314_v29 = vpack.c.bf16 %v1142_v3, %v1134_v38  ;;  %v15316_v11 = vpack.c.bf16 %v1141_v20, %v1133_v42  ;;  %1294 = vmatprep.mubr.f32.mxu0 %v27940_v0  ;;  %v17290_v1 = vunpack.i.h.bf16 %v17288_v18  ;;  %v17289_v61 = vunpack.i.l.bf16 %v17288_v18 }
  0xb5   : > { %v17275_v30 = vunpack.i.h.bf16 %v17273_v12  ;;  %v17274_v54 = vunpack.i.l.bf16 %v17273_v12  ;;  %17577 = vrot.lane.b32.xlu1 %v19949_v26, %s19835_s9 }
  0xb6   : > { %17562 = vrot.lane.b32.xlu0 %v19953_v27, %s19835_s9  ;;  %15315 = vmatprep.subr.bf16.mxu1 %v15314_v29  ;;  %v20322_v27 = vld [vmem:[%s27919_s1 + $0x30] sm:$0xff]  ;;  %v1112_v52 = vsel %vm27991_vm0, %v17289_v61, %v17290_v1  ;;  %v1111_v3 = vsel %vm27991_vm0, %v17210_v53, %v17289_v61  ;;  %v423_v53 = vlaneseq  ;;  %v20348_v29 = vld [vmem:[%s27919_s1 + $0x38] sm:$0xff] }
  0xb7   : > { %v1089_v2 = vsel %vm27991_vm0, %v17255_v4, %v17274_v54  ;;  %15317 = vmatpush1.bf16.msra.mxu1 %v15316_v11  ;;  %v17298_v60 = vpop.permute.xlu1 %17297  ;;  %v1090_v55 = vsel %vm27991_vm0, %v17274_v54, %v17275_v30  ;;  %14187 = vmatmul.mubr.msk.f32.gmra.mrb[2].mxu0 %vm27992_vm1, %v20306_v21 }
  0xb8   : > { %v17283_v22 = vpop.permute.xlu0 %17282  ;;  %v15334_v26 = vpack.c.bf16 %v1098_v49, %v1090_v55  ;;  %v15336_v19 = vpack.c.bf16 %v1097_v9, %v1089_v2  ;;  %1300 = vmatprep.mubr.f32.mxu0 %v27940_v0  ;;  %v17300_v5 = vunpack.i.h.bf16 %v17298_v60  ;;  %v17299_v14 = vunpack.i.l.bf16 %v17298_v60 }
  0xb9   : > { %v17285_v28 = vunpack.i.h.bf16 %v17283_v22  ;;  %v17284_v4 = vunpack.i.l.bf16 %v17283_v22  ;;  %17587 = vrot.lane.b32.xlu1 %v19961_v32, %s19835_s9  ;;  %v20357_v60 = vand.u32 127, %v423_v53 }
  0xba   : > { %17572 = vrot.lane.b32.xlu0 %v19965_v33, %s19835_s9  ;;  %15335 = vmatprep.subr.bf16.mxu1 %v15334_v26  ;;  %v1113_v11 = vsel %vm27991_vm0, %v17290_v1, %v17299_v14 }
  0xbb   : > { %v1103_v18 = vsel %vm27991_vm0, %v17205_v37, %v17284_v4  ;;  %14190 = vmatmul.mubr.msk.f32.vlgmr.msra.gmra.mrb[0].mxu1 %vm27992_vm1, %v20284_v15  ;;  %v17308_v38 = vpop.permute.xlu1 %17307  ;;  %v1104_v32 = vsel %vm27991_vm0, %v17284_v4, %v17285_v28  ;;  %14188 = vmatmul.mubr.msk.f32.gmra.mrb[4].mxu0 %vm27992_vm1, %v20322_v27  ;;  %v1114_v37 = vsel %vm27991_vm0, %v17299_v14, %v17300_v5 }
  0xbc   : > { %15337 = vmatpush1.bf16.msra.mxu1 %v15336_v19  ;;  %v17293_v33 = vpop.permute.xlu0 %17292  ;;  %v15322_v42 = vpack.c.bf16 %v1112_v52, %v1104_v32  ;;  %v15324_v46 = vpack.c.bf16 %v1111_v3, %v1103_v18  ;;  %1383 = vmatprep.mubr.f32.mxu1 %v27940_v0  ;;  %v17310_v20 = vunpack.i.h.bf16 %v17308_v38  ;;  %v17309_v30 = vunpack.i.l.bf16 %v17308_v38 }
  0xbd   : > { %v17295_v13 = vunpack.i.h.bf16 %v17293_v33  ;;  %v17294_v12 = vunpack.i.l.bf16 %v17293_v33  ;;  %17597 = vrot.lane.b32.xlu1 %v19971_v36, %s19835_s9  ;;  %1306 = vmatprep.mubr.f32.mxu0 %v27940_v0  ;;  %v20379_v38 = vadd.s32 128, %v20357_v60 }
  0xbe   : > { %17582 = vrot.lane.b32.xlu0 %v27940_v0, %s19835_s9  ;;  %15323 = vmatprep.subr.bf16.mxu0 %v15322_v42  ;;  %v1128_v26 = vsel %vm27991_vm0, %v17309_v30, %v17310_v20  ;;  %v1127_v19 = vsel %vm27991_vm0, %v17235_v47, %v17309_v30 }
  0xbf   : > { %v1105_v54 = vsel %vm27991_vm0, %v17285_v28, %v17294_v12  ;;  %15325 = vmatpush1.bf16.msra.mxu0 %v15324_v46  ;;  %v17318_v36 = vpop.permute.xlu1 %17317  ;;  %v1106_v49 = vsel %vm27991_vm0, %v17294_v12, %v17295_v13  ;;  %14191 = vmatmul.mubr.msk.f32.gmra.mrb[2].mxu1 %vm27992_vm1, %v20306_v21 }
  0xc0   : > { %v17303_v9 = vpop.permute.xlu0 %17302  ;;  %v15338_v61 = vpack.c.bf16 %v1114_v37, %v1106_v49  ;;  %v15340_v2 = vpack.c.bf16 %v1113_v11, %v1105_v54  ;;  %14189 = vmatmul.mubr.msk.f32.gmra.mrb[6].mxu0 %vm27992_vm1, %v20348_v29  ;;  %1389 = vmatprep.mubr.f32.mxu1 %v27940_v0  ;;  %v17320_v1 = vunpack.i.h.bf16 %v17318_v36  ;;  %v17319_v5 = vunpack.i.l.bf16 %v17318_v36 }
  0xc1   : > { %v17305_v55 = vunpack.i.h.bf16 %v17303_v9  ;;  %v17304_v22 = vunpack.i.l.bf16 %v17303_v9  ;;  %17607 = vrot.lane.b32.xlu1 %v27940_v0, %s19835_s9  ;;  %1466 = vmatprep.mubr.f32.mxu0 %v27940_v0  ;;  %v27931_v37 = vand.u32 31, %v20379_v38 }
  0xc2   : > { %17592 = vrot.lane.b32.xlu0 %v19981_v39, %s19835_s9  ;;  %15339 = vmatprep.subr.bf16.mxu1 %v15338_v61  ;;  %v1129_v32 = vsel %vm27991_vm0, %v17310_v20, %v17319_v5 }
  0xc3   : > { %v1119_v28 = vsel %vm27991_vm0, %v17230_v10, %v17304_v22  ;;  %15341 = vmatpush1.bf16.msra.mxu1 %v15340_v2  ;;  %v20374_v4 = vpop.permute.xlu1 %17327  ;;  %v1120_v52 = vsel %vm27991_vm0, %v17304_v22, %v17305_v55  ;;  %v1130_v10 = vsel %vm27991_vm0, %v17319_v5, %v17320_v1  ;;  %vm517_vm3 = vcmp.gt.s32.totalorder %v27931_v37, 0 }
  0xc4   : > { %v17330_v3 = vunpack.i.h.bf16 %v20374_v4  ;;  %v17313_v14 = vpop.permute.xlu0 %17312  ;;  %v15326_v18 = vpack.c.bf16 %v1128_v26, %v1120_v52  ;;  %v15328_v39 = vpack.c.bf16 %v1127_v19, %v1119_v28  ;;  %14192 = vmatmul.mubr.msk.f32.gmra.mrb[4].mxu1 %vm27992_vm1, %v20322_v27  ;;  %v17329_v47 = vunpack.i.l.bf16 %v20374_v4  ;;  %vm20427_vm4 = vmpackc.low %vm517_vm3, %vm517_vm3 }
  0xc5   : > { %v17315_v41 = vunpack.i.h.bf16 %v17313_v14  ;;  %v17314_v31 = vunpack.i.l.bf16 %v17313_v14  ;;  %17617 = vrot.lane.b32.xlu1 %v19989_v44, %s19835_s9  ;;  %1395 = vmatprep.mubr.f32.mxu1 %v27940_v0  ;;  %v28196_v22 = vmov 0  ;;  %v27930_v5 = vand.u32 31, %v20357_v60 }
  0xc6   : > { %17602 = vrot.lane.b32.xlu0 %v19993_v45, %s19835_s9  ;;  %15327 = vmatprep.subr.bf16.mxu0 %v15326_v18  ;;  %v1144_v12 = vsel %vm27991_vm0, %v17329_v47, %v17330_v3  ;;  %v1143_v54 = vsel %vm27991_vm0, %v17270_v58, %v17329_v47  ;;  %v28197_v22 = vsel %vm20427_vm4, 4294967295, %v28196_v22  ;;  %v20439_v14 = vadd.s32 256, %v20357_v60 }
  0xc7   : > { %v1121_v33 = vsel %vm27991_vm0, %v17305_v55, %v17314_v31  ;;  %15329 = vmatpush1.bf16.msra.mxu0 %v15328_v39  ;;  %v20392_v42 = vpop.permute.xlu1 %17337  ;;  %v1122_v46 = vsel %vm27991_vm0, %v17314_v31, %v17315_v41  ;;  %28198 = vst [vmem:[#allocation5_spill] sm:$0xff] %v28197_v22  ;;  %vm516_vm5 = vcmp.gt.s32.totalorder %v27930_v5, 0  ;;  %v28220_v37 = vmov 0 }
  0xc8   : > { %v17323_v44 = vpop.permute.xlu0 %17322  ;;  %v15342_v53 = vpack.c.bf16 %v1130_v10, %v1122_v46  ;;  %v15344_v13 = vpack.c.bf16 %v1129_v32, %v1121_v33  ;;  %14193 = vmatmul.mubr.msk.f32.gmra.mrb[6].mxu1 %vm27992_vm1, %v20348_v29  ;;  %v17340_v45 = vunpack.i.h.bf16 %v20392_v42  ;;  %v17339_v20 = vunpack.i.l.bf16 %v20392_v42  ;;  %vm20467_vm6 = vmpackc.low %vm516_vm5, %vm516_vm5 }
  0xc9   : > { %v17325_v11 = vunpack.i.h.bf16 %v17323_v44  ;;  %v17324_v30 = vunpack.i.l.bf16 %v17323_v44  ;;  %17627 = vrot.lane.b32.xlu1 %v20001_v50, %s19835_s9  ;;  %1555 = vmatprep.mubr.f32.mxu1 %v27940_v0  ;;  %v27927_v32 = vand.u32 31, %v20439_v14 }
  0xca   : > { %17612 = vrot.lane.b32.xlu0 %v20005_v51, %s19835_s9  ;;  %15343 = vmatprep.subr.bf16.mxu1 %v15342_v53  ;;  %v750_v51 = vsel %vm27978_vm2, %v17339_v20, %v17340_v45 }
  0xcb   : > { %v1135_v36 = vsel %vm27991_vm0, %v17265_v59, %v17324_v30  ;;  %15345 = vmatpush1.bf16.msra.mxu1 %v15344_v13  ;;  %v17348_v49 = vpop.permute.xlu1 %17347  ;;  %v1136_v9 = vsel %vm27991_vm0, %v17324_v30, %v17325_v11  ;;  %vm20488_vm8 = vcmp.gt.s32.totalorder %v27927_v32, 0 }
  0xcc   : > { %v17333_v50 = vpop.permute.xlu0 %17332  ;;  %v15330_v61 = vpack.c.bf16 %v1144_v12, %v1136_v9  ;;  %v15332_v2 = vpack.c.bf16 %v1143_v54, %v1135_v36  ;;  %v17350_v23 = vunpack.i.h.bf16 %v17348_v49  ;;  %v17349_v8 = vunpack.i.l.bf16 %v17348_v49  ;;  %vm20525_vm10 = vmpackc.low %vm20488_vm8, %vm20488_vm8 }
  0xcd   : > { %v17335_v58 = vunpack.i.h.bf16 %v17333_v50  ;;  %v17334_v1 = vunpack.i.l.bf16 %v17333_v50  ;;  %17637 = vrot.lane.b32.xlu1 %v20013_v56, %s19835_s9  ;;  %v20433_v56 = vadd.s32 384, %v20357_v60  ;;  %v28199_v12 = vmov 0 }
  0xce   : > { %17622 = vrot.lane.b32.xlu0 %v20017_v57, %s19835_s9  ;;  %15331 = vmatprep.subr.bf16.mxu0 %v15330_v61  ;;  %v1146_v52 = vsel %vm27991_vm0, %v17349_v8, %v17350_v23  ;;  %v1145_v18 = vsel %vm27991_vm0, %v17330_v3, %v17349_v8  ;;  %v28200_v12 = vsel %vm20467_vm6, 4294967295, %v28199_v12  ;;  %v28209_v8 = vmov 0 }
  0xcf   : > { %v742_v59 = vsel %vm27978_vm2, %v17334_v1, %v17335_v58  ;;  %15333 = vmatpush1.bf16.msra.mxu0 %v15332_v2  ;;  %v20425_v55 = vpop.permute.xlu1 %17357  ;;  %28201 = vst [vmem:[#allocation6_spill] sm:$0xff] %v28200_v12  ;;  %v28210_v8 = vsel %vm20525_vm10, 4294967295, %v28209_v8  ;;  %vm27995_vm8 = vcmask 252928  }
  0xd0   : > { %v17343_v26 = vpop.permute.xlu0 %17342  ;;  %v15350_v19 = vpack.c.bf16 %v750_v51, %v742_v59  ;;  %v17360_v33 = vunpack.i.h.bf16 %v20425_v55  ;;  %v17359_v46 = vunpack.i.l.bf16 %v20425_v55  ;;  %28211 = vst [vmem:[#allocation8_spill] sm:$0xff] %v28210_v8 }
  0xd1   : > { %v17345_v28 = vunpack.i.h.bf16 %v17343_v26  ;;  %v17344_v57 = vunpack.i.l.bf16 %v17343_v26  ;;  %17647 = vrot.lane.b32.xlu1 %v20025_v62, %s19835_s9 }
  0xd2   : > { %17632 = vrot.lane.b32.xlu0 %v20029_v63, %s19835_s9  ;;  %15352 = vmatprep.subr.msk.bf16.mxu0 %vm20427_vm4, %v15350_v19  ;;  %v27929_v63 = vand.u32 31, %v20433_v56  ;;  %v743_v36 = vsel %vm27978_vm2, %v17335_v58, %v17359_v46  ;;  %v744_v49 = vsel %vm27978_vm2, %v17359_v46, %v17360_v33 }
  0xd3   : > { %v1137_v39 = vsel %vm27991_vm0, %v17325_v11, %v17344_v57  ;;  %v20449_v41 = vpop.permute.xlu1 %17367  ;;  %v1138_v62 = vsel %vm27991_vm0, %v17344_v57, %v17345_v28  ;;  %14194 = vmatmul.mubr.msk.f32.vlgmr.msra.gmra.mrb[8].mxu0 %vm27992_vm1, %v20284_v15 }
  0xd4   : > { %v17353_v31 = vpop.permute.xlu0 %17352  ;;  %v15346_v10 = vpack.c.bf16 %v1146_v52, %v1138_v62  ;;  %v15348_v47 = vpack.c.bf16 %v1145_v18, %v1137_v39  ;;  %1472 = vmatprep.mubr.f32.mxu0 %v27940_v0  ;;  %vm20477_vm7 = vcmp.gt.s32.totalorder %v27929_v63, 0  ;;  %v17370_v9 = vunpack.i.h.bf16 %v20449_v41 }
  0xd5   : > { %v17355_v4 = vunpack.i.h.bf16 %v17353_v31  ;;  %v17354_v3 = vunpack.i.l.bf16 %v17353_v31  ;;  %17657 = vrot.lane.b32.xlu1 %v20037_v6, %s19835_s9  ;;  %v17369_v50 = vunpack.i.l.bf16 %v20449_v41  ;;  %vm20513_vm9 = vmpackc.low %vm20477_vm7, %vm20477_vm7 }
  0xd6   : > { %17642 = vrot.lane.b32.xlu0 %v20041_v7, %s19835_s9  ;;  %15347 = vmatprep.subr.bf16.mxu1 %v15346_v10  ;;  %v20584_v7 = vld [vmem:[%s19901_s30 + $0x40] sm:$0xff] }
  0xd7   : > { %v749_v44 = vsel %vm27978_vm2, %v17355_v4, %v17339_v20  ;;  %v741_v53 = vsel %vm27978_vm2, %v17354_v3, %v17334_v1  ;;  %15349 = vmatpush1.bf16.msra.mxu1 %v15348_v47  ;;  %v17378_v13 = vpop.permute.xlu1 %17377  ;;  %14195 = vmatmul.mubr.msk.f32.gmra.mrb[10].mxu0 %vm27992_vm1, %v20306_v21  ;;  %v758_v26 = vsel %vm27978_vm2, %v17369_v50, %v17370_v9 }
  0xd8   : > { %v15353_v6 = vpack.c.bf16 %v749_v44, %v741_v53  ;;  %v20473_v11 = vpop.permute.xlu0 %17362  ;;  %1478 = vmatprep.mubr.f32.mxu0 %v27940_v0  ;;  %v17379_v61 = vunpack.i.l.bf16 %v17378_v13 }
  0xd9   : > { %v17365_v20 = vunpack.i.h.bf16 %v20473_v11  ;;  %v17364_v30 = vunpack.i.l.bf16 %v20473_v11  ;;  %17667 = vrot.lane.b32.xlu1 %v20049_v16, %s19835_s9  ;;  %v17380_v16 = vunpack.i.h.bf16 %v17378_v13  ;;  %v28216_v11 = vmov 0 }
  0xda   : > { %17652 = vrot.lane.b32.xlu0 %v20053_v17, %s19835_s9  ;;  %15355 = vmatpush1.bf16.msk.msra.mxu0 %vm20467_vm6, %v15353_v6  ;;  %v28206_v17 = vmov 0  ;;  %v757_v28 = vsel %vm27978_vm2, %v17379_v61, %v17369_v50 }
  0xdb   : > { %v751_v2 = vsel %vm27978_vm2, %v17340_v45, %v17364_v30  ;;  %v752_v51 = vsel %vm27978_vm2, %v17364_v30, %v17365_v20  ;;  %v20508_v23 = vpop.permute.xlu1 %17387  ;;  %v28207_v17 = vsel %vm20513_vm9, 4294967295, %v28206_v17  ;;  %14198 = vmatmul.mubr.msk.f32.vlgmr.msra.gmra.mrb[8].mxu1 %vm27992_vm1, %v20284_v15  ;;  %14196 = vmatmul.mubr.msk.f32.gmra.mrb[12].mxu0 %vm27992_vm1, %v20322_v27  ;;  %v20587_v30 = vld [vmem:[%s19901_s30 + $0x48] sm:$0xff] }
  0xdc   : > { %28208 = vst [vmem:[#allocation7_spill] sm:$0xff] %v28207_v17  ;;  %v15377_v42 = vpack.c.bf16 %v751_v2, %v743_v36  ;;  %v27936_v45 = vunpack.i.h.bf16 %v20508_v23  ;;  %v17373_v58 = vpop.permute.xlu0 %17372  ;;  %v15374_v1 = vpack.c.bf16 %v752_v51, %v744_v49  ;;  %1484 = vmatprep.mubr.f32.mxu0 %v27940_v0  ;;  %1561 = vmatprep.mubr.f32.mxu1 %v27940_v0  ;;  %v17389_v19 = vunpack.i.l.bf16 %v20508_v23  ;;  %v20620_v51 = vld [vmem:[%s19901_s30] sm:$0xff] }
  0xdd   : > { %v17375_v15 = vunpack.i.h.bf16 %v17373_v58  ;;  %v17374_v59 = vunpack.i.l.bf16 %v17373_v58  ;;  %17677 = vrot.lane.b32.xlu1 %v20061_v24, %s19835_s9  ;;  %v17706_v54 = vpack.i.bf16 %v20587_v30, %v20584_v7 }
  0xde   : > { %17662 = vrot.lane.b32.xlu0 %v20065_v25, %s19835_s9  ;;  %15376 = vmatprep.subr.msk.bf16.mxu1 %vm20513_vm9, %v15374_v1  ;;  %v768_v25 = vsel %vm27978_vm2, %v17389_v19, %v27936_v45 }
  0xdf   : > { %v765_v57 = vsel %vm27978_vm2, %v17380_v16, %v17374_v59  ;;  %v766_v52 = vsel %vm27978_vm2, %v17374_v59, %v17375_v15  ;;  %15379 = vmatpush1.bf16.msk.msra.mxu1 %vm20525_vm10, %v15377_v42  ;;  %v20544_v24 = vpop.permute.xlu1 %17397  ;;  %14197 = vmatmul.mubr.msk.f32.gmra.mrb[14].mxu0 %vm27992_vm1, %v20348_v29  ;;  %v20608_v16 = vld [vmem:[%s19901_s30 + $0x18] sm:$0xff]  ;;  %v20623_v42 = vld [vmem:[%s19901_s30 + $0x8] sm:$0xff] }
  0xe0   : > { %v15359_v18 = vpack.c.bf16 %v765_v57, %v757_v28  ;;  %v20551_v39 = vpop.permute.xlu0 %17382  ;;  %v15356_v41 = vpack.c.bf16 %v766_v52, %v758_v26  ;;  %14199 = vmatmul.mubr.msk.f32.gmra.mrb[10].mxu1 %vm27992_vm1, %v20306_v21  ;;  %1656 = vmatprep.mubr.f32.mxu0 %v27940_v0  ;;  %v17400_v62 = vunpack.i.h.bf16 %v20544_v24  ;;  %v17399_v31 = vunpack.i.l.bf16 %v20544_v24  ;;  %v20632_v28 = vld [vmem:[%s19901_s30 + $0x80] sm:$0xff] }
  0xe1   : > { %v27935_v10 = vunpack.i.h.bf16 %v20551_v39  ;;  %v17384_v47 = vunpack.i.l.bf16 %v20551_v39  ;;  %17687 = vrot.lane.b32.xlu1 %v20073_v34, %s19835_s9  ;;  %1567 = vmatprep.mubr.f32.mxu1 %v27940_v0  ;;  %v767_v21 = vsel %vm27978_vm2, %v17375_v15, %v17389_v19  ;;  %v17701_v58 = vpack.i.bf16 %v20623_v42, %v20620_v51 }
  0xe2   : > { %17672 = vrot.lane.b32.xlu0 %v20077_v35, %s19835_s9  ;;  %15358 = vmatprep.subr.msk.bf16.mxu0 %vm20427_vm4, %v15356_v41  ;;  %v782_v53 = vsel %vm27978_vm2, %v17399_v31, %v17400_v62  ;;  %v20640_v52 = vadd.s32 640, %v20357_v60  ;;  %v20646_v41 = vadd.s32 512, %v20357_v60 }
  0xe3   : > { %v759_v4 = vsel %vm27978_vm2, %v17370_v9, %v17384_v47  ;;  %v760_v3 = vsel %vm27978_vm2, %v17384_v47, %v27935_v10  ;;  %15361 = vmatpush1.bf16.msk.msra.mxu0 %vm20467_vm6, %v15359_v18  ;;  %v20574_v34 = vpop.permute.xlu1 %17407 }
  0xe4   : > { %v15383_v46 = vpack.c.bf16 %v767_v21, %v759_v4  ;;  %v17393_v44 = vpop.permute.xlu0 %17392  ;;  %v15380_v35 = vpack.c.bf16 %v768_v25, %v760_v3  ;;  %14200 = vmatmul.mubr.msk.f32.gmra.mrb[12].mxu1 %vm27992_vm1, %v20322_v27  ;;  %v27933_v2 = vunpack.i.h.bf16 %v20574_v34 }
  0xe5   : > { %v17395_v13 = vunpack.i.h.bf16 %v17393_v44  ;;  %v17394_v6 = vunpack.i.l.bf16 %v17393_v44  ;;  %17697 = vrot.lane.b32.xlu1 %v20091_v43, %s19835_s9  ;;  %1573 = vmatprep.mubr.f32.mxu1 %v27940_v0 }
  0xe6   : > { %17682 = vrot.lane.b32.xlu0 %v20085_v40, %s19835_s9  ;;  %15382 = vmatprep.subr.msk.bf16.mxu1 %vm20513_vm9, %v15380_v35  ;;  %v20605_v40 = vld [vmem:[%s19901_s30 + $0x10] sm:$0xff] }
  0xe7   : > { %v774_v27 = vsel %vm27978_vm2, %v17394_v6, %v17395_v13  ;;  %15385 = vmatpush1.bf16.msk.msra.mxu1 %vm20525_vm10, %v15383_v46  ;;  %v20599_v43 = vpop.permute.xlu1 %17417  ;;  %v17716_v61 = vpack.i.bf16 %v20608_v16, %v20605_v40 }
  0xe8   : > { %v17403_v36 = vpop.permute.xlu0 %17402  ;;  %v15362_v49 = vpack.c.bf16 %v782_v53, %v774_v27  ;;  %14201 = vmatmul.mubr.msk.f32.gmra.mrb[14].mxu1 %vm27992_vm1, %v20348_v29  ;;  %v17409_v29 = vunpack.i.l.bf16 %v20574_v34  ;;  %v17420_v21 = vunpack.i.h.bf16 %v20599_v43  ;;  %v17419_v4 = vunpack.i.l.bf16 %v20599_v43  ;;  %v20821_v43 = vld [vmem:[%s19901_s30 + $0x110] sm:$0xff] }
  0xe9   : > { %v17405_v9 = vunpack.i.h.bf16 %v17403_v36  ;;  %v17404_v50 = vunpack.i.l.bf16 %v17403_v36  ;;  %17707 = vrot.lane.b32.xlu1 %v17706_v54, %s19836_s18  ;;  %1745 = vmatprep.mubr.f32.mxu1 %v27940_v0  ;;  %v27926_v27 = vand.u32 31, %v20640_v52 }
  0xea   : > { %17692 = vrot.lane.b32.xlu0 %v20101_v48, %s19835_s9  ;;  %15364 = vmatprep.subr.msk.bf16.mxu0 %vm20427_vm4, %v15362_v49  ;;  %v20635_v48 = vld [vmem:[%s19901_s30 + $0x88] sm:$0xff]  ;;  %v775_v47 = vsel %vm27978_vm2, %v17395_v13, %v17409_v29  ;;  %v790_v49 = vsel %vm27978_vm2, %v17419_v4, %v17420_v21 }
  0xeb   : > { %v781_v1 = vsel %vm27978_vm2, %v17405_v9, %v17399_v31  ;;  %v773_v15 = vsel %vm27978_vm2, %v17404_v50, %v17394_v6  ;;  %v17428_v59 = vpop.permute.xlu1 %17427  ;;  %v17726_v57 = vpack.i.bf16 %v20635_v48, %v20632_v28  ;;  %v776_v31 = vsel %vm27978_vm2, %v17409_v29, %v27933_v2  ;;  %v20680_v9 = vld [vmem:[%s19901_s30 + $0x50] sm:$0xff]  ;;  %v20683_v50 = vld [vmem:[%s19901_s30 + $0x58] sm:$0xff] }
  0xec   : > { %v15365_v26 = vpack.c.bf16 %v781_v1, %v773_v15  ;;  %v20629_v19 = vpop.permute.xlu0 %17412  ;;  %v17430_v3 = vunpack.i.h.bf16 %v17428_v59  ;;  %v17429_v46 = vunpack.i.l.bf16 %v17428_v59  ;;  %v20688_v29 = vld [vmem:[%s19901_s30 + $0xd0] sm:$0xff]  ;;  %v27928_v15 = vand.u32 31, %v20646_v41  ;;  %v20800_v2 = vld [vmem:[%s19901_s30 + $0x98] sm:$0xff] }
  0xed   : > { %v27934_v25 = vunpack.i.h.bf16 %v20629_v19  ;;  %v17414_v18 = vunpack.i.l.bf16 %v20629_v19  ;;  %17717 = vrot.lane.b32.xlu1 %v17716_v61, %s19836_s18  ;;  %v17721_v61 = vpack.i.bf16 %v20683_v50, %v20680_v9  ;;  %vm20710_vm11 = vcmp.gt.s32.totalorder %v27926_v27, 0 }
  0xee   : > { %17702 = vrot.lane.b32.xlu0 %v17701_v58, %s19836_s18  ;;  %15367 = vmatpush1.bf16.msk.msra.mxu0 %vm20467_vm6, %v15365_v26  ;;  %v20691_v58 = vld [vmem:[%s19901_s30 + $0xd8] sm:$0xff]  ;;  %v789_v59 = vsel %vm27978_vm2, %v17429_v46, %v17419_v4  ;;  %vm20738_vm12 = vcmp.gt.s32.totalorder %v27928_v15, 0  ;;  %vm20760_vm13 = vmpackc.low %vm20710_vm11, %vm20710_vm11 }
  0xef   : > { %v783_v44 = vsel %vm27978_vm2, %v17400_v62, %v17414_v18  ;;  %v784_v35 = vsel %vm27978_vm2, %v17414_v18, %v27934_v25  ;;  %v20663_v53 = vpop.permute.xlu1 %17437  ;;  %v17746_v1 = vpack.i.bf16 %v20691_v58, %v20688_v29  ;;  %v28217_v11 = vsel %vm20760_vm13, 4294967295, %v28216_v11  ;;  %vm20789_vm14 = vmpackc.low %vm20738_vm12, %vm20738_vm12 }
  0xf0   : > { %v15389_v13 = vpack.c.bf16 %v783_v44, %v775_v47  ;;  %v20665_v6 = vpop.permute.xlu0 %17422  ;;  %v15386_v54 = vpack.c.bf16 %v784_v35, %v776_v31  ;;  %v17440_v36 = vunpack.i.h.bf16 %v20663_v53  ;;  %v17439_v26 = vunpack.i.l.bf16 %v20663_v53  ;;  %28218 = vst [vmem:[#allocation9_spill] sm:$0xff] %v28217_v11 }
  0xf1   : > { %v17425_v24 = vunpack.i.h.bf16 %v20665_v6  ;;  %v17424_v62 = vunpack.i.l.bf16 %v20665_v6  ;;  %17727 = vrot.lane.b32.xlu1 %v17726_v57, %s19836_s18  ;;  %v28221_v37 = vsel %vm20789_vm14, 4294967295, %v28220_v37 }
  0xf2   : > { %17712 = vrot.lane.b32.xlu0 %v27940_v0, %s19836_s18  ;;  %15388 = vmatprep.subr.msk.bf16.mxu1 %vm20513_vm9, %v15386_v54  ;;  %v754_v46 = vsel %vm27978_vm2, %v17439_v26, %v17440_v36  ;;  %28222 = vst [vmem:[#allocation11_spill] sm:$0xff] %v28221_v37  ;;  %v21097_v37 = vld [vmem:[%s19901_s30 + $0xf8] sm:$0xff] }
  0xf3   : > { %v797_v57 = vsel %vm27978_vm2, %v17430_v3, %v17424_v62  ;;  %v798_v18 = vsel %vm27978_vm2, %v17424_v62, %v17425_v24  ;;  %15391 = vmatpush1.bf16.msk.msra.mxu1 %vm20525_vm10, %v15389_v13  ;;  %v20704_v31 = vpop.permute.xlu1 %17447  ;;  %v20715_v3 = vadd.s32 896, %v20357_v60  ;;  %28261 = vst [vmem:[#allocation30_spill] sm:$0xff] %v21097_v37 }
  0xf4   : > { %v15371_v47 = vpack.c.bf16 %v797_v57, %v789_v59  ;;  %v20706_v44 = vpop.permute.xlu0 %17432  ;;  %v15368_v35 = vpack.c.bf16 %v798_v18, %v790_v49  ;;  %v27932_v13 = vunpack.i.h.bf16 %v20704_v31  ;;  %v20729_v49 = vld [vmem:[%s19901_s30 + $0xc0] sm:$0xff]  ;;  %v20732_v59 = vld [vmem:[%s19901_s30 + $0xc8] sm:$0xff]  ;;  %v17449_v27 = vunpack.i.l.bf16 %v20704_v31 }
  0xf5   : > { %v27937_v54 = vunpack.i.h.bf16 %v20706_v44  ;;  %v17434_v62 = vunpack.i.l.bf16 %v20706_v44  ;;  %17737 = vrot.lane.b32.xlu1 %v27940_v0, %s19836_s18  ;;  %v17731_v57 = vpack.i.bf16 %v20732_v59, %v20729_v49  ;;  %v27938_v5 = vand.u32 31, %v20715_v3 }
  0xf6   : > { %17722 = vrot.lane.b32.xlu0 %v17721_v61, %s19836_s18  ;;  %15370 = vmatprep.subr.msk.bf16.mxu0 %vm20427_vm4, %v15368_v35  ;;  %v20743_v61 = vadd.s32 768, %v20357_v60  ;;  %v753_v35 = vsel %vm27978_vm2, %v17365_v20, %v17439_v26  ;;  %v20769_v26 = vld [vmem:[%s27919_s1] sm:$0xff]  ;;  %v799_v25 = vsel %vm27978_vm2, %v17425_v24, %v17449_v27  ;;  %v20891_v24 = vld [vmem:[%s27919_s1 + $0x10] sm:$0xff] }
  0xf7   : > { %v745_v32 = vsel %vm27978_vm2, %v17360_v33, %v17434_v62  ;;  %v746_v15 = vsel %vm27978_vm2, %v17434_v62, %v27937_v54  ;;  %15373 = vmatpush1.bf16.msk.msra.mxu0 %vm20467_vm6, %v15371_v47  ;;  %v17458_v63 = vpop.permute.xlu1 %17457  ;;  %v20772_v47 = vld [vmem:[%s19901_s30 + $0x140] sm:$0xff]  ;;  %v20775_v62 = vld [vmem:[%s19901_s30 + $0x148] sm:$0xff]  ;;  %vm20830_vm15 = vcmp.gt.s32.totalorder %v27938_v5, 0 }
  0xf8   : > { %v15401_v20 = vpack.c.bf16 %v753_v35, %v745_v32  ;;  %v20764_v55 = vpop.permute.xlu0 %17442  ;;  %v15398_v33 = vpack.c.bf16 %v754_v46, %v746_v15  ;;  %28219 = vst [vmem:[#allocation10_spill] sm:$0xff] %v20772_v47  ;;  %v17756_v4 = vpack.i.bf16 %v20775_v62, %v20772_v47  ;;  %v800_v32 = vsel %vm27978_vm2, %v17449_v27, %v27932_v13  ;;  %v20797_v13 = vld [vmem:[%s19901_s30 + $0x90] sm:$0xff]  ;;  %v20850_v5 = vld [vmem:[%s19901_s30 + $0x108] sm:$0xff]  ;;  %vm20873_vm5 = vmpackc.low %vm20830_vm15, %vm20830_vm15 }
  0xf9   : > { %v17460_v35 = vunpack.i.h.bf16 %v17458_v63  ;;  %v27939_v15 = vunpack.i.h.bf16 %v20764_v55  ;;  %v17444_v46 = vunpack.i.l.bf16 %v20764_v55  ;;  %17747 = vrot.lane.b32.xlu1 %v17746_v1, %s19836_s18  ;;  %v17741_v1 = vpack.i.bf16 %v20800_v2, %v20797_v13 }
  0xfa   : > { %17732 = vrot.lane.b32.xlu0 %v17731_v57, %s19836_s18  ;;  %15400 = vmatprep.subr.msk.bf16.mxu0 %vm20760_vm13, %v15398_v33  ;;  %v27944_v18 = vand.u32 31, %v20743_v61  ;;  %v17459_v10 = vunpack.i.l.bf16 %v17458_v63 }
  0xfb   : > { %v791_v57 = vsel %vm27978_vm2, %v17420_v21, %v17444_v46  ;;  %v792_v33 = vsel %vm27978_vm2, %v17444_v46, %v27939_v15  ;;  %14218 = vmatmul.mubr.msk.f32.vlgmr.msra.gmra.mrb[0].mxu0 %vm27992_vm1, %v20769_v26  ;;  %v20816_v45 = vpop.permute.xlu1 %17467  ;;  %v20824_v21 = vld [vmem:[%s19901_s30 + $0x118] sm:$0xff] }
  0xfc   : > { %v15395_v54 = vpack.c.bf16 %v799_v25, %v791_v57  ;;  %15403 = vmatpush1.bf16.msk.msra.mxu0 %vm20789_vm14, %v15401_v20  ;;  %v17453_v6 = vpop.permute.xlu0 %17452  ;;  %v15392_v63 = vpack.c.bf16 %v800_v32, %v792_v33  ;;  %v17766_v27 = vpack.i.bf16 %v20824_v21, %v20821_v43  ;;  %1662 = vmatprep.mubr.f32.mxu0 %v27940_v0  ;;  %v20838_v25 = vld [vmem:[%s27919_s1 + $0x8] sm:$0xff]  ;;  %v17470_v32 = vunpack.i.h.bf16 %v20816_v45  ;;  %v20847_v33 = vld [vmem:[%s19901_s30 + $0x100] sm:$0xff] }
  0xfd   : > { %v756_v20 = vsel %vm27978_vm2, %v17459_v10, %v17460_v35  ;;  %v17455_v46 = vunpack.i.h.bf16 %v17453_v6  ;;  %v17454_v57 = vunpack.i.l.bf16 %v17453_v6  ;;  %17757 = vrot.lane.b32.xlu1 %v17756_v4, %s19836_s18  ;;  %28225 = vst [vmem:[#allocation12_spill] sm:$0xff] %v20847_v33  ;;  %v17751_v35 = vpack.i.bf16 %v20850_v5, %v20847_v33 }
  0xfe   : > { %17742 = vrot.lane.b32.xlu0 %v17741_v1, %s19836_s18  ;;  %15394 = vmatprep.subr.msk.bf16.mxu1 %vm20513_vm9, %v15392_v63  ;;  %vm20856_vm3 = vcmp.gt.s32.totalorder %v27944_v18, 0  ;;  %v755_v4 = vsel %vm27978_vm2, %v17440_v36, %v17459_v10  ;;  %v17469_v1 = vunpack.i.l.bf16 %v20816_v45  ;;  %v28228_v63 = vunpack.i.h.bf16 %v20706_v44  ;;  %v20880_v36 = vld [vmem:[%s19901_s30 + $0x180] sm:$0xff]  ;;  %v20883_v44 = vld [vmem:[%s19901_s30 + $0x188] sm:$0xff] }
  0xff   : > { %v748_v0 = vsel %vm27978_vm2, %v17454_v57, %v17455_v46  ;;  %15397 = vmatpush1.bf16.msk.msra.mxu1 %vm20525_vm10, %v15395_v54  ;;  %v17478_v17 = vpop.permute.xlu1 %17477  ;;  %v28229_v18 = vmov 0  ;;  %14219 = vmatmul.mubr.msk.f32.gmra.mrb[2].mxu0 %vm27992_vm1, %v20838_v25  ;;  %28232 = vst [vmem:[#allocation14_spill] sm:$0xff] %v20880_v36  ;;  %v17776_v54 = vpack.i.bf16 %v20883_v44, %v20880_v36  ;;  %v28233_v46 = vmov 0.0   ;;  %vm20898_vm7 = vmpackc.low %vm20856_vm3, %vm20856_vm3  ;;  %v20951_v36 = vld [vmem:[%s19901_s30 + $0x60] sm:$0xff] }
 0x100   : > { %v747_v15 = vsel %vm27978_vm2, %v28228_v63, %v17454_v57  ;;  %v28230_v18 = vsel %vm20873_vm5, 4294967295, %v28229_v18  ;;  %v17463_v10 = vpop.permute.xlu0 %17462  ;;  %v15422_v53 = vpack.c.bf16 %v756_v20, %v748_v0  ;;  %1668 = vmatprep.mubr.f32.mxu0 %v28233_v46  ;;  %v770_v57 = vsel %vm27978_vm2, %v17469_v1, %v17470_v32 }
 0x101   : > { %28231 = vst [vmem:[#allocation13_spill] sm:$0xff] %v28230_v18  ;;  %v15425_v45 = vpack.c.bf16 %v755_v4, %v747_v15  ;;  %v17480_v63 = vunpack.i.h.bf16 %v17478_v17  ;;  %v17465_v15 = vunpack.i.h.bf16 %v17463_v10  ;;  %v17464_v4 = vunpack.i.l.bf16 %v17463_v10  ;;  %17767 = vrot.lane.b32.xlu1 %v17766_v27, %s19836_s18  ;;  %v21138_v18 = vld [vmem:[%s19901_s30 + $0x168] sm:$0xff] }
 0x102   : > { %v28234_v0 = vmov 0  ;;  %17752 = vrot.lane.b32.xlu0 %v17751_v35, %s19836_s18  ;;  %15424 = vmatprep.subr.msk.bf16.mxu1 %vm20873_vm5, %v15422_v53  ;;  %v28237_v20 = vunpack.i.h.bf16 %v20508_v23  ;;  %v17479_v12 = vunpack.i.l.bf16 %v17478_v17  ;;  %v28238_v10 = vunpack.i.h.bf16 %v20551_v39  ;;  %28269 = vst [vmem:[#allocation33_spill] sm:$0xff] %v21138_v18 }
 0x103   : > { %v28235_v0 = vsel %vm20898_vm7, 4294967295, %v28234_v0  ;;  %v762_v6 = vsel %vm27978_vm2, %v17464_v4, %v17465_v15  ;;  %14238 = vmatmul.mubr.msk.f32.vlgmr.msra.gmra.mrb[0].mxu1 %vm27992_vm1, %v20769_v26  ;;  %v20914_v22 = vpop.permute.xlu1 %17487  ;;  %14220 = vmatmul.mubr.msk.f32.gmra.mrb[4].mxu0 %vm27992_vm1, %v20891_v24 }
 0x104   : > { %28236 = vst [vmem:[#allocation15_spill] sm:$0xff] %v28235_v0  ;;  %v769_v8 = vsel %vm27978_vm2, %v28237_v20, %v17469_v1  ;;  %v761_v27 = vsel %vm27978_vm2, %v28238_v10, %v17464_v4  ;;  %15427 = vmatpush1.bf16.msk.msra.mxu1 %vm20898_vm7, %v15425_v45  ;;  %v17473_v17 = vpop.permute.xlu0 %17472  ;;  %v15404_v39 = vpack.c.bf16 %v770_v57, %v762_v6  ;;  %v17490_v1 = vunpack.i.h.bf16 %v20914_v22  ;;  %v20935_v45 = vld [vmem:[%s19901_s30 + $0x150] sm:$0xff]  ;;  %v20938_v57 = vld [vmem:[%s19901_s30 + $0x158] sm:$0xff] }
 0x105   : > { %v15407_v23 = vpack.c.bf16 %v769_v8, %v761_v27  ;;  %1751 = vmatprep.mubr.f32.mxu1 %v28233_v46  ;;  %v772_v35 = vsel %vm27978_vm2, %v17479_v12, %v17480_v63  ;;  %v17475_v53 = vunpack.i.h.bf16 %v17473_v17  ;;  %v17474_v4 = vunpack.i.l.bf16 %v17473_v17  ;;  %17777 = vrot.lane.b32.xlu1 %v17776_v54, %s19836_s18  ;;  %v20928_v8 = vld [vmem:[%s27919_s1 + $0x18] sm:$0xff]  ;;  %28239 = vst [vmem:[#allocation16_spill] sm:$0xff] %v20938_v57 }
 0x106   : > { %1674 = vmatprep.mubr.f32.mxu0 %v28233_v46  ;;  %17762 = vrot.lane.b32.xlu0 %v28233_v46, %s19836_s18  ;;  %v17771_v54 = vpack.i.bf16 %v20938_v57, %v20935_v45  ;;  %v771_v63 = vsel %vm27978_vm2, %v17470_v32, %v17479_v12  ;;  %v17489_v20 = vunpack.i.l.bf16 %v20914_v22  ;;  %v20954_v12 = vld [vmem:[%s19901_s30 + $0x68] sm:$0xff] }
 0x107   : > { %15406 = vmatprep.subr.msk.bf16.mxu0 %vm20760_vm13, %v15404_v39  ;;  %v763_v10 = vsel %vm27978_vm2, %v17465_v15, %v17474_v4  ;;  %v764_v27 = vsel %vm27978_vm2, %v17474_v4, %v17475_v53  ;;  %v17498_v6 = vpop.permute.xlu1 %17497  ;;  %14239 = vmatmul.mubr.msk.f32.gmra.mrb[2].mxu1 %vm27992_vm1, %v20838_v25  ;;  %28240 = vst [vmem:[#allocation17_spill] sm:$0xff] %v20954_v12  ;;  %v20972_v4 = vld [vmem:[%s19901_s30 + $0x1c8] sm:$0xff] }
 0x108   : > { %15409 = vmatpush1.bf16.msk.msra.mxu0 %vm20789_vm14, %v15407_v23  ;;  %v15431_v17 = vpack.c.bf16 %v771_v63, %v763_v10  ;;  %v17483_v39 = vpop.permute.xlu0 %17482  ;;  %v15428_v57 = vpack.c.bf16 %v772_v35, %v764_v27  ;;  %v17796_v22 = vpack.i.bf16 %v20954_v12, %v20951_v36  ;;  %1757 = vmatprep.mubr.f32.mxu1 %v28233_v46  ;;  %v17500_v15 = vunpack.i.h.bf16 %v17498_v6  ;;  %v20969_v35 = vld [vmem:[%s19901_s30 + $0x1c0] sm:$0xff] }
 0x109   : > { %14221 = vmatmul.mubr.msk.f32.gmra.mrb[6].mxu0 %vm27992_vm1, %v20928_v8  ;;  %v786_v32 = vsel %vm27978_vm2, %v17489_v20, %v17490_v1  ;;  %v17485_v23 = vunpack.i.h.bf16 %v17483_v39  ;;  %v17484_v53 = vunpack.i.l.bf16 %v17483_v39  ;;  %17787 = vrot.lane.b32.xlu1 %v28233_v46, %s19836_s18  ;;  %28241 = vst [vmem:[#allocation18_spill] sm:$0xff] %v20969_v35  ;;  %28242 = vst [vmem:[#allocation19_spill] sm:$0xff] %v20972_v4  ;;  %v28243_v10 = vunpack.i.h.bf16 %v20629_v19  ;;  %v20988_v19 = vld [vmem:[%s19901_s30 + $0x1d0] sm:$0xff] }
 0x10a   : > { %1834 = vmatprep.mubr.f32.mxu0 %v28233_v46  ;;  %17772 = vrot.lane.b32.xlu0 %v17771_v54, %s19836_s18  ;;  %v17781_v63 = vpack.i.bf16 %v20972_v4, %v20969_v35  ;;  %v17499_v39 = vunpack.i.l.bf16 %v17498_v6  ;;  %v28244_v12 = vunpack.i.h.bf16 %v20574_v34  ;;  %28245 = vst [vmem:[#allocation20_spill] sm:$0xff] %v20988_v19 }
 0x10b   : > { %15430 = vmatprep.subr.msk.bf16.mxu1 %vm20873_vm5, %v15428_v57  ;;  %v785_v27 = vsel %vm27978_vm2, %v28243_v10, %v17489_v20  ;;  %v778_v54 = vsel %vm27978_vm2, %v17484_v53, %v17485_v23  ;;  %v20985_v57 = vpop.permute.xlu1 %17507  ;;  %v20991_v20 = vld [vmem:[%s19901_s30 + $0x1d8] sm:$0xff]  ;;  %14240 = vmatmul.mubr.msk.f32.gmra.mrb[4].mxu1 %vm27992_vm1, %v20891_v24 }
 0x10c   : > { %v777_v47 = vsel %vm27978_vm2, %v28244_v12, %v17484_v53  ;;  %15433 = vmatpush1.bf16.msk.msra.mxu1 %vm20898_vm7, %v15431_v17  ;;  %v17493_v4 = vpop.permute.xlu0 %17492  ;;  %v15410_v35 = vpack.c.bf16 %v786_v32, %v778_v54  ;;  %28246 = vst [vmem:[#allocation21_spill] sm:$0xff] %v20991_v20  ;;  %v17806_v34 = vpack.i.bf16 %v20991_v20, %v20988_v19  ;;  %v17510_v17 = vunpack.i.h.bf16 %v20985_v57  ;;  %v21008_v32 = vld [vmem:[%s19901_s30 + $0x28] sm:$0xff] }
 0x10d   : > { %v15413_v33 = vpack.c.bf16 %v785_v27, %v777_v47  ;;  %v788_v6 = vsel %vm27978_vm2, %v17499_v39, %v17500_v15  ;;  %v17495_v12 = vunpack.i.h.bf16 %v17493_v4  ;;  %v17494_v53 = vunpack.i.l.bf16 %v17493_v4  ;;  %17797 = vrot.lane.b32.xlu1 %v17796_v22, %s19836_s18  ;;  %1763 = vmatprep.mubr.f32.mxu1 %v28233_v46  ;;  %v21005_v47 = vld [vmem:[%s19901_s30 + $0x20] sm:$0xff]  ;;  %28247 = vst [vmem:[#allocation22_spill] sm:$0xff] %v21008_v32 }
 0x10e   : > { %17782 = vrot.lane.b32.xlu0 %v17781_v63, %s19836_s18  ;;  %15412 = vmatprep.subr.msk.bf16.mxu0 %vm20760_vm13, %v15410_v35  ;;  %v17791_v15 = vpack.i.bf16 %v21008_v32, %v21005_v47  ;;  %v787_v10 = vsel %vm27978_vm2, %v17490_v1, %v17499_v39  ;;  %v17509_v22 = vunpack.i.l.bf16 %v20985_v57 }
 0x10f   : > { %v779_v4 = vsel %vm27978_vm2, %v17485_v23, %v17494_v53  ;;  %v780_v63 = vsel %vm27978_vm2, %v17494_v53, %v17495_v12  ;;  %15415 = vmatpush1.bf16.msk.msra.mxu0 %vm20789_vm14, %v15413_v33  ;;  %v17518_v35 = vpop.permute.xlu1 %17517  ;;  %14241 = vmatmul.mubr.msk.f32.gmra.mrb[6].mxu1 %vm27992_vm1, %v20928_v8  ;;  %v21023_v23 = vld [vmem:[%s19901_s30 + $0x70] sm:$0xff]  ;;  %v21026_v12 = vld [vmem:[%s19901_s30 + $0x78] sm:$0xff] }
 0x110   : > { %v15437_v27 = vpack.c.bf16 %v787_v10, %v779_v4  ;;  %v17520_v54 = vunpack.i.h.bf16 %v17518_v35  ;;  %v17503_v20 = vpop.permute.xlu0 %17502  ;;  %v15434_v32 = vpack.c.bf16 %v788_v6, %v780_v63  ;;  %v802_v1 = vsel %vm27978_vm2, %v17509_v22, %v17510_v17  ;;  %28248 = vst [vmem:[#allocation23_spill] sm:$0xff] %v21023_v23  ;;  %28249 = vst [vmem:[#allocation24_spill] sm:$0xff] %v21026_v12 }
 0x111   : > { %v17505_v39 = vunpack.i.h.bf16 %v17503_v20  ;;  %v17504_v57 = vunpack.i.l.bf16 %v17503_v20  ;;  %17807 = vrot.lane.b32.xlu1 %v17806_v34, %s19836_s18  ;;  %v17816_v33 = vpack.i.bf16 %v21026_v12, %v21023_v23  ;;  %1923 = vmatprep.mubr.f32.mxu1 %v28233_v46  ;;  %v17519_v6 = vunpack.i.l.bf16 %v17518_v35  ;;  %v21035_v20 = vld [vmem:[%s19901_s30 + $0x190] sm:$0xff]  ;;  %v21038_v34 = vld [vmem:[%s19901_s30 + $0x198] sm:$0xff]  ;;  %v21055_v23 = vld [vmem:[%s19901_s30 + $0xe0] sm:$0xff] }
 0x112   : > { %17792 = vrot.lane.b32.xlu0 %v17791_v15, %s19836_s18  ;;  %15436 = vmatprep.subr.msk.bf16.mxu1 %vm20873_vm5, %v15434_v32  ;;  %28250 = vst [vmem:[#allocation25_spill] sm:$0xff] %v21038_v34  ;;  %v17801_v53 = vpack.i.bf16 %v21038_v34, %v21035_v20  ;;  %v28251_v10 = vunpack.i.h.bf16 %v20704_v31  ;;  %v28252_v63 = vunpack.i.h.bf16 %v20764_v55 }
 0x113   : > { %v794_v15 = vsel %vm27978_vm2, %v17504_v57, %v17505_v39  ;;  %15439 = vmatpush1.bf16.msk.msra.mxu1 %vm20898_vm7, %v15437_v27  ;;  %v21051_v32 = vpop.permute.xlu1 %17527  ;;  %v804_v12 = vsel %vm27978_vm2, %v17519_v6, %v17520_v54  ;;  %v21069_v54 = vld [vmem:[%s19901_s30 + $0x30] sm:$0xff] }
 0x114   : > { %v801_v4 = vsel %vm27978_vm2, %v28251_v10, %v17509_v22  ;;  %v793_v35 = vsel %vm27978_vm2, %v28252_v63, %v17504_v57  ;;  %v17513_v19 = vpop.permute.xlu0 %17512  ;;  %v15416_v31 = vpack.c.bf16 %v802_v1, %v794_v15  ;;  %v21058_v22 = vld [vmem:[%s19901_s30 + $0xe8] sm:$0xff]  ;;  %v17529_v27 = vunpack.i.l.bf16 %v21051_v32  ;;  %28254 = vst [vmem:[#allocation27_spill] sm:$0xff] %v21069_v54  ;;  %v21072_v1 = vld [vmem:[%s19901_s30 + $0x38] sm:$0xff] }
 0x115   : > { %v15419_v34 = vpack.c.bf16 %v801_v4, %v793_v35  ;;  %28253 = vst [vmem:[#allocation26_spill] sm:$0xff] %v21058_v22  ;;  %v17826_v55 = vpack.i.bf16 %v21058_v22, %v21055_v23  ;;  %v17515_v10 = vunpack.i.h.bf16 %v17513_v19  ;;  %v17514_v63 = vunpack.i.l.bf16 %v17513_v19  ;;  %17817 = vrot.lane.b32.xlu1 %v17816_v33, %s19836_s18  ;;  %28255 = vst [vmem:[#allocation28_spill] sm:$0xff] %v21072_v1 }
 0x116   : > { %17802 = vrot.lane.b32.xlu0 %v17801_v53, %s19836_s18  ;;  %15418 = vmatprep.subr.msk.bf16.mxu0 %vm20760_vm13, %v15416_v31  ;;  %v17811_v4 = vpack.i.bf16 %v21072_v1, %v21069_v54  ;;  %v803_v35 = vsel %vm27978_vm2, %v17510_v17, %v17519_v6  ;;  %v28256_v15 = vand.u32 31, %v20379_v38 }
 0x117   : > { %v795_v19 = vsel %vm27978_vm2, %v17505_v39, %v17514_v63  ;;  %v796_v33 = vsel %vm27978_vm2, %v17514_v63, %v17515_v10  ;;  %15421 = vmatpush1.bf16.msk.msra.mxu0 %vm20789_vm14, %v15419_v34  ;;  %v21081_v53 = vpop.permute.xlu1 %17537  ;;  %v28259_v39 = vunpack.i.h.bf16 %v21051_v32  ;;  %v21094_v34 = vld [vmem:[%s19901_s30 + $0xf0] sm:$0xff] }
 0x118   : > { %vm21085_vm11 = vcmp.lt.s32.totalorder %v28256_v15, 31  ;;  %v15443_v57 = vpack.c.bf16 %v803_v35, %v795_v19  ;;  %v17523_v11 = vpop.permute.xlu0 %17522  ;;  %v15440_v17 = vpack.c.bf16 %v804_v12, %v796_v33  ;;  %28260 = vst [vmem:[#allocation29_spill] sm:$0xff] %v21094_v34  ;;  %v17836_v38 = vpack.i.bf16 %v21097_v37, %v21094_v34  ;;  %v21105_v12 = vld [vmem:[%s19901_s30 + $0xa0] sm:$0xff]  ;;  %v21108_v35 = vld [vmem:[%s19901_s30 + $0xa8] sm:$0xff]  ;;  %v21267_v34 = vld [vmem:[%s19901_s30 + $0x1f8] sm:$0xff] }
 0x119   : > { %v2115_v6 = vsel %vm27995_vm8, %v17529_v27, %v28259_v39  ;;  %v17525_v10 = vunpack.i.h.bf16 %v17523_v11  ;;  %v17524_v63 = vunpack.i.l.bf16 %v17523_v11  ;;  %17827 = vrot.lane.b32.xlu1 %v17826_v55, %s19836_s18  ;;  %28262 = vst [vmem:[#allocation31_spill] sm:$0xff] %v21108_v35  ;;  %v17821_v11 = vpack.i.bf16 %v21108_v35, %v21105_v12  ;;  %vm21115_vm12 = vmpackc.low %vm21085_vm11, %vm21085_vm11 }
 0x11a   : > { %17812 = vrot.lane.b32.xlu0 %v17811_v4, %s19836_s18  ;;  %15442 = vmatprep.subr.msk.bf16.mxu1 %vm20873_vm5, %v15440_v17  ;;  %v28263_v55 = vmov 0  ;;  %v28266_v33 = vand.u32 31, %v20357_v60  ;;  %v17539_v35 = vunpack.i.l.bf16 %v21081_v53  ;;  %v28275_v15 = vand.u32 31, %v20433_v56  ;;  %28297 = vst [vmem:[#allocation46_spill] sm:$0xff] %v21267_v34 }
 0x11b   : > { %v28264_v55 = vsel %vm21115_vm12, 4294967295, %v28263_v55  ;;  %v2107_v4 = vsel %vm27995_vm8, %v17524_v63, %v17525_v10  ;;  %15445 = vmatpush1.bf16.msk.msra.mxu1 %vm20898_vm7, %v15443_v57  ;;  %v21122_v19 = vpop.permute.xlu1 %17547  ;;  %14258 = vmatmul.mubr.msk.f32.vlgmr.msra.gmra.mrb[8].mxu0 %vm27992_vm1, %v20769_v26  ;;  %v21135_v57 = vld [vmem:[%s19901_s30 + $0x160] sm:$0xff] }
 0x11c   : > { %28265 = vst [vmem:[#allocation32_spill] sm:$0xff] %v28264_v55  ;;  %vm21128_vm15 = vcmp.lt.s32.totalorder %v28266_v33, 31  ;;  %v17533_v31 = vpop.permute.xlu0 %17532  ;;  %v15446_v17 = vpack.c.bf16 %v2115_v6, %v2107_v4  ;;  %1840 = vmatprep.mubr.f32.mxu0 %v28233_v46  ;;  %v17846_v60 = vpack.i.bf16 %v21138_v18, %v21135_v57  ;;  %v21148_v6 = vld [vmem:[%s19901_s30 + $0xb0] sm:$0xff]  ;;  %v21151_v4 = vld [vmem:[%s19901_s30 + $0xb8] sm:$0xff]  ;;  %vm21170_vm11 = vcmp.lt.s32.totalorder %v28275_v15, 31 }
 0x11d   : > { %v17535_v39 = vunpack.i.h.bf16 %v17533_v31  ;;  %v17534_v0 = vunpack.i.l.bf16 %v17533_v31  ;;  %17837 = vrot.lane.b32.xlu1 %v17836_v38, %s19836_s18  ;;  %28270 = vst [vmem:[#allocation34_spill] sm:$0xff] %v21148_v6  ;;  %28271 = vst [vmem:[#allocation35_spill] sm:$0xff] %v21151_v4  ;;  %v17831_v38 = vpack.i.bf16 %v21151_v4, %v21148_v6  ;;  %v28272_v31 = vmov 0  ;;  %v21264_v4 = vld [vmem:[%s19901_s30 + $0x1f0] sm:$0xff] }
 0x11e   : > { %17822 = vrot.lane.b32.xlu0 %v17821_v11, %s19836_s18  ;;  %15448 = vmatprep.subr.msk.bf16.mxu0 %vm21115_vm12, %v15446_v17  ;;  %vm21158_vm3 = vmpackc.low %vm21128_vm15, %vm21128_vm15  ;;  %v28278_v18 = vand.u32 31, %v20439_v14  ;;  %v21191_v14 = vld [vmem:[%s19901_s30 + $0x178] sm:$0xff]  ;;  %v17550_v37 = vunpack.i.h.bf16 %v21122_v19  ;;  %v17549_v1 = vunpack.i.l.bf16 %v21122_v19  ;;  %28296 = vst [vmem:[#allocation45_spill] sm:$0xff] %v21264_v4 }
 0x11f   : > { %v28273_v31 = vsel %vm21158_vm3, 4294967295, %v28272_v31  ;;  %v2114_v11 = vsel %vm27995_vm8, %v17535_v39, %v17529_v27  ;;  %v2106_v17 = vsel %vm27995_vm8, %v17534_v0, %v17524_v63  ;;  %v17558_v33 = vpop.permute.xlu1 %17557  ;;  %14278 = vmatmul.mubr.msk.f32.vlgmr.msra.gmra.mrb[8].mxu1 %vm27992_vm1, %v20769_v26  ;;  %14259 = vmatmul.mubr.msk.f32.gmra.mrb[10].mxu0 %vm27992_vm1, %v20838_v25  ;;  %v21188_v39 = vld [vmem:[%s19901_s30 + $0x170] sm:$0xff]  ;;  %28282 = vst [vmem:[#allocation38_spill] sm:$0xff] %v21191_v14  ;;  %v28284_v26 = vunpack.i.h.bf16 %v21081_v53  ;;  %vm21215_vm2 = vmpackc.low %vm21170_vm11, %vm21170_vm11 }
 0x120   : > { %28274 = vst [vmem:[#allocation36_spill] sm:$0xff] %v28273_v31  ;;  %vm21176_vm15 = vcmp.lt.s32.totalorder %v28278_v18, 31  ;;  %v15449_v0 = vpack.c.bf16 %v2114_v11, %v2106_v17  ;;  %v21180_v63 = vpop.permute.xlu0 %17542  ;;  %1846 = vmatprep.mubr.f32.mxu0 %v28233_v46  ;;  %1929 = vmatprep.mubr.f32.mxu1 %v28233_v46  ;;  %28281 = vst [vmem:[#allocation37_spill] sm:$0xff] %v21188_v39  ;;  %v17856_v18 = vpack.i.bf16 %v21191_v14, %v21188_v39  ;;  %v21196_v11 = vld [vmem:[%s19901_s30 + $0x120] sm:$0xff]  ;;  %v21199_v17 = vld [vmem:[%s19901_s30 + $0x128] sm:$0xff] }
 0x121   : > { %v17544_v56 = vunpack.i.l.bf16 %v21180_v63  ;;  %17847 = vrot.lane.b32.xlu1 %v17846_v60, %s19836_s18  ;;  %28283 = vst [vmem:[#allocation39_spill] sm:$0xff] %v21199_v17  ;;  %v17841_v15 = vpack.i.bf16 %v21199_v17, %v21196_v11  ;;  %v2109_v6 = vsel %vm27995_vm8, %v17539_v35, %v28284_v26  ;;  %v2108_v60 = vsel %vm27995_vm8, %v17525_v10, %v17539_v35  ;;  %vm21234_vm11 = vmpackc.low %vm21176_vm15, %vm21176_vm15  ;;  %v21246_v39 = vld [vmem:[%s19901_s30 + $0x1e8] sm:$0xff] }
 0x122   : > { %17832 = vrot.lane.b32.xlu0 %v17831_v38, %s19836_s18  ;;  %15451 = vmatpush1.bf16.msk.msra.mxu0 %vm21158_vm3, %v15449_v0  ;;  %v28285_v17 = vmov 0  ;;  %v17560_v14 = vunpack.i.h.bf16 %v17558_v33  ;;  %v17559_v26 = vunpack.i.l.bf16 %v17558_v33  ;;  %v28288_v10 = vunpack.i.h.bf16 %v21051_v32  ;;  %28293 = vst [vmem:[#allocation42_spill] sm:$0xff] %v21246_v39  ;;  %v22051_v31 = vld [vmem:[%s19901_s30 + $0x188] sm:$0xff] }
 0x123   : > { %v28286_v17 = vsel %vm21215_vm2, 4294967295, %v28285_v17  ;;  %v28289_v19 = vunpack.i.h.bf16 %v21180_v63  ;;  %v21225_v0 = vpop.permute.xlu1 %17567  ;;  %14260 = vmatmul.mubr.msk.f32.gmra.mrb[12].mxu0 %vm27992_vm1, %v20891_v24  ;;  %14279 = vmatmul.mubr.msk.f32.gmra.mrb[10].mxu1 %vm27992_vm1, %v20838_v25  ;;  %v28290_v32 = vmov 0 }
 0x124   : > { %28287 = vst [vmem:[#allocation40_spill] sm:$0xff] %v28286_v17  ;;  %v2116_v35 = vsel %vm27995_vm8, %v28288_v10, %v17544_v56  ;;  %v28291_v32 = vsel %vm21234_vm11, 4294967295, %v28290_v32  ;;  %1852 = vmatprep.mubr.f32.mxu0 %v28233_v46  ;;  %1935 = vmatprep.mubr.f32.mxu1 %v28233_v46  ;;  %v2122_v22 = vsel %vm27995_vm8, %v17559_v26, %v17549_v1 }
 0x125   : > { %v2117_v38 = vsel %vm27995_vm8, %v17544_v56, %v28289_v19  ;;  %28292 = vst [vmem:[#allocation41_spill] sm:$0xff] %v28291_v32  ;;  %v15473_v33 = vpack.c.bf16 %v2116_v35, %v2108_v60  ;;  %v17553_v56 = vpop.permute.xlu0 %17552  ;;  %17857 = vrot.lane.b32.xlu1 %v17856_v18, %s19836_s18  ;;  %v21243_v19 = vld [vmem:[%s19901_s30 + $0x1e0] sm:$0xff]  ;;  %v2123_v35 = vsel %vm27995_vm8, %v17549_v1, %v17550_v37 }
 0x126   : > { %v15470_v10 = vpack.c.bf16 %v2117_v38, %v2109_v6  ;;  %v17555_v25 = vunpack.i.h.bf16 %v17553_v56  ;;  %v17554_v27 = vunpack.i.l.bf16 %v17553_v56  ;;  %v17866_v60 = vpack.i.bf16 %v21246_v39, %v21243_v19  ;;  %17842 = vrot.lane.b32.xlu0 %v17841_v15, %s19836_s18  ;;  %v21256_v38 = vld [vmem:[%s19901_s30 + $0x130] sm:$0xff]  ;;  %v21259_v56 = vld [vmem:[%s19901_s30 + $0x138] sm:$0xff] }
 0x127   : > { %v17569_v6 = vunpack.i.l.bf16 %v21225_v0  ;;  %28294 = vst [vmem:[#allocation43_spill] sm:$0xff] %v21256_v38  ;;  %28295 = vst [vmem:[#allocation44_spill] sm:$0xff] %v21259_v56  ;;  %v17851_v18 = vpack.i.bf16 %v21259_v56, %v21256_v38  ;;  %v17876_v39 = vpack.i.bf16 %v21267_v34, %v21264_v4  ;;  %v21276_v54 = vpop.permute.xlu1 %17577  ;;  %14261 = vmatmul.mubr.msk.f32.gmra.mrb[14].mxu0 %vm27992_vm1, %v20928_v8  ;;  %v28298_v56 = vunpack.i.h.bf16 %v21225_v0 }
 0x128   : > { %15472 = vmatprep.subr.msk.bf16.mxu1 %vm21215_vm2, %v15470_v10  ;;  %v2130_v15 = vsel %vm27995_vm8, %v17560_v14, %v17554_v27  ;;  %v2131_v10 = vsel %vm27995_vm8, %v17554_v27, %v17555_v25  ;;  %2374 = vmatprep.mubr.f32.mxu0 %v28233_v46 }
 0x129   : > { %15475 = vmatpush1.bf16.msk.msra.mxu1 %vm21234_vm11, %v15473_v33  ;;  %v2133_v34 = vsel %vm27995_vm8, %v17569_v6, %v28298_v56  ;;  %v15455_v4 = vpack.c.bf16 %v2130_v15, %v2122_v22  ;;  %v21283_v1 = vpop.permute.xlu0 %17562  ;;  %v15452_v14 = vpack.c.bf16 %v2131_v10, %v2123_v35  ;;  %v17579_v33 = vunpack.i.l.bf16 %v21276_v54  ;;  %17867 = vrot.lane.b32.xlu1 %v17866_v60, %s19836_s18  ;;  %v21298_v22 = vld [vmem:[%s19901_s30 + $0x1a0] sm:$0xff] }
 0x12a   : > { %14280 = vmatmul.mubr.msk.f32.gmra.mrb[12].mxu1 %vm27992_vm1, %v20891_v24  ;;  %v17565_v27 = vunpack.i.h.bf16 %v21283_v1  ;;  %v17564_v38 = vunpack.i.l.bf16 %v21283_v1  ;;  %17852 = vrot.lane.b32.xlu0 %v17851_v18, %s19836_s18  ;;  %v21301_v24 = vld [vmem:[%s19901_s30 + $0x1a8] sm:$0xff]  ;;  %v2132_v56 = vsel %vm27995_vm8, %v17555_v25, %v17569_v6  ;;  %v28300_v25 = vunpack.i.h.bf16 %v21276_v54 }
 0x12b   : > { %1941 = vmatprep.mubr.f32.mxu1 %v28233_v46  ;;  %15454 = vmatprep.subr.msk.bf16.mxu0 %vm21115_vm12, %v15452_v14  ;;  %28299 = vst [vmem:[#allocation47_spill] sm:$0xff] %v21301_v24  ;;  %v17861_v35 = vpack.i.bf16 %v21301_v24, %v21298_v22  ;;  %v21312_v18 = vpop.permute.xlu1 %17587 }
 0x12c   : > { %v2124_v15 = vsel %vm27995_vm8, %v17550_v37, %v17564_v38  ;;  %v2125_v60 = vsel %vm27995_vm8, %v17564_v38, %v17565_v27  ;;  %15457 = vmatpush1.bf16.msk.msra.mxu0 %vm21158_vm3, %v15455_v4  ;;  %v2147_v37 = vsel %vm27995_vm8, %v17579_v33, %v28300_v25  ;;  %v17886_v38 = vpack.i.bf16 %v20680_v9, %v20587_v30 }
 0x12d   : > { %v15479_v10 = vpack.c.bf16 %v2132_v56, %v2124_v15  ;;  %v17573_v14 = vpop.permute.xlu0 %17572  ;;  %v15476_v26 = vpack.c.bf16 %v2133_v34, %v2125_v60  ;;  %17877 = vrot.lane.b32.xlu1 %v17876_v39, %s19836_s18  ;;  %v21327_v34 = vld [vmem:[%s19901_s30 + $0x1b0] sm:$0xff]  ;;  %v17590_v60 = vunpack.i.h.bf16 %v21312_v18 }
 0x12e   : > { %14281 = vmatmul.mubr.msk.f32.gmra.mrb[14].mxu1 %vm27992_vm1, %v20928_v8  ;;  %v17575_v6 = vunpack.i.h.bf16 %v17573_v14  ;;  %v17574_v24 = vunpack.i.l.bf16 %v17573_v14  ;;  %17862 = vrot.lane.b32.xlu0 %v17861_v35, %s19836_s18  ;;  %v21330_v8 = vld [vmem:[%s19901_s30 + $0x1b8] sm:$0xff]  ;;  %v17589_v14 = vunpack.i.l.bf16 %v21312_v18 }
 0x12f   : > { %2463 = vmatprep.mubr.f32.mxu1 %v28233_v46  ;;  %15478 = vmatprep.subr.msk.bf16.mxu1 %vm21215_vm2, %v15476_v26  ;;  %v17871_v4 = vpack.i.bf16 %v21330_v8, %v21327_v34  ;;  %v21337_v30 = vpop.permute.xlu1 %17597  ;;  %v17896_v26 = vpack.i.bf16 %v21005_v47, %v20608_v16 }
 0x130   : > { %v2139_v56 = vsel %vm27995_vm8, %v17574_v24, %v17575_v6  ;;  %15481 = vmatpush1.bf16.msk.msra.mxu1 %vm21234_vm11, %v15479_v10  ;;  %v17881_v10 = vpack.i.bf16 %v20605_v40, %v20623_v42  ;;  %v17891_v40 = vpack.i.bf16 %v20584_v7, %v20620_v51  ;;  %v2141_v42 = vsel %vm27995_vm8, %v17589_v14, %v17590_v60 }
 0x131   : > { %v17583_v9 = vpop.permute.xlu0 %17582  ;;  %v15458_v39 = vpack.c.bf16 %v2147_v37, %v2139_v56  ;;  %17887 = vrot.lane.b32.xlu1 %v17886_v38, %s19837_s10 }
 0x132   : > { %v17585_v35 = vunpack.i.h.bf16 %v17583_v9  ;;  %v17584_v15 = vunpack.i.l.bf16 %v17583_v9  ;;  %17872 = vrot.lane.b32.xlu0 %v17871_v4, %s19836_s18  ;;  %v17906_v4 = vpack.i.bf16 %v20797_v13, %v20635_v48  ;;  %v28301_v13 = vunpack.i.h.bf16 %v21276_v54 }
 0x133   : > { %15460 = vmatprep.subr.msk.bf16.mxu0 %vm21115_vm12, %v15458_v39  ;;  %v17608_v38 = vpop.permute.xlu1 %17607  ;;  %v17599_v39 = vunpack.i.l.bf16 %v21337_v30  ;;  %v17916_v54 = vpack.i.bf16 %v20729_v49, %v20632_v28 }
 0x134   : > { %v2146_v25 = vsel %vm27995_vm8, %v17585_v35, %v17579_v33  ;;  %v2138_v37 = vsel %vm27995_vm8, %v17584_v15, %v17574_v24  ;;  %v2140_v33 = vsel %vm27995_vm8, %v17575_v6, %v17589_v14  ;;  %v17600_v24 = vunpack.i.h.bf16 %v21337_v30 }
 0x135   : > { %v15461_v56 = vpack.c.bf16 %v2146_v25, %v2138_v37  ;;  %v21351_v9 = vpop.permute.xlu0 %17592  ;;  %17897 = vrot.lane.b32.xlu1 %v17896_v26, %s19837_s10  ;;  %v17610_v35 = vunpack.i.h.bf16 %v17608_v38  ;;  %v17609_v48 = vunpack.i.l.bf16 %v17608_v38 }
 0x136   : > { %v17595_v16 = vunpack.i.h.bf16 %v21351_v9  ;;  %v17594_v47 = vunpack.i.l.bf16 %v21351_v9  ;;  %17882 = vrot.lane.b32.xlu0 %v17881_v10, %s19837_s10  ;;  %v2155_v38 = vsel %vm27995_vm8, %v17599_v39, %v17600_v24 }
 0x137   : > { %15463 = vmatpush1.bf16.msk.msra.mxu0 %vm21158_vm3, %v15461_v56  ;;  %v21375_v6 = vpop.permute.xlu1 %17617  ;;  %v17901_v56 = vpack.i.bf16 %v20951_v36, %v20683_v50  ;;  %v17926_v50 = vpack.i.bf16 %v21055_v23, %v20691_v58  ;;  %v17911_v58 = vpack.i.bf16 %v20688_v29, %v20732_v59  ;;  %v28306_v23 = vmov 0 }
 0x138   : > { %v2148_v7 = vsel %vm27995_vm8, %v28301_v13, %v17594_v47  ;;  %v2149_v51 = vsel %vm27995_vm8, %v17594_v47, %v17595_v16  ;;  %v17620_v10 = vunpack.i.h.bf16 %v21375_v6  ;;  %v2154_v47 = vsel %vm27995_vm8, %v17609_v48, %v17599_v39 }
 0x139   : > { %v15485_v15 = vpack.c.bf16 %v2148_v7, %v2140_v33  ;;  %v17603_v26 = vpop.permute.xlu0 %17602  ;;  %v15482_v14 = vpack.c.bf16 %v2149_v51, %v2141_v42  ;;  %17907 = vrot.lane.b32.xlu1 %v17906_v4, %s19837_s10  ;;  %v17619_v42 = vunpack.i.l.bf16 %v21375_v6  ;;  %v28303_v51 = vand.u32 31, %v20646_v41 }
 0x13a   : > { %v17605_v25 = vunpack.i.h.bf16 %v17603_v26  ;;  %v17604_v37 = vunpack.i.l.bf16 %v17603_v26  ;;  %17892 = vrot.lane.b32.xlu0 %v17891_v40, %s19837_s10  ;;  %v28302_v40 = vand.u32 31, %v20640_v52  ;;  %v17956_v6 = vpack.i.bf16 %v21035_v20, %v20883_v44  ;;  %v28332_v44 = vld [vmem:[#allocation12_spill] sm:$0xff]  ;;  %v28333_v20 = vld [vmem:[#allocation10_spill] sm:$0xff] }
 0x13b   : > { %15484 = vmatprep.subr.msk.bf16.mxu1 %vm21215_vm2, %v15482_v14  ;;  %v21395_v49 = vpop.permute.xlu1 %17627  ;;  %v2119_v36 = vsel %vm27995_vm8, %v17619_v42, %v17620_v10  ;;  %vm21408_vm0 = vcmp.lt.s32.totalorder %v28303_v51, 31  ;;  %v28310_v14 = vunpack.i.h.bf16 %v21081_v53  ;;  %v17936_v53 = vpack.i.bf16 %v20935_v45, %v20775_v62 }
 0x13c   : > { %v2162_v4 = vsel %vm27995_vm8, %v17610_v35, %v17604_v37  ;;  %v2163_v28 = vsel %vm27995_vm8, %v17604_v37, %v17605_v25  ;;  %15487 = vmatpush1.bf16.msk.msra.mxu1 %vm21234_vm11, %v15485_v15  ;;  %vm1958_vm15 = vcmp.lt.s32.totalorder %v28302_v40, 31  ;;  %v17630_v39 = vunpack.i.h.bf16 %v21395_v49 }
 0x13d   : > { %v15467_v33 = vpack.c.bf16 %v2162_v4, %v2154_v47  ;;  %v17613_v13 = vpop.permute.xlu0 %17612  ;;  %v15464_v7 = vpack.c.bf16 %v2163_v28, %v2155_v38  ;;  %17917 = vrot.lane.b32.xlu1 %v17916_v54, %s19837_s10  ;;  %vm21417_vm1 = vmpackc.low %vm1958_vm15, %vm1958_vm15  ;;  %v28309_v15 = vunpack.i.h.bf16 %v21180_v63  ;;  %v17629_v26 = vunpack.i.l.bf16 %v21395_v49  ;;  %v21436_v63 = vld [vmem:[%s27919_s1 + $0x40] sm:$0xff] }
 0x13e   : > { %v17615_v35 = vunpack.i.h.bf16 %v17613_v13  ;;  %v17614_v48 = vunpack.i.l.bf16 %v17613_v13  ;;  %17902 = vrot.lane.b32.xlu0 %v17901_v56, %s19837_s10  ;;  %v28307_v23 = vsel %vm21417_vm1, 4294967295, %v28306_v23  ;;  %vm21443_vm15 = vmpackc.low %vm21408_vm0, %vm21408_vm0  ;;  %v28311_v47 = vmov 0  ;;  %v28367_v49 = vld [vmem:[#allocation29_spill] sm:$0xff] }
 0x13f   : > { %15466 = vmatprep.subr.msk.bf16.mxu0 %vm21115_vm12, %v15464_v7  ;;  %28308 = vst [vmem:[#allocation48_spill] sm:$0xff] %v28307_v23  ;;  %v2118_v41 = vsel %vm27995_vm8, %v28309_v15, %v17619_v42  ;;  %v17638_v29 = vpop.permute.xlu1 %17637  ;;  %v28312_v47 = vsel %vm21443_vm15, 4294967295, %v28311_v47  ;;  %v2165_v42 = vsel %vm27995_vm8, %v17629_v26, %v17630_v39  ;;  %v17921_v62 = vpack.i.bf16 %v21105_v12, %v20800_v2  ;;  %v28340_v2 = vld [vmem:[#allocation14_spill] sm:$0xff] }
 0x140   : > { %v2110_v37 = vsel %vm27995_vm8, %v28310_v14, %v17614_v48  ;;  %v2111_v54 = vsel %vm27995_vm8, %v17614_v48, %v17615_v35  ;;  %15469 = vmatpush1.bf16.msk.msra.mxu0 %vm21158_vm3, %v15467_v33  ;;  %28313 = vst [vmem:[#allocation49_spill] sm:$0xff] %v28312_v47  ;;  %v17640_v4 = vunpack.i.h.bf16 %v17638_v29  ;;  %v2164_v45 = vsel %vm27995_vm8, %v17605_v25, %v17629_v26  ;;  %v21483_v48 = vld [vmem:[%s27919_s1 + $0x48] sm:$0xff] }
 0x141   : > { %v15497_v59 = vpack.c.bf16 %v2118_v41, %v2110_v37  ;;  %v21431_v38 = vpop.permute.xlu0 %17622  ;;  %v15494_v56 = vpack.c.bf16 %v2119_v36, %v2111_v54  ;;  %17927 = vrot.lane.b32.xlu1 %v17926_v50, %s19837_s10  ;;  %v17639_v33 = vunpack.i.l.bf16 %v17638_v29  ;;  %vm28314_vm0 = vcmask 523264  }
 0x142   : > { %v17625_v28 = vunpack.i.h.bf16 %v21431_v38  ;;  %v17624_v40 = vunpack.i.l.bf16 %v21431_v38  ;;  %17912 = vrot.lane.b32.xlu0 %v17911_v58, %s19837_s10  ;;  %v28315_v36 = vand.u32 31, %v20715_v3  ;;  %v17946_v25 = vpack.i.bf16 %v21196_v11, %v20824_v21 }
 0x143   : > { %15496 = vmatprep.subr.msk.bf16.mxu0 %vm21417_vm1, %v15494_v56  ;;  %14302 = vmatmul.mubr.msk.f32.vlgmr.msra.gmra.mrb[0].mxu0 %vm28314_vm0, %v21436_v63  ;;  %v21467_v50 = vpop.permute.xlu1 %17647  ;;  %v2121_v3 = vsel %vm27995_vm8, %v17639_v33, %v17640_v4  ;;  %v28318_v15 = vand.u32 31, %v20743_v61  ;;  %v17931_v21 = vpack.i.bf16 %v20821_v43, %v20850_v5  ;;  %v28321_v11 = vmov 0 }
 0x144   : > { %v2156_v13 = vsel %vm27995_vm8, %v17600_v24, %v17624_v40  ;;  %v2157_v7 = vsel %vm27995_vm8, %v17624_v40, %v17625_v28  ;;  %vm21471_vm3 = vcmp.lt.s32.totalorder %v28315_v36, 31  ;;  %15499 = vmatpush1.bf16.msk.msra.mxu0 %vm21443_vm15, %v15497_v59  ;;  %2380 = vmatprep.mubr.f32.mxu0 %v28233_v46  ;;  %v17650_v51 = vunpack.i.h.bf16 %v21467_v50 }
 0x145   : > { %v15491_v12 = vpack.c.bf16 %v2164_v45, %v2156_v13  ;;  %v17633_v30 = vpop.permute.xlu0 %17632  ;;  %v15488_v24 = vpack.c.bf16 %v2165_v42, %v2157_v7  ;;  %17937 = vrot.lane.b32.xlu1 %v17936_v53, %s19837_s10  ;;  %vm21490_vm0 = vcmp.lt.s32.totalorder %v28318_v15, 31  ;;  %vm21502_vm8 = vmpackc.low %vm21471_vm3, %vm21471_vm3  ;;  %vm28324_vm12 = vcmask 252928  }
 0x146   : > { %v17635_v52 = vunpack.i.h.bf16 %v17633_v30  ;;  %v17634_v58 = vunpack.i.l.bf16 %v17633_v30  ;;  %17922 = vrot.lane.b32.xlu0 %v17921_v62, %s19837_s10  ;;  %v28322_v11 = vsel %vm21502_vm8, 4294967295, %v28321_v11  ;;  %v2120_v61 = vsel %vm28324_vm12, %v17620_v10, %v17639_v33  ;;  %vm28325_vm7 = vmmov %vm28324_vm12  ;;  %v21522_v10 = vld [vmem:[%s27919_s1 + $0x50] sm:$0xff] }
 0x147   : > { %15490 = vmatprep.subr.msk.bf16.mxu1 %vm21215_vm2, %v15488_v24  ;;  %28323 = vst [vmem:[#allocation50_spill] sm:$0xff] %v28322_v11  ;;  %v17649_v26 = vunpack.i.l.bf16 %v21467_v50  ;;  %vm28326_vm5 = vmmov %vm28325_vm7  ;;  %v17658_v5 = vpop.permute.xlu1 %17657  ;;  %vm28327_vm2 = vcmask 523264   ;;  %v17941_v4 = vpack.i.bf16 %v28333_v20, %v28332_v44  ;;  %v28334_v40 = vunpack.i.h.bf16 %v21225_v0 }
 0x148   : > { %v2112_v14 = vsel %vm28325_vm7, %v17615_v35, %v17634_v58  ;;  %v2113_v37 = vsel %vm28326_vm5, %v17634_v58, %v17635_v52  ;;  %15493 = vmatpush1.bf16.msk.msra.mxu1 %vm21234_vm11, %v15491_v12  ;;  %14303 = vmatmul.mubr.msk.f32.gmra.mrb[2].mxu0 %vm28327_vm2, %v21483_v48  ;;  %vm21527_vm5 = vmpackc.low %vm21490_vm0, %vm21490_vm0  ;;  %v28328_v35 = vmov 0  ;;  %v17660_v56 = vunpack.i.h.bf16 %v17658_v5  ;;  %v28341_v12 = vld [vmem:[#allocation18_spill] sm:$0xff]  ;;  %v28343_v52 = vld [vmem:[#allocation16_spill] sm:$0xff] }
 0x149   : > { %v15521_v43 = vpack.c.bf16 %v2120_v61, %v2112_v14  ;;  %v17643_v54 = vpop.permute.xlu0 %17642  ;;  %v15518_v29 = vpack.c.bf16 %v2121_v3, %v2113_v37  ;;  %2386 = vmatprep.mubr.f32.mxu0 %v28233_v46  ;;  %v28329_v35 = vsel %vm21527_vm5, 4294967295, %v28328_v35  ;;  %vm28331_vm2 = vmmov %vm28325_vm7  ;;  %17947 = vrot.lane.b32.xlu1 %v17946_v25, %s19837_s10  ;;  %v17659_v45 = vunpack.i.l.bf16 %v17658_v5  ;;  %v21560_v3 = vld [vmem:[%s27919_s1 + $0x58] sm:$0xff] }
 0x14a   : > { %28330 = vst [vmem:[#allocation51_spill] sm:$0xff] %v28329_v35  ;;  %v2135_v59 = vsel %vm28331_vm2, %v17649_v26, %v17650_v51  ;;  %v17645_v53 = vunpack.i.h.bf16 %v17643_v54  ;;  %v17644_v42 = vunpack.i.l.bf16 %v17643_v54  ;;  %17932 = vrot.lane.b32.xlu0 %v17931_v21, %s19837_s10  ;;  %vm28335_vm7 = vmmov %vm28331_vm2  ;;  %vm28338_vm0 = vcmask 523264   ;;  %v28347_v54 = vld [vmem:[#allocation23_spill] sm:$0xff] }
 0x14b   : > { %15520 = vmatprep.subr.msk.bf16.mxu1 %vm21502_vm8, %v15518_v29  ;;  %v2134_v62 = vsel %vm28335_vm7, %v28334_v40, %v17649_v26  ;;  %vm28336_vm12 = vmmov %vm28331_vm2  ;;  %14322 = vmatmul.mubr.msk.f32.vlgmr.msra.gmra.mrb[0].mxu1 %vm28338_vm0, %v21436_v63  ;;  %v17668_v7 = vpop.permute.xlu1 %17667  ;;  %v17966_v1 = vpack.i.bf16 %v28341_v12, %v28340_v2  ;;  %v17951_v58 = vpack.i.bf16 %v21135_v57, %v28343_v52 }
 0x14c   : > { %v2126_v33 = vsel %vm28336_vm12, %v17565_v27, %v17644_v42  ;;  %vm28337_vm3 = vmmov %vm28331_vm2  ;;  %15523 = vmatpush1.bf16.msk.msra.mxu1 %vm21527_vm5, %v15521_v43  ;;  %2469 = vmatprep.mubr.f32.mxu1 %v28233_v46  ;;  %v17670_v30 = vunpack.i.h.bf16 %v17668_v7  ;;  %v17669_v41 = vunpack.i.l.bf16 %v17668_v7  ;;  %v28346_v43 = vld [vmem:[#allocation17_spill] sm:$0xff] }
 0x14d   : > { %v2127_v13 = vsel %vm28337_vm3, %v17644_v42, %v17645_v53  ;;  %vm28339_vm2 = vmmov %vm28338_vm0  ;;  %v15503_v50 = vpack.c.bf16 %v2134_v62, %v2126_v33  ;;  %v17653_v0 = vpop.permute.xlu0 %17652  ;;  %17957 = vrot.lane.b32.xlu1 %v17956_v6, %s19837_s10  ;;  %v17976_v57 = vpack.i.bf16 %v28347_v54, %v28346_v43  ;;  %v28354_v7 = vld [vmem:[#allocation21_spill] sm:$0xff] }
 0x14e   : > { %14304 = vmatmul.mubr.msk.f32.gmra.mrb[4].mxu0 %vm28339_vm2, %v21522_v10  ;;  %v15500_v36 = vpack.c.bf16 %v2135_v59, %v2127_v13  ;;  %vm28342_vm7 = vmmov %vm28337_vm3  ;;  %v17655_v24 = vunpack.i.h.bf16 %v17653_v0  ;;  %v17654_v25 = vunpack.i.l.bf16 %v17653_v0  ;;  %17942 = vrot.lane.b32.xlu0 %v17941_v4, %s19837_s10  ;;  %v28356_v0 = vld [vmem:[#allocation22_spill] sm:$0xff] }
 0x14f   : > { %v2137_v27 = vsel %vm28342_vm7, %v17659_v45, %v17660_v56  ;;  %2392 = vmatprep.mubr.f32.mxu0 %v28233_v46  ;;  %vm28344_vm12 = vmmov %vm28337_vm3  ;;  %v17678_v26 = vpop.permute.xlu1 %17677  ;;  %14323 = vmatmul.mubr.msk.f32.gmra.mrb[2].mxu1 %vm28339_vm2, %v21483_v48  ;;  %v28350_v56 = vld [vmem:[#allocation19_spill] sm:$0xff] }
 0x150   : > { %15502 = vmatprep.subr.msk.bf16.mxu0 %vm21417_vm1, %v15500_v36  ;;  %v2136_v15 = vsel %vm28344_vm12, %v17650_v51, %v17659_v45  ;;  %v2128_v21 = vsel %vm28337_vm3, %v17645_v53, %v17654_v25  ;;  %vm28345_vm0 = vmmov %vm28337_vm3  ;;  %2475 = vmatprep.mubr.f32.mxu1 %v28233_v46  ;;  %v17680_v29 = vunpack.i.h.bf16 %v17678_v26  ;;  %v28351_v53 = vld [vmem:[#allocation20_spill] sm:$0xff]  ;;  %v17679_v20 = vunpack.i.l.bf16 %v17678_v26  ;;  %v28357_v36 = vld [vmem:[#allocation27_spill] sm:$0xff] }
 0x151   : > { %v2129_v61 = vsel %vm28345_vm0, %v17654_v25, %v17655_v24  ;;  %15505 = vmatpush1.bf16.msk.msra.mxu0 %vm21443_vm15, %v15503_v50  ;;  %v15527_v14 = vpack.c.bf16 %v2136_v15, %v2128_v21  ;;  %v17663_v37 = vpop.permute.xlu0 %17662  ;;  %vm28348_vm7 = vmmov %vm28339_vm2  ;;  %17967 = vrot.lane.b32.xlu1 %v17966_v1, %s19837_s10  ;;  %v17961_v42 = vpack.i.bf16 %v28351_v53, %v28350_v56  ;;  %v28366_v56 = vld [vmem:[#allocation26_spill] sm:$0xff] }
 0x152   : > { %v15524_v5 = vpack.c.bf16 %v2137_v27, %v2129_v61  ;;  %14305 = vmatmul.mubr.msk.f32.gmra.mrb[6].mxu0 %vm28348_vm7, %v21560_v3  ;;  %vm28349_vm12 = vmmov %vm28345_vm0  ;;  %v17665_v6 = vunpack.i.h.bf16 %v17663_v37  ;;  %v17664_v59 = vunpack.i.l.bf16 %v17663_v37  ;;  %17952 = vrot.lane.b32.xlu0 %v17951_v58, %s19837_s10  ;;  %v17986_v50 = vpack.i.bf16 %v21243_v19, %v28354_v7  ;;  %v28361_v61 = vld [vmem:[#allocation24_spill] sm:$0xff]  ;;  %v28362_v37 = vld [vmem:[#allocation25_spill] sm:$0xff] }
 0x153   : > { %v2151_v51 = vsel %vm28349_vm12, %v17669_v41, %v17670_v30  ;;  %2552 = vmatprep.mubr.f32.mxu0 %v28233_v46  ;;  %vm28352_vm3 = vmmov %vm28345_vm0  ;;  %v17688_v62 = vpop.permute.xlu1 %17687  ;;  %14324 = vmatmul.mubr.msk.f32.gmra.mrb[4].mxu1 %vm28348_vm7, %v21522_v10  ;;  %v17971_v19 = vpack.i.bf16 %v28357_v36, %v28356_v0  ;;  %v17996_v26 = vpack.i.bf16 %v28233_v46, %v28361_v61  ;;  %v28372_v0 = vld [vmem:[#allocation31_spill] sm:$0xff]  ;;  %v28373_v36 = vld [vmem:[#allocation34_spill] sm:$0xff] }
 0x154   : > { %15526 = vmatprep.subr.msk.bf16.mxu1 %vm21502_vm8, %v15524_v5  ;;  %v2150_v44 = vsel %vm28352_vm3, %v17595_v16, %v17669_v41  ;;  %v2142_v4 = vsel %vm28345_vm0, %v17590_v60, %v17664_v59  ;;  %vm28353_vm2 = vmmov %vm28345_vm0  ;;  %v17690_v18 = vunpack.i.h.bf16 %v17688_v62  ;;  %2481 = vmatprep.mubr.f32.mxu1 %v28233_v46  ;;  %v17689_v12 = vunpack.i.l.bf16 %v17688_v62  ;;  %v28378_v61 = vld [vmem:[#allocation35_spill] sm:$0xff] }
 0x155   : > { %v2143_v40 = vsel %vm28353_vm2, %v17664_v59, %v17665_v6  ;;  %15529 = vmatpush1.bf16.msk.msra.mxu1 %vm21527_vm5, %v15527_v14  ;;  %v15509_v45 = vpack.c.bf16 %v2150_v44, %v2142_v4  ;;  %v17673_v33 = vpop.permute.xlu0 %17672  ;;  %vm28355_vm12 = vmmov %vm28345_vm0  ;;  %17977 = vrot.lane.b32.xlu1 %v17976_v57, %s19837_s10  ;;  %v17981_v5 = vpack.i.bf16 %v21298_v22, %v28362_v37  ;;  %v28368_v44 = vld [vmem:[#allocation28_spill] sm:$0xff] }
 0x156   : > { %v15506_v13 = vpack.c.bf16 %v2151_v51, %v2143_v40  ;;  %v2153_v9 = vsel %vm28355_vm12, %v17679_v20, %v17680_v29  ;;  %v17675_v16 = vunpack.i.h.bf16 %v17673_v33  ;;  %v17674_v60 = vunpack.i.l.bf16 %v17673_v33  ;;  %17962 = vrot.lane.b32.xlu0 %v17961_v42, %s19837_s10  ;;  %vm28358_vm3 = vmmov %vm28345_vm0 }
 0x157   : > { %v2152_v2 = vsel %vm28358_vm3, %v17670_v30, %v17679_v20  ;;  %vm28359_vm2 = vmmov %vm28345_vm0  ;;  %v17698_v24 = vpop.permute.xlu1 %17697  ;;  %14325 = vmatmul.mubr.msk.f32.gmra.mrb[6].mxu1 %vm28348_vm7, %v21560_v3  ;;  %v18006_v53 = vpack.i.bf16 %v28367_v49, %v28366_v56  ;;  %v17991_v20 = vpack.i.bf16 %v28233_v46, %v28368_v44 }
 0x158   : > { %15508 = vmatprep.subr.msk.bf16.mxu0 %vm21417_vm1, %v15506_v13  ;;  %v2144_v1 = vsel %vm28345_vm0, %v17665_v6, %v17674_v60  ;;  %v2145_v27 = vsel %vm28359_vm2, %v17674_v60, %v17675_v16  ;;  %v17700_v52 = vunpack.i.h.bf16 %v17698_v24  ;;  %vm28360_vm12 = vmmov %vm28345_vm0  ;;  %2641 = vmatprep.mubr.f32.mxu1 %v28233_v46  ;;  %v17699_v14 = vunpack.i.l.bf16 %v17698_v24 }
 0x159   : > { %15511 = vmatpush1.bf16.msk.msra.mxu0 %vm21443_vm15, %v15509_v45  ;;  %v15533_v25 = vpack.c.bf16 %v2152_v2, %v2144_v1  ;;  %v17683_v58 = vpop.permute.xlu0 %17682  ;;  %v15530_v15 = vpack.c.bf16 %v2153_v9, %v2145_v27  ;;  %v2167_v41 = vsel %vm28360_vm12, %v17689_v12, %v17690_v18  ;;  %17987 = vrot.lane.b32.xlu1 %v17986_v50, %s19837_s10  ;;  %vm28363_vm3 = vmmov %vm28345_vm0  ;;  %vm28067_vm12 = vcmask 7168  }
 0x15a   : > { %v17685_v21 = vunpack.i.h.bf16 %v17683_v58  ;;  %v17684_v30 = vunpack.i.l.bf16 %v17683_v58  ;;  %17972 = vrot.lane.b32.xlu0 %v17971_v19, %s19837_s10  ;;  %v2166_v43 = vsel %vm28363_vm3, %v17630_v39, %v17689_v12  ;;  %vm28364_vm2 = vmmov %vm28345_vm0  ;;  %v18001_v19 = vpack.i.bf16 %v28373_v36, %v28372_v0  ;;  %v28376_v58 = vld [vmem:[#allocation37_spill] sm:$0xff]  ;;  %v28390_v36 = vld [vmem:[#allocation44_spill] sm:$0xff] }
 0x15b   : > { %15532 = vmatprep.subr.msk.bf16.mxu1 %vm21502_vm8, %v15530_v15  ;;  %v21634_v51 = vpop.permute.xlu1 %17707  ;;  %vm28365_vm7 = vmmov %vm28345_vm0 }
 0x15c   : > { %v2158_v54 = vsel %vm28345_vm0, %v17625_v28, %v17684_v30  ;;  %v2159_v57 = vsel %vm28364_vm2, %v17684_v30, %v17685_v21  ;;  %15535 = vmatpush1.bf16.msk.msra.mxu1 %vm21527_vm5, %v15533_v25  ;;  %v2169_v29 = vsel %vm28365_vm7, %v17699_v14, %v17700_v52  ;;  %v17710_v39 = vunpack.i.h.bf16 %v21634_v51  ;;  %vm28369_vm3 = vmmov %vm28345_vm0  ;;  %v28375_v52 = vld [vmem:[#allocation33_spill] sm:$0xff] }
 0x15d   : > { %v15515_v6 = vpack.c.bf16 %v2166_v43, %v2158_v54  ;;  %v17693_v59 = vpop.permute.xlu0 %17692  ;;  %v15512_v22 = vpack.c.bf16 %v2167_v41, %v2159_v57  ;;  %v17709_v38 = vunpack.i.l.bf16 %v21634_v51  ;;  %17997 = vrot.lane.b32.xlu1 %v17996_v26, %s19837_s10  ;;  %v2168_v4 = vsel %vm28369_vm3, %v17690_v18, %v17699_v14  ;;  %vm28370_vm2 = vmmov %vm28345_vm0  ;;  %v28371_v18 = vld [vmem:[#allocation30_spill] sm:$0xff]  ;;  %v21987_v30 = vld [vmem:[%s19901_s30 + $0xa0] sm:$0xff] }
 0x15e   : > { %v17695_v28 = vunpack.i.h.bf16 %v17693_v59  ;;  %v17694_v42 = vunpack.i.l.bf16 %v17693_v59  ;;  %17982 = vrot.lane.b32.xlu0 %v17981_v5, %s19837_s10  ;;  %v18016_v60 = vpack.i.bf16 %v28233_v46, %v28371_v18  ;;  %vm28374_vm7 = vcmask 523264   ;;  %28411 = vst [vmem:[#allocation25_spill] sm:$0xff] %v21987_v30 }
 0x15f   : > { %15514 = vmatprep.subr.msk.bf16.mxu0 %vm21417_vm1, %v15512_v22  ;;  %v21652_v45 = vpop.permute.xlu1 %17717  ;;  %v2857_v50 = vsel %vm28067_vm12, %v17709_v38, %v17710_v39  ;;  %v18026_v15 = vpack.i.bf16 %v28376_v58, %v28375_v52  ;;  %v18011_v26 = vpack.i.bf16 %v28233_v46, %v28378_v61  ;;  %vm28379_vm3 = vmmov %vm28374_vm7  ;;  %v28383_v22 = vld [vmem:[#allocation43_spill] sm:$0xff] }
 0x160   : > { %v2160_v40 = vsel %vm28345_vm0, %v17685_v21, %v17694_v42  ;;  %v2161_v62 = vsel %vm28370_vm2, %v17694_v42, %v17695_v28  ;;  %15517 = vmatpush1.bf16.msk.msra.mxu0 %vm21443_vm15, %v15515_v6  ;;  %v17720_v41 = vunpack.i.h.bf16 %v21652_v45  ;;  %v17719_v21 = vunpack.i.l.bf16 %v21652_v45  ;;  %vm28380_vm0 = vmmov %vm28379_vm3  ;;  %v28381_v6 = vld [vmem:[#allocation38_spill] sm:$0xff]  ;;  %v21984_v42 = vld [vmem:[%s19901_s30 + $0x98] sm:$0xff] }
 0x161   : > { %v15539_v33 = vpack.c.bf16 %v2168_v4, %v2160_v40  ;;  %v17703_v13 = vpop.permute.xlu0 %17702  ;;  %v15536_v7 = vpack.c.bf16 %v2169_v29, %v2161_v62  ;;  %18007 = vrot.lane.b32.xlu1 %v18006_v53, %s19837_s10  ;;  %v18036_v59 = vpack.i.bf16 %v28233_v46, %v28381_v6  ;;  %vm28385_vm2 = vmmov %vm28380_vm0  ;;  %v21963_v45 = vld [vmem:[%s19901_s30 + $0x148] sm:$0xff] }
 0x162   : > { %v17705_v9 = vunpack.i.h.bf16 %v17703_v13  ;;  %v17704_v16 = vunpack.i.l.bf16 %v17703_v13  ;;  %17992 = vrot.lane.b32.xlu0 %v17991_v20, %s19837_s10  ;;  %v2851_v49 = vsel %vm28067_vm12, %v17719_v21, %v17720_v41 }
 0x163   : > { %15538 = vmatprep.subr.msk.bf16.mxu1 %vm21502_vm8, %v15536_v7  ;;  %v21668_v12 = vpop.permute.xlu1 %17727  ;;  %14342 = vmatmul.mubr.msk.f32.vlgmr.msra.gmra.mrb[8].mxu0 %vm28374_vm7, %v21436_v63  ;;  %vm28386_vm7 = vmmov %vm28380_vm0 }
 0x164   : > { %v2849_v2 = vsel %vm28067_vm12, %v17704_v16, %v17705_v9  ;;  %15541 = vmatpush1.bf16.msk.msra.mxu1 %vm21527_vm5, %v15539_v33  ;;  %2558 = vmatprep.mubr.f32.mxu0 %v28233_v46  ;;  %v2850_v53 = vsel %vm28067_vm12, %v17705_v9, %v17719_v21  ;;  %v17729_v28 = vunpack.i.l.bf16 %v21668_v12  ;;  %v28387_v9 = vld [vmem:[#allocation42_spill] sm:$0xff] }
 0x165   : > { %v17713_v1 = vpop.permute.xlu0 %17712  ;;  %v15542_v27 = vpack.c.bf16 %v2857_v50, %v2849_v2  ;;  %18017 = vrot.lane.b32.xlu1 %v18016_v60, %s19837_s10  ;;  %v28391_v2 = vld [vmem:[#allocation46_spill] sm:$0xff] }
 0x166   : > { %v17715_v24 = vunpack.i.h.bf16 %v17713_v1  ;;  %v17714_v25 = vunpack.i.l.bf16 %v17713_v1  ;;  %18002 = vrot.lane.b32.xlu0 %v18001_v19, %s19837_s10  ;;  %v18031_v19 = vpack.i.bf16 %v28233_v46, %v28390_v36 }
 0x167   : > { %15544 = vmatprep.subr.msk.bf16.mxu0 %vm20427_vm4, %v15542_v27  ;;  %v17738_v5 = vpop.permute.xlu1 %17737  ;;  %14362 = vmatmul.mubr.msk.f32.vlgmr.msra.gmra.mrb[8].mxu1 %vm28379_vm3, %v21436_v63  ;;  %v28382_v63 = vld [vmem:[#allocation39_spill] sm:$0xff]  ;;  %vm28393_vm3 = vmmov %vm28380_vm0 }
 0x168   : > { %v2856_v14 = vsel %vm28067_vm12, %v17715_v24, %v17709_v38  ;;  %v2848_v37 = vsel %vm28067_vm12, %v17714_v25, %v17704_v16  ;;  %14343 = vmatmul.mubr.msk.f32.gmra.mrb[10].mxu0 %vm28380_vm0, %v21483_v48  ;;  %2647 = vmatprep.mubr.f32.mxu1 %v28233_v46  ;;  %v18021_v56 = vpack.i.bf16 %v28383_v22, %v28382_v63  ;;  %v17730_v38 = vunpack.i.h.bf16 %v21668_v12  ;;  %v28388_v16 = vld [vmem:[#allocation45_spill] sm:$0xff] }
 0x169   : > { %v15545_v43 = vpack.c.bf16 %v2856_v14, %v2848_v37  ;;  %v21689_v54 = vpop.permute.xlu0 %17722  ;;  %2564 = vmatprep.mubr.f32.mxu0 %v28233_v46  ;;  %18027 = vrot.lane.b32.xlu1 %v18026_v15, %s19837_s10  ;;  %v17740_v44 = vunpack.i.h.bf16 %v17738_v5  ;;  %v17739_v20 = vunpack.i.l.bf16 %v17738_v5  ;;  %v18046_v18 = vpack.i.bf16 %v28388_v16, %v28387_v9 }
 0x16a   : > { %v17725_v57 = vunpack.i.h.bf16 %v21689_v54  ;;  %v17724_v29 = vunpack.i.l.bf16 %v21689_v54  ;;  %18012 = vrot.lane.b32.xlu0 %v18011_v26, %s19837_s10  ;;  %v2865_v60 = vsel %vm28067_vm12, %v17729_v28, %v17730_v38  ;;  %v18056_v12 = vpack.i.bf16 %v28233_v46, %v28391_v2 }
 0x16b   : > { %15547 = vmatpush1.bf16.msk.msra.mxu0 %vm20467_vm6, %v15545_v43  ;;  %v21715_v62 = vpop.permute.xlu1 %17747  ;;  %14363 = vmatmul.mubr.msk.f32.gmra.mrb[10].mxu1 %vm28386_vm7, %v21483_v48  ;;  %v2864_v1 = vsel %vm28067_vm12, %v17739_v20, %v17729_v28  ;;  %v28394_v43 = vld [vmem:[#allocation47_spill] sm:$0xff]  ;;  %v21780_v28 = vld [vmem:[%s19901_s30 + $0x48] sm:$0xff]  ;;  %vm28415_vm7 = vmmov %vm28380_vm0 }
 0x16c   : > { %v2858_v4 = vsel %vm28067_vm12, %v17710_v39, %v17724_v29  ;;  %v2859_v40 = vsel %vm28067_vm12, %v17724_v29, %v17725_v57  ;;  %14344 = vmatmul.mubr.msk.f32.gmra.mrb[12].mxu0 %vm28385_vm2, %v21522_v10  ;;  %v28007_v13 = vunpack.i.h.bf16 %v21715_v62  ;;  %2653 = vmatprep.mubr.f32.mxu1 %v28233_v46  ;;  %v17749_v48 = vunpack.i.l.bf16 %v21715_v62  ;;  %vm28395_vm2 = vmmov %vm28380_vm0 }
 0x16d   : > { %v15569_v33 = vpack.c.bf16 %v2858_v4, %v2850_v53  ;;  %v17733_v7 = vpop.permute.xlu0 %17732  ;;  %v15566_v50 = vpack.c.bf16 %v2859_v40, %v2851_v49  ;;  %2570 = vmatprep.mubr.f32.mxu0 %v28233_v46  ;;  %18037 = vrot.lane.b32.xlu1 %v18036_v59, %s19837_s10 }
 0x16e   : > { %v17735_v51 = vunpack.i.h.bf16 %v17733_v7  ;;  %v17734_v39 = vunpack.i.l.bf16 %v17733_v7  ;;  %18022 = vrot.lane.b32.xlu0 %v18021_v56, %s19837_s10  ;;  %v2875_v58 = vsel %vm28067_vm12, %v17749_v48, %v28007_v13 }
 0x16f   : > { %15568 = vmatprep.subr.msk.bf16.mxu1 %vm20513_vm9, %v15566_v50  ;;  %v21741_v52 = vpop.permute.xlu1 %17757  ;;  %14364 = vmatmul.mubr.msk.f32.gmra.mrb[12].mxu1 %vm28380_vm0, %v21522_v10  ;;  %v18041_v10 = vpack.i.bf16 %v21327_v34, %v28394_v43  ;;  %v21849_v43 = vld [vmem:[%s19901_s30 + $0x40] sm:$0xff] }
 0x170   : > { %v2872_v27 = vsel %vm28067_vm12, %v17740_v44, %v17734_v39  ;;  %v2873_v24 = vsel %vm28067_vm12, %v17734_v39, %v17735_v51  ;;  %15571 = vmatpush1.bf16.msk.msra.mxu1 %vm20525_vm10, %v15569_v33  ;;  %14345 = vmatmul.mubr.msk.f32.gmra.mrb[14].mxu0 %vm28393_vm3, %v21560_v3  ;;  %v17760_v26 = vunpack.i.h.bf16 %v21741_v52  ;;  %v17759_v14 = vunpack.i.l.bf16 %v21741_v52  ;;  %v21783_v44 = vld [vmem:[%s19901_s30 + $0x50] sm:$0xff]  ;;  %v21803_v39 = vld [vmem:[%s19901_s30 + $0x18] sm:$0xff]  ;;  %v21877_v52 = vld [vmem:[%s19901_s30 + $0x80] sm:$0xff] }
 0x171   : > { %v15551_v15 = vpack.c.bf16 %v2872_v27, %v2864_v1  ;;  %v21748_v21 = vpop.permute.xlu0 %17742  ;;  %v15548_v61 = vpack.c.bf16 %v2873_v24, %v2865_v60  ;;  %3116 = vmatprep.mubr.f32.mxu0 %v28233_v46  ;;  %18047 = vrot.lane.b32.xlu1 %v18046_v18, %s19837_s10  ;;  %v2874_v29 = vsel %vm28067_vm12, %v17735_v51, %v17749_v48  ;;  %v21818_v60 = vld [vmem:[%s19901_s30 + $0x10] sm:$0xff]  ;;  %v21821_v48 = vld [vmem:[%s19901_s30 + $0x8] sm:$0xff]  ;;  %vm28421_vm3 = vmmov %vm28380_vm0 }
 0x172   : > { %v28006_v37 = vunpack.i.h.bf16 %v21748_v21  ;;  %v17744_v5 = vunpack.i.l.bf16 %v21748_v21  ;;  %2659 = vmatprep.mubr.f32.mxu1 %v28233_v46  ;;  %18032 = vrot.lane.b32.xlu0 %v18031_v19, %s19837_s10  ;;  %v2889_v34 = vsel %vm28067_vm12, %v17759_v14, %v17760_v26  ;;  %v21787_v20 = vpack.i.bf16 %v21783_v44, %v21780_v28 }
 0x173   : > { %15550 = vmatprep.subr.msk.bf16.mxu0 %vm20427_vm4, %v15548_v61  ;;  %v21771_v63 = vpop.permute.xlu1 %17767  ;;  %14365 = vmatmul.mubr.msk.f32.gmra.mrb[14].mxu1 %vm28395_vm2, %v21560_v3  ;;  %v18051_v3 = vpack.i.bf16 %v28233_v46, %v21330_v8  ;;  %v21806_v8 = vld [vmem:[%s19901_s30 + $0x20] sm:$0xff]  ;;  %v21825_v36 = vpack.i.bf16 %v21818_v60, %v21821_v48  ;;  %v21839_v61 = vld [vmem:[%s19901_s30 + $0x90] sm:$0xff] }
 0x174   : > { %v2866_v6 = vsel %vm28067_vm12, %v17730_v38, %v17744_v5  ;;  %v2867_v59 = vsel %vm28067_vm12, %v17744_v5, %v28006_v37  ;;  %15553 = vmatpush1.bf16.msk.msra.mxu0 %vm20467_vm6, %v15551_v15  ;;  %28396 = vst [vmem:[#allocation12_spill] sm:$0xff] %v21787_v20  ;;  %3205 = vmatprep.mubr.f32.mxu1 %v28233_v46  ;;  %28397 = vst [vmem:[#allocation10_spill] sm:$0xff] %v21806_v8  ;;  %v28004_v16 = vunpack.i.h.bf16 %v21771_v63  ;;  %v21836_v15 = vld [vmem:[%s19901_s30 + $0x88] sm:$0xff]  ;;  %v21846_v5 = vld [vmem:[%s19901_s30] sm:$0xff] }
 0x175   : > { %v15575_v22 = vpack.c.bf16 %v2874_v29, %v2866_v6  ;;  %v17753_v56 = vpop.permute.xlu0 %17752  ;;  %v15572_v49 = vpack.c.bf16 %v2875_v58, %v2867_v59  ;;  %18057 = vrot.lane.b32.xlu1 %v18056_v12, %s19837_s10  ;;  %v21810_v9 = vpack.i.bf16 %v21806_v8, %v21803_v39  ;;  %v17769_v18 = vunpack.i.l.bf16 %v21771_v63  ;;  %28399 = vst [vmem:[#allocation18_spill] sm:$0xff] %v21825_v36 }
 0x176   : > { %v17755_v53 = vunpack.i.h.bf16 %v17753_v56  ;;  %v17754_v38 = vunpack.i.l.bf16 %v17753_v56  ;;  %18042 = vrot.lane.b32.xlu0 %v18041_v10, %s19837_s10  ;;  %v21853_v10 = vpack.i.bf16 %v21849_v43, %v21846_v5 }
 0x177   : > { %15574 = vmatprep.subr.msk.bf16.mxu1 %vm20513_vm9, %v15572_v49  ;;  %v21798_v40 = vpop.permute.xlu1 %17777  ;;  %28398 = vst [vmem:[#allocation14_spill] sm:$0xff] %v21810_v9  ;;  %v2883_v29 = vsel %vm28067_vm12, %v17769_v18, %v28004_v16 }
 0x178   : > { %v2881_v4 = vsel %vm28067_vm12, %v17754_v38, %v17755_v53  ;;  %15577 = vmatpush1.bf16.msk.msra.mxu1 %vm20525_vm10, %v15575_v22  ;;  %28401 = vst [vmem:[#allocation17_spill] sm:$0xff] %v21853_v10  ;;  %v2882_v6 = vsel %vm28067_vm12, %v17755_v53, %v17769_v18  ;;  %v28009_v59 = vunpack.i.h.bf16 %v21798_v40  ;;  %v17779_v22 = vunpack.i.l.bf16 %v21798_v40 }
 0x179   : > { %v17763_v33 = vpop.permute.xlu0 %17762  ;;  %v15554_v7 = vpack.c.bf16 %v2889_v34, %v2881_v4  ;;  %18067 = vrot.lane.b32.xlu1 %v21787_v20, %s19838_s20  ;;  %v28413_v11 = vunpack.i.h.bf16 %v21798_v40  ;;  %v22007_v40 = vld [vmem:[%s19901_s30 + $0x118] sm:$0xff] }
 0x17a   : > { %v17765_v50 = vunpack.i.h.bf16 %v17763_v33  ;;  %v17764_v51 = vunpack.i.l.bf16 %v17763_v33  ;;  %18052 = vrot.lane.b32.xlu0 %v18051_v3, %s19837_s10 }
 0x17b   : > { %15556 = vmatprep.subr.msk.bf16.mxu0 %vm20427_vm4, %v15554_v7  ;;  %v17788_v12 = vpop.permute.xlu1 %17787 }
 0x17c   : > { %v2888_v19 = vsel %vm28067_vm12, %v17765_v50, %v17759_v14  ;;  %v2880_v2 = vsel %vm28067_vm12, %v17764_v51, %v17754_v38  ;;  %v21843_v14 = vpack.i.bf16 %v21839_v61, %v21836_v15  ;;  %v17790_v56 = vunpack.i.h.bf16 %v17788_v12 }
 0x17d   : > { %v15557_v1 = vpack.c.bf16 %v2888_v19, %v2880_v2  ;;  %v21829_v27 = vpop.permute.xlu0 %17772  ;;  %18077 = vrot.lane.b32.xlu1 %v21810_v9, %s19838_s20  ;;  %v17789_v49 = vunpack.i.l.bf16 %v17788_v12  ;;  %v2897_v19 = vsel %vm28067_vm12, %v17779_v22, %v28009_v59  ;;  %v21894_v2 = vld [vmem:[%s19901_s30 + $0x58] sm:$0xff]  ;;  %v21897_v12 = vld [vmem:[%s19901_s30 + $0x60] sm:$0xff] }
 0x17e   : > { %v28005_v24 = vunpack.i.h.bf16 %v21829_v27  ;;  %v17774_v58 = vunpack.i.l.bf16 %v21829_v27  ;;  %28400 = vst [vmem:[#allocation16_spill] sm:$0xff] %v21843_v14  ;;  %18062 = vrot.lane.b32.xlu0 %v21825_v36, %s19838_s20  ;;  %28403 = vst [vmem:[#allocation19_spill] sm:$0xff] %v21897_v12  ;;  %v28429_v36 = vld [vmem:[#allocation15_spill] sm:$0xff] }
 0x17f   : > { %15559 = vmatpush1.bf16.msk.msra.mxu0 %vm20467_vm6, %v15557_v1  ;;  %v21871_v38 = vpop.permute.xlu1 %17797  ;;  %v21901_v1 = vpack.i.bf16 %v21897_v12, %v21894_v2 }
 0x180   : > { %v2890_v34 = vsel %vm28067_vm12, %v17760_v26, %v17774_v58  ;;  %v2891_v53 = vsel %vm28067_vm12, %v17774_v58, %v28005_v24  ;;  %v28008_v7 = vunpack.i.h.bf16 %v21871_v38  ;;  %v21880_v26 = vld [vmem:[%s19901_s30 + $0xc0] sm:$0xff]  ;;  %v2896_v58 = vsel %vm28067_vm12, %v17789_v49, %v17779_v22  ;;  %v21914_v24 = vld [vmem:[%s19901_s30 + $0xd8] sm:$0xff] }
 0x181   : > { %v15581_v3 = vpack.c.bf16 %v2890_v34, %v2882_v6  ;;  %v17783_v4 = vpop.permute.xlu0 %17782  ;;  %v15578_v33 = vpack.c.bf16 %v2891_v53, %v2883_v29  ;;  %18087 = vrot.lane.b32.xlu1 %v21843_v14, %s19838_s20  ;;  %v21884_v18 = vpack.i.bf16 %v21880_v26, %v21877_v52  ;;  %28404 = vst [vmem:[#allocation20_spill] sm:$0xff] %v21901_v1  ;;  %v17799_v29 = vunpack.i.l.bf16 %v21871_v38  ;;  %v21917_v22 = vld [vmem:[%s19901_s30 + $0xe0] sm:$0xff] }
 0x182   : > { %v17785_v50 = vunpack.i.h.bf16 %v17783_v4  ;;  %v17784_v51 = vunpack.i.l.bf16 %v17783_v4  ;;  %18072 = vrot.lane.b32.xlu0 %v21853_v10, %s19838_s20  ;;  %28405 = vst [vmem:[#allocation21_spill] sm:$0xff] %v21917_v22 }
 0x183   : > { %28402 = vst [vmem:[#allocation23_spill] sm:$0xff] %v21884_v18  ;;  %15580 = vmatprep.subr.msk.bf16.mxu1 %vm20513_vm9, %v15578_v33  ;;  %v21909_v53 = vpop.permute.xlu1 %17807  ;;  %v2861_v49 = vsel %vm28067_vm12, %v17799_v29, %v28008_v7 }
 0x184   : > { %v2904_v6 = vsel %vm28067_vm12, %v17790_v56, %v17784_v51  ;;  %v2905_v34 = vsel %vm28067_vm12, %v17784_v51, %v17785_v50  ;;  %15583 = vmatpush1.bf16.msk.msra.mxu1 %vm20525_vm10, %v15581_v3  ;;  %v21921_v56 = vpack.i.bf16 %v21917_v22, %v21914_v24  ;;  %v17809_v37 = vunpack.i.l.bf16 %v21909_v53  ;;  %v22142_v22 = vld [vmem:[%s19901_s30 + $0x68] sm:$0xff] }
 0x185   : > { %v15563_v4 = vpack.c.bf16 %v2904_v6, %v2896_v58  ;;  %v21911_v33 = vpop.permute.xlu0 %17792  ;;  %v15560_v16 = vpack.c.bf16 %v2905_v34, %v2897_v19  ;;  %18097 = vrot.lane.b32.xlu1 %v21884_v18, %s19838_s20  ;;  %v21936_v19 = vld [vmem:[%s19901_s30 + $0xd0] sm:$0xff]  ;;  %v21939_v6 = vld [vmem:[%s19901_s30 + $0xc8] sm:$0xff] }
 0x186   : > { %28406 = vst [vmem:[#allocation22_spill] sm:$0xff] %v21921_v56  ;;  %v17795_v51 = vunpack.i.h.bf16 %v21911_v33  ;;  %v17794_v58 = vunpack.i.l.bf16 %v21911_v33  ;;  %18082 = vrot.lane.b32.xlu0 %v21901_v1, %s19838_s20  ;;  %v21943_v34 = vpack.i.bf16 %v21936_v19, %v21939_v6  ;;  %v2860_v33 = vsel %vm28067_vm12, %v17725_v57, %v17799_v29  ;;  %v21960_v57 = vld [vmem:[%s27919_s1 + $0x60] sm:$0xff] }
 0x187   : > { %15562 = vmatprep.subr.msk.bf16.mxu0 %vm20427_vm4, %v15560_v16  ;;  %v17818_v7 = vpop.permute.xlu1 %17817 }
 0x188   : > { %28407 = vst [vmem:[#allocation27_spill] sm:$0xff] %v21943_v34  ;;  %v2852_v13 = vsel %vm28067_vm12, %v17720_v41, %v17794_v58  ;;  %v2853_v16 = vsel %vm28067_vm12, %v17794_v58, %v17795_v51  ;;  %15565 = vmatpush1.bf16.msk.msra.mxu0 %vm20467_vm6, %v15563_v4  ;;  %v21966_v41 = vld [vmem:[%s19901_s30 + $0x150] sm:$0xff]  ;;  %v28409_v4 = vunpack.i.h.bf16 %v21909_v53  ;;  %v17820_v58 = vunpack.i.h.bf16 %v17818_v7 }
 0x189   : > { %v15593_v59 = vpack.c.bf16 %v2860_v33, %v2852_v13  ;;  %v21955_v3 = vpop.permute.xlu0 %17802  ;;  %v15590_v54 = vpack.c.bf16 %v2861_v49, %v2853_v16  ;;  %v21970_v29 = vpack.i.bf16 %v21966_v41, %v21963_v45  ;;  %18107 = vrot.lane.b32.xlu1 %v21921_v56, %s19838_s20  ;;  %v2906_v49 = vsel %vm28067_vm12, %v17785_v50, %v17809_v37 }
 0x18a   : > { %v2907_v13 = vsel %vm28067_vm12, %v17809_v37, %v28409_v4  ;;  %v17804_v33 = vunpack.i.l.bf16 %v21955_v3  ;;  %18092 = vrot.lane.b32.xlu0 %v21943_v34, %s19838_s20  ;;  %v21991_v4 = vpack.i.bf16 %v21987_v30, %v21984_v42  ;;  %v17819_v35 = vunpack.i.l.bf16 %v17818_v7 }
 0x18b   : > { %28408 = vst [vmem:[#allocation24_spill] sm:$0xff] %v21970_v29  ;;  %15592 = vmatprep.subr.msk.bf16.mxu0 %vm20760_vm13, %v15590_v54  ;;  %v28414_v23 = vunpack.i.h.bf16 %v21955_v3  ;;  %14386 = vmatmul.mubr.msk.f32.vlgmr.msra.gmra.mrb[0].mxu0 %vm28415_vm7, %v21960_v57  ;;  %v22002_v54 = vpop.permute.xlu1 %17827  ;;  %vm28428_vm7 = vmmov %vm28395_vm2 }
 0x18c   : > { %28412 = vst [vmem:[#allocation26_spill] sm:$0xff] %v21991_v4  ;;  %v2898_v47 = vsel %vm28067_vm12, %v28413_v11, %v17804_v33  ;;  %15595 = vmatpush1.bf16.msk.msra.mxu0 %vm20789_vm14, %v15593_v59  ;;  %v22010_v11 = vld [vmem:[%s19901_s30 + $0x120] sm:$0xff]  ;;  %3122 = vmatprep.mubr.f32.mxu0 %v28233_v46  ;;  %v2863_v59 = vsel %vm28067_vm12, %v17819_v35, %v17820_v58  ;;  %v17830_v50 = vunpack.i.h.bf16 %v22002_v54  ;;  %v17829_v1 = vunpack.i.l.bf16 %v22002_v54 }
 0x18d   : > { %v2899_v34 = vsel %vm28067_vm12, %v17804_v33, %v28414_v23  ;;  %v15587_v56 = vpack.c.bf16 %v2906_v49, %v2898_v47  ;;  %v17813_v37 = vpop.permute.xlu0 %17812  ;;  %28417 = vst [vmem:[#allocation29_spill] sm:$0xff] %v22010_v11  ;;  %v22014_v23 = vpack.i.bf16 %v22010_v11, %v22007_v40  ;;  %v22020_v47 = vld [vmem:[%s27919_s1 + $0x68] sm:$0xff]  ;;  %18117 = vrot.lane.b32.xlu1 %v21970_v29, %s19838_s20  ;;  %v22031_v49 = vld [vmem:[%s19901_s30 + $0x110] sm:$0xff] }
 0x18e   : > { %v15584_v7 = vpack.c.bf16 %v2907_v13, %v2899_v34  ;;  %v17815_v34 = vunpack.i.h.bf16 %v17813_v37  ;;  %v17814_v13 = vunpack.i.l.bf16 %v17813_v37  ;;  %18102 = vrot.lane.b32.xlu0 %v21991_v4, %s19838_s20  ;;  %v22034_v33 = vld [vmem:[%s19901_s30 + $0x108] sm:$0xff]  ;;  %v28420_v37 = vunpack.i.h.bf16 %v21871_v38 }
 0x18f   : > { %28418 = vst [vmem:[#allocation28_spill] sm:$0xff] %v22014_v23  ;;  %v22038_v58 = vpack.i.bf16 %v22031_v49, %v22034_v33  ;;  %14387 = vmatmul.mubr.msk.f32.gmra.mrb[2].mxu0 %vm28421_vm3, %v22020_v47  ;;  %vm28430_vm3 = vnez %v28429_v36 }
 0x190   : > { %15586 = vmatprep.subr.msk.bf16.mxu1 %vm20513_vm9, %v15584_v7  ;;  %v2862_v29 = vsel %vm28067_vm12, %v28420_v37, %v17819_v35  ;;  %v2854_v4 = vsel %vm28067_vm12, %v17795_v51, %v17814_v13  ;;  %v2855_v0 = vsel %vm28067_vm12, %v17814_v13, %v17815_v34  ;;  %v17838_v7 = vpop.permute.xlu1 %17837  ;;  %v22054_v35 = vld [vmem:[%s19901_s30 + $0x190] sm:$0xff]  ;;  %3128 = vmatprep.mubr.f32.mxu0 %v28233_v46  ;;  %v22074_v34 = vld [vmem:[%s19901_s30 + $0x140] sm:$0xff] }
 0x191   : > { %28419 = vst [vmem:[#allocation30_spill] sm:$0xff] %v22038_v58  ;;  %15589 = vmatpush1.bf16.msk.msra.mxu1 %vm20525_vm10, %v15587_v56  ;;  %v15617_v18 = vpack.c.bf16 %v2862_v29, %v2854_v4  ;;  %v17823_v17 = vpop.permute.xlu0 %17822  ;;  %v15614_v38 = vpack.c.bf16 %v2863_v59, %v2855_v0  ;;  %v22058_v51 = vpack.i.bf16 %v22054_v35, %v22051_v31  ;;  %v22064_v56 = vld [vmem:[%s27919_s1 + $0x70] sm:$0xff]  ;;  %v17840_v4 = vunpack.i.h.bf16 %v17838_v7  ;;  %v28423_v59 = vld [vmem:[#allocation13_spill] sm:$0xff] }
 0x192   : > { %v2877_v29 = vsel %vm28067_vm12, %v17829_v1, %v17830_v50  ;;  %v17825_v54 = vunpack.i.h.bf16 %v17823_v17  ;;  %v17824_v0 = vunpack.i.l.bf16 %v17823_v17  ;;  %18127 = vrot.lane.b32.xlu1 %v22014_v23, %s19838_s20  ;;  %18112 = vrot.lane.b32.xlu0 %v22038_v58, %s19838_s20  ;;  %vm28424_vm0 = vnez %v28423_v59  ;;  %v22077_v13 = vld [vmem:[%s19901_s30 + $0x100] sm:$0xff]  ;;  %v22491_v59 = vld [vmem:[%s19901_s30 + $0x1b8] sm:$0xff] }
 0x193   : > { %28422 = vst [vmem:[#allocation31_spill] sm:$0xff] %v22058_v51  ;;  %15616 = vmatprep.subr.msk.bf16.mxu1 %vm28424_vm0, %v15614_v38  ;;  %v22081_v37 = vpack.i.bf16 %v22074_v34, %v22077_v13  ;;  %v28426_v17 = vunpack.i.h.bf16 %v21715_v62  ;;  %v17839_v23 = vunpack.i.l.bf16 %v17838_v7  ;;  %v28427_v58 = vunpack.i.h.bf16 %v21748_v21  ;;  %14388 = vmatmul.mubr.msk.f32.gmra.mrb[4].mxu0 %vm28428_vm7, %v22064_v56  ;;  %vm28436_vm7 = vmmov %vm28395_vm2 }
 0x194   : > { %v2869_v38 = vsel %vm28067_vm12, %v17824_v0, %v17825_v54  ;;  %14406 = vmatmul.mubr.msk.f32.vlgmr.msra.gmra.mrb[0].mxu1 %vm28395_vm2, %v21960_v57  ;;  %v22092_v14 = vpop.permute.xlu1 %17847  ;;  %3134 = vmatprep.mubr.f32.mxu0 %v28233_v46 }
 0x195   : > { %28425 = vst [vmem:[#allocation34_spill] sm:$0xff] %v22081_v37  ;;  %v2876_v25 = vsel %vm28067_vm12, %v28426_v17, %v17829_v1  ;;  %v2868_v10 = vsel %vm28067_vm12, %v28427_v58, %v17824_v0  ;;  %15619 = vmatpush1.bf16.msk.msra.mxu1 %vm28430_vm3, %v15617_v18  ;;  %v17833_v62 = vpop.permute.xlu0 %17832  ;;  %v15596_v21 = vpack.c.bf16 %v2877_v29, %v2869_v38  ;;  %v22099_v1 = vld [vmem:[%s19901_s30 + $0x180] sm:$0xff]  ;;  %v22117_v29 = vld [vmem:[%s27919_s1 + $0x78] sm:$0xff] }
 0x196   : > { %v15599_v55 = vpack.c.bf16 %v2876_v25, %v2868_v10  ;;  %v22102_v58 = vld [vmem:[%s19901_s30 + $0x1c0] sm:$0xff]  ;;  %3211 = vmatprep.mubr.f32.mxu1 %v28233_v46  ;;  %v2879_v0 = vsel %vm28067_vm12, %v17839_v23, %v17840_v4  ;;  %v17850_v25 = vunpack.i.h.bf16 %v22092_v14  ;;  %v17835_v10 = vunpack.i.h.bf16 %v17833_v62  ;;  %18137 = vrot.lane.b32.xlu1 %v22058_v51, %s19838_s20  ;;  %v22124_v4 = vld [vmem:[%s19901_s30 + $0x158] sm:$0xff] }
 0x197   : > { %v22106_v7 = vpack.i.bf16 %v22102_v58, %v22099_v1  ;;  %v17834_v18 = vunpack.i.l.bf16 %v17833_v62  ;;  %18122 = vrot.lane.b32.xlu0 %v22081_v37, %s19838_s20  ;;  %15598 = vmatprep.subr.msk.bf16.mxu0 %vm20760_vm13, %v15596_v21  ;;  %v22127_v17 = vld [vmem:[%s19901_s30 + $0x160] sm:$0xff]  ;;  %v2878_v62 = vsel %vm28067_vm12, %v17830_v50, %v17839_v23  ;;  %v17849_v51 = vunpack.i.l.bf16 %v22092_v14  ;;  %v22145_v23 = vld [vmem:[%s19901_s30 + $0x70] sm:$0xff] }
 0x198   : > { %28432 = vst [vmem:[#allocation37_spill] sm:$0xff] %v22127_v17  ;;  %v22131_v38 = vpack.i.bf16 %v22127_v17, %v22124_v4  ;;  %15601 = vmatpush1.bf16.msk.msra.mxu0 %vm20789_vm14, %v15599_v55  ;;  %v17858_v21 = vpop.permute.xlu1 %17857  ;;  %14407 = vmatmul.mubr.msk.f32.gmra.mrb[2].mxu1 %vm28395_vm2, %v22020_v47  ;;  %28434 = vst [vmem:[#allocation38_spill] sm:$0xff] %v22145_v23  ;;  %v22149_v14 = vpack.i.bf16 %v22145_v23, %v22142_v22 }
 0x199   : > { %28431 = vst [vmem:[#allocation33_spill] sm:$0xff] %v22106_v7  ;;  %v2870_v9 = vsel %vm28067_vm12, %v17825_v54, %v17834_v18  ;;  %v2871_v37 = vsel %vm28067_vm12, %v17834_v18, %v17835_v10  ;;  %v17843_v11 = vpop.permute.xlu0 %17842  ;;  %3217 = vmatprep.mubr.f32.mxu1 %v28233_v46  ;;  %14389 = vmatmul.mubr.msk.f32.gmra.mrb[6].mxu0 %vm28436_vm7, %v22117_v29  ;;  %v28439_v10 = vunpack.i.h.bf16 %v21829_v27  ;;  %v22184_v27 = vld [vmem:[%s19901_s30 + $0x1d8] sm:$0xff]  ;;  %vm28446_vm7 = vmmov %vm28395_vm2 }
 0x19a   : > { %28433 = vst [vmem:[#allocation35_spill] sm:$0xff] %v22131_v38  ;;  %v15623_v20 = vpack.c.bf16 %v2878_v62, %v2870_v9  ;;  %v15620_v17 = vpack.c.bf16 %v2879_v0, %v2871_v37  ;;  %28435 = vst [vmem:[#allocation39_spill] sm:$0xff] %v22149_v14  ;;  %v2893_v55 = vsel %vm28067_vm12, %v17849_v51, %v17850_v25  ;;  %v17860_v9 = vunpack.i.h.bf16 %v17858_v21  ;;  %v22163_v37 = vld [vmem:[%s19901_s30 + $0x1c8] sm:$0xff]  ;;  %v22166_v0 = vld [vmem:[%s19901_s30 + $0x1d0] sm:$0xff] }
 0x19b   : > { %v17845_v50 = vunpack.i.h.bf16 %v17843_v11  ;;  %v17844_v54 = vunpack.i.l.bf16 %v17843_v11  ;;  %18147 = vrot.lane.b32.xlu1 %v22106_v7, %s19838_s20  ;;  %3294 = vmatprep.mubr.f32.mxu0 %v28233_v46  ;;  %28437 = vst [vmem:[#allocation43_spill] sm:$0xff] %v22166_v0  ;;  %v22170_v11 = vpack.i.bf16 %v22166_v0, %v22163_v37  ;;  %v2892_v18 = vsel %vm28067_vm12, %v28439_v10, %v17849_v51  ;;  %v22187_v51 = vld [vmem:[%s19901_s30 + $0x1e0] sm:$0xff]  ;;  %v22221_v0 = vld [vmem:[%s19901_s30 + $0x78] sm:$0xff] }
 0x19c   : > { %18132 = vrot.lane.b32.xlu0 %v22131_v38, %s19838_s20  ;;  %15622 = vmatprep.subr.msk.bf16.mxu1 %vm28424_vm0, %v15620_v17  ;;  %v17859_v62 = vunpack.i.l.bf16 %v17858_v21  ;;  %v28440_v7 = vunpack.i.h.bf16 %v21771_v63  ;;  %v22181_v17 = vpop.permute.xlu1 %17867  ;;  %28441 = vst [vmem:[#allocation45_spill] sm:$0xff] %v22187_v51  ;;  %v22191_v63 = vpack.i.bf16 %v22187_v51, %v22184_v27  ;;  %28445 = vst [vmem:[#allocation52_spill] sm:$0xff] %v22221_v0 }
 0x19d   : > { %28438 = vst [vmem:[#allocation42_spill] sm:$0xff] %v22170_v11  ;;  %v2885_v23 = vsel %vm28067_vm12, %v17844_v54, %v17845_v50  ;;  %15625 = vmatpush1.bf16.msk.msra.mxu1 %vm28430_vm3, %v15623_v20  ;;  %v17853_v12 = vpop.permute.xlu0 %17852 }
 0x19e   : > { %v2884_v38 = vsel %vm28067_vm12, %v28440_v7, %v17844_v54  ;;  %v15602_v8 = vpack.c.bf16 %v2893_v55, %v2885_v23  ;;  %28442 = vst [vmem:[#allocation44_spill] sm:$0xff] %v22191_v63  ;;  %14408 = vmatmul.mubr.msk.f32.gmra.mrb[4].mxu1 %vm28395_vm2, %v22064_v56  ;;  %v2895_v20 = vsel %vm28067_vm12, %v17859_v62, %v17860_v9  ;;  %v17870_v7 = vunpack.i.h.bf16 %v22181_v17  ;;  %v22205_v23 = vld [vmem:[%s19901_s30 + $0x28] sm:$0xff]  ;;  %v22208_v55 = vld [vmem:[%s19901_s30 + $0x30] sm:$0xff] }
 0x19f   : > { %v15605_v30 = vpack.c.bf16 %v2892_v18, %v2884_v38  ;;  %v17855_v21 = vunpack.i.h.bf16 %v17853_v12  ;;  %v17854_v38 = vunpack.i.l.bf16 %v17853_v12  ;;  %18157 = vrot.lane.b32.xlu1 %v22149_v14, %s19838_s20  ;;  %3223 = vmatprep.mubr.f32.mxu1 %v28233_v46  ;;  %28443 = vst [vmem:[#allocation46_spill] sm:$0xff] %v22208_v55  ;;  %v22212_v9 = vpack.i.bf16 %v22208_v55, %v22205_v23 }
 0x1a0   : > { %18142 = vrot.lane.b32.xlu0 %v22170_v11, %s19838_s20  ;;  %15604 = vmatprep.subr.msk.bf16.mxu0 %vm20760_vm13, %v15602_v8  ;;  %v2894_v12 = vsel %vm28067_vm12, %v17850_v25, %v17859_v62  ;;  %v17869_v54 = vunpack.i.l.bf16 %v22181_v17  ;;  %v17878_v8 = vpop.permute.xlu1 %17877  ;;  %v22225_v25 = vpack.i.bf16 %v28233_v46, %v22221_v0 }
 0x1a1   : > { %28444 = vst [vmem:[#allocation47_spill] sm:$0xff] %v22212_v9  ;;  %v2886_v10 = vsel %vm28067_vm12, %v17845_v50, %v17854_v38  ;;  %v2887_v18 = vsel %vm28067_vm12, %v17854_v38, %v17855_v21  ;;  %15607 = vmatpush1.bf16.msk.msra.mxu0 %vm20789_vm14, %v15605_v30  ;;  %v17863_v14 = vpop.permute.xlu0 %17862  ;;  %v17880_v62 = vunpack.i.h.bf16 %v17878_v8  ;;  %v22241_v21 = vld [vmem:[%s19901_s30 + $0x1a0] sm:$0xff] }
 0x1a2   : > { %v15629_v11 = vpack.c.bf16 %v2894_v12, %v2886_v10  ;;  %v15626_v51 = vpack.c.bf16 %v2895_v20, %v2887_v18  ;;  %14409 = vmatmul.mubr.msk.f32.gmra.mrb[6].mxu1 %vm28446_vm7, %v22117_v29  ;;  %v2909_v50 = vsel %vm28067_vm12, %v17869_v54, %v17870_v7  ;;  %v17865_v17 = vunpack.i.h.bf16 %v17863_v14  ;;  %v22238_v20 = vld [vmem:[%s19901_s30 + $0x198] sm:$0xff]  ;;  %28447 = vst [vmem:[#allocation53_spill] sm:$0xff] %v22241_v21  ;;  %vm28450_vm7 = vmmov %vm28395_vm2 }
 0x1a3   : > { %v17864_v30 = vunpack.i.l.bf16 %v17863_v14  ;;  %18167 = vrot.lane.b32.xlu1 %v22191_v63, %s19838_s20  ;;  %3383 = vmatprep.mubr.f32.mxu1 %v28233_v46  ;;  %v22245_v38 = vpack.i.bf16 %v22241_v21, %v22238_v20  ;;  %v28448_v14 = vunpack.i.h.bf16 %v21909_v53  ;;  %v17879_v10 = vunpack.i.l.bf16 %v17878_v8 }
 0x1a4   : > { %18152 = vrot.lane.b32.xlu0 %v22212_v9, %s19838_s20  ;;  %15628 = vmatprep.subr.msk.bf16.mxu1 %vm28424_vm0, %v15626_v51  ;;  %v28449_v18 = vunpack.i.h.bf16 %v21955_v3  ;;  %v22256_v63 = vpop.permute.xlu1 %17887  ;;  %v15638_v53 = vpack.c.bf16 %v21780_v28, %v21821_v48  ;;  %v22278_v28 = vld [vmem:[%s19901_s30 + $0x38] sm:$0xff] }
 0x1a5   : > { %v2908_v12 = vsel %vm28067_vm12, %v28448_v14, %v17869_v54  ;;  %v2901_v51 = vsel %vm28067_vm12, %v17864_v30, %v17865_v17  ;;  %15631 = vmatpush1.bf16.msk.msra.mxu1 %vm28430_vm3, %v15629_v11  ;;  %v17873_v55 = vpop.permute.xlu0 %17872  ;;  %v2911_v54 = vsel %vm28067_vm12, %v17879_v10, %v17880_v62  ;;  %v22267_v14 = vld [vmem:[%s19901_s30 + $0xf0] sm:$0xff]  ;;  %v22282_v48 = vpack.i.bf16 %v28233_v46, %v22278_v28 }
 0x1a6   : > { %v2900_v9 = vsel %vm28067_vm12, %v28449_v18, %v17864_v30  ;;  %v15608_v0 = vpack.c.bf16 %v2909_v50, %v2901_v51  ;;  %v17875_v8 = vunpack.i.h.bf16 %v17873_v55  ;;  %v17874_v3 = vunpack.i.l.bf16 %v17873_v55  ;;  %v22264_v30 = vld [vmem:[%s19901_s30 + $0xe8] sm:$0xff] }
 0x1a7   : > { %v15611_v21 = vpack.c.bf16 %v2908_v12, %v2900_v9  ;;  %18177 = vrot.lane.b32.xlu1 %v22225_v25, %s19838_s20  ;;  %v22271_v11 = vpack.i.bf16 %v22267_v14, %v22264_v30  ;;  %v2910_v55 = vsel %vm28067_vm12, %v17870_v7, %v17879_v10  ;;  %v15640_v51 = vpack.c.bf16 %v21849_v43, %v21846_v5  ;;  %v22298_v7 = vld [vmem:[%s19901_s30 + $0xf8] sm:$0xff]  ;;  %v22311_v5 = vld [vmem:[%s19901_s30 + $0xa8] sm:$0xff]  ;;  %v22314_v43 = vld [vmem:[%s19901_s30 + $0xb0] sm:$0xff] }
 0x1a8   : > { %18162 = vrot.lane.b32.xlu0 %v22245_v38, %s19838_s20  ;;  %15610 = vmatprep.subr.msk.bf16.mxu0 %vm20760_vm13, %v15608_v0  ;;  %v2902_v9 = vsel %vm28067_vm12, %v17865_v17, %v17874_v3  ;;  %v2903_v50 = vsel %vm28067_vm12, %v17874_v3, %v17875_v8  ;;  %v22289_v62 = vpop.permute.xlu1 %17897  ;;  %v22302_v17 = vpack.i.bf16 %v28233_v46, %v22298_v7  ;;  %v22341_v8 = vld [vmem:[%s19901_s30 + $0x170] sm:$0xff]  ;;  %vm28471_vm12 = vmmov %vm28395_vm2 }
 0x1a9   : > { %15613 = vmatpush1.bf16.msk.msra.mxu0 %vm20789_vm14, %v15611_v21  ;;  %v15635_v0 = vpack.c.bf16 %v2910_v55, %v2902_v9  ;;  %v22291_v12 = vpop.permute.xlu0 %17882  ;;  %v15632_v18 = vpack.c.bf16 %v2911_v54, %v2903_v50  ;;  %v15642_v21 = vpack.c.bf16 %v21939_v6, %v21836_v15  ;;  %v22318_v10 = vpack.i.bf16 %v22314_v43, %v22311_v5  ;;  %vm28497_vm14 = vmmov %vm28395_vm2 }
 0x1aa   : > { %15639 = vmatprep.subr.bf16.mxu0 %v15638_v53  ;;  %v15654_v53 = vpack.c.bf16 %v21894_v2, %v21803_v39  ;;  %v15644_v54 = vpack.c.bf16 %v21880_v26, %v21877_v52  ;;  %v15656_v39 = vpack.c.bf16 %v21783_v44, %v21818_v60  ;;  %v22338_v2 = vld [vmem:[%s19901_s30 + $0x168] sm:$0xff]  ;;  %v22350_v52 = vld [vmem:[%s19901_s30 + $0xb8] sm:$0xff]  ;;  %v15646_v26 = vpack.c.bf16 %v21963_v45, %v22034_v33  ;;  %v22389_v33 = vld [vmem:[%s19901_s30 + $0x130] sm:$0xff] }
 0x1ab   : > { %18187 = vrot.lane.b32.xlu1 %v22271_v11, %s19838_s20  ;;  %15634 = vmatprep.subr.msk.bf16.mxu1 %vm28424_vm0, %v15632_v18  ;;  %v22345_v3 = vpack.i.bf16 %v22341_v8, %v22338_v2  ;;  %v22354_v44 = vpack.i.bf16 %v28233_v46, %v22350_v52  ;;  %v15658_v55 = vpack.c.bf16 %v21914_v24, %v21984_v42  ;;  %v22379_v42 = vld [vmem:[%s19901_s30 + $0x178] sm:$0xff]  ;;  %v22386_v45 = vld [vmem:[%s19901_s30 + $0x128] sm:$0xff] }
 0x1ac   : > { %18172 = vrot.lane.b32.xlu0 %v22282_v48, %s19838_s20  ;;  %14426 = vmatmul.mubr.msk.f32.vlgmr.msra.gmra.mrb[8].mxu0 %vm28395_vm2, %v21960_v57  ;;  %v22326_v15 = vpop.permute.xlu1 %17907  ;;  %v15660_v50 = vpack.c.bf16 %v21936_v19, %v21839_v61  ;;  %v22383_v24 = vpack.i.bf16 %v28233_v46, %v22379_v42  ;;  %v15664_v18 = vpack.c.bf16 %v21966_v41, %v22031_v49 }
 0x1ad   : > { %15637 = vmatpush1.bf16.msk.msra.mxu1 %vm28430_vm3, %v15635_v0  ;;  %15641 = vmatpush1.bf16.msra.mxu0 %v15640_v51  ;;  %v22328_v6 = vpop.permute.xlu0 %17892  ;;  %v15662_v0 = vpack.c.bf16 %v22124_v4, %v22007_v40  ;;  %v22420_v40 = vld [vmem:[%s19901_s30 + $0x1e8] sm:$0xff]  ;;  %v22423_v4 = vld [vmem:[%s19901_s30 + $0x1f0] sm:$0xff]  ;;  %v22430_v51 = vld [vmem:[%s19901_s30 + $0x138] sm:$0xff] }
 0x1ae   : > { %3300 = vmatprep.mubr.f32.mxu0 %v28233_v46  ;;  %15643 = vmatprep.subr.bf16.mxu0 %v15642_v21  ;;  %v22434_v41 = vpack.i.bf16 %v28233_v46, %v22430_v51  ;;  %v28455_v21 = vld [vmem:[#allocation43_spill] sm:$0xff]  ;;  %vm28489_vm3 = vmmov %vm28395_vm2 }
 0x1af   : > { %18197 = vrot.lane.b32.xlu1 %v22302_v17, %s19838_s20  ;;  %15655 = vmatprep.subr.bf16.mxu1 %v15654_v53  ;;  %v15668_v53 = vpack.c.bf16 %v28455_v21, %v22054_v35 }
 0x1b0   : > { %18182 = vrot.lane.b32.xlu0 %v22318_v10, %s19838_s20  ;;  %14427 = vmatmul.mubr.msk.f32.gmra.mrb[10].mxu0 %vm28450_vm7, %v22020_v47  ;;  %v22360_v60 = vpop.permute.xlu1 %17917  ;;  %vm28451_vm7 = vmmov %vm28395_vm2  ;;  %28453 = vst [vmem:[#allocation55_spill] sm:$0xff] %v22434_v41 }
 0x1b1   : > { %14446 = vmatmul.mubr.msk.f32.vlgmr.msra.gmra.mrb[8].mxu1 %vm28395_vm2, %v21960_v57  ;;  %15645 = vmatpush1.bf16.msra.mxu0 %v15644_v54  ;;  %v22366_v9 = vpop.permute.xlu0 %17902  ;;  %v15648_v57 = vpack.c.bf16 %v22074_v34, %v22077_v13  ;;  %v22393_v34 = vpack.i.bf16 %v22389_v33, %v22386_v45  ;;  %v15650_v13 = vpack.c.bf16 %v22163_v37, %v22051_v31  ;;  %v28456_v54 = vld [vmem:[#allocation10_spill] sm:$0xff] }
 0x1b2   : > { %15657 = vmatpush1.bf16.msra.mxu1 %v15656_v39  ;;  %3306 = vmatprep.mubr.f32.mxu0 %v28233_v46  ;;  %v22427_v37 = vpack.i.bf16 %v22423_v4, %v22420_v40  ;;  %v28457_v39 = vld [vmem:[#allocation19_spill] sm:$0xff] }
 0x1b3   : > { %18207 = vrot.lane.b32.xlu1 %v22345_v3, %s19838_s20  ;;  %3389 = vmatprep.mubr.f32.mxu1 %v28233_v46 }
 0x1b4   : > { %18192 = vrot.lane.b32.xlu0 %v22354_v44, %s19838_s20  ;;  %15647 = vmatprep.subr.bf16.mxu0 %v15646_v26  ;;  %v22395_v61 = vpop.permute.xlu1 %17927  ;;  %28452 = vst [vmem:[#allocation54_spill] sm:$0xff] %v22427_v37  ;;  %v15672_v26 = vpack.c.bf16 %v28457_v39, %v28456_v54  ;;  %v28463_v54 = vld [vmem:[#allocation46_spill] sm:$0xff] }
 0x1b5   : > { %15659 = vmatprep.subr.bf16.mxu1 %v15658_v55  ;;  %14428 = vmatmul.mubr.msk.f32.gmra.mrb[12].mxu0 %vm28451_vm7, %v22064_v56  ;;  %v22401_v19 = vpop.permute.xlu0 %17912  ;;  %vm28454_vm7 = vmmov %vm28395_vm2  ;;  %v22451_v55 = vld [vmem:[%s19901_s30 + $0x1f8] sm:$0xff]  ;;  %v28464_v39 = vld [vmem:[#allocation38_spill] sm:$0xff] }
 0x1b6   : > { %14447 = vmatmul.mubr.msk.f32.gmra.mrb[10].mxu1 %vm28395_vm2, %v22020_v47  ;;  %15649 = vmatpush1.bf16.msra.mxu0 %v15648_v57  ;;  %v15652_v47 = vpack.c.bf16 %v22102_v58, %v22099_v1  ;;  %v15666_v1 = vpack.c.bf16 %v22184_v27, %v22238_v20  ;;  %v15670_v58 = vpack.c.bf16 %v22142_v22, %v22205_v23  ;;  %v22464_v22 = vld [vmem:[%s27919_s1 + $0x80] sm:$0xff]  ;;  %v22472_v27 = vld [vmem:[%s19901_s30 + $0x1b0] sm:$0xff] }
 0x1b7   : > { %15661 = vmatpush1.bf16.msra.mxu1 %v15660_v50  ;;  %18217 = vrot.lane.b32.xlu1 %v22383_v24, %s19838_s20  ;;  %v22455_v57 = vpack.i.bf16 %v28233_v46, %v22451_v55  ;;  %v15674_v20 = vpack.c.bf16 %v22264_v30, %v22311_v5  ;;  %v28460_v50 = vld [vmem:[#allocation52_spill] sm:$0xff]  ;;  %v15688_v36 = vpack.c.bf16 %v28464_v39, %v28463_v54  ;;  %v17890_v39 = vunpack.i.h.bf16 %v22256_v63 }
 0x1b8   : > { %18202 = vrot.lane.b32.xlu0 %v22393_v34, %s19838_s20  ;;  %3312 = vmatprep.mubr.f32.mxu0 %v28233_v46  ;;  %v22417_v31 = vpop.permute.xlu1 %17937  ;;  %v22495_v30 = vpack.i.bf16 %v28233_v46, %v22491_v59  ;;  %v15690_v5 = vpack.c.bf16 %v22298_v7, %v22350_v52  ;;  %v28470_v52 = vld [vmem:[#allocation45_spill] sm:$0xff]  ;;  %v17895_v54 = vunpack.i.h.bf16 %v22328_v6  ;;  %v17909_v7 = vunpack.i.l.bf16 %v22326_v15 }
 0x1b9   : > { %3395 = vmatprep.mubr.f32.mxu1 %v28233_v46  ;;  %15651 = vmatprep.subr.bf16.mxu0 %v15650_v13  ;;  %v22436_v49 = vpop.permute.xlu0 %17922  ;;  %28458 = vst [vmem:[#allocation43_spill] sm:$0xff] %v22455_v57  ;;  %v15686_v13 = vpack.c.bf16 %v28460_v50, %v22278_v28  ;;  %v15678_v28 = vpack.c.bf16 %v22338_v2, %v22386_v45  ;;  %v17904_v2 = vunpack.i.l.bf16 %v22366_v9 }
 0x1ba   : > { %15663 = vmatprep.subr.bf16.mxu1 %v15662_v0  ;;  %14429 = vmatmul.mubr.msk.f32.gmra.mrb[14].mxu0 %vm28454_vm7, %v22117_v29  ;;  %28465 = vst [vmem:[#allocation19_spill] sm:$0xff] %v22495_v30  ;;  %vm28466_vm7 = vmmov %vm28395_vm2 }
 0x1bb   : > { %14448 = vmatmul.mubr.msk.f32.gmra.mrb[12].mxu1 %vm28395_vm2, %v22064_v56  ;;  %15653 = vmatpush1.bf16.msra.mxu0 %v15652_v47  ;;  %v22469_v56 = vld [vmem:[%s19901_s30 + $0x1a8] sm:$0xff]  ;;  %v28461_v47 = vld [vmem:[#allocation25_spill] sm:$0xff] }
 0x1bc   : > { %15665 = vmatpush1.bf16.msra.mxu1 %v15664_v18  ;;  %18227 = vrot.lane.b32.xlu1 %v22427_v37, %s19838_s20  ;;  %v22466_v35 = vpop.permute.xlu1 %17947  ;;  %v22476_v23 = vpack.i.bf16 %v22472_v27, %v22469_v56  ;;  %v28462_v18 = vld [vmem:[#allocation21_spill] sm:$0xff] }
 0x1bd   : > { %18212 = vrot.lane.b32.xlu0 %v22434_v41, %s19838_s20  ;;  %3401 = vmatprep.mubr.f32.mxu1 %v28233_v46  ;;  %v22484_v0 = vpop.permute.xlu0 %17932  ;;  %v15676_v21 = vpack.c.bf16 %v28462_v18, %v28461_v47  ;;  %v15692_v47 = vpack.c.bf16 %v22267_v14, %v22314_v43  ;;  %v28469_v43 = vld [vmem:[#allocation53_spill] sm:$0xff]  ;;  %v28479_v41 = vpack.c.bf16 %v22379_v42, %v22430_v51 }
 0x1be   : > { %28459 = vst [vmem:[#allocation10_spill] sm:$0xff] %v22476_v23  ;;  %3521 = vmatprep.mubr.f32.mxu0 %v28233_v46  ;;  %15667 = vmatprep.subr.bf16.mxu1 %v15666_v1  ;;  %v28467_v1 = vld [vmem:[#allocation29_spill] sm:$0xff]  ;;  %v17935_v51 = vunpack.i.h.bf16 %v22484_v0 }
 0x1bf   : > { %15671 = vmatprep.subr.bf16.mxu0 %v15670_v58  ;;  %14449 = vmatmul.mubr.msk.f32.gmra.mrb[14].mxu1 %vm28466_vm7, %v22117_v29  ;;  %v28468_v58 = vld [vmem:[#allocation37_spill] sm:$0xff]  ;;  %v22522_v29 = vld [vmem:[%s27919_s1 + $0x88] sm:$0xff]  ;;  %vm28080_vm7 = vcmask 1039360  }
 0x1c0   : > { %14454 = vmatmul.mubr.msk.f32.vlgmr.msra.gmra.mrb[0].mxu0 %vm28395_vm2, %v22464_v22  ;;  %v15680_v50 = vpack.c.bf16 %v28468_v58, %v28467_v1  ;;  %15669 = vmatpush1.bf16.msra.mxu1 %v15668_v53  ;;  %v22509_v18 = vpop.permute.xlu1 %17957  ;;  %v17889_v1 = vunpack.i.l.bf16 %v22256_v63  ;;  %v17885_v58 = vunpack.i.h.bf16 %v22291_v12  ;;  %v17884_v53 = vunpack.i.l.bf16 %v22291_v12  ;;  %v22557_v12 = vld [vmem:[%s27919_s1 + $0x90] sm:$0xff] }
 0x1c1   : > { %15673 = vmatpush1.bf16.msra.mxu0 %v15672_v26  ;;  %18237 = vrot.lane.b32.xlu1 %v22455_v57, %s19838_s20  ;;  %v22524_v14 = vpop.permute.xlu0 %17942  ;;  %v17894_v63 = vunpack.i.l.bf16 %v22328_v6  ;;  %v17915_v57 = vunpack.i.h.bf16 %v22401_v19 }
 0x1c2   : > { %18222 = vrot.lane.b32.xlu0 %v22476_v23, %s19838_s20  ;;  %3527 = vmatprep.mubr.f32.mxu0 %v28233_v46  ;;  %v4140_v6 = vsel %vm28080_vm7, %v17884_v53, %v17885_v58 }
 0x1c3   : > { %3610 = vmatprep.mubr.f32.mxu1 %v28233_v46  ;;  %15675 = vmatprep.subr.bf16.mxu0 %v15674_v20  ;;  %v28472_v20 = vld [vmem:[#allocation12_spill] sm:$0xff] }
 0x1c4   : > { %15687 = vmatprep.subr.bf16.mxu1 %v15686_v13  ;;  %14455 = vmatmul.mubr.msk.f32.gmra.mrb[2].mxu0 %vm28395_vm2, %v22522_v29  ;;  %v22544_v26 = vpop.permute.xlu1 %17967  ;;  %v4148_v13 = vsel %vm28080_vm7, %v17889_v1, %v17890_v39 }
 0x1c5   : > { %14458 = vmatmul.mubr.msk.f32.vlgmr.msra.gmra.mrb[0].mxu1 %vm28471_vm12, %v22464_v22  ;;  %15677 = vmatpush1.bf16.msra.mxu0 %v15676_v21  ;;  %v22547_v45 = vpop.permute.xlu0 %17952  ;;  %v17899_v21 = vunpack.i.l.bf16 %v22289_v62  ;;  %vm28473_vm12 = vmmov %vm28395_vm2 }
 0x1c6   : > { %15689 = vmatpush1.bf16.msra.mxu1 %v15688_v36  ;;  %18247 = vrot.lane.b32.xlu1 %v28472_v20, %s19839_s17  ;;  %v17910_v20 = vunpack.i.h.bf16 %v22326_v15  ;;  %v22571_v36 = vsel %vm28080_vm7, %v17895_v54, %v17889_v1  ;;  %v22581_v15 = vsel %vm28080_vm7, %v17894_v63, %v17884_v53  ;;  %v17914_v54 = vunpack.i.l.bf16 %v22401_v19  ;;  %v28475_v53 = vld [vmem:[#allocation14_spill] sm:$0xff] }
 0x1c7   : > { %18232 = vrot.lane.b32.xlu0 %v22495_v30, %s19838_s20  ;;  %3533 = vmatprep.mubr.f32.mxu0 %v28233_v46  ;;  %v28474_v1 = vunpack.i.h.bf16 %v22289_v62  ;;  %v22592_v23 = vsel %vm28080_vm7, %v17885_v58, %v17899_v21  ;;  %v28476_v63 = vld [vmem:[#allocation18_spill] sm:$0xff]  ;;  %v22608_v58 = vsel %vm28080_vm7, %v17890_v39, %v17904_v2  ;;  %v28077_v39 = vunpack.i.h.bf16 %v22436_v49 }
 0x1c8   : > { %3616 = vmatprep.mubr.f32.mxu1 %v28233_v46  ;;  %15679 = vmatprep.subr.bf16.mxu0 %v15678_v28  ;;  %v22568_v32 = vpop.permute.xlu1 %17977  ;;  %v17920_v28 = vunpack.i.h.bf16 %v22360_v60  ;;  %v28478_v19 = vpack.c.bf16 %v22420_v40, %v22469_v56  ;;  %v15729_v42 = vpack.c.bf16 %v22608_v58, %v22592_v23  ;;  %v4164_v40 = vsel %vm28080_vm7, %v17914_v54, %v17915_v57 }
 0x1c9   : > { %15691 = vmatprep.subr.bf16.mxu1 %v15690_v5  ;;  %14456 = vmatmul.mubr.msk.f32.gmra.mrb[4].mxu0 %vm28473_vm12, %v22557_v12  ;;  %v22578_v30 = vpop.permute.xlu0 %17962  ;;  %v17919_v5 = vunpack.i.l.bf16 %v22360_v60  ;;  %v22589_v16 = vsel %vm28080_vm7, %v17899_v21, %v28474_v1  ;;  %v22602_v60 = vld [vmem:[%s27919_s1 + $0x98] sm:$0xff]  ;;  %v17929_v21 = vunpack.i.l.bf16 %v22395_v61  ;;  %vm28480_vm12 = vmmov %vm28395_vm2  ;;  %v28481_v56 = vpack.c.bf16 %v28470_v52, %v28469_v43 }
 0x1ca   : > { %14459 = vmatmul.mubr.msk.f32.gmra.mrb[2].mxu1 %vm28395_vm2, %v22522_v29  ;;  %15681 = vmatpush1.bf16.msra.mxu0 %v15680_v50  ;;  %v15702_v50 = vpack.c.bf16 %v4148_v13, %v4140_v6  ;;  %v28477_v13 = vunpack.i.h.bf16 %v22366_v9  ;;  %v28499_v23 = vunpack.i.h.bf16 %v22366_v9 }
 0x1cb   : > { %15693 = vmatpush1.bf16.msra.mxu1 %v15692_v47  ;;  %18257 = vrot.lane.b32.xlu1 %v28475_v53, %s19839_s17  ;;  %v22605_v47 = vsel %vm28080_vm7, %v17909_v7, %v17910_v20  ;;  %v15705_v53 = vpack.c.bf16 %v22571_v36, %v22581_v15  ;;  %v22632_v36 = vsel %vm28080_vm7, %v17919_v5, %v17909_v7  ;;  %v28483_v7 = vunpack.i.h.bf16 %v22395_v61 }
 0x1cc   : > { %18242 = vrot.lane.b32.xlu0 %v28476_v63, %s19839_s17  ;;  %3539 = vmatprep.mubr.f32.mxu0 %v28233_v46  ;;  %v22614_v1 = vpop.permute.xlu1 %17987  ;;  %v4150_v6 = vsel %vm28080_vm7, %v17904_v2, %v28477_v13  ;;  %v17924_v63 = vunpack.i.l.bf16 %v22436_v49  ;;  %v22635_v15 = vsel %vm28080_vm7, %v17920_v28, %v17914_v54  ;;  %v17940_v2 = vunpack.i.h.bf16 %v22417_v31 }
 0x1cd   : > { %3622 = vmatprep.mubr.f32.mxu1 %v28233_v46  ;;  %15683 = vmatprep.subr.bf16.mxu0 %v28478_v19  ;;  %v22629_v37 = vpop.permute.xlu0 %17972  ;;  %v17939_v13 = vunpack.i.l.bf16 %v22417_v31  ;;  %v28482_v31 = vpack.c.bf16 %v22341_v8, %v22389_v33  ;;  %v22657_v28 = vsel %vm28080_vm7, %v17929_v21, %v28483_v7  ;;  %v22660_v5 = vsel %vm28080_vm7, %v17915_v57, %v17929_v21  ;;  %v28484_v19 = vld [vmem:[#allocation32_spill] sm:$0xff]  ;;  %v28487_v21 = vld [vmem:[#allocation17_spill] sm:$0xff] }
 0x1ce   : > { %15695 = vmatprep.subr.bf16.mxu1 %v28479_v41  ;;  %14457 = vmatmul.mubr.msk.f32.gmra.mrb[6].mxu0 %vm28480_vm12, %v22602_v60  ;;  %v17934_v41 = vunpack.i.l.bf16 %v22484_v0  ;;  %v17945_v54 = vunpack.i.h.bf16 %v22524_v14  ;;  %vm28485_vm12 = vnez %v28484_v19  ;;  %v28486_v0 = vld [vmem:[#allocation16_spill] sm:$0xff]  ;;  %v15726_v43 = vpack.c.bf16 %v4150_v6, %v22589_v16 }
 0x1cf   : > { %14460 = vmatmul.mubr.msk.f32.gmra.mrb[4].mxu1 %vm28395_vm2, %v22557_v12  ;;  %15685 = vmatpush1.bf16.msra.mxu0 %v28481_v56  ;;  %v15711_v33 = vpack.c.bf16 %v22635_v15, %v22632_v36  ;;  %v22673_v52 = vsel %vm28080_vm7, %v17910_v20, %v17924_v63  ;;  %v22678_v57 = vsel %vm28080_vm7, %v17924_v63, %v28077_v39  ;;  %v17950_v36 = vunpack.i.h.bf16 %v22466_v35 }
 0x1d0   : > { %15697 = vmatpush1.bf16.msra.mxu1 %v28482_v31  ;;  %15704 = vmatprep.subr.msk.bf16.mxu0 %vm28485_vm12, %v15702_v50  ;;  %v22668_v8 = vpop.permute.xlu1 %17997  ;;  %v17944_v50 = vunpack.i.l.bf16 %v22524_v14  ;;  %v4180_v6 = vsel %vm28080_vm7, %v17939_v13, %v17940_v2  ;;  %v17949_v20 = vunpack.i.l.bf16 %v22466_v35  ;;  %v28488_v63 = vpack.c.bf16 %v22451_v55, %v22491_v59  ;;  %v28517_v35 = vld [vmem:[#allocation34_spill] sm:$0xff] }
 0x1d1   : > { %18267 = vrot.lane.b32.xlu1 %v28486_v0, %s19839_s17  ;;  %18252 = vrot.lane.b32.xlu0 %v28487_v21, %s19839_s17  ;;  %v22684_v16 = vpop.permute.xlu0 %17982  ;;  %v15708_v14 = vpack.c.bf16 %v4164_v40, %v22605_v47  ;;  %v4172_v15 = vsel %vm28080_vm7, %v17934_v41, %v17935_v51  ;;  %v17960_v56 = vunpack.i.h.bf16 %v22509_v18  ;;  %v17959_v31 = vunpack.i.l.bf16 %v22509_v18  ;;  %v28491_v0 = vld [vmem:[#allocation36_spill] sm:$0xff] }
 0x1d2   : > { %3628 = vmatprep.mubr.f32.mxu1 %v28233_v46  ;;  %3699 = vmatprep.mubr.f32.mxu0 %v28233_v46  ;;  %v17954_v7 = vunpack.i.l.bf16 %v22547_v45  ;;  %v22705_v55 = vsel %vm28080_vm7, %v17945_v54, %v17939_v13  ;;  %v17955_v47 = vunpack.i.h.bf16 %v22547_v45  ;;  %v28490_v40 = vpack.c.bf16 %v22423_v4, %v22472_v27  ;;  %v28493_v4 = vld [vmem:[#allocation40_spill] sm:$0xff] }
 0x1d3   : > { %15699 = vmatprep.subr.bf16.mxu1 %v28488_v63  ;;  %14461 = vmatmul.mubr.msk.f32.gmra.mrb[6].mxu1 %vm28395_vm2, %v22602_v60  ;;  %vm28492_vm0 = vnez %v28491_v0  ;;  %v15732_v21 = vpack.c.bf16 %v22657_v28, %v22678_v57  ;;  %v4171_v39 = vsel %vm28080_vm7, %v17944_v50, %v17934_v41  ;;  %v17970_v59 = vunpack.i.h.bf16 %v22544_v26  ;;  %v28496_v57 = vld [vmem:[#allocation20_spill] sm:$0xff] }
 0x1d4   : > { %14462 = vmatmul.mubr.msk.f32.vlgmr.msra.gmra.mrb[8].mxu0 %vm28489_vm3, %v22464_v22  ;;  %15701 = vmatpush1.bf16.msra.mxu1 %v28490_v40  ;;  %v22715_v63 = vpop.permute.xlu1 %18007  ;;  %v17969_v13 = vunpack.i.l.bf16 %v22544_v26  ;;  %v17964_v54 = vunpack.i.l.bf16 %v22578_v30  ;;  %vm28494_vm3 = vnez %v28493_v4  ;;  %v22731_v41 = vsel %vm28080_vm7, %v17935_v51, %v17949_v20  ;;  %v28495_v26 = vld [vmem:[#allocation23_spill] sm:$0xff] }
 0x1d5   : > { %15707 = vmatpush1.bf16.msk.msra.mxu0 %vm28492_vm0, %v15705_v53  ;;  %15728 = vmatprep.subr.msk.bf16.mxu1 %vm28494_vm3, %v15726_v43  ;;  %v22725_v27 = vpop.permute.xlu0 %17992  ;;  %v4174_v53 = vsel %vm28080_vm7, %v17949_v20, %v17950_v36  ;;  %v17965_v28 = vunpack.i.h.bf16 %v22578_v30  ;;  %v15714_v50 = vpack.c.bf16 %v4180_v6, %v4172_v15  ;;  %v4188_v43 = vsel %vm28080_vm7, %v17959_v31, %v17960_v56 }
 0x1d6   : > { %15710 = vmatprep.subr.msk.bf16.mxu0 %vm28485_vm12, %v15708_v14  ;;  %18277 = vrot.lane.b32.xlu1 %v28495_v26, %s19839_s17  ;;  %v22742_v14 = vsel %vm28080_vm7, %v17940_v2, %v17954_v7  ;;  %v17980_v40 = vunpack.i.h.bf16 %v22568_v32  ;;  %v17979_v51 = vunpack.i.l.bf16 %v22568_v32  ;;  %v15717_v30 = vpack.c.bf16 %v22705_v55, %v4171_v39 }
 0x1d7   : > { %18262 = vrot.lane.b32.xlu0 %v28496_v57, %s19839_s17  ;;  %3705 = vmatprep.mubr.f32.mxu0 %v28233_v46  ;;  %v4182_v6 = vsel %vm28080_vm7, %v17954_v7, %v17955_v47  ;;  %v17975_v20 = vunpack.i.h.bf16 %v22629_v37  ;;  %v17974_v15 = vunpack.i.l.bf16 %v22629_v37  ;;  %v22761_v2 = vsel %vm28080_vm7, %v17969_v13, %v17959_v31 }
 0x1d8   : > { %3788 = vmatprep.mubr.f32.mxu1 %v28233_v46  ;;  %14463 = vmatmul.mubr.msk.f32.gmra.mrb[10].mxu0 %vm28395_vm2, %v22522_v29  ;;  %v22758_v32 = vpop.permute.xlu1 %18017  ;;  %v22764_v39 = vsel %vm28080_vm7, %v17970_v59, %v17964_v54  ;;  %v17989_v7 = vunpack.i.l.bf16 %v22614_v1  ;;  %v15741_v31 = vpack.c.bf16 %v22742_v14, %v22731_v41  ;;  %v4196_v59 = vsel %vm28080_vm7, %v17964_v54, %v17965_v28  ;;  %v28500_v54 = vld [vmem:[#allocation22_spill] sm:$0xff]  ;;  %v28501_v41 = vld [vmem:[#allocation27_spill] sm:$0xff] }
 0x1d9   : > { %14466 = vmatmul.mubr.msk.f32.vlgmr.msra.gmra.mrb[8].mxu1 %vm28497_vm14, %v22464_v22  ;;  %15713 = vmatpush1.bf16.msk.msra.mxu0 %vm28492_vm0, %v15711_v33  ;;  %v17984_v22 = vunpack.i.l.bf16 %v22684_v16  ;;  %v22775_v55 = vpop.permute.xlu0 %18002  ;;  %v17990_v13 = vunpack.i.h.bf16 %v22614_v1  ;;  %v17985_v26 = vunpack.i.h.bf16 %v22684_v16  ;;  %v22789_v58 = vsel %vm28080_vm7, %v28499_v23, %v17979_v51  ;;  %vm28503_vm14 = vmmov %vm28395_vm2 }
 0x1da   : > { %15731 = vmatpush1.bf16.msk.msra.mxu1 %vm21234_vm11, %v15729_v42  ;;  %15716 = vmatprep.subr.msk.bf16.mxu0 %vm28485_vm12, %v15714_v50  ;;  %v4152_v42 = vsel %vm28080_vm7, %v17979_v51, %v17980_v40  ;;  %v17999_v33 = vunpack.i.l.bf16 %v22668_v8  ;;  %v15738_v57 = vpack.c.bf16 %v4182_v6, %v4174_v53  ;;  %v15723_v50 = vpack.c.bf16 %v22764_v39, %v22761_v2 }
 0x1db   : > { %15734 = vmatprep.subr.msk.bf16.mxu1 %vm28494_vm3, %v15732_v21  ;;  %18287 = vrot.lane.b32.xlu1 %v28500_v54, %s19839_s17  ;;  %v28502_v21 = vunpack.i.h.bf16 %v22289_v62  ;;  %v4144_v14 = vsel %vm28080_vm7, %v17974_v15, %v17975_v20  ;;  %v18000_v51 = vunpack.i.h.bf16 %v22668_v8  ;;  %v22811_v53 = vsel %vm28080_vm7, %v17965_v28, %v17989_v7 }
 0x1dc   : > { %18272 = vrot.lane.b32.xlu0 %v28501_v41, %s19839_s17  ;;  %3711 = vmatprep.mubr.f32.mxu0 %v28233_v46  ;;  %v22808_v23 = vpop.permute.xlu1 %18027  ;;  %v22816_v62 = vsel %vm28080_vm7, %v17960_v56, %v17984_v22  ;;  %v17994_v8 = vunpack.i.l.bf16 %v22725_v27  ;;  %v15720_v6 = vpack.c.bf16 %v4196_v59, %v4188_v43  ;;  %v4198_v28 = vsel %vm28080_vm7, %v17989_v7, %v17990_v13 }
 0x1dd   : > { %v22802_v9 = vsel %vm28080_vm7, %v28502_v21, %v17974_v15  ;;  %3794 = vmatprep.mubr.f32.mxu1 %v28233_v46  ;;  %14464 = vmatmul.mubr.msk.f32.gmra.mrb[12].mxu0 %vm28503_vm14, %v22557_v12  ;;  %v22823_v15 = vpop.permute.xlu0 %18012  ;;  %v4190_v18 = vsel %vm28080_vm7, %v17984_v22, %v17985_v26  ;;  %v28504_v56 = vpack.c.bf16 %v22660_v5, %v22673_v52  ;;  %v17995_v43 = vunpack.i.h.bf16 %v22725_v27  ;;  %v28505_v22 = vld [vmem:[#allocation24_spill] sm:$0xff]  ;;  %vm28508_vm14 = vmmov %vm28395_vm2 }
 0x1de   : > { %14467 = vmatmul.mubr.msk.f32.gmra.mrb[10].mxu1 %vm28395_vm2, %v22522_v29  ;;  %15719 = vmatpush1.bf16.msk.msra.mxu0 %vm28492_vm0, %v15717_v30  ;;  %v18009_v29 = vunpack.i.l.bf16 %v22715_v63  ;;  %v15753_v2 = vpack.c.bf16 %v22789_v58, %v22802_v9  ;;  %v22843_v39 = vsel %vm28080_vm7, %v17980_v40, %v17999_v33  ;;  %v18004_v5 = vunpack.i.l.bf16 %v22775_v55  ;;  %v28506_v40 = vld [vmem:[#allocation26_spill] sm:$0xff] }
 0x1df   : > { %15737 = vmatpush1.bf16.msk.msra.mxu1 %vm21234_vm11, %v28504_v56  ;;  %15722 = vmatprep.subr.msk.bf16.mxu0 %vm28485_vm12, %v15720_v6  ;;  %v15750_v52 = vpack.c.bf16 %v4152_v42, %v4144_v14  ;;  %v4154_v30 = vsel %vm28080_vm7, %v17999_v33, %v18000_v51  ;;  %v15747_v27 = vpack.c.bf16 %v22811_v53, %v22816_v62  ;;  %v18010_v7 = vunpack.i.h.bf16 %v22715_v63  ;;  %v28512_v56 = vld [vmem:[#allocation30_spill] sm:$0xff] }
 0x1e0   : > { %15740 = vmatprep.subr.msk.bf16.mxu1 %vm28494_vm3, %v15738_v57  ;;  %18297 = vrot.lane.b32.xlu1 %v28505_v22, %s19839_s17  ;;  %v18005_v59 = vunpack.i.h.bf16 %v22775_v55  ;;  %v22859_v58 = vpop.permute.xlu1 %18037  ;;  %v22862_v54 = vsel %vm28080_vm7, %v17975_v20, %v17994_v8  ;;  %v18020_v42 = vunpack.i.h.bf16 %v22758_v32  ;;  %v18019_v63 = vunpack.i.l.bf16 %v22758_v32 }
 0x1e1   : > { %18282 = vrot.lane.b32.xlu0 %v28506_v40, %s19839_s17  ;;  %3717 = vmatprep.mubr.f32.mxu0 %v28233_v46  ;;  %v15744_v33 = vpack.c.bf16 %v4198_v28, %v4190_v18  ;;  %v22868_v41 = vpop.permute.xlu0 %18022  ;;  %v28507_v57 = vunpack.i.h.bf16 %v22395_v61  ;;  %v4146_v21 = vsel %vm28080_vm7, %v17994_v8, %v17995_v43  ;;  %v18015_v20 = vunpack.i.h.bf16 %v22823_v15  ;;  %v28511_v18 = vld [vmem:[#allocation28_spill] sm:$0xff] }
 0x1e2   : > { %3800 = vmatprep.mubr.f32.mxu1 %v28233_v46  ;;  %14465 = vmatmul.mubr.msk.f32.gmra.mrb[14].mxu0 %vm28508_vm14, %v22602_v60  ;;  %v18014_v32 = vunpack.i.l.bf16 %v22823_v15  ;;  %v28509_v61 = vunpack.i.h.bf16 %v22436_v49  ;;  %v18030_v14 = vunpack.i.h.bf16 %v22808_v23  ;;  %v18025_v51 = vunpack.i.h.bf16 %v22868_v41  ;;  %v22903_v49 = vld [vmem:[%s27919_s1 + $0xa0] sm:$0xff]  ;;  %vm28513_vm14 = vmmov %vm28395_vm2 }
 0x1e3   : > { %v22873_v55 = vsel %vm28080_vm7, %v28507_v57, %v18009_v29  ;;  %14468 = vmatmul.mubr.msk.f32.gmra.mrb[12].mxu1 %vm28395_vm2, %v22557_v12  ;;  %15725 = vmatpush1.bf16.msk.msra.mxu0 %vm28492_vm0, %v15723_v50  ;;  %v18024_v12 = vunpack.i.l.bf16 %v22868_v41  ;;  %v4168_v53 = vsel %vm28080_vm7, %v18009_v29, %v18010_v7  ;;  %v15777_v62 = vpack.c.bf16 %v22843_v39, %v22862_v54 }
 0x1e4   : > { %15743 = vmatpush1.bf16.msk.msra.mxu1 %vm21234_vm11, %v15741_v31  ;;  %v4159_v9 = vsel %vm28080_vm7, %v28509_v61, %v18004_v5  ;;  %v4160_v50 = vsel %vm28080_vm7, %v18004_v5, %v18005_v59  ;;  %15752 = vmatprep.subr.msk.bf16.mxu0 %vm21417_vm1, %v15750_v52  ;;  %v18029_v8 = vunpack.i.l.bf16 %v22808_v23  ;;  %v22906_v6 = vpop.permute.xlu1 %18047  ;;  %v22909_v15 = vsel %vm28080_vm7, %v18010_v7, %v18019_v63 }
 0x1e5   : > { %15746 = vmatprep.subr.msk.bf16.mxu1 %vm28494_vm3, %v15744_v33  ;;  %v4170_v28 = vsel %vm28080_vm7, %v18019_v63, %v18020_v42  ;;  %18307 = vrot.lane.b32.xlu1 %v28511_v18, %s19839_s17  ;;  %v15774_v29 = vpack.c.bf16 %v4154_v30, %v4146_v21  ;;  %v18040_v43 = vunpack.i.h.bf16 %v22859_v58  ;;  %v18033_v39 = vpop.permute.xlu0 %18032  ;;  %v15759_v5 = vpack.c.bf16 %v22873_v55, %v4159_v9  ;;  %v28520_v18 = vld [vmem:[#allocation33_spill] sm:$0xff] }
 0x1e6   : > { %18292 = vrot.lane.b32.xlu0 %v28512_v56, %s19839_s17  ;;  %3806 = vmatprep.mubr.f32.mxu1 %v28233_v46  ;;  %v4162_v52 = vsel %vm28080_vm7, %v18014_v32, %v18015_v20  ;;  %v18035_v7 = vunpack.i.h.bf16 %v18033_v39  ;;  %v18034_v22 = vunpack.i.l.bf16 %v18033_v39  ;;  %v4184_v30 = vsel %vm28080_vm7, %v18029_v8, %v18030_v14 }
 0x1e7   : > { %4407 = vmatprep.mubr.f32.mxu0 %v28233_v46  ;;  %14469 = vmatmul.mubr.msk.f32.gmra.mrb[14].mxu1 %vm28513_vm14, %v22602_v60  ;;  %v15756_v40 = vpack.c.bf16 %v4168_v53, %v4160_v50  ;;  %v18039_v54 = vunpack.i.l.bf16 %v22859_v58  ;;  %v4176_v42 = vsel %vm28080_vm7, %v18024_v12, %v18025_v51  ;;  %v4183_v60 = vsel %vm28080_vm7, %v17955_v47, %v18029_v8  ;;  %vm28518_vm14 = vmmov %vm28395_vm2 }
 0x1e8   : > { %14490 = vmatmul.mubr.msk.f32.vlgmr.msra.gmra.mrb[0].mxu0 %vm28395_vm2, %v22903_v49  ;;  %15749 = vmatpush1.bf16.msk.msra.mxu1 %vm21234_vm11, %v15747_v27  ;;  %v4161_v33 = vsel %vm28080_vm7, %v18005_v59, %v18014_v32  ;;  %v4175_v41 = vsel %vm28080_vm7, %v17950_v36, %v18024_v12  ;;  %v18050_v58 = vunpack.i.h.bf16 %v22906_v6  ;;  %v18058_v57 = vpop.permute.xlu1 %18057  ;;  %v28516_v27 = vld [vmem:[#allocation31_spill] sm:$0xff]  ;;  %v15780_v45 = vpack.c.bf16 %v4170_v28, %v4162_v52 }
 0x1e9   : > { %15755 = vmatpush1.bf16.msk.msra.mxu0 %vm21443_vm15, %v15753_v2  ;;  %15776 = vmatprep.subr.msk.bf16.mxu1 %vm21502_vm8, %v15774_v29  ;;  %v4186_v2 = vsel %vm28080_vm7, %v18039_v54, %v18040_v43  ;;  %v18049_v47 = vunpack.i.l.bf16 %v22906_v6  ;;  %v18060_v21 = vunpack.i.h.bf16 %v18058_v57  ;;  %v18043_v59 = vpop.permute.xlu0 %18042  ;;  %v4178_v36 = vsel %vm28080_vm7, %v18034_v22, %v18035_v7 }
 0x1ea   : > { %18317 = vrot.lane.b32.xlu1 %v28516_v27, %s19839_s17  ;;  %18302 = vrot.lane.b32.xlu0 %v28517_v35, %s19839_s17  ;;  %v15762_v20 = vpack.c.bf16 %v4184_v30, %v4176_v42  ;;  %v18045_v32 = vunpack.i.h.bf16 %v18043_v59  ;;  %v18044_v61 = vunpack.i.l.bf16 %v18043_v59  ;;  %v15783_v9 = vpack.c.bf16 %v22909_v15, %v4161_v33  ;;  %v28523_v33 = vld [vmem:[#allocation42_spill] sm:$0xff]  ;;  %v28524_v59 = vld [vmem:[#allocation44_spill] sm:$0xff] }
 0x1eb   : > { %4496 = vmatprep.mubr.f32.mxu1 %v28233_v46  ;;  %15758 = vmatprep.subr.msk.bf16.mxu0 %vm21417_vm1, %v15756_v40  ;;  %v15765_v12 = vpack.c.bf16 %v4183_v60, %v4175_v41  ;;  %v18059_v53 = vunpack.i.l.bf16 %v18058_v57  ;;  %v4200_v8 = vsel %vm28080_vm7, %v18049_v47, %v18050_v58  ;;  %v4177_v6 = vsel %vm28080_vm7, %v18025_v51, %v18034_v22  ;;  %v28521_v51 = vld [vmem:[#allocation35_spill] sm:$0xff]  ;;  %v22990_v22 = vld [vmem:[%s27919_s1 + $0xa8] sm:$0xff] }
 0x1ec   : > { %14510 = vmatmul.mubr.msk.f32.vlgmr.msra.gmra.mrb[0].mxu1 %vm28518_vm14, %v22903_v49  ;;  %v4192_v15 = vsel %vm28080_vm7, %v18044_v61, %v18045_v32  ;;  %v22964_v28 = vpop.permute.xlu1 %18067  ;;  %v15786_v29 = vpack.c.bf16 %v4186_v2, %v4178_v36  ;;  %v4185_v16 = vsel %vm28080_vm7, %v18030_v14, %v18039_v54  ;;  %vm28087_vm2 = vcmask 793600   ;;  %4413 = vmatprep.mubr.f32.mxu0 %v28233_v46  ;;  %v28522_v40 = vld [vmem:[#allocation39_spill] sm:$0xff] }
 0x1ed   : > { %15761 = vmatpush1.bf16.msk.msra.mxu0 %vm21443_vm15, %v15759_v5  ;;  %15779 = vmatpush1.bf16.msk.msra.mxu1 %vm21527_vm5, %v15777_v62  ;;  %v4202_v56 = vsel %vm28080_vm7, %v18059_v53, %v18060_v21  ;;  %v4191_v62 = vsel %vm28080_vm7, %v17985_v26, %v18044_v61  ;;  %v18053_v43 = vpop.permute.xlu0 %18052  ;;  %v18070_v39 = vunpack.i.h.bf16 %v22964_v28  ;;  %v18069_v5 = vunpack.i.l.bf16 %v22964_v28 }
 0x1ee   : > { %18327 = vrot.lane.b32.xlu1 %v28520_v18, %s19839_s17  ;;  %15782 = vmatprep.subr.msk.bf16.mxu1 %vm21502_vm8, %v15780_v45  ;;  %v18055_v52 = vunpack.i.h.bf16 %v18053_v43  ;;  %v18054_v7 = vunpack.i.l.bf16 %v18053_v43  ;;  %v4199_v26 = vsel %vm28080_vm7, %v17990_v13, %v18049_v47  ;;  %v15768_v30 = vpack.c.bf16 %v4200_v8, %v4192_v15  ;;  %v23023_v45 = vld [vmem:[%s27919_s1 + $0xb0] sm:$0xff] }
 0x1ef   : > { %18312 = vrot.lane.b32.xlu0 %v28521_v51, %s19839_s17  ;;  %15764 = vmatprep.subr.msk.bf16.mxu0 %vm21417_vm1, %v15762_v20  ;;  %v15789_v23 = vpack.c.bf16 %v4185_v16, %v4177_v6  ;;  %v15771_v1 = vpack.c.bf16 %v4199_v26, %v4191_v62  ;;  %v4890_v41 = vsel %vm28087_vm2, %v18069_v5, %v18070_v39  ;;  %v28525_v20 = vld [vmem:[#allocation47_spill] sm:$0xff] }
 0x1f0   : > { %4502 = vmatprep.mubr.f32.mxu1 %v28233_v46  ;;  %v4194_v13 = vsel %vm28080_vm7, %v18054_v7, %v18055_v52  ;;  %v22998_v14 = vpop.permute.xlu1 %18077  ;;  %v4193_v54 = vsel %vm28080_vm7, %v18045_v32, %v18054_v7  ;;  %14491 = vmatmul.mubr.msk.f32.gmra.mrb[2].mxu0 %vm28518_vm14, %v22990_v22  ;;  %v4201_v2 = vsel %vm28080_vm7, %v18050_v58, %v18059_v53  ;;  %vm28526_vm7 = vmmov %vm28518_vm14 }
 0x1f1   : > { %15785 = vmatpush1.bf16.msk.msra.mxu1 %vm21527_vm5, %v15783_v9  ;;  %15767 = vmatpush1.bf16.msk.msra.mxu0 %vm21443_vm15, %v15765_v12  ;;  %v23005_v42 = vpop.permute.xlu0 %18062  ;;  %v15792_v60 = vpack.c.bf16 %v4202_v56, %v4194_v13  ;;  %v15795_v47 = vpack.c.bf16 %v4201_v2, %v4193_v54  ;;  %v23046_v9 = vld [vmem:[%s27919_s1 + $0xb8] sm:$0xff]  ;;  %v18080_v12 = vunpack.i.h.bf16 %v22998_v14  ;;  %v18079_v56 = vunpack.i.l.bf16 %v22998_v14  ;;  %v19761_v14 = vld [vmem:[%s19901_s30 + $0x40] sm:$0xff] }
 0x1f2   : > { %18337 = vrot.lane.b32.xlu1 %v28522_v40, %s19839_s17  ;;  %15788 = vmatprep.subr.msk.bf16.mxu1 %vm21502_vm8, %v15786_v29  ;;  %v18065_v57 = vunpack.i.h.bf16 %v23005_v42  ;;  %v18064_v27 = vunpack.i.l.bf16 %v23005_v42 }
 0x1f3   : > { %18322 = vrot.lane.b32.xlu0 %v28523_v33, %s19839_s17  ;;  %15770 = vmatprep.subr.msk.bf16.mxu0 %vm21417_vm1, %v15768_v30 }
 0x1f4   : > { %4419 = vmatprep.mubr.f32.mxu0 %v28233_v46  ;;  %v4882_v21 = vsel %vm28087_vm2, %v18064_v27, %v18065_v57  ;;  %v23030_v58 = vpop.permute.xlu1 %18087  ;;  %14511 = vmatmul.mubr.msk.f32.gmra.mrb[2].mxu1 %vm28526_vm7, %v22990_v22  ;;  %v4883_v54 = vsel %vm28087_vm2, %v18065_v57, %v18079_v56 }
 0x1f5   : > { %15791 = vmatpush1.bf16.msk.msra.mxu1 %vm21527_vm5, %v15789_v23  ;;  %15773 = vmatpush1.bf16.msk.msra.mxu0 %vm21443_vm15, %v15771_v1  ;;  %v18073_v35 = vpop.permute.xlu0 %18072  ;;  %v15798_v36 = vpack.c.bf16 %v4890_v41, %v4882_v21  ;;  %v18090_v43 = vunpack.i.h.bf16 %v23030_v58 }
 0x1f6   : > { %18347 = vrot.lane.b32.xlu1 %v28524_v59, %s19839_s17  ;;  %15794 = vmatprep.subr.msk.bf16.mxu1 %vm21502_vm8, %v15792_v60  ;;  %v18075_v32 = vunpack.i.h.bf16 %v18073_v35  ;;  %v18074_v61 = vunpack.i.l.bf16 %v18073_v35 }
 0x1f7   : > { %18332 = vrot.lane.b32.xlu0 %v28525_v20, %s19839_s17  ;;  %14492 = vmatmul.mubr.msk.f32.gmra.mrb[4].mxu0 %vm28518_vm14, %v23023_v45  ;;  %vm28528_vm14 = vmmov %vm28526_vm7 }
 0x1f8   : > { %4425 = vmatprep.mubr.f32.mxu0 %v28233_v46  ;;  %v4889_v53 = vsel %vm28087_vm2, %v18075_v32, %v18069_v5  ;;  %v4881_v8 = vsel %vm28087_vm2, %v18074_v61, %v18064_v27  ;;  %4508 = vmatprep.mubr.f32.mxu1 %v28233_v46  ;;  %v18098_v6 = vpop.permute.xlu1 %18097 }
 0x1f9   : > { %15797 = vmatpush1.bf16.msk.msra.mxu1 %vm21527_vm5, %v15795_v47  ;;  %15800 = vmatprep.subr.msk.bf16.mxu0 %vm20427_vm4, %v15798_v36  ;;  %v23058_v18 = vpop.permute.xlu0 %18082  ;;  %v15801_v51 = vpack.c.bf16 %v4889_v53, %v4881_v8  ;;  %v18099_v5 = vunpack.i.l.bf16 %v18098_v6  ;;  %v18100_v52 = vunpack.i.h.bf16 %v18098_v6 }
 0x1fa   : > { %18357 = vrot.lane.b32.xlu1 %v22225_v25, %s19839_s17  ;;  %v18085_v62 = vunpack.i.h.bf16 %v23058_v18  ;;  %v18084_v29 = vunpack.i.l.bf16 %v23058_v18  ;;  %v18089_v25 = vunpack.i.l.bf16 %v23030_v58  ;;  %14512 = vmatmul.mubr.msk.f32.gmra.mrb[4].mxu1 %vm28528_vm14, %v23023_v45  ;;  %vm28530_vm14 = vmmov %vm28526_vm7  ;;  %v19758_v18 = vld [vmem:[%s19901_s30 + $0x88] sm:$0xff] }
 0x1fb   : > { %18342 = vrot.lane.b32.xlu0 %v22245_v38, %s19839_s17  ;;  %14493 = vmatmul.mubr.msk.f32.gmra.mrb[6].mxu0 %vm28526_vm7, %v23046_v9  ;;  %v4884_v38 = vsel %vm28087_vm2, %v18079_v56, %v18080_v12 }
 0x1fc   : > { %4585 = vmatprep.mubr.f32.mxu0 %v28233_v46  ;;  %v4892_v7 = vsel %vm28087_vm2, %v18084_v29, %v18085_v62  ;;  %4514 = vmatprep.mubr.f32.mxu1 %v28233_v46  ;;  %v23079_v16 = vpop.permute.xlu1 %18107  ;;  %v4891_v26 = vsel %vm28087_vm2, %v18070_v39, %v18084_v29  ;;  %v4897_v28 = vsel %vm28087_vm2, %v18099_v5, %v18089_v25 }
 0x1fd   : > { %v18110_v30 = vunpack.i.h.bf16 %v23079_v16  ;;  %v18093_v23 = vpop.permute.xlu0 %18092  ;;  %v15822_v1 = vpack.c.bf16 %v4892_v7, %v4884_v38  ;;  %v18109_v39 = vunpack.i.l.bf16 %v23079_v16  ;;  %v19772_v16 = vld [vmem:[%s19901_s30 + $0x98] sm:$0xff] }
 0x1fe   : > { %18367 = vrot.lane.b32.xlu1 %v22271_v11, %s19839_s17  ;;  %v18095_v13 = vunpack.i.h.bf16 %v18093_v23  ;;  %v18094_v40 = vunpack.i.l.bf16 %v18093_v23  ;;  %v4898_v11 = vsel %vm28087_vm2, %v18089_v25, %v18090_v43  ;;  %14513 = vmatmul.mubr.msk.f32.gmra.mrb[6].mxu1 %vm28530_vm14, %v23046_v9  ;;  %vm28532_vm14 = vmmov %vm28526_vm7 }
 0x1ff   : > { %18352 = vrot.lane.b32.xlu0 %v22282_v48, %s19839_s17  ;;  %14530 = vmatmul.mubr.msk.f32.vlgmr.msra.gmra.mrb[8].mxu0 %vm28526_vm7, %v22903_v49  ;;  %v15825_v48 = vpack.c.bf16 %v4891_v26, %v4883_v54  ;;  %v4908_v27 = vsel %vm28087_vm2, %v18109_v39, %v18110_v30 }
 0x200   : > { %15803 = vmatpush1.bf16.msk.msra.mxu0 %vm20467_vm6, %v15801_v51  ;;  %v4905_v60 = vsel %vm28087_vm2, %v18100_v52, %v18094_v40  ;;  %v4906_v33 = vsel %vm28087_vm2, %v18094_v40, %v18095_v13  ;;  %4674 = vmatprep.mubr.f32.mxu1 %v28233_v46  ;;  %v23104_v57 = vpop.permute.xlu1 %18117  ;;  %v4907_v36 = vsel %vm28087_vm2, %v18095_v13, %v18109_v39 }
 0x201   : > { %15824 = vmatprep.subr.msk.bf16.mxu1 %vm20513_vm9, %v15822_v1  ;;  %v15807_v2 = vpack.c.bf16 %v4905_v60, %v4897_v28  ;;  %v23111_v47 = vpop.permute.xlu0 %18102  ;;  %v15804_v21 = vpack.c.bf16 %v4906_v33, %v4898_v11  ;;  %4591 = vmatprep.mubr.f32.mxu0 %v28233_v46  ;;  %v18120_v58 = vunpack.i.h.bf16 %v23104_v57  ;;  %v18119_v59 = vunpack.i.l.bf16 %v23104_v57  ;;  %v28537_v1 = vld [vmem:[#allocation55_spill] sm:$0xff] }
 0x202   : > { %18377 = vrot.lane.b32.xlu1 %v22302_v17, %s19839_s17  ;;  %v18105_v35 = vunpack.i.h.bf16 %v23111_v47  ;;  %v18104_v17 = vunpack.i.l.bf16 %v23111_v47  ;;  %14550 = vmatmul.mubr.msk.f32.vlgmr.msra.gmra.mrb[8].mxu1 %vm28532_vm14, %v22903_v49  ;;  %vm28534_vm14 = vmmov %vm28526_vm7 }
 0x203   : > { %18362 = vrot.lane.b32.xlu0 %v22318_v10, %s19839_s17  ;;  %14531 = vmatmul.mubr.msk.f32.gmra.mrb[10].mxu0 %vm28526_vm7, %v22990_v22  ;;  %v4922_v6 = vsel %vm28087_vm2, %v18119_v59, %v18120_v58 }
 0x204   : > { %15806 = vmatprep.subr.msk.bf16.mxu0 %vm20427_vm4, %v15804_v21  ;;  %15827 = vmatpush1.bf16.msk.msra.mxu1 %vm20525_vm10, %v15825_v48  ;;  %v4899_v20 = vsel %vm28087_vm2, %v18090_v43, %v18104_v17  ;;  %v4900_v32 = vsel %vm28087_vm2, %v18104_v17, %v18105_v35  ;;  %v23135_v61 = vpop.permute.xlu1 %18127  ;;  %v19753_v21 = vld [vmem:[%s19901_s30 + $0x50] sm:$0xff] }
 0x205   : > { %15809 = vmatpush1.bf16.msk.msra.mxu0 %vm20467_vm6, %v15807_v2  ;;  %v15831_v49 = vpack.c.bf16 %v4907_v36, %v4899_v20  ;;  %v18113_v53 = vpop.permute.xlu0 %18112  ;;  %v15828_v8 = vpack.c.bf16 %v4908_v27, %v4900_v32  ;;  %4597 = vmatprep.mubr.f32.mxu0 %v28233_v46  ;;  %v18130_v38 = vunpack.i.h.bf16 %v23135_v61  ;;  %v18129_v52 = vunpack.i.l.bf16 %v23135_v61  ;;  %v28538_v27 = vld [vmem:[#allocation43_spill] sm:$0xff]  ;;  %v19752_v2 = vld [vmem:[%s19901_s30 + $0x48] sm:$0xff]  ;;  %v19780_v61 = vld [vmem:[%s19901_s30 + $0x140] sm:$0xff] }
 0x206   : > { %18387 = vrot.lane.b32.xlu1 %v22345_v3, %s19839_s17  ;;  %v18115_v56 = vunpack.i.h.bf16 %v18113_v53  ;;  %v18114_v29 = vunpack.i.l.bf16 %v18113_v53  ;;  %4680 = vmatprep.mubr.f32.mxu1 %v28233_v46 }
 0x207   : > { %18372 = vrot.lane.b32.xlu0 %v22354_v44, %s19839_s17  ;;  %14532 = vmatmul.mubr.msk.f32.gmra.mrb[12].mxu0 %vm28526_vm7, %v23023_v45  ;;  %v4916_v54 = vsel %vm28087_vm2, %v18129_v52, %v18130_v38 }
 0x208   : > { %15830 = vmatprep.subr.msk.bf16.mxu1 %vm20513_vm9, %v15828_v8  ;;  %4603 = vmatprep.mubr.f32.mxu0 %v28233_v46  ;;  %v4914_v3 = vsel %vm28087_vm2, %v18114_v29, %v18115_v56  ;;  %v23151_v43 = vpop.permute.xlu1 %18137  ;;  %v4915_v11 = vsel %vm28087_vm2, %v18115_v56, %v18129_v52  ;;  %v19757_v52 = vld [vmem:[%s19901_s30 + $0x8] sm:$0xff] }
 0x209   : > { %15833 = vmatpush1.bf16.msk.msra.mxu1 %vm20525_vm10, %v15831_v49  ;;  %v18123_v44 = vpop.permute.xlu0 %18122  ;;  %v15810_v25 = vpack.c.bf16 %v4922_v6, %v4914_v3  ;;  %v18140_v28 = vunpack.i.h.bf16 %v23151_v43 }
 0x20a   : > { %18397 = vrot.lane.b32.xlu1 %v22383_v24, %s19839_s17  ;;  %14551 = vmatmul.mubr.msk.f32.gmra.mrb[10].mxu1 %vm28534_vm14, %v22990_v22  ;;  %v18125_v51 = vunpack.i.h.bf16 %v18123_v44  ;;  %v18124_v5 = vunpack.i.l.bf16 %v18123_v44  ;;  %vm28536_vm14 = vmmov %vm28526_vm7  ;;  %v19754_v44 = vld [vmem:[%s19901_s30 + $0x18] sm:$0xff] }
 0x20b   : > { %18382 = vrot.lane.b32.xlu0 %v22393_v34, %s19839_s17  ;;  %14533 = vmatmul.mubr.msk.f32.gmra.mrb[14].mxu0 %vm28526_vm7, %v23046_v9  ;;  %v28535_v34 = vld [vmem:[#allocation54_spill] sm:$0xff] }
 0x20c   : > { %15812 = vmatprep.subr.msk.bf16.mxu0 %vm20427_vm4, %v15810_v25  ;;  %4686 = vmatprep.mubr.f32.mxu1 %v28233_v46  ;;  %v4921_v24 = vsel %vm28087_vm2, %v18125_v51, %v18119_v59  ;;  %v4913_v22 = vsel %vm28087_vm2, %v18124_v5, %v18114_v29  ;;  %v18426_v59 = vpack.i.bf16 %v19753_v21, %v19752_v2  ;;  %v19755_v25 = vld [vmem:[%s19901_s30 + $0x20] sm:$0xff]  ;;  %v19756_v5 = vld [vmem:[%s19901_s30 + $0x10] sm:$0xff] }
 0x20d   : > { %v18148_v7 = vpop.permute.xlu1 %18147  ;;  %5149 = vmatprep.mubr.f32.mxu0 %v28233_v46  ;;  %v15813_v26 = vpack.c.bf16 %v4921_v24, %v4913_v22  ;;  %v18436_v51 = vpack.i.bf16 %v19755_v25, %v19754_v44  ;;  %v18421_v24 = vpack.i.bf16 %v19756_v5, %v19757_v52  ;;  %v19760_v21 = vld [vmem:[%s19901_s30] sm:$0xff]  ;;  %v28543_v25 = vld [vmem:[#allocation11_spill] sm:$0xff]  ;;  %v19764_v52 = vld [vmem:[%s19901_s30 + $0x58] sm:$0xff] }
 0x20e   : > { %18407 = vrot.lane.b32.xlu1 %v28535_v34, %s19839_s17  ;;  %v23172_v23 = vpop.permute.xlu0 %18132  ;;  %14552 = vmatmul.mubr.msk.f32.gmra.mrb[12].mxu1 %vm28536_vm14, %v23023_v45  ;;  %v18139_v45 = vunpack.i.l.bf16 %v23151_v43  ;;  %v18150_v39 = vunpack.i.h.bf16 %v18148_v7  ;;  %v18149_v48 = vunpack.i.l.bf16 %v18148_v7  ;;  %vm28542_vm14 = vmmov %vm28526_vm7  ;;  %v19762_v43 = vld [vmem:[%s19901_s30 + $0x80] sm:$0xff] }
 0x20f   : > { %18392 = vrot.lane.b32.xlu0 %v28537_v1, %s19839_s17  ;;  %v18135_v13 = vunpack.i.h.bf16 %v23172_v23  ;;  %v18134_v40 = vunpack.i.l.bf16 %v23172_v23  ;;  %4692 = vmatprep.mubr.f32.mxu1 %v28233_v46 }
 0x210   : > { %15815 = vmatpush1.bf16.msk.msra.mxu0 %vm20467_vm6, %v15813_v26  ;;  %v4930_v8 = vsel %vm28087_vm2, %v18139_v45, %v18140_v28  ;;  %v28540_v26 = vld [vmem:[#allocation19_spill] sm:$0xff] }
 0x211   : > { %v4923_v60 = vsel %vm28087_vm2, %v18120_v58, %v18134_v40  ;;  %v4924_v33 = vsel %vm28087_vm2, %v18134_v40, %v18135_v13  ;;  %v23193_v57 = vpop.permute.xlu1 %18157  ;;  %v28539_v58 = vld [vmem:[#allocation10_spill] sm:$0xff] }
 0x212   : > { %18417 = vrot.lane.b32.xlu1 %v28538_v27, %s19839_s17  ;;  %v15837_v17 = vpack.c.bf16 %v4923_v60, %v4915_v11  ;;  %v18143_v36 = vpop.permute.xlu0 %18142  ;;  %v15834_v20 = vpack.c.bf16 %v4924_v33, %v4916_v54  ;;  %14553 = vmatmul.mubr.msk.f32.gmra.mrb[14].mxu1 %vm28526_vm7, %v23046_v9  ;;  %v18160_v32 = vunpack.i.h.bf16 %v23193_v57  ;;  %v4929_v9 = vsel %vm28087_vm2, %v18149_v48, %v18139_v45  ;;  %v23244_v27 = vld [vmem:[%s27919_s1 + $0xc0] sm:$0xff] }
 0x213   : > { %18402 = vrot.lane.b32.xlu0 %v28539_v58, %s19839_s17  ;;  %v18145_v49 = vunpack.i.h.bf16 %v18143_v36  ;;  %v18144_v53 = vunpack.i.l.bf16 %v18143_v36  ;;  %5238 = vmatprep.mubr.f32.mxu1 %v28233_v46  ;;  %v18159_v6 = vunpack.i.l.bf16 %v23193_v57  ;;  %vm28544_vm7 = vnez %v28543_v25  ;;  %v19767_v57 = vld [vmem:[%s19901_s30 + $0xe0] sm:$0xff] }
 0x214   : > { %15836 = vmatprep.subr.msk.bf16.mxu1 %vm20513_vm9, %v15834_v20 }
 0x215   : > { %v4937_v56 = vsel %vm28087_vm2, %v18150_v39, %v18144_v53  ;;  %v4938_v29 = vsel %vm28087_vm2, %v18144_v53, %v18145_v49  ;;  %15839 = vmatpush1.bf16.msk.msra.mxu1 %vm20525_vm10, %v15837_v17  ;;  %v23216_v3 = vpop.permute.xlu1 %18167  ;;  %v4894_v1 = vsel %vm28087_vm2, %v18159_v6, %v18160_v32  ;;  %v4893_v45 = vsel %vm28087_vm2, %v18085_v62, %v18159_v6  ;;  %v19759_v62 = vld [vmem:[%s19901_s30 + $0x90] sm:$0xff] }
 0x216   : > { %18427 = vrot.lane.b32.xlu1 %v18426_v59, %s19840_s16  ;;  %v15819_v22 = vpack.c.bf16 %v4937_v56, %v4929_v9  ;;  %v18153_v7 = vpop.permute.xlu0 %18152  ;;  %v15816_v34 = vpack.c.bf16 %v4938_v29, %v4930_v8  ;;  %v18170_v40 = vunpack.i.h.bf16 %v23216_v3  ;;  %v18169_v39 = vunpack.i.l.bf16 %v23216_v3 }
 0x217   : > { %18412 = vrot.lane.b32.xlu0 %v28540_v26, %s19839_s17  ;;  %v18155_v54 = vunpack.i.h.bf16 %v18153_v7  ;;  %v18154_v11 = vunpack.i.l.bf16 %v18153_v7  ;;  %v18446_v2 = vpack.i.bf16 %v19759_v62, %v19758_v18  ;;  %v18431_v59 = vpack.i.bf16 %v19761_v14, %v19760_v21  ;;  %v19769_v14 = vld [vmem:[%s19901_s30 + $0xc8] sm:$0xff] }
 0x218   : > { %15818 = vmatprep.subr.msk.bf16.mxu0 %vm20427_vm4, %v15816_v34  ;;  %v4940_v20 = vsel %vm28087_vm2, %v18169_v39, %v18170_v40  ;;  %v4939_v6 = vsel %vm28087_vm2, %v18145_v49, %v18169_v39  ;;  %v23278_v49 = vld [vmem:[%s27919_s1 + $0xc8] sm:$0xff] }
 0x219   : > { %v4885_v48 = vsel %vm28087_vm2, %v18080_v12, %v18154_v11  ;;  %v4886_v60 = vsel %vm28087_vm2, %v18154_v11, %v18155_v54  ;;  %15821 = vmatpush1.bf16.msk.msra.mxu0 %vm20467_vm6, %v15819_v22  ;;  %v18178_v33 = vpop.permute.xlu1 %18177 }
 0x21a   : > { %18437 = vrot.lane.b32.xlu1 %v18436_v51, %s19840_s16  ;;  %v15849_v12 = vpack.c.bf16 %v4893_v45, %v4885_v48  ;;  %v23251_v17 = vpop.permute.xlu0 %18162  ;;  %v15846_v36 = vpack.c.bf16 %v4894_v1, %v4886_v60  ;;  %v18180_v58 = vunpack.i.h.bf16 %v18178_v33  ;;  %v18179_v56 = vunpack.i.l.bf16 %v18178_v33 }
 0x21b   : > { %18422 = vrot.lane.b32.xlu0 %v18421_v24, %s19840_s16  ;;  %v18165_v53 = vunpack.i.h.bf16 %v23251_v17  ;;  %v18164_v8 = vunpack.i.l.bf16 %v23251_v17  ;;  %v19765_v24 = vld [vmem:[%s19901_s30 + $0x60] sm:$0xff] }
 0x21c   : > { %15848 = vmatprep.subr.msk.bf16.mxu0 %vm20760_vm13, %v15846_v36  ;;  %14574 = vmatmul.mubr.msk.f32.vlgmr.msra.gmra.mrb[0].mxu0 %vm28542_vm14, %v23244_v27  ;;  %v18441_v22 = vpack.i.bf16 %v19765_v24, %v19764_v52  ;;  %v4896_v1 = vsel %vm28087_vm2, %v18179_v56, %v18180_v58  ;;  %v4895_v48 = vsel %vm28087_vm2, %v18160_v32, %v18179_v56  ;;  %v19768_v32 = vld [vmem:[%s19901_s30 + $0xd0] sm:$0xff] }
 0x21d   : > { %v4931_v29 = vsel %vm28087_vm2, %v18140_v28, %v18164_v8  ;;  %v4932_v44 = vsel %vm28087_vm2, %v18164_v8, %v18165_v53  ;;  %15851 = vmatpush1.bf16.msk.msra.mxu0 %vm28544_vm7, %v15849_v12  ;;  %v23272_v51 = vpop.permute.xlu1 %18187  ;;  %5155 = vmatprep.mubr.f32.mxu0 %v28233_v46  ;;  %v19763_v28 = vld [vmem:[%s19901_s30 + $0xc0] sm:$0xff] }
 0x21e   : > { %18447 = vrot.lane.b32.xlu1 %v18446_v2, %s19840_s16  ;;  %v18456_v5 = vpack.i.bf16 %v19763_v28, %v19762_v43  ;;  %v15843_v7 = vpack.c.bf16 %v4939_v6, %v4931_v29  ;;  %v18173_v34 = vpop.permute.xlu0 %18172  ;;  %v15840_v26 = vpack.c.bf16 %v4940_v20, %v4932_v44  ;;  %v18190_v11 = vunpack.i.h.bf16 %v23272_v51  ;;  %v19766_v2 = vld [vmem:[%s19901_s30 + $0xd8] sm:$0xff]  ;;  %v23309_v20 = vld [vmem:[%s27919_s1 + $0xd0] sm:$0xff]  ;;  %v19770_v29 = vld [vmem:[%s19901_s30 + $0x148] sm:$0xff] }
 0x21f   : > { %18432 = vrot.lane.b32.xlu0 %v18431_v59, %s19840_s16  ;;  %v18175_v45 = vunpack.i.h.bf16 %v18173_v34  ;;  %v18174_v39 = vunpack.i.l.bf16 %v18173_v34  ;;  %v18189_v60 = vunpack.i.l.bf16 %v23272_v51  ;;  %v18466_v21 = vpack.i.bf16 %v19767_v57, %v19766_v2  ;;  %v19771_v44 = vld [vmem:[%s19901_s30 + $0x150] sm:$0xff]  ;;  %v28545_v43 = vld [vmem:[#allocation13_spill] sm:$0xff]  ;;  %v19774_v57 = vld [vmem:[%s19901_s30 + $0x118] sm:$0xff] }
 0x220   : > { %15842 = vmatprep.subr.msk.bf16.mxu1 %vm20513_vm9, %v15840_v26  ;;  %14575 = vmatmul.mubr.msk.f32.gmra.mrb[2].mxu0 %vm28542_vm14, %v23278_v49  ;;  %v18451_v59 = vpack.i.bf16 %v19768_v32, %v19769_v14  ;;  %v18476_v51 = vpack.i.bf16 %v19771_v44, %v19770_v29  ;;  %vm28546_vm14 = vnez %v28545_v43  ;;  %v19773_v34 = vld [vmem:[%s19901_s30 + $0xa0] sm:$0xff] }
 0x221   : > { %v4887_v33 = vsel %vm28087_vm2, %v18155_v54, %v18174_v39  ;;  %v4888_v18 = vsel %vm28087_vm2, %v18174_v39, %v18175_v45  ;;  %15845 = vmatpush1.bf16.msk.msra.mxu1 %vm20525_vm10, %v15843_v7  ;;  %v18198_v62 = vpop.permute.xlu1 %18197  ;;  %5161 = vmatprep.mubr.f32.mxu0 %v28233_v46  ;;  %v4910_v58 = vsel %vm28087_vm2, %v18189_v60, %v18190_v11  ;;  %vm28547_vm10 = vcmask 523264  }
 0x222   : > { %18457 = vrot.lane.b32.xlu1 %v18456_v5, %s19840_s16  ;;  %v15873_v12 = vpack.c.bf16 %v4895_v48, %v4887_v33  ;;  %v18183_v54 = vpop.permute.xlu0 %18182  ;;  %v15870_v36 = vpack.c.bf16 %v4896_v1, %v4888_v18  ;;  %v18200_v8 = vunpack.i.h.bf16 %v18198_v62  ;;  %v4909_v28 = vsel %vm28087_vm2, %v18110_v30, %v18189_v60  ;;  %vm28550_vm6 = vmmov %vm28547_vm10  ;;  %v23343_v60 = vld [vmem:[%s27919_s1 + $0xd8] sm:$0xff] }
 0x223   : > { %18442 = vrot.lane.b32.xlu0 %v18441_v22, %s19840_s16  ;;  %v18185_v6 = vunpack.i.h.bf16 %v18183_v54  ;;  %v18184_v56 = vunpack.i.l.bf16 %v18183_v54  ;;  %v18199_v5 = vunpack.i.l.bf16 %v18198_v62  ;;  %v28548_v22 = vld [vmem:[#allocation15_spill] sm:$0xff]  ;;  %v18461_v30 = vpack.i.bf16 %v19773_v34, %v19772_v16 }
 0x224   : > { %15872 = vmatprep.subr.msk.bf16.mxu1 %vm28546_vm14, %v15870_v36  ;;  %14594 = vmatmul.mubr.msk.f32.vlgmr.msra.gmra.mrb[0].mxu1 %vm28547_vm10, %v23244_v27  ;;  %vm28549_vm9 = vnez %v28548_v22  ;;  %vm28551_vm10 = vmmov %vm28550_vm6  ;;  %v19776_v54 = vld [vmem:[%s19901_s30 + $0x110] sm:$0xff]  ;;  %v19777_v36 = vld [vmem:[%s19901_s30 + $0x108] sm:$0xff] }
 0x225   : > { %v4901_v52 = vsel %vm28087_vm2, %v18105_v35, %v18184_v56  ;;  %v4902_v24 = vsel %vm28087_vm2, %v18184_v56, %v18185_v6  ;;  %15875 = vmatpush1.bf16.msk.msra.mxu1 %vm28549_vm9, %v15873_v12  ;;  %v23328_v7 = vpop.permute.xlu1 %18207  ;;  %14576 = vmatmul.mubr.msk.f32.gmra.mrb[4].mxu0 %vm28550_vm6, %v23309_v20  ;;  %v4912_v35 = vsel %vm28087_vm2, %v18199_v5, %v18200_v8 }
 0x226   : > { %18467 = vrot.lane.b32.xlu1 %v18466_v21, %s19840_s16  ;;  %v15855_v26 = vpack.c.bf16 %v4909_v28, %v4901_v52  ;;  %v18193_v1 = vpop.permute.xlu0 %18192  ;;  %v15852_v47 = vpack.c.bf16 %v4910_v58, %v4902_v24  ;;  %5244 = vmatprep.mubr.f32.mxu1 %v28233_v46  ;;  %v18210_v45 = vunpack.i.h.bf16 %v23328_v7  ;;  %v4911_v33 = vsel %vm28087_vm2, %v18190_v11, %v18199_v5  ;;  %v19775_v21 = vld [vmem:[%s19901_s30 + $0x120] sm:$0xff]  ;;  %v19778_v5 = vld [vmem:[%s19901_s30 + $0x188] sm:$0xff]  ;;  %v19779_v52 = vld [vmem:[%s19901_s30 + $0x190] sm:$0xff] }
 0x227   : > { %18452 = vrot.lane.b32.xlu0 %v18451_v59, %s19840_s16  ;;  %v18195_v39 = vunpack.i.h.bf16 %v18193_v1  ;;  %v18194_v48 = vunpack.i.l.bf16 %v18193_v1  ;;  %5167 = vmatprep.mubr.f32.mxu0 %v28233_v46  ;;  %v18209_v18 = vunpack.i.l.bf16 %v23328_v7  ;;  %v18486_v32 = vpack.i.bf16 %v19775_v21, %v19774_v57  ;;  %v19784_v57 = vld [vmem:[%s19901_s30 + $0x158] sm:$0xff]  ;;  %v19785_v21 = vld [vmem:[%s19901_s30 + $0x160] sm:$0xff] }
 0x228   : > { %15854 = vmatprep.subr.msk.bf16.mxu0 %vm20760_vm13, %v15852_v47  ;;  %14595 = vmatmul.mubr.msk.f32.gmra.mrb[2].mxu1 %vm28550_vm6, %v23278_v49  ;;  %v18471_v58 = vpack.i.bf16 %v19776_v54, %v19777_v36  ;;  %v18496_v24 = vpack.i.bf16 %v19779_v52, %v19778_v5 }
 0x229   : > { %v4903_v62 = vsel %vm28087_vm2, %v18185_v6, %v18194_v48  ;;  %v4904_v2 = vsel %vm28087_vm2, %v18194_v48, %v18195_v39  ;;  %15857 = vmatpush1.bf16.msk.msra.mxu0 %vm28544_vm7, %v15855_v26  ;;  %5250 = vmatprep.mubr.f32.mxu1 %v28233_v46  ;;  %v18218_v11 = vpop.permute.xlu1 %18217  ;;  %v4926_v8 = vsel %vm28087_vm2, %v18209_v18, %v18210_v45  ;;  %v19782_v48 = vld [vmem:[%s19901_s30 + $0x180] sm:$0xff] }
 0x22a   : > { %18477 = vrot.lane.b32.xlu1 %v18476_v51, %s19840_s16  ;;  %v15879_v14 = vpack.c.bf16 %v4911_v33, %v4903_v62  ;;  %v18203_v59 = vpop.permute.xlu0 %18202  ;;  %v15876_v12 = vpack.c.bf16 %v4912_v35, %v4904_v2  ;;  %14577 = vmatmul.mubr.msk.f32.gmra.mrb[6].mxu0 %vm28551_vm10, %v23343_v60  ;;  %v18220_v29 = vunpack.i.h.bf16 %v18218_v11  ;;  %v4925_v44 = vsel %vm28087_vm2, %v18135_v13, %v18209_v18  ;;  %vm28552_vm10 = vmmov %vm28550_vm6  ;;  %v19783_v33 = vld [vmem:[%s19901_s30 + $0x1c0] sm:$0xff] }
 0x22b   : > { %18462 = vrot.lane.b32.xlu0 %v18461_v30, %s19840_s16  ;;  %v18205_v6 = vunpack.i.h.bf16 %v18203_v59  ;;  %v18204_v56 = vunpack.i.l.bf16 %v18203_v59  ;;  %5327 = vmatprep.mubr.f32.mxu0 %v28233_v46  ;;  %v18219_v7 = vunpack.i.l.bf16 %v18218_v11  ;;  %v18506_v18 = vpack.i.bf16 %v19783_v33, %v19782_v48 }
 0x22c   : > { %15878 = vmatprep.subr.msk.bf16.mxu1 %vm28546_vm14, %v15876_v12  ;;  %14596 = vmatmul.mubr.msk.f32.gmra.mrb[4].mxu1 %vm28550_vm6, %v23309_v20  ;;  %vm28088_vm6 = vcmask 785408  }
 0x22d   : > { %v4917_v51 = vsel %vm28087_vm2, %v18130_v38, %v18204_v56  ;;  %v4918_v28 = vsel %vm28087_vm2, %v18204_v56, %v18205_v6  ;;  %15881 = vmatpush1.bf16.msk.msra.mxu1 %vm28549_vm9, %v15879_v14  ;;  %5256 = vmatprep.mubr.f32.mxu1 %v28233_v46  ;;  %v19781_v38 = vld [vmem:[%s19901_s30 + $0x100] sm:$0xff]  ;;  %v4928_v26 = vsel %vm28087_vm2, %v18219_v7, %v18220_v29 }
 0x22e   : > { %18487 = vrot.lane.b32.xlu1 %v18486_v32, %s19840_s16  ;;  %v15861_v16 = vpack.c.bf16 %v4925_v44, %v4917_v51  ;;  %v15858_v34 = vpack.c.bf16 %v4926_v8, %v4918_v28  ;;  %v18481_v23 = vpack.i.bf16 %v19780_v61, %v19781_v38  ;;  %v23386_v13 = vpop.permute.xlu1 %18227  ;;  %v4927_v39 = vsel %vm28087_vm2, %v18210_v45, %v18219_v7  ;;  %v19786_v8 = vld [vmem:[%s19901_s30 + $0x68] sm:$0xff]  ;;  %v19789_v28 = vld [vmem:[%s19901_s30 + $0x1d0] sm:$0xff] }
 0x22f   : > { %18472 = vrot.lane.b32.xlu0 %v18471_v58, %s19840_s16  ;;  %v18213_v30 = vpop.permute.xlu0 %18212  ;;  %v18230_v35 = vunpack.i.h.bf16 %v23386_v13  ;;  %v18491_v32 = vpack.i.bf16 %v19785_v21, %v19784_v57  ;;  %v18229_v14 = vunpack.i.l.bf16 %v23386_v13  ;;  %v19788_v51 = vld [vmem:[%s19901_s30 + $0x1c8] sm:$0xff]  ;;  %v19794_v57 = vld [vmem:[%s19901_s30 + $0x78] sm:$0xff] }
 0x230   : > { %v18215_v1 = vunpack.i.h.bf16 %v18213_v30  ;;  %v18214_v47 = vunpack.i.l.bf16 %v18213_v30  ;;  %15860 = vmatprep.subr.msk.bf16.mxu0 %vm20760_vm13, %v15858_v34  ;;  %14597 = vmatmul.mubr.msk.f32.gmra.mrb[6].mxu1 %vm28552_vm10, %v23343_v60  ;;  %v18501_v5 = vpack.i.bf16 %v19789_v28, %v19788_v51  ;;  %v18536_v21 = vpack.i.bf16 %v28233_v46, %v19794_v57 }
 0x231   : > { %15863 = vmatpush1.bf16.msk.msra.mxu0 %vm28544_vm7, %v15861_v16  ;;  %5416 = vmatprep.mubr.f32.mxu1 %v28233_v46  ;;  %v4942_v54 = vsel %vm28087_vm2, %v18229_v14, %v18230_v35  ;;  %v4941_v44 = vsel %vm28087_vm2, %v18170_v40, %v18229_v14  ;;  %v19790_v40 = vld [vmem:[%s19901_s30 + $0x1d8] sm:$0xff] }
 0x232   : > { %18497 = vrot.lane.b32.xlu1 %v18496_v24, %s19840_s16  ;;  %v4919_v62 = vsel %vm28087_vm2, %v18205_v6, %v18214_v47  ;;  %v4920_v2 = vsel %vm28087_vm2, %v18214_v47, %v18215_v1  ;;  %v19787_v6 = vld [vmem:[%s19901_s30 + $0x70] sm:$0xff] }
 0x233   : > { %18482 = vrot.lane.b32.xlu0 %v18481_v23, %s19840_s16  ;;  %v15885_v11 = vpack.c.bf16 %v4927_v39, %v4919_v62  ;;  %v15882_v59 = vpack.c.bf16 %v4928_v26, %v4920_v2  ;;  %v18238_v45 = vpop.permute.xlu1 %18237  ;;  %v18516_v56 = vpack.i.bf16 %v19787_v6, %v19786_v8  ;;  %v19791_v23 = vld [vmem:[%s19901_s30 + $0x1e0] sm:$0xff]  ;;  %v19793_v26 = vld [vmem:[%s19901_s30 + $0x30] sm:$0xff] }
 0x234   : > { %v18223_v12 = vpop.permute.xlu0 %18222  ;;  %v18240_v29 = vunpack.i.h.bf16 %v18238_v45  ;;  %v18239_v7 = vunpack.i.l.bf16 %v18238_v45  ;;  %v18526_v13 = vpack.i.bf16 %v19791_v23, %v19790_v40  ;;  %v19798_v8 = vld [vmem:[%s19901_s30 + $0xf0] sm:$0xff] }
 0x235   : > { %v18225_v36 = vunpack.i.h.bf16 %v18223_v12  ;;  %v18224_v58 = vunpack.i.l.bf16 %v18223_v12  ;;  %15884 = vmatprep.subr.msk.bf16.mxu1 %vm28546_vm14, %v15882_v59 }
 0x236   : > { %18507 = vrot.lane.b32.xlu1 %v18506_v18, %s19840_s16  ;;  %15887 = vmatpush1.bf16.msk.msra.mxu1 %vm28549_vm9, %v15885_v11  ;;  %v4944_v3 = vsel %vm28087_vm2, %v18239_v7, %v18240_v29  ;;  %v4943_v48 = vsel %vm28087_vm2, %v18230_v35, %v18239_v7  ;;  %v19795_v35 = vld [vmem:[%s19901_s30 + $0x198] sm:$0xff]  ;;  %v19796_v11 = vld [vmem:[%s19901_s30 + $0x1a0] sm:$0xff] }
 0x237   : > { %18492 = vrot.lane.b32.xlu0 %v18491_v32, %s19840_s16  ;;  %v4933_v52 = vsel %vm28087_vm2, %v18165_v53, %v18224_v58  ;;  %v4934_v24 = vsel %vm28087_vm2, %v18224_v58, %v18225_v36  ;;  %v19792_v53 = vld [vmem:[%s19901_s30 + $0x28] sm:$0xff]  ;;  %v18521_v59 = vpack.i.bf16 %v19796_v11, %v19795_v35  ;;  %v19799_v29 = vld [vmem:[%s19901_s30 + $0x38] sm:$0xff] }
 0x238   : > { %v15867_v16 = vpack.c.bf16 %v4941_v44, %v4933_v52  ;;  %v15864_v34 = vpack.c.bf16 %v4942_v54, %v4934_v24  ;;  %v23425_v61 = vpop.permute.xlu1 %18247  ;;  %v18511_v1 = vpack.i.bf16 %v19793_v26, %v19792_v53  ;;  %v19797_v58 = vld [vmem:[%s19901_s30 + $0xe8] sm:$0xff]  ;;  %v18531_v44 = vpack.i.bf16 %v28233_v46, %v19799_v29  ;;  %v19800_v24 = vld [vmem:[%s19901_s30 + $0xf8] sm:$0xff] }
 0x239   : > { %v18233_v38 = vpop.permute.xlu0 %18232  ;;  %v18250_v47 = vunpack.i.h.bf16 %v23425_v61  ;;  %v18249_v39 = vunpack.i.l.bf16 %v23425_v61  ;;  %v18546_v6 = vpack.i.bf16 %v19798_v8, %v19797_v58  ;;  %v18556_v7 = vpack.i.bf16 %v28233_v46, %v19800_v24  ;;  %v19807_v58 = vld [vmem:[%s19901_s30 + $0x128] sm:$0xff]  ;;  %v19808_v8 = vld [vmem:[%s19901_s30 + $0x130] sm:$0xff] }
 0x23a   : > { %18517 = vrot.lane.b32.xlu1 %v18516_v56, %s19840_s16  ;;  %v18235_v17 = vunpack.i.h.bf16 %v18233_v38  ;;  %v18234_v30 = vunpack.i.l.bf16 %v18233_v38  ;;  %15866 = vmatprep.subr.msk.bf16.mxu0 %vm20760_vm13, %v15864_v34  ;;  %v19802_v34 = vld [vmem:[%s19901_s30 + $0xb0] sm:$0xff] }
 0x23b   : > { %18502 = vrot.lane.b32.xlu0 %v18501_v5, %s19840_s16  ;;  %15869 = vmatpush1.bf16.msk.msra.mxu0 %vm28544_vm7, %v15867_v16  ;;  %v5632_v54 = vsel %vm28088_vm6, %v18249_v39, %v18250_v47  ;;  %v19801_v16 = vld [vmem:[%s19901_s30 + $0xa8] sm:$0xff]  ;;  %v19810_v24 = vld [vmem:[%s19901_s30 + $0x1f0] sm:$0xff] }
 0x23c   : > { %v4935_v33 = vsel %vm28087_vm2, %v18225_v36, %v18234_v30  ;;  %v4936_v18 = vsel %vm28087_vm2, %v18234_v30, %v18235_v17  ;;  %vm28553_vm2 = vmmov %vm28552_vm10  ;;  %v18541_v38 = vpack.i.bf16 %v19802_v34, %v19801_v16 }
 0x23d   : > { %v15891_v62 = vpack.c.bf16 %v4943_v48, %v4935_v33  ;;  %v15888_v2 = vpack.c.bf16 %v4944_v3, %v4936_v18  ;;  %v23446_v32 = vpop.permute.xlu1 %18257 }
 0x23e   : > { %18527 = vrot.lane.b32.xlu1 %v18526_v13, %s19840_s16  ;;  %v18243_v14 = vpop.permute.xlu0 %18242  ;;  %14614 = vmatmul.mubr.msk.f32.vlgmr.msra.gmra.mrb[8].mxu0 %vm28552_vm10, %v23244_v27  ;;  %v18259_v3 = vunpack.i.l.bf16 %v23446_v32 }
 0x23f   : > { %18512 = vrot.lane.b32.xlu0 %v18511_v1, %s19840_s16  ;;  %v18245_v45 = vunpack.i.h.bf16 %v18243_v14  ;;  %v18244_v12 = vunpack.i.l.bf16 %v18243_v14  ;;  %15890 = vmatprep.subr.msk.bf16.mxu1 %vm28546_vm14, %v15888_v2  ;;  %v19803_v1 = vld [vmem:[%s19901_s30 + $0x168] sm:$0xff] }
 0x240   : > { %15893 = vmatpush1.bf16.msk.msra.mxu1 %vm28549_vm9, %v15891_v62  ;;  %5333 = vmatprep.mubr.f32.mxu0 %v28233_v46 }
 0x241   : > { %v5624_v36 = vsel %vm28088_vm6, %v18244_v12, %v18245_v45  ;;  %v5625_v33 = vsel %vm28088_vm6, %v18245_v45, %v18259_v3 }
 0x242   : > { %18537 = vrot.lane.b32.xlu1 %v18536_v21, %s19840_s16  ;;  %v15894_v56 = vpack.c.bf16 %v5632_v54, %v5624_v36  ;;  %14615 = vmatmul.mubr.msk.f32.gmra.mrb[10].mxu0 %vm28552_vm10, %v23278_v49  ;;  %vm28554_vm10 = vmmov %vm28553_vm2 }
 0x243   : > { %18522 = vrot.lane.b32.xlu0 %v18521_v59, %s19840_s16  ;;  %v23470_v51 = vpop.permute.xlu1 %18267  ;;  %14634 = vmatmul.mubr.msk.f32.vlgmr.msra.gmra.mrb[8].mxu1 %vm28553_vm2, %v23244_v27  ;;  %v18253_v28 = vpop.permute.xlu0 %18252  ;;  %v18260_v27 = vunpack.i.h.bf16 %v23446_v32 }
 0x244   : > { %15895 = vmatprep.subr.bf16.mxu0 %v15894_v56  ;;  %5339 = vmatprep.mubr.f32.mxu0 %v28233_v46  ;;  %v18255_v5 = vunpack.i.h.bf16 %v18253_v28  ;;  %v18254_v52 = vunpack.i.l.bf16 %v18253_v28  ;;  %v18270_v2 = vunpack.i.h.bf16 %v23470_v51  ;;  %v18269_v57 = vunpack.i.l.bf16 %v23470_v51 }
 0x245   : > { %5422 = vmatprep.mubr.f32.mxu1 %v28233_v46  ;;  %v5626_v62 = vsel %vm28088_vm6, %v18259_v3, %v18260_v27 }
 0x246   : > { %18547 = vrot.lane.b32.xlu1 %v18546_v6, %s19840_s16  ;;  %14616 = vmatmul.mubr.msk.f32.gmra.mrb[12].mxu0 %vm28554_vm10, %v23309_v20  ;;  %v5631_v40 = vsel %vm28088_vm6, %v18255_v5, %v18249_v39  ;;  %v5623_v23 = vsel %vm28088_vm6, %v18254_v52, %v18244_v12  ;;  %v19804_v39 = vld [vmem:[%s19901_s30 + $0x170] sm:$0xff]  ;;  %vm28555_vm10 = vmmov %vm28553_vm2  ;;  %v19806_v12 = vld [vmem:[%s19901_s30 + $0x178] sm:$0xff]  ;;  %v18561_v6 = vpack.i.bf16 %v19808_v8, %v19807_v58 }
 0x247   : > { %18532 = vrot.lane.b32.xlu0 %v18531_v44, %s19840_s16  ;;  %5345 = vmatprep.mubr.f32.mxu0 %v28233_v46  ;;  %v15896_v13 = vpack.c.bf16 %v5631_v40, %v5623_v23  ;;  %v18566_v48 = vpack.i.bf16 %v19804_v39, %v19803_v1  ;;  %v18576_v54 = vpack.i.bf16 %v28233_v46, %v19806_v12  ;;  %v19809_v52 = vld [vmem:[%s19901_s30 + $0x1e8] sm:$0xff]  ;;  %v19811_v40 = vld [vmem:[%s19901_s30 + $0x138] sm:$0xff] }
 0x248   : > { %14635 = vmatmul.mubr.msk.f32.gmra.mrb[10].mxu1 %vm28553_vm2, %v23278_v49  ;;  %v18278_v17 = vpop.permute.xlu1 %18277  ;;  %v19805_v49 = vld [vmem:[%s19901_s30 + $0xb8] sm:$0xff]  ;;  %v5640_v51 = vsel %vm28088_vm6, %v18269_v57, %v18270_v2 }
 0x249   : > { %v23491_v30 = vpop.permute.xlu0 %18262  ;;  %5428 = vmatprep.mubr.f32.mxu1 %v28233_v46  ;;  %15897 = vmatpush1.bf16.msra.mxu0 %v15896_v13  ;;  %v18551_v18 = vpack.i.bf16 %v28233_v46, %v19805_v49  ;;  %v18280_v35 = vunpack.i.h.bf16 %v18278_v17  ;;  %v18279_v11 = vunpack.i.l.bf16 %v18278_v17  ;;  %v19815_v12 = vld [vmem:[%s19901_s30 + $0x1b8] sm:$0xff] }
 0x24a   : > { %18557 = vrot.lane.b32.xlu1 %v18556_v7, %s19840_s16  ;;  %v18265_v53 = vunpack.i.h.bf16 %v23491_v30  ;;  %v18264_v26 = vunpack.i.l.bf16 %v23491_v30  ;;  %14617 = vmatmul.mubr.msk.f32.gmra.mrb[14].mxu0 %vm28555_vm10, %v23343_v60  ;;  %vm28556_vm10 = vmmov %vm28553_vm2  ;;  %v18586_v7 = vpack.i.bf16 %v19810_v24, %v19809_v52 }
 0x24b   : > { %18542 = vrot.lane.b32.xlu0 %v18541_v38, %s19840_s16  ;;  %5827 = vmatprep.mubr.f32.mxu0 %v28233_v46  ;;  %v5639_v29 = vsel %vm28088_vm6, %v18279_v11, %v18269_v57  ;;  %v19814_v57 = vld [vmem:[%s19901_s30 + $0x1b0] sm:$0xff] }
 0x24c   : > { %v5633_v21 = vsel %vm28088_vm6, %v18250_v47, %v18264_v26  ;;  %v5634_v14 = vsel %vm28088_vm6, %v18264_v26, %v18265_v53  ;;  %14636 = vmatmul.mubr.msk.f32.gmra.mrb[12].mxu1 %vm28553_vm2, %v23309_v20 }
 0x24d   : > { %v15910_v59 = vpack.c.bf16 %v5634_v14, %v5626_v62  ;;  %v15912_v45 = vpack.c.bf16 %v5633_v21, %v5625_v33  ;;  %5434 = vmatprep.mubr.f32.mxu1 %v28233_v46  ;;  %v23521_v61 = vpop.permute.xlu1 %18287  ;;  %v19812_v33 = vld [vmem:[%s19901_s30 + $0x1f8] sm:$0xff]  ;;  %v19813_v62 = vld [vmem:[%s19901_s30 + $0x1a8] sm:$0xff] }
 0x24e   : > { %18567 = vrot.lane.b32.xlu1 %v18566_v48, %s19840_s16  ;;  %v18273_v47 = vpop.permute.xlu0 %18272  ;;  %v18290_v56 = vunpack.i.h.bf16 %v23521_v61  ;;  %v18289_v5 = vunpack.i.l.bf16 %v23521_v61  ;;  %v18596_v49 = vpack.i.bf16 %v28233_v46, %v19812_v33  ;;  %v18581_v21 = vpack.i.bf16 %v19814_v57, %v19813_v62 }
 0x24f   : > { %18552 = vrot.lane.b32.xlu0 %v18551_v18, %s19840_s16  ;;  %v18275_v36 = vunpack.i.h.bf16 %v18273_v47  ;;  %v18274_v20 = vunpack.i.l.bf16 %v18273_v47  ;;  %15911 = vmatprep.subr.bf16.mxu1 %v15910_v59 }
 0x250   : > { %15913 = vmatpush1.bf16.msra.mxu1 %v15912_v45  ;;  %v5650_v17 = vsel %vm28088_vm6, %v18289_v5, %v18290_v56 }
 0x251   : > { %v5647_v44 = vsel %vm28088_vm6, %v18280_v35, %v18274_v20  ;;  %v5648_v28 = vsel %vm28088_vm6, %v18274_v20, %v18275_v36  ;;  %14637 = vmatmul.mubr.msk.f32.gmra.mrb[14].mxu1 %vm28556_vm10, %v23343_v60  ;;  %v18571_v60 = vpack.i.bf16 %v28233_v46, %v19811_v40  ;;  %v5649_v39 = vsel %vm28088_vm6, %v18275_v36, %v18289_v5  ;;  %vm28557_vm10 = vmmov %vm28553_vm2 }
 0x252   : > { %18577 = vrot.lane.b32.xlu1 %v18576_v54, %s19840_s16  ;;  %v15898_v16 = vpack.c.bf16 %v5648_v28, %v5640_v51  ;;  %v15900_v34 = vpack.c.bf16 %v5647_v44, %v5639_v29  ;;  %5916 = vmatprep.mubr.f32.mxu1 %v28233_v46  ;;  %v18298_v38 = vpop.permute.xlu1 %18297  ;;  %v18591_v54 = vpack.i.bf16 %v28233_v46, %v19815_v12 }
 0x253   : > { %18562 = vrot.lane.b32.xlu0 %v18561_v6, %s19840_s16  ;;  %v23541_v3 = vpop.permute.xlu0 %18282  ;;  %v18300_v26 = vunpack.i.h.bf16 %v18298_v38  ;;  %v18299_v1 = vunpack.i.l.bf16 %v18298_v38 }
 0x254   : > { %v18285_v23 = vunpack.i.h.bf16 %v23541_v3  ;;  %v18284_v13 = vunpack.i.l.bf16 %v23541_v3  ;;  %15899 = vmatprep.subr.bf16.mxu0 %v15898_v16 }
 0x255   : > { %15901 = vmatpush1.bf16.msra.mxu0 %v15900_v34  ;;  %v5664_v47 = vsel %vm28088_vm6, %v18299_v1, %v18300_v26 }
 0x256   : > { %v5641_v48 = vsel %vm28088_vm6, %v18270_v2, %v18284_v13  ;;  %18587 = vrot.lane.b32.xlu1 %v18586_v7, %s19840_s16  ;;  %v5642_v18 = vsel %vm28088_vm6, %v18284_v13, %v18285_v23 }
 0x257   : > { %18572 = vrot.lane.b32.xlu0 %v18571_v60, %s19840_s16  ;;  %v15914_v14 = vpack.c.bf16 %v5650_v17, %v5642_v18  ;;  %v15916_v35 = vpack.c.bf16 %v5649_v39, %v5641_v48  ;;  %v23561_v11 = vpop.permute.xlu1 %18307 }
 0x258   : > { %v18293_v2 = vpop.permute.xlu0 %18292  ;;  %v18310_v44 = vunpack.i.h.bf16 %v23561_v11  ;;  %v18309_v51 = vunpack.i.l.bf16 %v23561_v11 }
 0x259   : > { %v18295_v59 = vunpack.i.h.bf16 %v18293_v2  ;;  %v18294_v45 = vunpack.i.l.bf16 %v18293_v2  ;;  %15915 = vmatprep.subr.bf16.mxu1 %v15914_v14  ;;  %v6894_v2 = vld [vmem:[%s27922_s4 + $0x8] sm:$0xff] }
 0x25a   : > { %18597 = vrot.lane.b32.xlu1 %v18596_v49, %s19840_s16  ;;  %15917 = vmatpush1.bf16.msra.mxu1 %v15916_v35  ;;  %v5658_v13 = vsel %vm28088_vm6, %v18309_v51, %v18310_v44 }
 0x25b   : > { %18582 = vrot.lane.b32.xlu0 %v18581_v21, %s19840_s16  ;;  %v5656_v36 = vsel %vm28088_vm6, %v18294_v45, %v18295_v59  ;;  %v5657_v38 = vsel %vm28088_vm6, %v18295_v59, %v18309_v51 }
 0x25c   : > { %v23569_v20 = vpop.permute.xlu1 %18317  ;;  %v15902_v58 = vpack.c.bf16 %v5664_v47, %v5656_v36  ;;  %v18303_v8 = vpop.permute.xlu0 %18302  ;;  %v28094_v36 = vmov 0  }
 0x25d   : > { %v18305_v6 = vunpack.i.h.bf16 %v18303_v8  ;;  %v18304_v29 = vunpack.i.l.bf16 %v18303_v8  ;;  %v18320_v40 = vunpack.i.h.bf16 %v23569_v20  ;;  %v18319_v60 = vunpack.i.l.bf16 %v23569_v20  ;;  %18601 = vset.pattern.permute.xlu0 %v28094_v36  ;;  %18602 = vset.pattern.permute.xlu1 %v28094_v36 }
 0x25e   : > { %15903 = vmatprep.subr.bf16.mxu0 %v15902_v58  ;;  %6904 = vperm.xlu1 %18602, %v6894_v2  }
 0x25f   : > { %18592 = vrot.lane.b32.xlu0 %v18591_v54, %s19840_s16  ;;  %v5663_v28 = vsel %vm28088_vm6, %v18305_v6, %v18299_v1  ;;  %v5655_v5 = vsel %vm28088_vm6, %v18304_v29, %v18294_v45  ;;  %v5672_v35 = vsel %vm28088_vm6, %v18319_v60, %v18320_v40 }
 0x260   : > { %v18328_v52 = vpop.permute.xlu1 %18327  ;;  %v15904_v7 = vpack.c.bf16 %v5663_v28, %v5655_v5  ;;  %v6896_v5 = vld [vmem:[%s27922_s4 + $0x18] sm:$0xff] }
 0x261   : > { %v23576_v24 = vpop.permute.xlu0 %18312  ;;  %v18330_v17 = vunpack.i.h.bf16 %v18328_v52  ;;  %v18329_v1 = vunpack.i.l.bf16 %v18328_v52  ;;  %v6895_v52 = vld [vmem:[%s27922_s4 + $0x10] sm:$0xff] }
 0x262   : > { %v18315_v16 = vunpack.i.h.bf16 %v23576_v24  ;;  %v18314_v34 = vunpack.i.l.bf16 %v23576_v24  ;;  %15905 = vmatpush1.bf16.msra.mxu0 %v15904_v7  ;;  %6909 = vperm.xlu1 %18602, %v6895_v52  }
 0x263   : > { %v5671_v59 = vsel %vm28088_vm6, %v18329_v1, %v18319_v60 }
 0x264   : > { %v5665_v39 = vsel %vm28088_vm6, %v18300_v26, %v18314_v34  ;;  %v23587_v48 = vpop.permute.xlu1 %18337  ;;  %v5666_v33 = vsel %vm28088_vm6, %v18314_v34, %v18315_v16  ;;  %v6893_v26 = vld [vmem:[%s27922_s4] sm:$0xff] }
 0x265   : > { %v18323_v49 = vpop.permute.xlu0 %18322  ;;  %v15918_v18 = vpack.c.bf16 %v5666_v33, %v5658_v13  ;;  %v15920_v62 = vpack.c.bf16 %v5665_v39, %v5657_v38  ;;  %v18340_v57 = vunpack.i.h.bf16 %v23587_v48  ;;  %v18339_v45 = vunpack.i.l.bf16 %v23587_v48  ;;  %6899 = vperm.xlu0 %18601, %v6893_v26   ;;  %v23649_v26 = vld [vmem:[%s27919_s1 + $0xe8] sm:$0xff] }
 0x266   : > { %v18325_v21 = vunpack.i.h.bf16 %v18323_v49  ;;  %v18324_v14 = vunpack.i.l.bf16 %v18323_v49 }
 0x267   : > { %15919 = vmatprep.subr.bf16.mxu1 %v15918_v18  ;;  %v5636_v28 = vsel %vm28088_vm6, %v18339_v45, %v18340_v57  ;;  %v5635_v7 = vsel %vm28088_vm6, %v18265_v53, %v18339_v45 }
 0x268   : > { %v5679_v47 = vsel %vm28088_vm6, %v18330_v17, %v18324_v14  ;;  %15921 = vmatpush1.bf16.msra.mxu1 %v15920_v62  ;;  %v23603_v12 = vpop.permute.xlu1 %18347  ;;  %v5680_v54 = vsel %vm28088_vm6, %v18324_v14, %v18325_v21  ;;  %v23629_v17 = vld [vmem:[%s27919_s1 + $0xe0] sm:$0xff] }
 0x269   : > { %v18333_v20 = vpop.permute.xlu0 %18332  ;;  %v15906_v58 = vpack.c.bf16 %v5680_v54, %v5672_v35  ;;  %v15908_v8 = vpack.c.bf16 %v5679_v47, %v5671_v59  ;;  %v18350_v6 = vunpack.i.h.bf16 %v23603_v12  ;;  %v18349_v34 = vunpack.i.l.bf16 %v23603_v12  ;;  %6914 = vperm.xlu0 %18601, %v6896_v5  }
 0x26a   : > { %v18335_v29 = vunpack.i.h.bf16 %v18333_v20  ;;  %v18334_v51 = vunpack.i.l.bf16 %v18333_v20 }
 0x26b   : > { %15907 = vmatprep.subr.bf16.mxu0 %v15906_v58  ;;  %v5681_v49 = vsel %vm28088_vm6, %v18325_v21, %v18349_v34 }
 0x26c   : > { %v5627_v38 = vsel %vm28088_vm6, %v18260_v27, %v18334_v51  ;;  %15909 = vmatpush1.bf16.msra.mxu0 %v15908_v8  ;;  %v18358_v60 = vpop.permute.xlu1 %18357  ;;  %v5628_v13 = vsel %vm28088_vm6, %v18334_v51, %v18335_v29  ;;  %v5682_v27 = vsel %vm28088_vm6, %v18349_v34, %v18350_v6  ;;  %v23663_v34 = vld [vmem:[%s27919_s1 + $0xf0] sm:$0xff] }
 0x26d   : > { %v23631_v1 = vpop.permute.xlu0 %18342  ;;  %v15926_v30 = vpack.c.bf16 %v5636_v28, %v5628_v13  ;;  %v15928_v39 = vpack.c.bf16 %v5635_v7, %v5627_v38  ;;  %v18360_v53 = vunpack.i.h.bf16 %v18358_v60  ;;  %v18359_v18 = vunpack.i.l.bf16 %v18358_v60 }
 0x26e   : > { %v18345_v33 = vunpack.i.h.bf16 %v23631_v1  ;;  %v18344_v32 = vunpack.i.l.bf16 %v23631_v1 }
 0x26f   : > { %15927 = vmatprep.subr.bf16.mxu0 %v15926_v30  ;;  %14642 = vmatmul.mubr.msk.f32.vlgmr.msra.gmra.mrb[0].mxu0 %vm28553_vm2, %v23629_v17  ;;  %v5637_v20 = vsel %vm28088_vm6, %v18340_v57, %v18359_v18 }
 0x270   : > { %v5673_v62 = vsel %vm28088_vm6, %v18320_v40, %v18344_v32  ;;  %15929 = vmatpush1.bf16.msra.mxu0 %v15928_v39  ;;  %v18368_v14 = vpop.permute.xlu1 %18367  ;;  %v5674_v35 = vsel %vm28088_vm6, %v18344_v32, %v18345_v33  ;;  %5833 = vmatprep.mubr.f32.mxu0 %v28233_v46  ;;  %v5638_v40 = vsel %vm28088_vm6, %v18359_v18, %v18360_v53 }
 0x271   : > { %v18353_v2 = vpop.permute.xlu0 %18352  ;;  %v15922_v59 = vpack.c.bf16 %v5682_v27, %v5674_v35  ;;  %v15924_v45 = vpack.c.bf16 %v5681_v49, %v5673_v62  ;;  %v18370_v21 = vunpack.i.h.bf16 %v18368_v14  ;;  %v18369_v58 = vunpack.i.l.bf16 %v18368_v14 }
 0x272   : > { %v18355_v47 = vunpack.i.h.bf16 %v18353_v2  ;;  %v18354_v54 = vunpack.i.l.bf16 %v18353_v2 }
 0x273   : > { %15923 = vmatprep.subr.bf16.mxu1 %v15922_v59  ;;  %14643 = vmatmul.mubr.msk.f32.gmra.mrb[2].mxu0 %vm28557_vm10, %v23649_v26  ;;  %v5652_v60 = vsel %vm28088_vm6, %v18369_v58, %v18370_v21  ;;  %vm28558_vm10 = vmmov %vm28553_vm2 }
 0x274   : > { %v5629_v8 = vsel %vm28088_vm6, %v18335_v29, %v18354_v54  ;;  %15925 = vmatpush1.bf16.msra.mxu1 %v15924_v45  ;;  %v18378_v51 = vpop.permute.xlu1 %18377  ;;  %v5630_v28 = vsel %vm28088_vm6, %v18354_v54, %v18355_v47  ;;  %5839 = vmatprep.mubr.f32.mxu0 %v28233_v46  ;;  %v5651_v29 = vsel %vm28088_vm6, %v18290_v56, %v18369_v58 }
 0x275   : > { %v18363_v5 = vpop.permute.xlu0 %18362  ;;  %v15942_v52 = vpack.c.bf16 %v5638_v40, %v5630_v28  ;;  %v15944_v7 = vpack.c.bf16 %v5637_v20, %v5629_v8  ;;  %v18380_v48 = vunpack.i.h.bf16 %v18378_v51  ;;  %v18379_v13 = vunpack.i.l.bf16 %v18378_v51 }
 0x276   : > { %v18365_v38 = vunpack.i.h.bf16 %v18363_v5  ;;  %v18364_v57 = vunpack.i.l.bf16 %v18363_v5 }
 0x277   : > { %15943 = vmatprep.subr.bf16.mxu1 %v15942_v52  ;;  %14646 = vmatmul.mubr.msk.f32.vlgmr.msra.gmra.mrb[0].mxu1 %vm28553_vm2, %v23629_v17  ;;  %v5654_v3 = vsel %vm28088_vm6, %v18379_v13, %v18380_v48  ;;  %v5653_v62 = vsel %vm28088_vm6, %v18370_v21, %v18379_v13 }
 0x278   : > { %v5643_v30 = vsel %vm28088_vm6, %v18285_v23, %v18364_v57  ;;  %15945 = vmatpush1.bf16.msra.mxu1 %v15944_v7  ;;  %v18388_v39 = vpop.permute.xlu1 %18387  ;;  %v5644_v53 = vsel %vm28088_vm6, %v18364_v57, %v18365_v38  ;;  %14644 = vmatmul.mubr.msk.f32.gmra.mrb[4].mxu0 %vm28558_vm10, %v23663_v34  ;;  %v23683_v23 = vld [vmem:[%s27919_s1 + $0xf8] sm:$0xff]  ;;  %vm28559_vm10 = vmmov %vm28553_vm2 }
 0x279   : > { %v18373_v32 = vpop.permute.xlu0 %18372  ;;  %v15930_v27 = vpack.c.bf16 %v5652_v60, %v5644_v53  ;;  %v15932_v49 = vpack.c.bf16 %v5651_v29, %v5643_v30  ;;  %5922 = vmatprep.mubr.f32.mxu1 %v28233_v46  ;;  %5845 = vmatprep.mubr.f32.mxu0 %v28233_v46  ;;  %v18390_v61 = vunpack.i.h.bf16 %v18388_v39  ;;  %v18389_v14 = vunpack.i.l.bf16 %v18388_v39 }
 0x27a   : > { %v18375_v56 = vunpack.i.h.bf16 %v18373_v32  ;;  %v18374_v18 = vunpack.i.l.bf16 %v18373_v32 }
 0x27b   : > { %15931 = vmatprep.subr.bf16.mxu0 %v15930_v27  ;;  %14647 = vmatmul.mubr.msk.f32.gmra.mrb[2].mxu1 %vm28553_vm2, %v23649_v26  ;;  %v5668_v21 = vsel %vm28088_vm6, %v18389_v14, %v18390_v61  ;;  %v5667_v8 = vsel %vm28088_vm6, %v18315_v16, %v18389_v14 }
 0x27c   : > { %v5645_v35 = vsel %vm28088_vm6, %v18365_v38, %v18374_v18  ;;  %15933 = vmatpush1.bf16.msra.mxu0 %v15932_v49  ;;  %v18398_v2 = vpop.permute.xlu1 %18397  ;;  %v5646_v59 = vsel %vm28088_vm6, %v18374_v18, %v18375_v56  ;;  %5928 = vmatprep.mubr.f32.mxu1 %v28233_v46 }
 0x27d   : > { %v18383_v45 = vpop.permute.xlu0 %18382  ;;  %v15946_v47 = vpack.c.bf16 %v5654_v3, %v5646_v59  ;;  %v15948_v54 = vpack.c.bf16 %v5653_v62, %v5645_v35  ;;  %14645 = vmatmul.mubr.msk.f32.gmra.mrb[6].mxu0 %vm28559_vm10, %v23683_v23  ;;  %v18400_v40 = vunpack.i.h.bf16 %v18398_v2  ;;  %v18399_v51 = vunpack.i.l.bf16 %v18398_v2  ;;  %vm28560_vm10 = vmmov %vm28553_vm2 }
 0x27e   : > { %v18385_v20 = vunpack.i.h.bf16 %v18383_v45  ;;  %v18384_v58 = vunpack.i.l.bf16 %v18383_v45  ;;  %6005 = vmatprep.mubr.f32.mxu0 %v28233_v46 }
 0x27f   : > { %15947 = vmatprep.subr.bf16.mxu1 %v15946_v47  ;;  %14648 = vmatmul.mubr.msk.f32.gmra.mrb[4].mxu1 %vm28553_vm2, %v23663_v34  ;;  %v5670_v24 = vsel %vm28088_vm6, %v18399_v51, %v18400_v40  ;;  %v5669_v11 = vsel %vm28088_vm6, %v18390_v61, %v18399_v51  ;;  %vm28089_vm2 = vcmask 777216  }
 0x280   : > { %v5659_v28 = vsel %vm28088_vm6, %v18310_v44, %v18384_v58  ;;  %15949 = vmatpush1.bf16.msra.mxu1 %v15948_v54  ;;  %v18408_v5 = vpop.permute.xlu1 %18407  ;;  %v5660_v52 = vsel %vm28088_vm6, %v18384_v58, %v18385_v20  ;;  %5934 = vmatprep.mubr.f32.mxu1 %v28233_v46 }
 0x281   : > { %v18393_v7 = vpop.permute.xlu0 %18392  ;;  %v15934_v48 = vpack.c.bf16 %v5668_v21, %v5660_v52  ;;  %v15936_v38 = vpack.c.bf16 %v5667_v8, %v5659_v28  ;;  %v18410_v57 = vunpack.i.h.bf16 %v18408_v5  ;;  %v18409_v44 = vunpack.i.l.bf16 %v18408_v5 }
 0x282   : > { %v18395_v60 = vunpack.i.h.bf16 %v18393_v7  ;;  %v18394_v29 = vunpack.i.l.bf16 %v18393_v7 }
 0x283   : > { %15935 = vmatprep.subr.bf16.mxu0 %v15934_v48  ;;  %14649 = vmatmul.mubr.msk.f32.gmra.mrb[6].mxu1 %vm28560_vm10, %v23683_v23  ;;  %v5684_v18 = vsel %vm28088_vm6, %v18409_v44, %v18410_v57  ;;  %v5683_v61 = vsel %vm28088_vm6, %v18350_v6, %v18409_v44 }
 0x284   : > { %v5661_v16 = vsel %vm28088_vm6, %v18385_v20, %v18394_v29  ;;  %15937 = vmatpush1.bf16.msra.mxu0 %v15936_v38  ;;  %v18418_v13 = vpop.permute.xlu1 %18417  ;;  %v5662_v30 = vsel %vm28088_vm6, %v18394_v29, %v18395_v60  ;;  %6094 = vmatprep.mubr.f32.mxu1 %v28233_v46 }
 0x285   : > { %v18420_v39 = vunpack.i.h.bf16 %v18418_v13  ;;  %v18403_v53 = vpop.permute.xlu0 %18402  ;;  %v15950_v32 = vpack.c.bf16 %v5670_v24, %v5662_v30  ;;  %v15952_v27 = vpack.c.bf16 %v5669_v11, %v5661_v16  ;;  %v18419_v3 = vunpack.i.l.bf16 %v18418_v13 }
 0x286   : > { %v18405_v49 = vunpack.i.h.bf16 %v18403_v53  ;;  %v18404_v56 = vunpack.i.l.bf16 %v18403_v53 }
 0x287   : > { %15951 = vmatprep.subr.bf16.mxu1 %v15950_v32  ;;  %v5686_v47 = vsel %vm28088_vm6, %v18419_v3, %v18420_v39  ;;  %v5685_v12 = vsel %vm28088_vm6, %v18410_v57, %v18419_v3 }
 0x288   : > { %v5675_v62 = vsel %vm28088_vm6, %v18345_v33, %v18404_v56  ;;  %15953 = vmatpush1.bf16.msra.mxu1 %v15952_v27  ;;  %v18428_v14 = vpop.permute.xlu1 %18427  ;;  %v5676_v35 = vsel %vm28088_vm6, %v18404_v56, %v18405_v49 }
 0x289   : > { %v18413_v2 = vpop.permute.xlu0 %18412  ;;  %v15938_v59 = vpack.c.bf16 %v5684_v18, %v5676_v35  ;;  %v15940_v45 = vpack.c.bf16 %v5683_v61, %v5675_v62  ;;  %v18430_v54 = vunpack.i.h.bf16 %v18428_v14  ;;  %v18429_v40 = vunpack.i.l.bf16 %v18428_v14 }
 0x28a   : > { %v18415_v20 = vunpack.i.h.bf16 %v18413_v2  ;;  %v18414_v58 = vunpack.i.l.bf16 %v18413_v2 }
 0x28b   : > { %15939 = vmatprep.subr.bf16.mxu0 %v15938_v59  ;;  %v6310_v28 = vsel %vm28089_vm2, %v18429_v40, %v18430_v54 }
 0x28c   : > { %v5677_v6 = vsel %vm28088_vm6, %v18405_v49, %v18414_v58  ;;  %15941 = vmatpush1.bf16.msra.mxu0 %v15940_v45  ;;  %v23723_v1 = vpop.permute.xlu1 %18437  ;;  %v5678_v33 = vsel %vm28088_vm6, %v18414_v58, %v18415_v20  ;;  %vm28561_vm6 = vmmov %vm28560_vm10 }
 0x28d   : > { %v18423_v21 = vpop.permute.xlu0 %18422  ;;  %v15954_v8 = vpack.c.bf16 %v5686_v47, %v5678_v33  ;;  %v15956_v51 = vpack.c.bf16 %v5685_v12, %v5677_v6  ;;  %v18440_v24 = vunpack.i.h.bf16 %v23723_v1  ;;  %v18439_v11 = vunpack.i.l.bf16 %v23723_v1 }
 0x28e   : > { %v18425_v5 = vunpack.i.h.bf16 %v18423_v21  ;;  %v18424_v52 = vunpack.i.l.bf16 %v18423_v21 }
 0x28f   : > { %15955 = vmatprep.subr.bf16.mxu1 %v15954_v8  ;;  %14650 = vmatmul.mubr.msk.f32.vlgmr.msra.gmra.mrb[8].mxu0 %vm28560_vm10, %v23629_v17 }
 0x290   : > { %v6302_v7 = vsel %vm28089_vm2, %v18424_v52, %v18425_v5  ;;  %15957 = vmatpush1.bf16.msra.mxu1 %v15956_v51  ;;  %v23730_v48 = vpop.permute.xlu1 %18447  ;;  %6011 = vmatprep.mubr.f32.mxu0 %v28233_v46  ;;  %v6303_v27 = vsel %vm28089_vm2, %v18425_v5, %v18439_v11 }
 0x291   : > { %v18433_v38 = vpop.permute.xlu0 %18432  ;;  %v15958_v57 = vpack.c.bf16 %v6310_v28, %v6302_v7  ;;  %v18450_v49 = vunpack.i.h.bf16 %v23730_v48  ;;  %v18449_v56 = vunpack.i.l.bf16 %v23730_v48 }
 0x292   : > { %v18435_v60 = vunpack.i.h.bf16 %v18433_v38  ;;  %v18434_v29 = vunpack.i.l.bf16 %v18433_v38 }
 0x293   : > { %15960 = vmatprep.subr.msk.bf16.mxu0 %vm28485_vm12, %v15958_v57  ;;  %14654 = vmatmul.mubr.msk.f32.vlgmr.msra.gmra.mrb[8].mxu1 %vm28560_vm10, %v23629_v17  ;;  %v6304_v17 = vsel %vm28089_vm2, %v18439_v11, %v18440_v24  ;;  %vm28562_vm10 = vmmov %vm28561_vm6 }
 0x294   : > { %v6309_v44 = vsel %vm28089_vm2, %v18435_v60, %v18429_v40  ;;  %v6301_v16 = vsel %vm28089_vm2, %v18434_v29, %v18424_v52  ;;  %v18458_v13 = vpop.permute.xlu1 %18457  ;;  %14651 = vmatmul.mubr.msk.f32.gmra.mrb[10].mxu0 %vm28561_vm6, %v23649_v26  ;;  %6100 = vmatprep.mubr.f32.mxu1 %v28233_v46 }
 0x295   : > { %v15961_v30 = vpack.c.bf16 %v6309_v44, %v6301_v16  ;;  %v23744_v39 = vpop.permute.xlu0 %18442  ;;  %6017 = vmatprep.mubr.f32.mxu0 %v28233_v46  ;;  %v18460_v18 = vunpack.i.h.bf16 %v18458_v13  ;;  %v18459_v3 = vunpack.i.l.bf16 %v18458_v13 }
 0x296   : > { %v18445_v53 = vunpack.i.h.bf16 %v23744_v39  ;;  %v18444_v32 = vunpack.i.l.bf16 %v23744_v39 }
 0x297   : > { %15963 = vmatpush1.bf16.msk.msra.mxu0 %vm28492_vm0, %v15961_v30  ;;  %14655 = vmatmul.mubr.msk.f32.gmra.mrb[10].mxu1 %vm28561_vm6, %v23649_v26  ;;  %v6317_v20 = vsel %vm28089_vm2, %v18459_v3, %v18449_v56 }
 0x298   : > { %v6311_v61 = vsel %vm28089_vm2, %v18430_v54, %v18444_v32  ;;  %v6312_v62 = vsel %vm28089_vm2, %v18444_v32, %v18445_v53  ;;  %v23763_v14 = vpop.permute.xlu1 %18467  ;;  %14652 = vmatmul.mubr.msk.f32.gmra.mrb[12].mxu0 %vm28562_vm10, %v23663_v34  ;;  %6106 = vmatprep.mubr.f32.mxu1 %v28233_v46  ;;  %v6318_v54 = vsel %vm28089_vm2, %v18449_v56, %v18450_v49  ;;  %vm28563_vm10 = vmmov %vm28561_vm6 }
 0x299   : > { %v15985_v35 = vpack.c.bf16 %v6311_v61, %v6303_v27  ;;  %v18470_v2 = vunpack.i.h.bf16 %v23763_v14  ;;  %v18453_v59 = vpop.permute.xlu0 %18452  ;;  %v15982_v26 = vpack.c.bf16 %v6312_v62, %v6304_v17  ;;  %6023 = vmatprep.mubr.f32.mxu0 %v28233_v46  ;;  %v18469_v40 = vunpack.i.l.bf16 %v23763_v14 }
 0x29a   : > { %v18455_v45 = vunpack.i.h.bf16 %v18453_v59  ;;  %v18454_v47 = vunpack.i.l.bf16 %v18453_v59 }
 0x29b   : > { %15984 = vmatprep.subr.msk.bf16.mxu1 %vm28494_vm3, %v15982_v26  ;;  %14656 = vmatmul.mubr.msk.f32.gmra.mrb[12].mxu1 %vm28561_vm6, %v23663_v34  ;;  %v6328_v33 = vsel %vm28089_vm2, %v18469_v40, %v18470_v2 }
 0x29c   : > { %v6325_v58 = vsel %vm28089_vm2, %v18460_v18, %v18454_v47  ;;  %v6326_v12 = vsel %vm28089_vm2, %v18454_v47, %v18455_v45  ;;  %15987 = vmatpush1.bf16.msk.msra.mxu1 %vm21234_vm11, %v15985_v35  ;;  %v18478_v6 = vpop.permute.xlu1 %18477  ;;  %14653 = vmatmul.mubr.msk.f32.gmra.mrb[14].mxu0 %vm28563_vm10, %v23683_v23  ;;  %v6327_v7 = vsel %vm28089_vm2, %v18455_v45, %v18469_v40  ;;  %vm28564_vm10 = vmmov %vm28561_vm6 }
 0x29d   : > { %v15967_v21 = vpack.c.bf16 %v6325_v58, %v6317_v20  ;;  %v23786_v8 = vpop.permute.xlu0 %18462  ;;  %v15964_v34 = vpack.c.bf16 %v6326_v12, %v6318_v54  ;;  %6569 = vmatprep.mubr.f32.mxu0 %v28233_v46  ;;  %6112 = vmatprep.mubr.f32.mxu1 %v28233_v46  ;;  %v18480_v51 = vunpack.i.h.bf16 %v18478_v6  ;;  %v18479_v28 = vunpack.i.l.bf16 %v18478_v6 }
 0x29e   : > { %v18465_v5 = vunpack.i.h.bf16 %v23786_v8  ;;  %v18464_v52 = vunpack.i.l.bf16 %v23786_v8 }
 0x29f   : > { %15966 = vmatprep.subr.msk.bf16.mxu0 %vm28485_vm12, %v15964_v34  ;;  %14657 = vmatmul.mubr.msk.f32.gmra.mrb[14].mxu1 %vm28561_vm6, %v23683_v23  ;;  %v6342_v23 = vsel %vm28089_vm2, %v18479_v28, %v18480_v51 }
 0x2a0   : > { %v6319_v48 = vsel %vm28089_vm2, %v18450_v49, %v18464_v52  ;;  %v6320_v38 = vsel %vm28089_vm2, %v18464_v52, %v18465_v5  ;;  %15969 = vmatpush1.bf16.msk.msra.mxu0 %vm28492_vm0, %v15967_v21  ;;  %v23803_v57 = vpop.permute.xlu1 %18487  ;;  %6658 = vmatprep.mubr.f32.mxu1 %v28233_v46 }
 0x2a1   : > { %v15991_v60 = vpack.c.bf16 %v6327_v7, %v6319_v48  ;;  %v18473_v29 = vpop.permute.xlu0 %18472  ;;  %v15988_v11 = vpack.c.bf16 %v6328_v33, %v6320_v38  ;;  %v18490_v56 = vunpack.i.h.bf16 %v23803_v57  ;;  %v18489_v18 = vunpack.i.l.bf16 %v23803_v57 }
 0x2a2   : > { %v18475_v44 = vunpack.i.h.bf16 %v18473_v29  ;;  %v18474_v16 = vunpack.i.l.bf16 %v18473_v29 }
 0x2a3   : > { %15990 = vmatprep.subr.msk.bf16.mxu1 %vm28494_vm3, %v15988_v11  ;;  %v6336_v47 = vsel %vm28089_vm2, %v18489_v18, %v18490_v56 }
 0x2a4   : > { %v6334_v13 = vsel %vm28089_vm2, %v18474_v16, %v18475_v44  ;;  %15993 = vmatpush1.bf16.msk.msra.mxu1 %vm21234_vm11, %v15991_v60  ;;  %v23812_v30 = vpop.permute.xlu1 %18497  ;;  %v6335_v54 = vsel %vm28089_vm2, %v18475_v44, %v18489_v18 }
 0x2a5   : > { %v18483_v32 = vpop.permute.xlu0 %18482  ;;  %v15970_v17 = vpack.c.bf16 %v6342_v23, %v6334_v13  ;;  %v18500_v40 = vunpack.i.h.bf16 %v23812_v30  ;;  %v18499_v20 = vunpack.i.l.bf16 %v23812_v30 }
 0x2a6   : > { %v18485_v27 = vunpack.i.h.bf16 %v18483_v32  ;;  %v18484_v49 = vunpack.i.l.bf16 %v18483_v32 }
 0x2a7   : > { %15972 = vmatprep.subr.msk.bf16.mxu0 %vm28485_vm12, %v15970_v17  ;;  %v6350_v60 = vsel %vm28089_vm2, %v18499_v20, %v18500_v40 }
 0x2a8   : > { %v6341_v3 = vsel %vm28089_vm2, %v18485_v27, %v18479_v28  ;;  %v6333_v61 = vsel %vm28089_vm2, %v18484_v49, %v18474_v16  ;;  %v18508_v62 = vpop.permute.xlu1 %18507 }
 0x2a9   : > { %v15973_v35 = vpack.c.bf16 %v6341_v3, %v6333_v61  ;;  %v23820_v59 = vpop.permute.xlu0 %18492  ;;  %v18510_v58 = vunpack.i.h.bf16 %v18508_v62  ;;  %v18509_v12 = vunpack.i.l.bf16 %v18508_v62 }
 0x2aa   : > { %v18495_v26 = vunpack.i.h.bf16 %v23820_v59  ;;  %v18494_v45 = vunpack.i.l.bf16 %v23820_v59 }
 0x2ab   : > { %15975 = vmatpush1.bf16.msk.msra.mxu0 %vm28492_vm0, %v15973_v35  ;;  %v6349_v29 = vsel %vm28089_vm2, %v18509_v12, %v18499_v20 }
 0x2ac   : > { %v6343_v6 = vsel %vm28089_vm2, %v18480_v51, %v18494_v45  ;;  %v6344_v33 = vsel %vm28089_vm2, %v18494_v45, %v18495_v26  ;;  %v18518_v21 = vpop.permute.xlu1 %18517  ;;  %v23863_v45 = vld [vmem:[%s27919_s1 + $0x100] sm:$0xff] }
 0x2ad   : > { %v15997_v34 = vpack.c.bf16 %v6343_v6, %v6335_v54  ;;  %v18503_v28 = vpop.permute.xlu0 %18502  ;;  %v15994_v52 = vpack.c.bf16 %v6344_v33, %v6336_v47  ;;  %v18520_v7 = vunpack.i.h.bf16 %v18518_v21  ;;  %v18519_v11 = vunpack.i.l.bf16 %v18518_v21 }
 0x2ae   : > { %v18505_v48 = vunpack.i.h.bf16 %v18503_v28  ;;  %v18504_v38 = vunpack.i.l.bf16 %v18503_v28 }
 0x2af   : > { %15996 = vmatprep.subr.msk.bf16.mxu1 %vm28494_vm3, %v15994_v52  ;;  %v6314_v32 = vsel %vm28089_vm2, %v18519_v11, %v18520_v7  ;;  %v6313_v18 = vsel %vm28089_vm2, %v18445_v53, %v18519_v11 }
 0x2b0   : > { %v6357_v51 = vsel %vm28089_vm2, %v18510_v58, %v18504_v38  ;;  %v6358_v23 = vsel %vm28089_vm2, %v18504_v38, %v18505_v48  ;;  %15999 = vmatpush1.bf16.msk.msra.mxu1 %vm21234_vm11, %v15997_v34  ;;  %v23844_v44 = vpop.permute.xlu1 %18527  ;;  %v23887_v34 = vld [vmem:[%s27919_s1 + $0x108] sm:$0xff] }
 0x2b1   : > { %v15979_v16 = vpack.c.bf16 %v6357_v51, %v6349_v29  ;;  %v18513_v13 = vpop.permute.xlu0 %18512  ;;  %v15976_v30 = vpack.c.bf16 %v6358_v23, %v6350_v60  ;;  %v18530_v17 = vunpack.i.h.bf16 %v23844_v44  ;;  %v18529_v3 = vunpack.i.l.bf16 %v23844_v44 }
 0x2b2   : > { %v18515_v27 = vunpack.i.h.bf16 %v18513_v13  ;;  %v18514_v49 = vunpack.i.l.bf16 %v18513_v13 }
 0x2b3   : > { %15978 = vmatprep.subr.msk.bf16.mxu0 %vm28485_vm12, %v15976_v30  ;;  %v6360_v1 = vsel %vm28089_vm2, %v18529_v3, %v18530_v17  ;;  %v6359_v58 = vsel %vm28089_vm2, %v18505_v48, %v18529_v3  ;;  %v23903_v30 = vld [vmem:[%s27919_s1 + $0x110] sm:$0xff] }
 0x2b4   : > { %v6305_v61 = vsel %vm28089_vm2, %v18440_v24, %v18514_v49  ;;  %v6306_v62 = vsel %vm28089_vm2, %v18514_v49, %v18515_v27  ;;  %15981 = vmatpush1.bf16.msk.msra.mxu0 %vm28492_vm0, %v15979_v16  ;;  %v18538_v35 = vpop.permute.xlu1 %18537 }
 0x2b5   : > { %v16009_v39 = vpack.c.bf16 %v6313_v18, %v6305_v61  ;;  %v23865_v47 = vpop.permute.xlu0 %18522  ;;  %v16006_v53 = vpack.c.bf16 %v6314_v32, %v6306_v62  ;;  %v18540_v24 = vunpack.i.h.bf16 %v18538_v35  ;;  %v18539_v12 = vunpack.i.l.bf16 %v18538_v35 }
 0x2b6   : > { %v18525_v54 = vunpack.i.h.bf16 %v23865_v47  ;;  %v18524_v20 = vunpack.i.l.bf16 %v23865_v47 }
 0x2b7   : > { %14678 = vmatmul.mubr.msk.f32.vlgmr.msra.gmra.mrb[0].mxu0 %vm28564_vm10, %v23863_v45  ;;  %16008 = vmatprep.subr.msk.bf16.mxu0 %vm21417_vm1, %v16006_v53  ;;  %v6315_v11 = vsel %vm28089_vm2, %v18520_v7, %v18539_v12  ;;  %vm28565_vm10 = vmmov %vm28561_vm6 }
 0x2b8   : > { %v6351_v6 = vsel %vm28089_vm2, %v18500_v40, %v18524_v20  ;;  %v6352_v33 = vsel %vm28089_vm2, %v18524_v20, %v18525_v54  ;;  %16011 = vmatpush1.bf16.msk.msra.mxu0 %vm21443_vm15, %v16009_v39  ;;  %v18548_v21 = vpop.permute.xlu1 %18547  ;;  %6575 = vmatprep.mubr.f32.mxu0 %v28233_v46  ;;  %v6316_v40 = vsel %vm28089_vm2, %v18539_v12, %v18540_v24  ;;  %v23923_v24 = vld [vmem:[%s27919_s1 + $0x118] sm:$0xff] }
 0x2b9   : > { %v16003_v28 = vpack.c.bf16 %v6359_v58, %v6351_v6  ;;  %v18533_v52 = vpop.permute.xlu0 %18532  ;;  %v16000_v48 = vpack.c.bf16 %v6360_v1, %v6352_v33  ;;  %v18550_v38 = vunpack.i.h.bf16 %v18548_v21  ;;  %v18549_v51 = vunpack.i.l.bf16 %v18548_v21 }
 0x2ba   : > { %v18535_v60 = vunpack.i.h.bf16 %v18533_v52  ;;  %v18534_v29 = vunpack.i.l.bf16 %v18533_v52 }
 0x2bb   : > { %14679 = vmatmul.mubr.msk.f32.gmra.mrb[2].mxu0 %vm28561_vm6, %v23887_v34  ;;  %16002 = vmatprep.subr.msk.bf16.mxu1 %vm28494_vm3, %v16000_v48  ;;  %v6330_v7 = vsel %vm28089_vm2, %v18549_v51, %v18550_v38  ;;  %v6329_v62 = vsel %vm28089_vm2, %v18470_v2, %v18549_v51 }
 0x2bc   : > { %v6307_v23 = vsel %vm28089_vm2, %v18515_v27, %v18534_v29  ;;  %v6308_v16 = vsel %vm28089_vm2, %v18534_v29, %v18535_v60  ;;  %16005 = vmatpush1.bf16.msk.msra.mxu1 %vm21234_vm11, %v16003_v28  ;;  %v18558_v13 = vpop.permute.xlu1 %18557  ;;  %6581 = vmatprep.mubr.f32.mxu0 %v28233_v46 }
 0x2bd   : > { %v16033_v32 = vpack.c.bf16 %v6315_v11, %v6307_v23  ;;  %v18543_v49 = vpop.permute.xlu0 %18542  ;;  %v16030_v18 = vpack.c.bf16 %v6316_v40, %v6308_v16  ;;  %v18560_v3 = vunpack.i.h.bf16 %v18558_v13  ;;  %v18559_v35 = vunpack.i.l.bf16 %v18558_v13 }
 0x2be   : > { %v18545_v27 = vunpack.i.h.bf16 %v18543_v49  ;;  %v18544_v61 = vunpack.i.l.bf16 %v18543_v49 }
 0x2bf   : > { %14680 = vmatmul.mubr.msk.f32.gmra.mrb[4].mxu0 %vm28565_vm10, %v23903_v30  ;;  %14698 = vmatmul.mubr.msk.f32.vlgmr.msra.gmra.mrb[0].mxu1 %vm28561_vm6, %v23863_v45  ;;  %vm28566_vm10 = vmmov %vm28561_vm6  ;;  %v6331_v6 = vsel %vm28089_vm2, %v18550_v38, %v18559_v35 }
 0x2c0   : > { %v6321_v39 = vsel %vm28089_vm2, %v18465_v5, %v18544_v61  ;;  %v6322_v53 = vsel %vm28089_vm2, %v18544_v61, %v18545_v27  ;;  %16032 = vmatprep.subr.msk.bf16.mxu1 %vm21502_vm8, %v16030_v18  ;;  %v18568_v1 = vpop.permute.xlu1 %18567  ;;  %6587 = vmatprep.mubr.f32.mxu0 %v28233_v46  ;;  %v6332_v5 = vsel %vm28089_vm2, %v18559_v35, %v18560_v3 }
 0x2c1   : > { %v16015_v14 = vpack.c.bf16 %v6329_v62, %v6321_v39  ;;  %16035 = vmatpush1.bf16.msk.msra.mxu1 %vm21527_vm5, %v16033_v32  ;;  %v18553_v2 = vpop.permute.xlu0 %18552  ;;  %6664 = vmatprep.mubr.f32.mxu1 %v28233_v46  ;;  %v16012_v8 = vpack.c.bf16 %v6330_v7, %v6322_v53  ;;  %v18570_v20 = vunpack.i.h.bf16 %v18568_v1  ;;  %v18569_v33 = vunpack.i.l.bf16 %v18568_v1 }
 0x2c2   : > { %v18555_v58 = vunpack.i.h.bf16 %v18553_v2  ;;  %v18554_v12 = vunpack.i.l.bf16 %v18553_v2 }
 0x2c3   : > { %14681 = vmatmul.mubr.msk.f32.gmra.mrb[6].mxu0 %vm28566_vm10, %v23923_v24  ;;  %14699 = vmatmul.mubr.msk.f32.gmra.mrb[2].mxu1 %vm28561_vm6, %v23887_v34  ;;  %v6346_v38 = vsel %vm28089_vm2, %v18569_v33, %v18570_v20  ;;  %vm28567_vm10 = vmmov %vm28561_vm6  ;;  %v6345_v23 = vsel %vm28089_vm2, %v18495_v26, %v18569_v33 }
 0x2c4   : > { %v6323_v21 = vsel %vm28089_vm2, %v18545_v27, %v18554_v12  ;;  %v6324_v28 = vsel %vm28089_vm2, %v18554_v12, %v18555_v58  ;;  %16014 = vmatprep.subr.msk.bf16.mxu0 %vm21417_vm1, %v16012_v8  ;;  %v18578_v52 = vpop.permute.xlu1 %18577  ;;  %6670 = vmatprep.mubr.f32.mxu1 %v28233_v46 }
 0x2c5   : > { %v16039_v48 = vpack.c.bf16 %v6331_v6, %v6323_v21  ;;  %16017 = vmatpush1.bf16.msk.msra.mxu0 %vm21443_vm15, %v16015_v14  ;;  %v18563_v40 = vpop.permute.xlu0 %18562  ;;  %v16036_v60 = vpack.c.bf16 %v6332_v5, %v6324_v28  ;;  %6747 = vmatprep.mubr.f32.mxu0 %v28233_v46  ;;  %v18580_v29 = vunpack.i.h.bf16 %v18578_v52  ;;  %v18579_v16 = vunpack.i.l.bf16 %v18578_v52 }
 0x2c6   : > { %v18565_v11 = vunpack.i.h.bf16 %v18563_v40  ;;  %v18564_v51 = vunpack.i.l.bf16 %v18563_v40 }
 0x2c7   : > { %14700 = vmatmul.mubr.msk.f32.gmra.mrb[4].mxu1 %vm28567_vm10, %v23903_v30  ;;  %16038 = vmatprep.subr.msk.bf16.mxu1 %vm21502_vm8, %v16036_v60  ;;  %v6348_v59 = vsel %vm28089_vm2, %v18579_v16, %v18580_v29  ;;  %v6347_v57 = vsel %vm28089_vm2, %v18570_v20, %v18579_v16  ;;  %vm28568_vm10 = vmmov %vm28561_vm6 }
 0x2c8   : > { %v6337_v13 = vsel %vm28089_vm2, %v18490_v56, %v18564_v51  ;;  %v6338_v32 = vsel %vm28089_vm2, %v18564_v51, %v18565_v11  ;;  %16041 = vmatpush1.bf16.msk.msra.mxu1 %vm21527_vm5, %v16039_v48  ;;  %v18588_v49 = vpop.permute.xlu1 %18587  ;;  %6676 = vmatprep.mubr.f32.mxu1 %v28233_v46 }
 0x2c9   : > { %v16021_v18 = vpack.c.bf16 %v6345_v23, %v6337_v13  ;;  %v18573_v7 = vpop.permute.xlu0 %18572  ;;  %v16018_v3 = vpack.c.bf16 %v6346_v38, %v6338_v32  ;;  %v18590_v27 = vunpack.i.h.bf16 %v18588_v49  ;;  %v18589_v56 = vunpack.i.l.bf16 %v18588_v49 }
 0x2ca   : > { %v18575_v26 = vunpack.i.h.bf16 %v18573_v7  ;;  %v18574_v61 = vunpack.i.l.bf16 %v18573_v7 }
 0x2cb   : > { %14701 = vmatmul.mubr.msk.f32.gmra.mrb[6].mxu1 %vm28561_vm6, %v23923_v24  ;;  %16020 = vmatprep.subr.msk.bf16.mxu0 %vm21417_vm1, %v16018_v3  ;;  %v6362_v2 = vsel %vm28089_vm2, %v18589_v56, %v18590_v27  ;;  %v6361_v20 = vsel %vm28089_vm2, %v18530_v17, %v18589_v56 }
 0x2cc   : > { %v6339_v62 = vsel %vm28089_vm2, %v18565_v11, %v18574_v61  ;;  %v6340_v35 = vsel %vm28089_vm2, %v18574_v61, %v18575_v26  ;;  %16023 = vmatpush1.bf16.msk.msra.mxu0 %vm21443_vm15, %v16021_v18  ;;  %6836 = vmatprep.mubr.f32.mxu1 %v28233_v46  ;;  %v18598_v53 = vpop.permute.xlu1 %18597 }
 0x2cd   : > { %v16045_v39 = vpack.c.bf16 %v6347_v57, %v6339_v62  ;;  %v18583_v1 = vpop.permute.xlu0 %18582  ;;  %v16042_v14 = vpack.c.bf16 %v6348_v59, %v6340_v35  ;;  %v18600_v8 = vunpack.i.h.bf16 %v18598_v53  ;;  %v18599_v12 = vunpack.i.l.bf16 %v18598_v53 }
 0x2ce   : > { %v18585_v5 = vunpack.i.h.bf16 %v18583_v1  ;;  %v18584_v58 = vunpack.i.l.bf16 %v18583_v1 }
 0x2cf   : > { %16044 = vmatprep.subr.msk.bf16.mxu1 %vm21502_vm8, %v16042_v14  ;;  %v6364_v48 = vsel %vm28089_vm2, %v18599_v12, %v18600_v8  ;;  %v6363_v44 = vsel %vm28089_vm2, %v18590_v27, %v18599_v12 }
 0x2d0   : > { %v6353_v6 = vsel %vm28089_vm2, %v18525_v54, %v18584_v58  ;;  %v6354_v33 = vsel %vm28089_vm2, %v18584_v58, %v18585_v5  ;;  %16047 = vmatpush1.bf16.msk.msra.mxu1 %vm21527_vm5, %v16045_v39 }
 0x2d1   : > { %v16027_v21 = vpack.c.bf16 %v6361_v20, %v6353_v6  ;;  %v18593_v28 = vpop.permute.xlu0 %18592  ;;  %v16024_v52 = vpack.c.bf16 %v6362_v2, %v6354_v33 }
 0x2d2   : > { %v18595_v40 = vunpack.i.h.bf16 %v18593_v28  ;;  %v18594_v60 = vunpack.i.l.bf16 %v18593_v28 }
 0x2d3   : > { %16026 = vmatprep.subr.msk.bf16.mxu0 %vm21417_vm1, %v16024_v52 }
 0x2d4   : > { %v6355_v17 = vsel %vm28089_vm2, %v18585_v5, %v18594_v60  ;;  %v6356_v47 = vsel %vm28089_vm2, %v18594_v60, %v18595_v40  ;;  %16029 = vmatpush1.bf16.msk.msra.mxu0 %vm21443_vm15, %v16027_v21  ;;  %vm28569_vm2 = vmmov %vm28561_vm6 }
 0x2d5   : > { %v16051_v54 = vpack.c.bf16 %v6363_v44, %v6355_v17  ;;  %v16048_v38 = vpack.c.bf16 %v6364_v48, %v6356_v47 }
 0x2d7   : > { %14718 = vmatmul.mubr.msk.f32.vlgmr.msra.gmra.mrb[8].mxu0 %vm28568_vm10, %v23863_v45  ;;  %16050 = vmatprep.subr.msk.bf16.mxu1 %vm21502_vm8, %v16048_v38  ;;  %vm28570_vm10 = vmmov %vm28569_vm2 }
 0x2d8   : > { %16053 = vmatpush1.bf16.msk.msra.mxu1 %vm21527_vm5, %v16051_v54  ;;  %6753 = vmatprep.mubr.f32.mxu0 %v28233_v46  ;;  %vm28571_vm8 = vmmov %vm28569_vm2 }
 0x2d9   : > { %vm28572_vm5 = vmmov %vm28569_vm2 }
 0x2db   : > { %14719 = vmatmul.mubr.msk.f32.gmra.mrb[10].mxu0 %vm28561_vm6, %v23887_v34  ;;  %14738 = vmatmul.mubr.msk.f32.vlgmr.msra.gmra.mrb[8].mxu1 %vm28569_vm2, %v23863_v45  ;;  %vm28573_vm6 = vmmov %vm28569_vm2 }
 0x2dc   : > { %6759 = vmatprep.mubr.f32.mxu0 %v28233_v46  ;;  %6842 = vmatprep.mubr.f32.mxu1 %v28233_v46 }
 0x2dd   : > { %v6905_v26 = vpop.permute.xlu1 %6904 }
 0x2df   : > { %14720 = vmatmul.mubr.msk.f32.gmra.mrb[12].mxu0 %vm28570_vm10, %v23903_v30  ;;  %14739 = vmatmul.mubr.msk.f32.gmra.mrb[10].mxu1 %vm28571_vm8, %v23887_v34  ;;  %vm28574_vm8 = vcmask 261120  }
 0x2e0   : > { %6765 = vmatprep.mubr.f32.mxu0 %v28233_v46  ;;  %6848 = vmatprep.mubr.f32.mxu1 %v28233_v46 }
 0x2e1   : > { %v6910_v53 = vpop.permute.xlu1 %6909 }
 0x2e3   : > { %14721 = vmatmul.mubr.msk.f32.gmra.mrb[14].mxu0 %vm28572_vm5, %v23923_v24  ;;  %14740 = vmatmul.mubr.msk.f32.gmra.mrb[12].mxu1 %vm28573_vm6, %v23903_v30  ;;  %vm28575_vm5 = vmmov %vm28574_vm8 }
 0x2e4   : > { %6854 = vmatprep.mubr.f32.mxu1 %v28233_v46  ;;  %v6900_v30 = vpop.permute.xlu0 %6899  ;;  %vm28576_vm10 = vmmov %vm28575_vm5 }
 0x2e5   : > { %vm28577_vm6 = vmmov %vm28575_vm5 }
 0x2e7   : > { %14741 = vmatmul.mubr.msk.f32.gmra.mrb[14].mxu1 %vm28569_vm2, %v23923_v24  ;;  %vm28578_vm2 = vmmov %vm28575_vm5 }
 0x2e8   : > { %v24037_v20 = vpop.permute.xlu0 %6914 }
 0x38a   : > { %v6571_v45 = vpop.f32.mrb[0].mxu0 }
 0x38b   : > { %v6573_v29 = vpop.f32.mrb[1].mxu0  ;;  %v24014_v57 = vadd.f32 %v6900_v30, %v6571_v45 }
 0x38c   : > { %v24016_v24 = vadd.f32 %v6900_v30, %v6573_v29 }
 0x38e   : > { %v6577_v11 = vpop.f32.mrb[2].mxu0  ;;  %v6953_v62 = vadd.f32 %v24016_v24, %v24014_v57 }
 0x38f   : > { %v6579_v51 = vpop.f32.mrb[3].mxu0  ;;  %v24022_v35 = vadd.f32 %v6905_v26, %v6577_v11 }
 0x390   : > { %v24024_v39 = vadd.f32 %v6905_v26, %v6579_v51 }
 0x392   : > { %v6583_v34 = vpop.f32.mrb[4].mxu0  ;;  %v6660_v23 = vpop.f32.mrb[0].mxu1  ;;  %v6962_v58 = vadd.f32 %v24024_v39, %v24022_v35 }
 0x393   : > { %v6585_v16 = vpop.f32.mrb[5].mxu0  ;;  %v6662_v13 = vpop.f32.mrb[1].mxu1  ;;  %v24018_v56 = vadd.f32 %v6900_v30, %v6660_v23  ;;  %v24031_v8 = vadd.f32 %v6910_v53, %v6583_v34 }
 0x394   : > { %v24027_v14 = vadd.f32 %v6900_v30, %v6662_v13  ;;  %v24033_v5 = vadd.f32 %v6910_v53, %v6585_v16 }
 0x395   : > { %v6954_v1 = vadd.f32 %v6953_v62, %v24018_v56 }
 0x396   : > { %v6589_v32 = vpop.f32.mrb[6].mxu0  ;;  %v6666_v49 = vpop.f32.mrb[2].mxu1  ;;  %v6971_v40 = vadd.f32 %v24033_v5, %v24031_v8 }
 0x397   : > { %v6591_v18 = vpop.f32.mrb[7].mxu0  ;;  %v6668_v7 = vpop.f32.mrb[3].mxu1  ;;  %v24029_v2 = vadd.f32 %v6905_v26, %v6666_v49  ;;  %v6955_v33 = vadd.f32 %v6954_v1, %v24027_v14  ;;  %v24050_v60 = vadd.f32 %v24037_v20, %v6589_v32 }
 0x398   : > { %v24043_v28 = vadd.f32 %v6905_v26, %v6668_v7  ;;  %v24053_v44 = vadd.f32 %v24037_v20, %v6591_v18 }
 0x399   : > { %v6963_v21 = vadd.f32 %v6962_v58, %v24029_v2 }
 0x39a   : > { %v6672_v3 = vpop.f32.mrb[4].mxu1  ;;  %v6980_v49 = vadd.f32 %v24053_v44, %v24050_v60 }
 0x39b   : > { %v6674_v59 = vpop.f32.mrb[5].mxu1  ;;  %v24039_v12 = vadd.f32 %v6910_v53, %v6672_v3  ;;  %v6964_v51 = vadd.f32 %v6963_v21, %v24043_v28 }
 0x39c   : > { %v24059_v38 = vadd.f32 %v6910_v53, %v6674_v59 }
 0x39d   : > { %v6972_v54 = vadd.f32 %v6971_v40, %v24039_v12 }
 0x39e   : > { %v6678_v27 = vpop.f32.mrb[6].mxu1 }
 0x39f   : > { %v6680_v61 = vpop.f32.mrb[7].mxu1  ;;  %v24062_v45 = vadd.f32 %v24037_v20, %v6678_v27  ;;  %v6973_v27 = vadd.f32 %v6972_v54, %v24059_v38 }
 0x3a0   : > { %v24081_v1 = vadd.f32 %v24037_v20, %v6680_v61 }
 0x3a1   : > { %v6981_v62 = vadd.f32 %v6980_v49, %v24062_v45 }
 0x3aa   : > { %v6749_v6 = vpop.f32.mrb[8].mxu0 }
 0x3ab   : > { %v24045_v52 = vadd.f32 %v6900_v30, %v6749_v6  ;;  %v6751_v48 = vpop.f32.mrb[9].mxu0 }
 0x3ac   : > { %v24055_v17 = vadd.f32 %v6900_v30, %v6751_v48 }
 0x3ad   : > { %v6956_v47 = vadd.f32 %v6955_v33, %v24045_v52 }
 0x3ae   : > { %v6755_v29 = vpop.f32.mrb[10].mxu0  ;;  %v6838_v11 = vpop.f32.mrb[8].mxu1 }
 0x3af   : > { %v6957_v34 = vadd.f32 %v6956_v47, %v24055_v17  ;;  %v24066_v23 = vadd.f32 %v6905_v26, %v6755_v29  ;;  %v24068_v16 = vadd.f32 %v6900_v30, %v6838_v11  ;;  %v6757_v13 = vpop.f32.mrb[11].mxu0  ;;  %v6840_v32 = vpop.f32.mrb[9].mxu1 }
 0x3b0   : > { %v24072_v18 = vadd.f32 %v6905_v26, %v6757_v13  ;;  %v24074_v7 = vadd.f32 %v6900_v30, %v6840_v32 }
 0x3b1   : > { %v6965_v3 = vadd.f32 %v6964_v51, %v24066_v23  ;;  %v6958_v59 = vadd.f32 %v6957_v34, %v24068_v16  ;;  %v6982_v51 = vadd.f32 %v6981_v62, %v24081_v1 }
 0x3b2   : > { %v6761_v58 = vpop.f32.mrb[12].mxu0  ;;  %v6844_v6 = vpop.f32.mrb[10].mxu1 }
 0x3b3   : > { %v6966_v33 = vadd.f32 %v6965_v3, %v24072_v18  ;;  %v6959_v21 = vadd.f32 %v6958_v59, %v24074_v7  ;;  %v24085_v48 = vadd.f32 %v6910_v53, %v6761_v58  ;;  %v24087_v30 = vadd.f32 %v6905_v26, %v6844_v6  ;;  %v6763_v40 = vpop.f32.mrb[13].mxu0  ;;  %v6846_v47 = vpop.f32.mrb[11].mxu1 }
 0x3b4   : > { %v24089_v29 = vadd.f32 %v6910_v53, %v6763_v40  ;;  %v24091_v54 = vadd.f32 %v6905_v26, %v6846_v47 }
 0x3b5   : > { %v6974_v11 = vadd.f32 %v6973_v27, %v24085_v48  ;;  %v6967_v61 = vadd.f32 %v6966_v33, %v24087_v30  ;;  %6960 = vadd.xlane.f32.xlu1 %v6959_v21 }
 0x3b6   : > { %v6767_v34 = vpop.f32.mrb[14].mxu0  ;;  %v6850_v13 = vpop.f32.mrb[12].mxu1 }
 0x3b7   : > { %v6975_v32 = vadd.f32 %v6974_v11, %v24089_v29  ;;  %v6968_v49 = vadd.f32 %v6967_v61, %v24091_v54  ;;  %v24099_v3 = vadd.f32 %v24037_v20, %v6767_v34  ;;  %v24101_v59 = vadd.f32 %v6910_v53, %v6850_v13  ;;  %v6769_v26 = vpop.f32.mrb[15].mxu0  ;;  %v6852_v58 = vpop.f32.mrb[13].mxu1  ;;  %v6949_v13 = vld [vmem:[%s27923_s5] sm:$0xff] }
 0x3b8   : > { %v24104_v27 = vadd.f32 %v24037_v20, %v6769_v26  ;;  %v24106_v6 = vadd.f32 %v6910_v53, %v6852_v58  ;;  %15238 = vmatprep.mubr.msk.f32.mxu0 %vm28574_vm8, %v6949_v13  ;;  %15252 = vmatprep.mubr.msk.f32.mxu1 %vm28575_vm5, %v6949_v13  ;;  %vm28579_vm8 = vmmov %vm28578_vm2 }
 0x3b9   : > { %v6983_v62 = vadd.f32 %v6982_v51, %v24099_v3  ;;  %v6976_v33 = vadd.f32 %v6975_v32, %v24101_v59  ;;  %6969 = vadd.xlane.f32.xlu0 %v6968_v49  ;;  %vm28580_vm5 = vmmov %vm28578_vm2 }
 0x3ba   : > { %v6856_v21 = vpop.f32.mrb[14].mxu1 }
 0x3bb   : > { %v6984_v40 = vadd.f32 %v6983_v62, %v24104_v27  ;;  %v6977_v47 = vadd.f32 %v6976_v33, %v24106_v6  ;;  %v24113_v11 = vadd.f32 %v24037_v20, %v6856_v21  ;;  %v6858_v61 = vpop.f32.mrb[15].mxu1  ;;  %v24128_v33 = vld [vmem:[%s27923_s5 + $0x8] sm:$0xff]  ;;  %v24133_v21 = vld [vmem:[%s27923_s5 + $0x10] sm:$0xff] }
 0x3bc   : > { %v24116_v34 = vadd.f32 %v24037_v20, %v6858_v61 }
 0x3bd   : > { %v6985_v53 = vadd.f32 %v6984_v40, %v24113_v11  ;;  %6978 = vadd.xlane.f32.xlu0 %v6977_v47  ;;  %v24142_v40 = vld [vmem:[%s27923_s5 + $0x18] sm:$0xff] }
 0x3bf   : > { %v6986_v51 = vadd.f32 %v6985_v53, %v24116_v34 }
 0x3c1   : > { %6987 = vadd.xlane.f32.xlu1 %v6986_v51 }
 0x442   : > { %v6961_v32 = vpop.xlane.xlu1 %6960 }
 0x446   : > { %v6970_v49 = vpop.xlane.xlu0 %6969 }
 0x447   : > { %v16054_v26 = vpack.c.bf16 %v6970_v49, %v6961_v32 }
 0x449   : > { %16055 = vmatprep.subr.bf16.mxu0 %v16054_v26 }
 0x44a   : > { %16057 = vmatpush3.bf16.msra.mxu0 %v16054_v26  ;;  %v6979_v20 = vpop.xlane.xlu0 %6978 }
 0x44e   : > { %v6988_v58 = vpop.xlane.xlu1 %6987 }
 0x44f   : > { %v16058_v62 = vpack.c.bf16 %v6988_v58, %v6979_v20 }
 0x451   : > { %16059 = vmatprep.subr.bf16.mxu0 %v16058_v62 }
 0x452   : > { %16061 = vmatpush3.bf16.msra.mxu0 %v16058_v62 }
 0x455   : > { %15239 = vmatmul.mubr.msk.f32.vlgmr.msra.gmra.mrb[16].mxu0 %vm28576_vm10, %v24128_v33  ;;  %vm28581_vm10 = vmmov %vm28578_vm2 }
 0x456   : > { %15241 = vmatprep.mubr.msk.f32.mxu0 %vm28577_vm6, %v24133_v21 }
 0x459   : > { %15242 = vmatmul.mubr.msk.f32.gmra.mrb[18].mxu0 %vm28578_vm2, %v24142_v40 }
 0x45a   : > { %8021 = vmatprep.mubr.f32.mxu0 %v28233_v46 }
 0x528   : > { %v15240_v47 = vpop.f32.mrb[16].mxu0 }
 0x529   : > { %v7088_v61 = vmul.f32 0.00048828125, %v15240_v47  ;;  %v7067_v53 = vpop.f32.mrb[17].mxu0 }
 0x52a   : > { %v7087_v51 = vmul.f32 0.00048828125, %v7067_v53 }
 0x52b   : > { %7098 = vperm.xlu1 %18602, %v7088_v61  }
 0x52c   : > { %7093 = vperm.xlu0 %18601, %v7087_v51   ;;  %v15243_v13 = vpop.f32.mrb[18].mxu0 }
 0x52d   : > { %v7090_v32 = vmul.f32 0.00048828125, %v15243_v13  ;;  %v7077_v49 = vpop.f32.mrb[19].mxu0 }
 0x52e   : > { %v7089_v26 = vmul.f32 0.00048828125, %v7077_v49 }
 0x530   : > { %7108 = vperm.xlu0 %18601, %v7090_v32   ;;  %7103 = vperm.xlu1 %18602, %v7089_v26  }
 0x5aa   : > { %v7099_v20 = vpop.permute.xlu1 %7098 }
 0x5ab   : > { %v7094_v58 = vpop.permute.xlu0 %7093  ;;  %v24148_v62 = vsub.f32 %v24022_v35, %v7099_v20  ;;  %v24151_v36 = vsub.f32 %v24024_v39, %v7099_v20  ;;  %v24154_v47 = vsub.f32 %v24029_v2, %v7099_v20  ;;  %v24157_v61 = vsub.f32 %v24043_v28, %v7099_v20 }
 0x5ac   : > { %v24164_v13 = vsub.f32 %v24066_v23, %v7099_v20  ;;  %v24167_v35 = vsub.f32 %v24072_v18, %v7099_v20  ;;  %v24172_v32 = vsub.f32 %v24014_v57, %v7094_v58  ;;  %v24175_v28 = vsub.f32 %v24016_v24, %v7094_v58 }
 0x5ad   : > { %v7151_v53 = vmul.f32 %v24148_v62, %v24148_v62  ;;  %v7152_v51 = vmul.f32 %v24151_v36, %v24151_v36  ;;  %v7153_v39 = vmul.f32 %v24154_v47, %v24154_v47  ;;  %v24178_v49 = vsub.f32 %v24018_v56, %v7094_v58 }
 0x5ae   : > { %v24181_v26 = vsub.f32 %v24087_v30, %v7099_v20  ;;  %v7154_v23 = vmul.f32 %v24157_v61, %v24157_v61  ;;  %v24186_v55 = vsub.f32 %v24027_v14, %v7094_v58  ;;  %v7143_v57 = vmul.f32 %v24172_v32, %v24172_v32 }
 0x5af   : > { %v7184_v2 = vadd.f32 %v7152_v51, %v7151_v53  ;;  %v7109_v18 = vpop.permute.xlu0 %7108  ;;  %v7144_v24 = vmul.f32 %v24175_v28, %v24175_v28  ;;  %v24193_v56 = vsub.f32 %v24091_v54, %v7099_v20  ;;  %v7155_v30 = vmul.f32 %v24164_v13, %v24164_v13 }
 0x5b0   : > { %v7156_v53 = vmul.f32 %v24167_v35, %v24167_v35  ;;  %v7145_v14 = vmul.f32 %v24178_v49, %v24178_v49  ;;  %v24205_v63 = vsub.f32 %v24055_v17, %v7094_v58  ;;  %v24208_v54 = vsub.f32 %v24050_v60, %v7109_v18 }
 0x5b1   : > { %v7185_v50 = vadd.f32 %v7184_v2, %v7153_v39  ;;  %v24200_v39 = vsub.f32 %v24045_v52, %v7094_v58  ;;  %v7175_v2 = vadd.f32 %v7144_v24, %v7143_v57  ;;  %v24211_v20 = vsub.f32 %v24053_v44, %v7109_v18  ;;  %v7104_v24 = vpop.permute.xlu1 %7103 }
 0x5b2   : > { %v24214_v31 = vsub.f32 %v24062_v45, %v7109_v18  ;;  %v24221_v17 = vsub.f32 %v24068_v16, %v7094_v58  ;;  %v24224_v60 = vsub.f32 %v24081_v1, %v7109_v18  ;;  %v7167_v44 = vmul.f32 %v24208_v54, %v24208_v54 }
 0x5b3   : > { %v7186_v51 = vadd.f32 %v7185_v50, %v7154_v23  ;;  %v7157_v50 = vmul.f32 %v24181_v26, %v24181_v26  ;;  %v7146_v23 = vmul.f32 %v24186_v55, %v24186_v55  ;;  %v7176_v57 = vadd.f32 %v7175_v2, %v7145_v14 }
 0x5b4   : > { %v7168_v45 = vmul.f32 %v24211_v20, %v24211_v20  ;;  %v7147_v14 = vmul.f32 %v24200_v39, %v24200_v39  ;;  %v24235_v16 = vsub.f32 %v24074_v7, %v7094_v58  ;;  %v7148_v1 = vmul.f32 %v24205_v63, %v24205_v63 }
 0x5b5   : > { %v7187_v52 = vadd.f32 %v7186_v51, %v7155_v30  ;;  %v7158_v30 = vmul.f32 %v24193_v56, %v24193_v56  ;;  %v7177_v2 = vadd.f32 %v7176_v57, %v7146_v23  ;;  %v24240_v37 = vsub.f32 %v24099_v3, %v7109_v18 }
 0x5b6   : > { %v7169_v4 = vmul.f32 %v24214_v31, %v24214_v31  ;;  %v7202_v22 = vadd.f32 %v7168_v45, %v7167_v44  ;;  %v24250_v7 = vsub.f32 %v24104_v27, %v7109_v18  ;;  %v7170_v58 = vmul.f32 %v24224_v60, %v24224_v60 }
 0x5b7   : > { %v7188_v51 = vadd.f32 %v7187_v52, %v7156_v53  ;;  %v7178_v19 = vadd.f32 %v7177_v2, %v7147_v14  ;;  %v24245_v53 = vsub.f32 %v24031_v8, %v7104_v24  ;;  %v7149_v52 = vmul.f32 %v24221_v17, %v24221_v17 }
 0x5b8   : > { %v24255_v3 = vsub.f32 %v24033_v5, %v7104_v24  ;;  %v24258_v44 = vsub.f32 %v24039_v12, %v7104_v24  ;;  %v7150_v8 = vmul.f32 %v24235_v16, %v24235_v16  ;;  %v24263_v45 = vsub.f32 %v24113_v11, %v7109_v18 }
 0x5b9   : > { %v7189_v0 = vadd.f32 %v7188_v51, %v7157_v50  ;;  %v7179_v57 = vadd.f32 %v7178_v19, %v7148_v1  ;;  %v7203_v50 = vadd.f32 %v7202_v22, %v7169_v4  ;;  %v7159_v27 = vmul.f32 %v24245_v53, %v24245_v53 }
 0x5ba   : > { %v7160_v51 = vmul.f32 %v24255_v3, %v24255_v3  ;;  %v7171_v19 = vmul.f32 %v24240_v37, %v24240_v37  ;;  %v24272_v4 = vsub.f32 %v24059_v38, %v7104_v24  ;;  %v24275_v22 = vsub.f32 %v24116_v34, %v7109_v18 }
 0x5bb   : > { %v7190_v23 = vadd.f32 %v7189_v0, %v7158_v30  ;;  %v7180_v5 = vadd.f32 %v7179_v57, %v7149_v52  ;;  %v7204_v0 = vadd.f32 %v7203_v50, %v7170_v58  ;;  %v7172_v12 = vmul.f32 %v24250_v7, %v24250_v7 }
 0x5bc   : > { %v24280_v11 = vsub.f32 %v24085_v48, %v7104_v24  ;;  %v7161_v2 = vmul.f32 %v24258_v44, %v24258_v44  ;;  %v7193_v1 = vadd.f32 %v7160_v51, %v7159_v27  ;;  %v7173_v52 = vmul.f32 %v24263_v45, %v24263_v45 }
 0x5bd   : > { %7191 = vadd.xlane.f32.xlu0 %v7190_v23  ;;  %v7181_v30 = vadd.f32 %v7180_v5, %v7150_v8  ;;  %v7205_v14 = vadd.f32 %v7204_v0, %v7171_v19  ;;  %v24287_v34 = vsub.f32 %v24089_v29, %v7104_v24  ;;  %v7162_v18 = vmul.f32 %v24272_v4, %v24272_v4 }
 0x5be   : > { %v7194_v58 = vadd.f32 %v7193_v1, %v7161_v2  ;;  %v7174_v48 = vmul.f32 %v24275_v22, %v24275_v22  ;;  %v24294_v57 = vsub.f32 %v24101_v59, %v7104_v24  ;;  %v7163_v50 = vmul.f32 %v24280_v11, %v24280_v11  ;;  %v19819_v2 = vld [vmem:[%s27922_s4 + $0x18] sm:$0xff] }
 0x5bf   : > { %7182 = vadd.xlane.f32.xlu1 %v7181_v30  ;;  %v7206_v38 = vadd.f32 %v7205_v14, %v7172_v12  ;;  %v24299_v51 = vsub.f32 %v24106_v6, %v7104_v24  ;;  %v7164_v29 = vmul.f32 %v24287_v34, %v24287_v34  ;;  %v19816_v6 = vld [vmem:[%s27922_s4 + $0x8] sm:$0xff]  ;;  %v19817_v24 = vld [vmem:[%s27922_s4 + $0x10] sm:$0xff]  ;;  %v19818_v14 = vld [vmem:[%s27922_s4] sm:$0xff] }
 0x5c0   : > { %v7195_v8 = vadd.f32 %v7194_v58, %v7162_v18  ;;  %v7165_v19 = vmul.f32 %v24294_v57, %v24294_v57 }
 0x5c1   : > { %v7207_v23 = vadd.f32 %v7206_v38, %v7173_v52  ;;  %v7166_v59 = vmul.f32 %v24299_v51, %v24299_v51 }
 0x5c2   : > { %v7196_v5 = vadd.f32 %v7195_v8, %v7163_v50  ;;  %v28582_v50 = vmov 0  }
 0x5c3   : > { %v7208_v27 = vadd.f32 %v7207_v23, %v7174_v48  ;;  %v28105_v23 = vmov 2  }
 0x5c4   : > { %v7197_v0 = vadd.f32 %v7196_v5, %v7164_v29  ;;  %18604 = vset.pattern.permute.xlu0 %v28105_v23  ;;  %18603 = vset.pattern.permute.xlu1 %v28105_v23 }
 0x5c5   : > { %7209 = vadd.xlane.f32.xlu1 %v7208_v27 }
 0x5c6   : > { %v7198_v12 = vadd.f32 %v7197_v0, %v7165_v19 }
 0x5c8   : > { %v7199_v30 = vadd.f32 %v7198_v12, %v7166_v59 }
 0x5ca   : > { %7200 = vadd.xlane.f32.xlu0 %v7199_v30 }
 0x5d6   : > { %7310 = vrot.lane.b32.xlu1 %v19816_v6, %s19837_s10 }
 0x5da   : > { %7312 = vrot.lane.b32.xlu1 %v19817_v24, %s19837_s10 }
 0x5de   : > { %7377 = vperm.xlu1 %18603, %v19818_v14  }
 0x5e0   : > { %7308 = vrot.lane.b32.xlu0 %v19818_v14, %s19837_s10 }
 0x5e2   : > { %18607 = vset.pattern.permute.xlu1 %v28582_v50 }
 0x5e4   : > { %7314 = vrot.lane.b32.xlu0 %v19819_v2, %s19837_s10 }
 0x5e8   : > { %7381 = vperm.xlu0 %18604, %v19816_v6  }
 0x5ec   : > { %18605 = vset.pattern.permute.xlu0 %v28582_v50 }
 0x64a   : > { %v7192_v1 = vpop.xlane.xlu0 %7191 }
 0x64c   : > { %v7183_v52 = vpop.xlane.xlu1 %7182 }
 0x64d   : > { %v16062_v38 = vpack.c.bf16 %v7192_v1, %v7183_v52 }
 0x64f   : > { %16063 = vmatprep.subr.bf16.mxu1 %v16062_v38 }
 0x650   : > { %16065 = vmatpush3.bf16.msra.mxu1 %v16062_v38 }
 0x652   : > { %v7210_v18 = vpop.xlane.xlu1 %7209 }
 0x656   : > { %v7311_v14 = vpop.permute.xlu1 %7310 }
 0x657   : > { %v7201_v58 = vpop.xlane.xlu0 %7200 }
 0x658   : > { %v16066_v48 = vpack.c.bf16 %v7210_v18, %v7201_v58 }
 0x65a   : > { %16067 = vmatprep.subr.bf16.mxu1 %v16066_v48 }
 0x65b   : > { %16069 = vmatpush3.bf16.msra.mxu1 %v16066_v48  ;;  %v7309_v6 = vpop.permute.xlu0 %7308 }
 0x65e   : > { %15253 = vmatmul.mubr.msk.f32.vlgmr.msra.gmra.mrb[16].mxu1 %vm28579_vm8, %v24128_v33 }
 0x65f   : > { %15255 = vmatprep.mubr.msk.f32.mxu1 %vm28580_vm5, %v24133_v21  ;;  %v7315_v58 = vpop.permute.xlu0 %7314 }
 0x662   : > { %15256 = vmatmul.mubr.msk.f32.gmra.mrb[18].mxu1 %vm28581_vm10, %v24142_v40 }
 0x663   : > { %8110 = vmatprep.mubr.f32.mxu1 %v28233_v46 }
 0x731   : > { %v15254_v33 = vpop.f32.mrb[16].mxu1 }
 0x732   : > { %v7297_v8 = vmul.f32 0.00048828125, %v15254_v33  ;;  %v7277_v27 = vpop.f32.mrb[17].mxu1 }
 0x733   : > { %v7296_v21 = vmul.f32 0.00048828125, %v7277_v27  ;;  %v7313_v27 = vpop.permute.xlu1 %7312 }
 0x734   : > { %v7301_v29 = vadd.f32 1e-05, %v7297_v8 }
 0x735   : > { %v7300_v5 = vadd.f32 1e-05, %v7296_v21  ;;  %v15257_v40 = vpop.f32.mrb[18].mxu1 }
 0x736   : > { %19608 = vrsqrt.f32 %v7301_v29  ;;  %v7299_v19 = vmul.f32 0.00048828125, %v15257_v40  ;;  %v7287_v0 = vpop.f32.mrb[19].mxu1  ;;  %v7382_v29 = vpop.permute.xlu0 %7381 }
 0x737   : > { %19610 = vrsqrt.f32 %v7300_v5  ;;  %v7298_v59 = vmul.f32 0.00048828125, %v7287_v0  ;;  %v7378_v5 = vpop.permute.xlu1 %7377 }
 0x738   : > { %v7303_v12 = vadd.f32 1e-05, %v7299_v19 }
 0x739   : > { %v7302_v30 = vadd.f32 1e-05, %v7298_v59 }
 0x73a   : > { %19612 = vrsqrt.f32 %v7303_v12 }
 0x73b   : > { %19614 = vrsqrt.f32 %v7302_v30 }
 0x740   : > { %v19609_v1 = vpop.eup %19608 }
 0x741   : > { %v19611_v52 = vpop.eup %19610  ;;  %v7321_v38 = vmul.f32 %v19609_v1, %v7311_v14 }
 0x742   : > { %v7320_v18 = vmul.f32 %v19611_v52, %v7309_v6 }
 0x743   : > { %7331 = vperm.xlu0 %18605, %v7321_v38  }
 0x744   : > { %v19613_v48 = vpop.eup %19612  ;;  %7326 = vperm.xlu1 %18607, %v7320_v18  }
 0x745   : > { %v19615_v33 = vpop.eup %19614  ;;  %v7323_v8 = vmul.f32 %v19613_v48, %v7315_v58 }
 0x746   : > { %v7322_v21 = vmul.f32 %v19615_v33, %v7313_v27 }
 0x747   : > { %18606 = vset.pattern.permute.xlu0 %v28105_v23 }
 0x748   : > { %7341 = vperm.xlu1 %18607, %v7323_v8   ;;  %7385 = vperm.xlu0 %18606, %v19817_v24  }
 0x74c   : > { %7336 = vperm.xlu1 %18607, %v7322_v21   ;;  %19329 = vset.pattern.permute.xlu0 %v28582_v50 }
 0x74d   : > { %18610 = vrot.lane.b32.xlu0 %v28233_v46, %s19833_s26 }
 0x750   : > { %18608 = vset.pattern.permute.xlu1 %v28105_v23 }
 0x751   : > { %7389 = vperm.xlu1 %18608, %v19819_v2  }
 0x755   : > { %18615 = vrot.lane.b32.xlu1 %v28233_v46, %s19833_s26 }
 0x756   : > { %19330 = vset.pattern.permute.xlu1 %v28582_v50 }
 0x7c2   : > { %v7332_v40 = vpop.permute.xlu0 %7331 }
 0x7c3   : > { %v7352_v19 = vmul.f32 %v7332_v40, %v24148_v62  ;;  %v7353_v24 = vmul.f32 %v7332_v40, %v24151_v36  ;;  %v7354_v0 = vmul.f32 %v7332_v40, %v24154_v47  ;;  %v7355_v59 = vmul.f32 %v7332_v40, %v24157_v61  ;;  %v7327_v6 = vpop.permute.xlu1 %7326 }
 0x7c4   : > { %v7356_v12 = vmul.f32 %v7332_v40, %v24164_v13  ;;  %v7357_v2 = vmul.f32 %v7332_v40, %v24167_v35  ;;  %v7358_v30 = vmul.f32 %v7332_v40, %v24181_v26  ;;  %v7359_v18 = vmul.f32 %v7332_v40, %v24193_v56 }
 0x7c5   : > { %v7400_v14 = vadd.f32 %v7382_v29, %v7352_v19  ;;  %v7401_v1 = vadd.f32 %v7382_v29, %v7353_v24  ;;  %v7402_v52 = vadd.f32 %v7382_v29, %v7354_v0  ;;  %v7403_v38 = vadd.f32 %v7382_v29, %v7355_v59 }
 0x7c6   : > { %v24350_v62 = vadd.f32 %v7382_v29, %v7356_v12  ;;  %v24352_v36 = vadd.f32 %v7382_v29, %v7357_v2  ;;  %v24354_v47 = vadd.f32 %v7382_v29, %v7358_v30  ;;  %v7344_v13 = vmul.f32 %v7327_v6, %v24172_v32 }
 0x7c7   : > { %v7464_v61 = vmul.f32 0.2, %v7400_v14  ;;  %v7345_v35 = vmul.f32 %v7327_v6, %v24175_v28  ;;  %v7346_v26 = vmul.f32 %v7327_v6, %v24178_v49  ;;  %v7347_v58 = vmul.f32 %v7327_v6, %v24186_v55  ;;  %v24363_v8 = vpop.permute.xlu1 %7341 }
 0x7c8   : > { %v7348_v48 = vmul.f32 %v7327_v6, %v24200_v39  ;;  %v7349_v33 = vmul.f32 %v7327_v6, %v24205_v63  ;;  %v7350_v56 = vmul.f32 %v7327_v6, %v24221_v17  ;;  %v7465_v27 = vmul.f32 0.2, %v7401_v1 }
 0x7c9   : > { %v7466_v21 = vmul.f32 0.2, %v7402_v52  ;;  %v7467_v40 = vmul.f32 0.2, %v7403_v38  ;;  %v24365_v19 = vadd.f32 %v7382_v29, %v7359_v18  ;;  %v7468_v32 = vmul.f32 0.2, %v24350_v62 }
 0x7ca   : > { %v7469_v28 = vmul.f32 0.2, %v24352_v36  ;;  %v24370_v49 = vmul.f32 0.2, %v24354_v47  ;;  %v7351_v55 = vmul.f32 %v7327_v6, %v24235_v16  ;;  %v7392_v39 = vadd.f32 %v7378_v5, %v7344_v13 }
 0x7cb   : > { %v7393_v63 = vadd.f32 %v7378_v5, %v7345_v35  ;;  %v24373_v24 = vadd.f32 %v7378_v5, %v7346_v26  ;;  %v24375_v17 = vadd.f32 %v7378_v5, %v7347_v58  ;;  %v24377_v0 = vadd.f32 %v7378_v5, %v7348_v48  ;;  %v7337_v12 = vpop.permute.xlu1 %7336 }
 0x7cc   : > { %v24379_v59 = vadd.f32 %v7378_v5, %v7349_v33  ;;  %v24381_v29 = vadd.f32 %v7378_v5, %v7350_v56  ;;  %vm7434_vm6 = vcmp.ge.f32.partialorder %v7402_v52, 0.0  ;;  %vm7435_vm2 = vcmp.ge.f32.partialorder %v7403_v38, 0.0 }
 0x7cd   : > { %vm7432_vm8 = vcmp.ge.f32.partialorder %v7400_v14, 0.0  ;;  %vm7433_vm5 = vcmp.ge.f32.partialorder %v7401_v1, 0.0  ;;  %v24383_v2 = vsel %vm7434_vm6, %v7402_v52, %v7466_v21  ;;  %v24385_v16 = vsel %vm7435_vm2, %v7403_v38, %v7467_v40 }
 0x7ce   : > { %28583 = vst [vmem:[#allocation52_spill] sm:$0xff] %v24383_v2  ;;  %v24387_v30 = vsel %vm7432_vm8, %v7400_v14, %v7464_v61  ;;  %v24389_v6 = vsel %vm7433_vm5, %v7401_v1, %v7465_v27  ;;  %v24392_v18 = vmul.f32 0.2, %v24365_v19  ;;  %v24394_v13 = vadd.f32 %v7378_v5, %v7351_v55 }
 0x7cf   : > { %v24398_v35 = vpack.i.bf16 %v24385_v16, %v24383_v2  ;;  %v24402_v26 = vpack.i.bf16 %v24389_v6, %v24387_v30  ;;  %v7456_v52 = vmul.f32 0.2, %v7392_v39  ;;  %v7457_v38 = vmul.f32 0.2, %v7393_v63 }
 0x7d0   : > { %v24405_v14 = vmul.f32 0.2, %v24373_v24  ;;  %v7368_v1 = vmul.f32 %v24363_v8, %v24208_v54  ;;  %v24410_v61 = vmul.f32 0.2, %v24375_v17  ;;  %v7360_v5 = vmul.f32 %v7337_v12, %v24245_v53 }
 0x7d1   : > { %v7361_v58 = vmul.f32 %v7337_v12, %v24255_v3  ;;  %v7362_v48 = vmul.f32 %v7337_v12, %v24258_v44  ;;  %18625 = vrot.lane.b32.xlu0 %v24398_v35, %s19833_s26  ;;  %18620 = vrot.lane.b32.xlu1 %v24402_v26, %s19833_s26  ;;  %v24420_v33 = vmul.f32 0.2, %v24377_v0  ;;  %v24423_v54 = vmul.f32 0.2, %v24379_v59  ;;  %v7386_v3 = vpop.permute.xlu0 %7385 }
 0x7d2   : > { %v24426_v56 = vmul.f32 0.2, %v24381_v29  ;;  %v7369_v53 = vmul.f32 %v24363_v8, %v24211_v20  ;;  %v7370_v44 = vmul.f32 %v24363_v8, %v24214_v31  ;;  %v7371_v27 = vmul.f32 %v24363_v8, %v24224_v60 }
 0x7d3   : > { %v7372_v21 = vmul.f32 %v24363_v8, %v24240_v37  ;;  %v7373_v40 = vmul.f32 %v24363_v8, %v24250_v7  ;;  %v7363_v55 = vmul.f32 %v7337_v12, %v24272_v4  ;;  %v7364_v23 = vmul.f32 %v7337_v12, %v24280_v11  ;;  %v7390_v37 = vpop.permute.xlu1 %7389 }
 0x7d4   : > { %v7365_v50 = vmul.f32 %v7337_v12, %v24287_v34  ;;  %v7366_v20 = vmul.f32 %v7337_v12, %v24294_v57  ;;  %v7367_v43 = vmul.f32 %v7337_v12, %v24299_v51  ;;  %v24443_v31 = vadd.f32 %v7386_v3, %v7360_v5 }
 0x7d5   : > { %v24445_v25 = vadd.f32 %v7386_v3, %v7361_v58  ;;  %v24447_v60 = vadd.f32 %v7386_v3, %v7362_v48  ;;  %vm7436_vm10 = vcmp.ge.f32.partialorder %v24350_v62, 0.0  ;;  %vm7437_vm6 = vcmp.ge.f32.partialorder %v24352_v36, 0.0 }
 0x7d6   : > { %vm7424_vm2 = vcmp.ge.f32.partialorder %v7392_v39, 0.0  ;;  %vm7425_vm8 = vcmp.ge.f32.partialorder %v7393_v63, 0.0  ;;  %v24452_v7 = vsel %vm7436_vm10, %v24350_v62, %v7468_v32  ;;  %v24455_v4 = vsel %vm7437_vm6, %v24352_v36, %v7469_v28 }
 0x7d7   : > { %28584 = vst [vmem:[#allocation25_spill] sm:$0xff] %v24452_v7  ;;  %28585 = vst [vmem:[#allocation21_spill] sm:$0xff] %v24455_v4  ;;  %v24457_v11 = vsel %vm7424_vm2, %v7392_v39, %v7456_v52  ;;  %v24459_v34 = vsel %vm7425_vm8, %v7393_v63, %v7457_v38  ;;  %v7374_v57 = vmul.f32 %v24363_v8, %v24263_v45  ;;  %v7463_v63 = vmul.f32 0.2, %v24394_v13 }
 0x7d8   : > { %28586 = vst [vmem:[#allocation46_spill] sm:$0xff] %v24457_v11  ;;  %v24463_v51 = vadd.f32 %v7386_v3, %v7363_v55  ;;  %v24467_v12 = vpack.i.bf16 %v24455_v4, %v24452_v7  ;;  %v24471_v62 = vpack.i.bf16 %v24459_v34, %v24457_v11  ;;  %v7375_v36 = vmul.f32 %v24363_v8, %v24275_v22 }
 0x7d9   : > { %v24475_v32 = vadd.f32 %v7390_v37, %v7368_v1  ;;  %v7418_v28 = vadd.f32 %v7390_v37, %v7370_v44  ;;  %v7419_v39 = vadd.f32 %v7390_v37, %v7371_v27  ;;  %v24478_v45 = vadd.f32 %v7386_v3, %v7364_v23 }
 0x7da   : > { %v24480_v52 = vadd.f32 %v7386_v3, %v7365_v50  ;;  %v24482_v38 = vadd.f32 %v7386_v3, %v7366_v20  ;;  %18630 = vrot.lane.b32.xlu1 %v24467_v12, %s19833_s26  ;;  %18640 = vrot.lane.b32.xlu0 %v24471_v62, %s19833_s26  ;;  %v24488_v5 = vadd.f32 %v7386_v3, %v7367_v43  ;;  %v7472_v22 = vmul.f32 0.2, %v24443_v31 }
 0x7db   : > { %v7473_v8 = vmul.f32 0.2, %v24445_v25  ;;  %v24493_v1 = vmul.f32 0.2, %v24447_v60  ;;  %v24498_v23 = vmul.f32 0.2, %v24463_v51  ;;  %v7417_v50 = vadd.f32 %v7390_v37, %v7369_v53 }
 0x7dc   : > { %v7420_v58 = vadd.f32 %v7390_v37, %v7372_v21  ;;  %v7421_v48 = vadd.f32 %v7390_v37, %v7373_v40  ;;  %v24500_v44 = vadd.f32 %v7390_v37, %v7374_v57  ;;  %v7480_v43 = vmul.f32 0.2, %v24475_v32 }
 0x7dd   : > { %v7482_v3 = vmul.f32 0.2, %v7418_v28  ;;  %v7483_v27 = vmul.f32 0.2, %v7419_v39  ;;  %vm7438_vm8 = vcmp.ge.f32.partialorder %v24354_v47, 0.0  ;;  %vm7439_vm5 = vcmp.ge.f32.partialorder %v24365_v19, 0.0 }
 0x7de   : > { %v24507_v55 = vsel %vm7438_vm8, %v24354_v47, %v24370_v49  ;;  %v24511_v53 = vsel %vm7439_vm5, %v24365_v19, %v24392_v18  ;;  %vm7428_vm10 = vcmp.ge.f32.partialorder %v24377_v0, 0.0  ;;  %vm7429_vm2 = vcmp.ge.f32.partialorder %v24379_v59, 0.0 }
 0x7df   : > { %28587 = vst [vmem:[#allocation38_spill] sm:$0xff] %v24507_v55  ;;  %28588 = vst [vmem:[#allocation29_spill] sm:$0xff] %v24511_v53  ;;  %v24519_v21 = vpack.i.bf16 %v24511_v53, %v24507_v55  ;;  %v24523_v47 = vsel %vm7428_vm10, %v24377_v0, %v24420_v33  ;;  %v24527_v19 = vsel %vm7429_vm2, %v24379_v59, %v24423_v54  ;;  %vm7426_vm5 = vcmp.ge.f32.partialorder %v24373_v24, 0.0 }
 0x7e0   : > { %28589 = vst [vmem:[#allocation37_spill] sm:$0xff] %v24523_v47  ;;  %28590 = vst [vmem:[#allocation53_spill] sm:$0xff] %v24527_v19  ;;  %v24533_v49 = vpack.i.bf16 %v24527_v19, %v24523_v47  ;;  %vm7427_vm15 = vcmp.ge.f32.partialorder %v24375_v17, 0.0  ;;  %v24538_v18 = vsel %vm7426_vm5, %v24373_v24, %v24405_v14  ;;  %vm7430_vm10 = vcmp.ge.f32.partialorder %v24381_v29, 0.0 }
 0x7e1   : > { %28591 = vst [vmem:[#allocation45_spill] sm:$0xff] %v24538_v18  ;;  %v7481_v0 = vmul.f32 0.2, %v7417_v50  ;;  %18635 = vrot.lane.b32.xlu1 %v24519_v21, %s19833_s26  ;;  %v24545_v59 = vsel %vm7427_vm15, %v24375_v17, %v24410_v61  ;;  %vm7431_vm2 = vcmp.ge.f32.partialorder %v24394_v13, 0.0  ;;  %v24550_v33 = vsel %vm7430_vm10, %v24381_v29, %v24426_v56 }
 0x7e2   : > { %28592 = vst [vmem:[#allocation12_spill] sm:$0xff] %v24550_v33  ;;  %v7423_v54 = vadd.f32 %v7390_v37, %v7375_v36  ;;  %vm7448_vm5 = vcmp.ge.f32.partialorder %v24475_v32, 0.0  ;;  %vm7449_vm8 = vcmp.ge.f32.partialorder %v7417_v50, 0.0  ;;  %18650 = vrot.lane.b32.xlu0 %v24533_v49, %s19833_s26  ;;  %v24556_v24 = vsel %vm7431_vm2, %v24394_v13, %v7463_v63 }
 0x7e3   : > { %28593 = vst [vmem:[#allocation14_spill] sm:$0xff] %v24556_v24  ;;  %vm7452_vm6 = vcmp.ge.f32.partialorder %v7420_v58, 0.0  ;;  %v7484_v14 = vmul.f32 0.2, %v7420_v58  ;;  %v7485_v17 = vmul.f32 0.2, %v7421_v48  ;;  %v24560_v61 = vpack.i.bf16 %v24545_v59, %v24538_v18 }
 0x7e4   : > { %vm7453_vm15 = vcmp.ge.f32.partialorder %v7421_v48, 0.0  ;;  %v24564_v29 = vpack.i.bf16 %v24556_v24, %v24550_v33  ;;  %vm28594_vm10 = vcmp.ge.f32.partialorder %v7418_v28, 0.0  ;;  %vm28596_vm1 = vcmp.ge.f32.partialorder %v7419_v39, 0.0 }
 0x7e5   : > { %v24567_v56 = vsel %vm28594_vm10, %v7418_v28, %v7482_v3  ;;  %v24570_v40 = vsel %vm28596_vm1, %v7419_v39, %v7483_v27  ;;  %v7476_v13 = vmul.f32 0.2, %v24478_v45  ;;  %v7477_v20 = vmul.f32 0.2, %v24480_v52  ;;  %18645 = vrot.lane.b32.xlu1 %v24560_v61, %s19833_s26 }
 0x7e6   : > { %28595 = vst [vmem:[#allocation18_spill] sm:$0xff] %v24567_v56  ;;  %28597 = vst [vmem:[#allocation16_spill] sm:$0xff] %v24570_v40  ;;  %v24577_v37 = vsel %vm7448_vm5, %v24475_v32, %v7480_v43  ;;  %v24579_v57 = vsel %vm7449_vm8, %v7417_v50, %v7481_v0  ;;  %v7478_v36 = vmul.f32 0.2, %v24482_v38  ;;  %v7486_v28 = vmul.f32 0.2, %v24500_v44  ;;  %18655 = vrot.lane.b32.xlu0 %v24564_v29, %s19833_s26 }
 0x7e7   : > { %vm28598_vm1 = vcmp.ge.f32.partialorder %v24443_v31, 0.0  ;;  %vm28600_vm2 = vcmp.ge.f32.partialorder %v24445_v25, 0.0  ;;  %v7487_v32 = vmul.f32 0.2, %v7423_v54  ;;  %v24597_v50 = vpack.i.bf16 %v24570_v40, %v24567_v56 }
 0x7e8   : > { %v24588_v39 = vsel %vm28598_vm1, %v24443_v31, %v7472_v22  ;;  %v24593_v63 = vsel %vm28600_vm2, %v24445_v25, %v7473_v8  ;;  %v24600_v43 = vsel %vm7452_vm6, %v7420_v58, %v7484_v14  ;;  %v24603_v3 = vsel %vm7453_vm15, %v7421_v48, %v7485_v17 }
 0x7e9   : > { %28599 = vst [vmem:[#allocation17_spill] sm:$0xff] %v24588_v39  ;;  %28601 = vst [vmem:[#allocation23_spill] sm:$0xff] %v24600_v43  ;;  %v7479_v27 = vmul.f32 0.2, %v24488_v5  ;;  %vm7454_vm8 = vcmp.ge.f32.partialorder %v24500_v44, 0.0  ;;  %vm7455_vm5 = vcmp.ge.f32.partialorder %v7423_v54, 0.0  ;;  %v24609_v25 = vpack.i.bf16 %v24579_v57, %v24577_v37  ;;  %18665 = vrot.lane.b32.xlu1 %v24597_v50, %s19833_s26 }
 0x7ea   : > { %28602 = vst [vmem:[#allocation20_spill] sm:$0xff] %v24603_v3  ;;  %vm7445_vm10 = vcmp.ge.f32.partialorder %v24480_v52, 0.0  ;;  %vm7446_vm1 = vcmp.ge.f32.partialorder %v24482_v38, 0.0  ;;  %vm7447_vm2 = vcmp.ge.f32.partialorder %v24488_v5, 0.0  ;;  %v24618_v31 = vpack.i.bf16 %v24593_v63, %v24588_v39 }
 0x7eb   : > { %18660 = vrot.lane.b32.xlu0 %v24609_v25, %s19833_s26  ;;  %v24624_v22 = vpack.i.bf16 %v24603_v3, %v24600_v43  ;;  %vm28603_vm6 = vcmp.ge.f32.partialorder %v24447_v60, 0.0  ;;  %vm28605_vm15 = vcmp.ge.f32.partialorder %v24463_v51, 0.0  ;;  %v24639_v48 = vsel %vm7454_vm8, %v24500_v44, %v7486_v28 }
 0x7ec   : > { %v24630_v8 = vsel %vm28603_vm6, %v24447_v60, %v24493_v1  ;;  %v24636_v58 = vsel %vm28605_vm15, %v24463_v51, %v24498_v23  ;;  %28607 = vst [vmem:[#allocation24_spill] sm:$0xff] %v24639_v48  ;;  %v24641_v0 = vsel %vm7455_vm5, %v7423_v54, %v7487_v32  ;;  %vm28609_vm11 = vcmp.ge.f32.partialorder %v24478_v45, 0.0 }
 0x7ed   : > { %28604 = vst [vmem:[#allocation22_spill] sm:$0xff] %v24630_v8  ;;  %28606 = vst [vmem:[#allocation27_spill] sm:$0xff] %v24636_v58  ;;  %v24646_v14 = vsel %vm28609_vm11, %v24478_v45, %v7476_v13  ;;  %v24649_v17 = vsel %vm7445_vm10, %v24480_v52, %v7477_v20  ;;  %v24652_v60 = vsel %vm7446_vm1, %v24482_v38, %v7478_v36  ;;  %18670 = vrot.lane.b32.xlu1 %v24618_v31, %s19833_s26  ;;  %vm28619_vm11 = vcmask 261120  }
 0x7ee   : > { %28608 = vst [vmem:[#allocation26_spill] sm:$0xff] %v24641_v0  ;;  %28610 = vst [vmem:[#allocation28_spill] sm:$0xff] %v24646_v14  ;;  %v24655_v1 = vsel %vm7447_vm2, %v24488_v5, %v7479_v27  ;;  %v24663_v51 = vpack.i.bf16 %v24636_v58, %v24630_v8  ;;  %v24667_v45 = vpack.i.bf16 %v24641_v0, %v24639_v48 }
 0x7ef   : > { %28611 = vst [vmem:[#allocation30_spill] sm:$0xff] %v24649_v17  ;;  %28612 = vst [vmem:[#allocation31_spill] sm:$0xff] %v24652_v60  ;;  %18685 = vrot.lane.b32.xlu0 %v24471_v62, %s19834_s8  ;;  %v24671_v52 = vpack.i.bf16 %v24649_v17, %v24646_v14  ;;  %v24675_v38 = vpack.i.bf16 %v24655_v1, %v24652_v60  ;;  %v24685_v5 = vpack.i.bf16 %v24383_v2, %v24389_v6 }
 0x7f0   : > { %28613 = vst [vmem:[#allocation34_spill] sm:$0xff] %v24655_v1  ;;  %v24689_v23 = vpack.i.bf16 %v24538_v18, %v24459_v34  ;;  %v24695_v44 = vpack.i.bf16 %v24523_v47, %v24545_v59  ;;  %v24699_v54 = vpack.i.bf16 %v24387_v30, %v24457_v11  ;;  %v24703_v13 = vpack.i.bf16 %v24600_v43, %v24570_v40  ;;  %v18611_v11 = vpop.permute.xlu0 %18610  ;;  %vm28620_vm8 = vmmov %vm28619_vm11 }
 0x7f1   : > { %18675 = vrot.lane.b32.xlu1 %v24624_v22, %s19833_s26  ;;  %v24707_v20 = vpack.i.bf16 %v24452_v7, %v24385_v16  ;;  %v24711_v36 = vpack.i.bf16 %v24507_v55, %v24455_v4  ;;  %v24715_v28 = vpack.i.bf16 %v24567_v56, %v24579_v57  ;;  %v24719_v32 = vpack.i.bf16 %v24550_v33, %v24527_v19  ;;  %vm28621_vm5 = vmmov %vm28620_vm8 }
 0x7f2   : > { %v24723_v27 = vpack.i.bf16 %v24630_v8, %v24593_v63  ;;  %v24727_v9 = vpack.i.bf16 %v24577_v37, %v24588_v39  ;;  %v24733_v10 = vpack.i.bf16 %v24639_v48, %v24603_v3  ;;  %v24737_v41 = vpack.i.bf16 %v24646_v14, %v24636_v58  ;;  %vm28622_vm10 = vmmov %vm28621_vm5 }
 0x7f3   : > { %18695 = vrot.lane.b32.xlu0 %v24663_v51, %s19833_s26  ;;  %v24743_v42 = vpack.i.bf16 %v24652_v60, %v24649_v17  ;;  %v18612_v60 = vunpack.i.l.bf16 %v18611_v11  ;;  %vm28623_vm1 = vmmov %vm28621_vm5 }
 0x7f4   : > { %28614 = vst [vmem:[#allocation33_spill] sm:$0xff] %v24723_v27  ;;  %28615 = vst [vmem:[#allocation35_spill] sm:$0xff] %v24727_v9  ;;  %v24847_v9 = vpop.permute.xlu1 %18615  ;;  %v18613_v27 = vunpack.i.h.bf16 %v18611_v11 }
 0x7f5   : > { %18680 = vrot.lane.b32.xlu1 %v24667_v45, %s19833_s26  ;;  %28616 = vst [vmem:[#allocation39_spill] sm:$0xff] %v24733_v10  ;;  %28617 = vst [vmem:[#allocation42_spill] sm:$0xff] %v24737_v41 }
 0x7f6   : > { %28618 = vst [vmem:[#allocation44_spill] sm:$0xff] %v24743_v42  ;;  %vm28624_vm2 = vmmov %vm28623_vm1 }
 0x7f7   : > { %18700 = vrot.lane.b32.xlu0 %v28233_v46, %s19834_s8  ;;  %vm28625_vm6 = vmmov %vm28623_vm1 }
 0x7f8   : > { %vm28626_vm15 = vmmov %vm28623_vm1 }
 0x7f9   : > { %18690 = vrot.lane.b32.xlu1 %v24402_v26, %s19834_s8 }
 0x7fb   : > { %18710 = vrot.lane.b32.xlu0 %v24398_v35, %s19834_s8 }
 0x7fd   : > { %18705 = vrot.lane.b32.xlu1 %v24560_v61, %s19834_s8 }
 0x7ff   : > { %18715 = vrot.lane.b32.xlu0 %v24671_v52, %s19833_s26 }
 0x801   : > { %18730 = vrot.lane.b32.xlu1 %v28233_v46, %s19834_s8 }
 0x803   : > { %18720 = vrot.lane.b32.xlu0 %v24675_v38, %s19833_s26 }
 0x805   : > { %18735 = vrot.lane.b32.xlu1 %v24597_v50, %s19834_s8 }
 0x807   : > { %18725 = vrot.lane.b32.xlu0 %v24609_v25, %s19834_s8 }
 0x809   : > { %18745 = vrot.lane.b32.xlu1 %v24467_v12, %s19834_s8 }
 0x80b   : > { %18740 = vrot.lane.b32.xlu0 %v24533_v49, %s19834_s8 }
 0x80d   : > { %18755 = vrot.lane.b32.xlu1 %v24618_v31, %s19834_s8 }
 0x80f   : > { %18750 = vrot.lane.b32.xlu0 %v24564_v29, %s19834_s8 }
 0x811   : > { %18760 = vrot.lane.b32.xlu1 %v24519_v21, %s19834_s8 }
 0x813   : > { %18775 = vrot.lane.b32.xlu0 %v24663_v51, %s19834_s8 }
 0x815   : > { %18765 = vrot.lane.b32.xlu1 %v24624_v22, %s19834_s8 }
 0x817   : > { %18780 = vrot.lane.b32.xlu0 %v24471_v62, %s19835_s9 }
 0x819   : > { %18770 = vrot.lane.b32.xlu1 %v24667_v45, %s19834_s8 }
 0x81b   : > { %18790 = vrot.lane.b32.xlu0 %v28233_v46, %s19835_s9 }
 0x81d   : > { %18785 = vrot.lane.b32.xlu1 %v24402_v26, %s19835_s9 }
 0x81f   : > { %18800 = vrot.lane.b32.xlu0 %v24671_v52, %s19834_s8 }
 0x821   : > { %18795 = vrot.lane.b32.xlu1 %v24560_v61, %s19835_s9 }
 0x823   : > { %18805 = vrot.lane.b32.xlu0 %v24675_v38, %s19834_s8 }
 0x825   : > { %18820 = vrot.lane.b32.xlu1 %v28233_v46, %s19835_s9 }
 0x827   : > { %18810 = vrot.lane.b32.xlu0 %v24398_v35, %s19835_s9 }
 0x829   : > { %18825 = vrot.lane.b32.xlu1 %v24597_v50, %s19835_s9 }
 0x82b   : > { %18815 = vrot.lane.b32.xlu0 %v24609_v25, %s19835_s9 }
 0x82d   : > { %18835 = vrot.lane.b32.xlu1 %v24618_v31, %s19835_s9 }
 0x82f   : > { %18830 = vrot.lane.b32.xlu0 %v24533_v49, %s19835_s9 }
 0x831   : > { %18840 = vrot.lane.b32.xlu1 %v24467_v12, %s19835_s9 }
 0x833   : > { %18845 = vrot.lane.b32.xlu0 %v24663_v51, %s19835_s9 }
 0x835   : > { %18855 = vrot.lane.b32.xlu1 %v24519_v21, %s19835_s9 }
 0x837   : > { %18850 = vrot.lane.b32.xlu0 %v24564_v29, %s19835_s9 }
 0x839   : > { %18860 = vrot.lane.b32.xlu1 %v24624_v22, %s19835_s9 }
 0x83b   : > { %18870 = vrot.lane.b32.xlu0 %v24471_v62, %s19836_s18 }
 0x83d   : > { %18865 = vrot.lane.b32.xlu1 %v24667_v45, %s19835_s9 }
 0x83f   : > { %18880 = vrot.lane.b32.xlu0 %v24671_v52, %s19835_s9 }
 0x841   : > { %18875 = vrot.lane.b32.xlu1 %v24402_v26, %s19836_s18 }
 0x843   : > { %18885 = vrot.lane.b32.xlu0 %v24675_v38, %s19835_s9  ;;  %v24853_v42 = vpop.permute.xlu0 %18625  ;;  %v18621_v62 = vpop.permute.xlu1 %18620 }
 0x844   : > { %v18623_v26 = vunpack.i.h.bf16 %v18621_v62  ;;  %v18622_v10 = vunpack.i.l.bf16 %v18621_v62 }
 0x845   : > { %18895 = vrot.lane.b32.xlu1 %v24560_v61, %s19836_s18 }
 0x846   : > { %v7889_v55 = vsel %vm28619_vm11, %v18613_v27, %v18622_v10  ;;  %v7890_v62 = vsel %vm28622_vm10, %v18622_v10, %v18623_v26  ;;  %v18627_v10 = vunpack.i.l.bf16 %v24853_v42  ;;  %vm28627_vm11 = vmmov %vm28623_vm1 }
 0x847   : > { %18890 = vrot.lane.b32.xlu0 %v28233_v46, %s19836_s18  ;;  %vm28630_vm10 = vmmov %vm28623_vm1 }
 0x849   : > { %18910 = vrot.lane.b32.xlu1 %v28233_v46, %s19836_s18 }
 0x84b   : > { %18900 = vrot.lane.b32.xlu0 %v24398_v35, %s19836_s18 }
 0x84c   : > { %v18641_v41 = vpop.permute.xlu0 %18640  ;;  %v24863_v61 = vpop.permute.xlu1 %18630 }
 0x84d   : > { %v18643_v48 = vunpack.i.h.bf16 %v18641_v41  ;;  %v18642_v33 = vunpack.i.l.bf16 %v18641_v41  ;;  %18915 = vrot.lane.b32.xlu1 %v24618_v31, %s19836_s18 }
 0x84f   : > { %18905 = vrot.lane.b32.xlu0 %v24609_v25, %s19836_s18  ;;  %v7881_v14 = vsel %vm28620_vm8, %v18612_v60, %v18642_v33  ;;  %v7882_v35 = vsel %vm28621_vm5, %v18642_v33, %v18643_v48  ;;  %v28132_v33 = vunpack.i.h.bf16 %v24853_v42  ;;  %vm28628_vm8 = vmmov %vm28623_vm1 }
 0x850   : > { %v16070_v43 = vpack.c.bf16 %v7890_v62, %v7882_v35  ;;  %v16072_v11 = vpack.c.bf16 %v7889_v55, %v7881_v14  ;;  %v7891_v14 = vsel %vm28623_vm1, %v18623_v26, %v18627_v10  ;;  %vm28629_vm5 = vmmov %vm28623_vm1 }
 0x851   : > { %18920 = vrot.lane.b32.xlu1 %v24597_v50, %s19836_s18 }
 0x852   : > { %16071 = vmatprep.subr.bf16.mxu0 %v16070_v43 }
 0x853   : > { %18925 = vrot.lane.b32.xlu0 %v24663_v51, %s19836_s18  ;;  %16073 = vmatpush1.bf16.msra.mxu0 %v16072_v11  ;;  %v24875_v41 = vpop.permute.xlu1 %18635  ;;  %v18618_v11 = vunpack.i.h.bf16 %v24847_v9 }
 0x854   : > { %v24877_v31 = vpop.permute.xlu0 %18650  ;;  %v18638_v17 = vunpack.i.h.bf16 %v24875_v41 }
 0x855   : > { %18935 = vrot.lane.b32.xlu1 %v24467_v12, %s19836_s18  ;;  %v18652_v26 = vunpack.i.l.bf16 %v24877_v31 }
 0x857   : > { %18930 = vrot.lane.b32.xlu0 %v24533_v49, %s19836_s18  ;;  %v18646_v55 = vpop.permute.xlu1 %18645  ;;  %v7892_v49 = vsel %vm28626_vm15, %v18627_v10, %v28132_v33  ;;  %v18617_v10 = vunpack.i.l.bf16 %v24847_v9  ;;  %vm28633_vm15 = vmmov %vm28623_vm1 }
 0x858   : > { %v24885_v50 = vpop.permute.xlu0 %18655  ;;  %v18648_v43 = vunpack.i.h.bf16 %v18646_v55  ;;  %v18647_v25 = vunpack.i.l.bf16 %v18646_v55 }
 0x859   : > { %18945 = vrot.lane.b32.xlu1 %v24519_v21, %s19836_s18  ;;  %v18653_v21 = vunpack.i.h.bf16 %v24877_v31 }
 0x85a   : > { %v7883_v60 = vsel %vm28624_vm2, %v18643_v48, %v18647_v25  ;;  %v7884_v12 = vsel %vm28625_vm6, %v18647_v25, %v18648_v43  ;;  %v18633_v25 = vunpack.i.h.bf16 %v24863_v61  ;;  %vm28631_vm2 = vmmov %vm28623_vm1 }
 0x85b   : > { %18940 = vrot.lane.b32.xlu0 %v24564_v29, %s19836_s18  ;;  %v24897_v51 = vpop.permute.xlu1 %18665  ;;  %v16078_v27 = vpack.c.bf16 %v7892_v49, %v7884_v12  ;;  %v16080_v35 = vpack.c.bf16 %v7891_v14, %v7883_v60  ;;  %v18632_v14 = vunpack.i.l.bf16 %v24863_v61  ;;  %v18658_v12 = vunpack.i.h.bf16 %v24885_v50  ;;  %vm28632_vm6 = vmmov %vm28623_vm1 }
 0x85c   : > { %v18657_v49 = vunpack.i.l.bf16 %v24885_v50  ;;  %v18667_v50 = vunpack.i.l.bf16 %v24897_v51 }
 0x85d   : > { %v18661_v62 = vpop.permute.xlu0 %18660  ;;  %18950 = vrot.lane.b32.xlu1 %v24624_v22, %s19836_s18  ;;  %16079 = vmatprep.subr.bf16.mxu1 %v16078_v27 }
 0x85e   : > { %v18663_v29 = vunpack.i.h.bf16 %v18661_v62  ;;  %v18662_v48 = vunpack.i.l.bf16 %v18661_v62  ;;  %16081 = vmatpush1.bf16.msra.mxu1 %v16080_v35 }
 0x85f   : > { %18955 = vrot.lane.b32.xlu0 %v24671_v52, %s19836_s18  ;;  %v18671_v55 = vpop.permute.xlu1 %18670  ;;  %v7886_v52 = vsel %vm28627_vm11, %v18652_v26, %v18653_v21  ;;  %vm28634_vm11 = vmmov %vm28623_vm1 }
 0x860   : > { %v18673_v60 = vunpack.i.h.bf16 %v18671_v55  ;;  %v18672_v22 = vunpack.i.l.bf16 %v18671_v55  ;;  %v7905_v9 = vsel %vm28628_vm8, %v18618_v11, %v18662_v48  ;;  %v7906_v35 = vsel %vm28623_vm1, %v18662_v48, %v18663_v29  ;;  %vm28635_vm8 = vmmov %vm28623_vm1 }
 0x861   : > { %v24909_v31 = vpop.permute.xlu0 %18685  ;;  %18965 = vrot.lane.b32.xlu1 %v24667_v45, %s19836_s18 }
 0x862   : > { %v7897_v27 = vsel %vm28629_vm5, %v18617_v10, %v18672_v22  ;;  %v7898_v61 = vsel %vm28630_vm10, %v18672_v22, %v18673_v60  ;;  %v7894_v10 = vsel %vm28631_vm2, %v18632_v14, %v18633_v25  ;;  %vm28637_vm5 = vmmov %vm28623_vm1 }
 0x863   : > { %18960 = vrot.lane.b32.xlu0 %v24675_v38, %s19836_s18  ;;  %v24924_v55 = vpop.permute.xlu1 %18675  ;;  %v16074_v45 = vpack.c.bf16 %v7906_v35, %v7898_v61  ;;  %v16076_v33 = vpack.c.bf16 %v7905_v9, %v7897_v27  ;;  %v18637_v38 = vunpack.i.l.bf16 %v24875_v41  ;;  %v16086_v62 = vpack.c.bf16 %v7894_v10, %v7886_v52  ;;  %v24941_v9 = vld [vmem:[%s27920_s2 + $0x20] sm:$0xff]  ;;  %vm28639_vm10 = vmmov %vm28623_vm1 }
 0x864   : > { %v7885_v61 = vsel %vm28632_vm6, %v18648_v43, %v18652_v26  ;;  %v7888_v41 = vsel %vm28633_vm15, %v18657_v49, %v18658_v12  ;;  %v7907_v27 = vsel %vm28634_vm11, %v18663_v29, %v18667_v50  ;;  %vm28641_vm2 = vmmov %vm28623_vm1 }
 0x865   : > { %v24927_v11 = vpop.permute.xlu0 %18695  ;;  %18975 = vrot.lane.b32.xlu1 %v24685_v5, %s19837_s10  ;;  %16075 = vmatprep.subr.bf16.mxu0 %v16074_v45  ;;  %v28640_v45 = vunpack.i.h.bf16 %v24853_v42  ;;  %vm28642_vm6 = vmmov %vm28623_vm1 }
 0x866   : > { %v18697_v48 = vunpack.i.l.bf16 %v24927_v11  ;;  %16077 = vmatpush1.bf16.msra.mxu0 %v16076_v33  ;;  %v28636_v43 = vunpack.i.h.bf16 %v24927_v11  ;;  %v28638_v33 = vunpack.i.h.bf16 %v24897_v51  ;;  %vm28643_vm15 = vmmov %vm28623_vm1 }
 0x867   : > { %18970 = vrot.lane.b32.xlu0 %v24689_v23, %s19837_s10  ;;  %v24946_v22 = vpop.permute.xlu1 %18680  ;;  %16087 = vmatprep.subr.bf16.mxu0 %v16086_v62  ;;  %v7893_v10 = vsel %vm28623_vm1, %v28640_v45, %v18632_v14  ;;  %v7896_v62 = vsel %vm28642_vm6, %v18637_v38, %v18638_v17  ;;  %v24970_v14 = vld [vmem:[%s27920_s2 + $0x28] sm:$0xff]  ;;  %vm28644_vm11 = vmmov %vm28623_vm1 }
 0x868   : > { %v7899_v35 = vsel %vm28635_vm8, %v18673_v60, %v18697_v48  ;;  %v7900_v26 = vsel %vm28637_vm5, %v18697_v48, %v28636_v43  ;;  %v7908_v52 = vsel %vm28639_vm10, %v18667_v50, %v28638_v33  ;;  %v16088_v60 = vpack.c.bf16 %v7893_v10, %v7885_v61  ;;  %vm28645_vm8 = vmmov %vm28623_vm1 }
 0x869   : > { %v24957_v12 = vpop.permute.xlu0 %18700  ;;  %v16082_v29 = vpack.c.bf16 %v7908_v52, %v7900_v26  ;;  %v16084_v3 = vpack.c.bf16 %v7907_v27, %v7899_v35  ;;  %18985 = vrot.lane.b32.xlu1 %v24695_v44, %s19837_s10  ;;  %14754 = vmatmul.mubr.msk.f32.vlgmr.msra.gmra.mrb[20].mxu0 %vm28641_vm2, %v24941_v9  ;;  %v7887_v48 = vsel %vm28643_vm15, %v18653_v21, %v18657_v49  ;;  %v28135_v21 = vunpack.i.h.bf16 %v24909_v31  ;;  %vm28646_vm5 = vmmov %vm28623_vm1 }
 0x86a   : > { %v16094_v42 = vpack.c.bf16 %v7896_v62, %v7888_v41  ;;  %16089 = vmatpush1.bf16.msra.mxu0 %v16088_v60  ;;  %v7895_v61 = vsel %vm28644_vm11, %v18633_v25, %v18637_v38  ;;  %8027 = vmatprep.mubr.f32.mxu0 %v28233_v46  ;;  %v18678_v49 = vunpack.i.h.bf16 %v24924_v55  ;;  %v18677_v25 = vunpack.i.l.bf16 %v24924_v55  ;;  %v24993_v38 = vld [vmem:[%s27920_s2 + $0x30] sm:$0xff]  ;;  %vm28647_vm10 = vmmov %vm28623_vm1 }
 0x86b   : > { %18980 = vrot.lane.b32.xlu0 %v24699_v54, %s19837_s10  ;;  %16083 = vmatprep.subr.bf16.mxu1 %v16082_v29  ;;  %v24972_v50 = vpop.permute.xlu1 %18690  ;;  %v16096_v17 = vpack.c.bf16 %v7895_v61, %v7887_v48  ;;  %v25003_v26 = vpack.i.bf16 %v28233_v46, %v24511_v53  ;;  %v18682_v33 = vunpack.i.l.bf16 %v24946_v22  ;;  %v25012_v10 = vpack.i.bf16 %v28233_v46, %v24556_v24  ;;  %vm28650_vm6 = vmmov %vm28641_vm2 }
 0x86c   : > { %16085 = vmatpush1.bf16.msra.mxu1 %v16084_v3  ;;  %v28136_v3 = vunpack.i.l.bf16 %v24909_v31  ;;  %v28140_v41 = vunpack.i.h.bf16 %v24972_v50  ;;  %v18692_v35 = vunpack.i.l.bf16 %v24972_v50  ;;  %vm28648_vm1 = vcmask 269312   ;;  %vm28651_vm15 = vmmov %vm28641_vm2 }
 0x86d   : > { %v24975_v27 = vpop.permute.xlu0 %18710  ;;  %16095 = vmatprep.subr.bf16.mxu1 %v16094_v42  ;;  %19000 = vrot.lane.b32.xlu1 %v24703_v13, %s19837_s10  ;;  %v28649_v60 = vunpack.i.h.bf16 %v24897_v51  ;;  %v18683_v48 = vunpack.i.h.bf16 %v24946_v22  ;;  %v25030_v42 = vld [vmem:[%s27920_s2 + $0x38] sm:$0xff]  ;;  %v7910_v61 = vsel %vm28651_vm15, %v18677_v25, %v18678_v49  ;;  %vm28652_vm11 = vmmov %vm28648_vm1  ;;  %v28653_v22 = vunpack.i.h.bf16 %v24927_v11 }
 0x86e   : > { %14755 = vmatmul.mubr.msk.f32.gmra.mrb[22].mxu0 %vm28645_vm8, %v24970_v14  ;;  %v7709_v29 = vsel %vm28648_vm1, %v28136_v3, %v28135_v21  ;;  %v7717_v51 = vsel %vm28652_vm11, %v18692_v35, %v28140_v41  ;;  %vm28654_vm8 = vmmov %vm28641_vm2  ;;  %v18702_v41 = vunpack.i.l.bf16 %v24957_v12 }
 0x86f   : > { %18990 = vrot.lane.b32.xlu0 %v24707_v20, %s19837_s10  ;;  %14758 = vmatmul.mubr.msk.f32.vlgmr.msra.gmra.mrb[20].mxu1 %vm28646_vm5, %v24941_v9  ;;  %v24997_v43 = vpop.permute.xlu1 %18705  ;;  %v7909_v62 = vsel %vm28641_vm2, %v28649_v60, %v18677_v25  ;;  %vm28655_vm5 = vmmov %vm28641_vm2  ;;  %v18712_v25 = vunpack.i.l.bf16 %v24975_v27 }
 0x870   : > { %16097 = vmatpush1.bf16.msra.mxu1 %v16096_v17  ;;  %8033 = vmatprep.mubr.f32.mxu0 %v28233_v46  ;;  %v18703_v17 = vunpack.i.h.bf16 %v24957_v12  ;;  %v18707_v3 = vunpack.i.l.bf16 %v24997_v43  ;;  %vm28657_vm1 = vmmov %vm28641_vm2 }
 0x871   : > { %v18716_v55 = vpop.permute.xlu0 %18715  ;;  %8116 = vmatprep.mubr.f32.mxu1 %v28233_v46  ;;  %19010 = vrot.lane.b32.xlu1 %v24711_v36, %s19837_s10  ;;  %vm28660_vm15 = vmmov %vm28657_vm1 }
 0x872   : > { %v18718_v52 = vunpack.i.h.bf16 %v18716_v55  ;;  %v18717_v45 = vunpack.i.l.bf16 %v18716_v55  ;;  %14756 = vmatmul.mubr.msk.f32.gmra.mrb[24].mxu0 %vm28647_vm10, %v24993_v38  ;;  %vm28656_vm10 = vmmov %vm28641_vm2 }
 0x873   : > { %18995 = vrot.lane.b32.xlu0 %v24715_v28, %s19837_s10  ;;  %14759 = vmatmul.mubr.msk.f32.gmra.mrb[22].mxu1 %vm28650_vm6, %v24970_v14  ;;  %v25040_v60 = vpop.permute.xlu1 %18730  ;;  %v7911_v11 = vsel %vm28656_vm10, %v18678_v49, %v18682_v33  ;;  %vm28658_vm2 = vmmov %vm28652_vm11  ;;  %v16102_v49 = vpack.c.bf16 %v7717_v51, %v7709_v29  ;;  %v28670_v51 = vunpack.i.h.bf16 %v24909_v31 }
 0x874   : > { %v7901_v55 = vsel %vm28654_vm8, %v28653_v22, %v18717_v45  ;;  %8039 = vmatprep.mubr.f32.mxu0 %v28233_v46  ;;  %8122 = vmatprep.mubr.f32.mxu1 %v28233_v46  ;;  %v7902_v21 = vsel %vm28655_vm5, %v18717_v45, %v18718_v52  ;;  %v28143_v45 = vunpack.i.h.bf16 %v24975_v27  ;;  %v7716_v8 = vsel %vm28658_vm2, %v18703_v17, %v18692_v35  ;;  %vm28659_vm6 = vmmov %vm28657_vm1 }
 0x875   : > { %v18721_v47 = vpop.permute.xlu0 %18720  ;;  %v16090_v7 = vpack.c.bf16 %v7910_v61, %v7902_v21  ;;  %v16092_v24 = vpack.c.bf16 %v7909_v62, %v7901_v55  ;;  %19020 = vrot.lane.b32.xlu1 %v25003_v26, %s19837_s10  ;;  %vm28661_vm11 = vmmov %vm28657_vm1  ;;  %v28663_v35 = vunpack.i.h.bf16 %v24997_v43 }
 0x876   : > { %v18723_v22 = vunpack.i.h.bf16 %v18721_v47  ;;  %v18722_v53 = vunpack.i.l.bf16 %v18721_v47  ;;  %14757 = vmatmul.mubr.msk.f32.gmra.mrb[26].mxu0 %vm28657_vm1, %v25030_v42  ;;  %v7912_v47 = vsel %vm28660_vm15, %v18682_v33, %v18683_v48  ;;  %vm28662_vm8 = vmmov %vm28657_vm1 }
 0x877   : > { %19005 = vrot.lane.b32.xlu0 %v24719_v32, %s19837_s10  ;;  %14760 = vmatmul.mubr.msk.f32.gmra.mrb[24].mxu1 %vm28659_vm6, %v24993_v38  ;;  %v25062_v21 = vpop.permute.xlu1 %18735  ;;  %vm28664_vm5 = vmmov %vm28658_vm2 }
 0x878   : > { %v7903_v12 = vsel %vm28661_vm11, %v18718_v52, %v18722_v53  ;;  %16091 = vmatprep.subr.bf16.mxu0 %v16090_v7  ;;  %8128 = vmatprep.mubr.f32.mxu1 %v28233_v46  ;;  %v7904_v62 = vsel %vm28662_vm8, %v18722_v53, %v18723_v22  ;;  %v7711_v61 = vsel %vm28664_vm5, %v18707_v3, %v28663_v35  ;;  %v28665_v7 = vunpack.i.l.bf16 %v24909_v31  ;;  %vm28666_vm10 = vmmov %vm28658_vm2  ;;  %v28667_v53 = vld [vmem:[#allocation33_spill] sm:$0xff]  ;;  %v28673_v22 = vld [vmem:[#allocation6_spill] sm:$0xff] }
 0x879   : > { %16093 = vmatpush1.bf16.msra.mxu0 %v16092_v24  ;;  %v25069_v17 = vpop.permute.xlu0 %18725  ;;  %8199 = vmatprep.mubr.f32.mxu0 %v28233_v46  ;;  %v16098_v33 = vpack.c.bf16 %v7912_v47, %v7904_v62  ;;  %v16100_v48 = vpack.c.bf16 %v7911_v11, %v7903_v12  ;;  %vm28668_vm1 = vmmov %vm28658_vm2  ;;  %vm28674_vm11 = vnez %v28673_v22  ;;  %v28675_v47 = vunpack.i.h.bf16 %v24972_v50  ;;  %v28677_v31 = vld [vmem:[#allocation7_spill] sm:$0xff] }
 0x87a   : > { %v7708_v52 = vsel %vm28666_vm10, %v18702_v41, %v28665_v7  ;;  %16104 = vmatprep.subr.msk.bf16.mxu0 %vm20427_vm4, %v16102_v49  ;;  %19025 = vrot.lane.b32.xlu1 %v28667_v53, %s19837_s10  ;;  %v7719_v24 = vsel %vm28668_vm1, %v18712_v25, %v28143_v45  ;;  %vm28669_vm2 = vmmov %vm28659_vm6  ;;  %vm28678_vm5 = vnez %v28677_v31  ;;  %v18728_v49 = vunpack.i.h.bf16 %v25069_v17  ;;  %v28679_v35 = vld [vmem:[#allocation35_spill] sm:$0xff] }
 0x87b   : > { %v16105_v29 = vpack.c.bf16 %v7716_v8, %v7708_v52  ;;  %19015 = vrot.lane.b32.xlu0 %v25012_v10, %s19837_s10  ;;  %14761 = vmatmul.mubr.msk.f32.gmra.mrb[26].mxu1 %vm28669_vm2, %v25030_v42  ;;  %vm28671_vm6 = vmmov %vm28668_vm1  ;;  %v25091_v55 = vpop.permute.xlu1 %18745  ;;  %v16114_v11 = vpack.c.bf16 %v7719_v24, %v7711_v61  ;;  %v18727_v62 = vunpack.i.l.bf16 %v25069_v17  ;;  %v18732_v7 = vunpack.i.l.bf16 %v25040_v60 }
 0x87c   : > { %v7710_v41 = vsel %vm28671_vm6, %v28670_v51, %v18707_v3  ;;  %vm28672_vm15 = vmmov %vm28669_vm2  ;;  %16099 = vmatprep.subr.bf16.mxu1 %v16098_v33  ;;  %8288 = vmatprep.mubr.f32.mxu1 %v28233_v46  ;;  %v18747_v33 = vunpack.i.l.bf16 %v25091_v55 }
 0x87d   : > { %14762 = vmatmul.mubr.msk.f32.vlgmr.msra.gmra.mrb[28].mxu0 %vm28672_vm15, %v24941_v9  ;;  %16101 = vmatpush1.bf16.msra.mxu1 %v16100_v48  ;;  %v25095_v8 = vpop.permute.xlu0 %18740  ;;  %vm28676_vm8 = vmmov %vm28668_vm1  ;;  %v18733_v48 = vunpack.i.h.bf16 %v25040_v60  ;;  %v18737_v60 = vunpack.i.l.bf16 %v25062_v21 }
 0x87e   : > { %16107 = vmatpush1.bf16.msk.msra.mxu0 %vm28674_vm11, %v16105_v29  ;;  %v7718_v12 = vsel %vm28676_vm8, %v28675_v47, %v18712_v25  ;;  %16116 = vmatprep.subr.msk.bf16.mxu1 %vm28678_vm5, %v16114_v11  ;;  %v28145_v61 = vunpack.i.h.bf16 %v25095_v8  ;;  %v18742_v50 = vunpack.i.l.bf16 %v25095_v8  ;;  %v28146_v25 = vunpack.i.h.bf16 %v25091_v55  ;;  %vm28680_vm10 = vmmov %vm28669_vm2 }
 0x87f   : > { %8205 = vmatprep.mubr.f32.mxu0 %v28233_v46  ;;  %v16117_v3 = vpack.c.bf16 %v7718_v12, %v7710_v41  ;;  %19030 = vrot.lane.b32.xlu1 %v28679_v35, %s19837_s10  ;;  %v18756_v17 = vpop.permute.xlu1 %18755  ;;  %vm28681_vm1 = vmmov %vm28669_vm2  ;;  %v28682_v41 = vld [vmem:[#allocation8_spill] sm:$0xff]  ;;  %v7732_v11 = vsel %vm28671_vm6, %v18733_v48, %v18727_v62  ;;  %v28686_v12 = vld [vmem:[#allocation39_spill] sm:$0xff] }
 0x880   : > { %19045 = vrot.lane.b32.xlu0 %v24689_v23, %s19838_s20  ;;  %14766 = vmatmul.mubr.msk.f32.vlgmr.msra.gmra.mrb[28].mxu1 %vm28681_vm1, %v24941_v9  ;;  %v18758_v24 = vunpack.i.h.bf16 %v18756_v17  ;;  %v18757_v29 = vunpack.i.l.bf16 %v18756_v17  ;;  %vm28683_vm2 = vnez %v28682_v41  ;;  %vm28684_vm15 = vmmov %vm28671_vm6  ;;  %v28690_v48 = vld [vmem:[#allocation42_spill] sm:$0xff] }
 0x881   : > { %14763 = vmatmul.mubr.msk.f32.gmra.mrb[30].mxu0 %vm28680_vm10, %v24970_v14  ;;  %v25120_v52 = vpop.permute.xlu0 %18750  ;;  %16119 = vmatpush1.bf16.msk.msra.mxu1 %vm28683_vm2, %v16117_v3  ;;  %vm28685_vm8 = vmmov %vm28671_vm6 }
 0x882   : > { %8211 = vmatprep.mubr.f32.mxu0 %v28233_v46  ;;  %8294 = vmatprep.mubr.f32.mxu1 %v28233_v46  ;;  %v7724_v47 = vsel %vm28684_vm15, %v18732_v7, %v18757_v29  ;;  %v7725_v9 = vsel %vm28685_vm8, %v18757_v29, %v18758_v24  ;;  %vm28687_vm10 = vmmov %vm28671_vm6  ;;  %v18752_v51 = vunpack.i.l.bf16 %v25120_v52 }
 0x883   : > { %19035 = vrot.lane.b32.xlu1 %v28686_v12, %s19837_s10  ;;  %v7733_v17 = vsel %vm28687_vm10, %v18727_v62, %v18728_v49  ;;  %vm28688_vm1 = vmmov %vm28671_vm6  ;;  %vm28691_vm6 = vcmask 261120   ;;  %v18761_v7 = vpop.permute.xlu1 %18760  ;;  %v16111_v29 = vpack.c.bf16 %v7732_v11, %v7724_v47 }
 0x884   : > { %v7713_v45 = vsel %vm28688_vm1, %v18742_v50, %v28145_v61  ;;  %vm28689_vm3 = vmmov %vm28688_vm1  ;;  %19055 = vrot.lane.b32.xlu0 %v28690_v48, %s19837_s10  ;;  %v25151_v61 = vpack.i.bf16 %v28233_v46, %v24641_v0  ;;  %v18763_v58 = vunpack.i.h.bf16 %v18761_v7  ;;  %v18762_v40 = vunpack.i.l.bf16 %v18761_v7 }
 0x885   : > { %v7721_v3 = vsel %vm28689_vm3, %v18747_v33, %v28146_v25  ;;  %14764 = vmatmul.mubr.msk.f32.gmra.mrb[32].mxu0 %vm28691_vm6, %v24993_v38  ;;  %vm28692_vm15 = vmmov %vm28691_vm6  ;;  %v25146_v62 = vpop.permute.xlu0 %18775  ;;  %v16108_v25 = vpack.c.bf16 %v7733_v17, %v7725_v9  ;;  %v18753_v17 = vunpack.i.h.bf16 %v25120_v52  ;;  %v28700_v52 = vunpack.i.h.bf16 %v24975_v27 }
 0x886   : > { %14767 = vmatmul.mubr.msk.f32.gmra.mrb[30].mxu1 %vm28692_vm15, %v24970_v14  ;;  %8217 = vmatprep.mubr.f32.mxu0 %v28233_v46  ;;  %v18777_v56 = vunpack.i.l.bf16 %v25146_v62  ;;  %vm28693_vm3 = vmmov %vm28688_vm1  ;;  %v28694_v14 = vunpack.i.h.bf16 %v25062_v21  ;;  %v16126_v9 = vpack.c.bf16 %v7721_v3, %v7713_v45  ;;  %v28697_v0 = vunpack.i.h.bf16 %v25146_v62 }
 0x887   : > { %8300 = vmatprep.mubr.f32.mxu1 %v28233_v46  ;;  %v7734_v11 = vsel %vm28693_vm3, %v18728_v49, %v18737_v60  ;;  %vm28695_vm8 = vmmov %vm28688_vm1  ;;  %19040 = vrot.lane.b32.xlu1 %v25151_v61, %s19837_s10  ;;  %v28698_v45 = vunpack.i.h.bf16 %v24997_v43 }
 0x888   : > { %v7735_v47 = vsel %vm28695_vm8, %v18737_v60, %v28694_v14  ;;  %16110 = vmatprep.subr.msk.bf16.mxu0 %vm20427_vm4, %v16108_v25  ;;  %vm28696_vm10 = vmmov %vm28688_vm1  ;;  %v7727_v49 = vsel %vm28688_vm1, %v18777_v56, %v28697_v0  ;;  %19060 = vrot.lane.b32.xlu0 %v24699_v54, %s19838_s20  ;;  %v25174_v60 = vpop.permute.xlu1 %18765  ;;  %v25191_v0 = vld [vmem:[%s27920_s2] sm:$0xff]  ;;  %v28706_v14 = vunpack.i.h.bf16 %v25091_v55  ;;  %v28710_v55 = vunpack.i.h.bf16 %v25095_v8 }
 0x889   : > { %v7726_v7 = vsel %vm28696_vm10, %v18758_v24, %v18777_v56  ;;  %14765 = vmatmul.mubr.msk.f32.gmra.mrb[34].mxu0 %vm28691_vm6, %v25030_v42  ;;  %vm28699_vm15 = vmmov %vm28688_vm1  ;;  %v25186_v56 = vpop.permute.xlu0 %18780  ;;  %v16120_v43 = vpack.c.bf16 %v7735_v47, %v7727_v49  ;;  %v18767_v49 = vunpack.i.l.bf16 %v25174_v60 }
 0x88a   : > { %v7712_v25 = vsel %vm28699_vm15, %v28698_v45, %v18742_v50  ;;  %vm28701_vm3 = vmmov %vm28688_vm1  ;;  %16113 = vmatpush1.bf16.msk.msra.mxu0 %vm28674_vm11, %v16111_v29  ;;  %v16123_v3 = vpack.c.bf16 %v7734_v11, %v7726_v7  ;;  %8389 = vmatprep.mubr.f32.mxu0 %v28233_v46  ;;  %v18768_v7 = vunpack.i.h.bf16 %v25174_v60 }
 0x88b   : > { %v7720_v24 = vsel %vm28701_vm3, %v28700_v52, %v18747_v33  ;;  %vm28702_vm8 = vmmov %vm28691_vm6  ;;  %16128 = vmatprep.subr.msk.bf16.mxu0 %vm20760_vm13, %v16126_v9  ;;  %19050 = vrot.lane.b32.xlu1 %v24685_v5, %s19838_s20  ;;  %v7715_v33 = vsel %vm28688_vm1, %v18752_v51, %v18753_v17  ;;  %v28708_v9 = vld [vmem:[#allocation11_spill] sm:$0xff]  ;;  %v28709_v17 = vld [vmem:[#allocation13_spill] sm:$0xff] }
 0x88c   : > { %14768 = vmatmul.mubr.msk.f32.gmra.mrb[32].mxu1 %vm28702_vm8, %v24993_v38  ;;  %vm28703_vm10 = vmmov %vm28688_vm1  ;;  %v16129_v38 = vpack.c.bf16 %v7720_v24, %v7712_v25  ;;  %19070 = vrot.lane.b32.xlu0 %v24707_v20, %s19838_s20  ;;  %v28712_v52 = vld [vmem:[#allocation44_spill] sm:$0xff] }
 0x88d   : > { %v7723_v50 = vsel %vm28703_vm10, %v18762_v40, %v18763_v58  ;;  %8306 = vmatprep.mubr.f32.mxu1 %v28233_v46  ;;  %14778 = vmatmul.mubr.msk.f32.vlgmr.msra.gmra.mrb[20].mxu0 %vm28691_vm6, %v25191_v0  ;;  %v25205_v58 = vpop.permute.xlu1 %18770  ;;  %vm28705_vm15 = vmmov %vm28691_vm6  ;;  %v25211_v29 = vpop.permute.xlu0 %18790 }
 0x88e   : > { %16122 = vmatprep.subr.msk.bf16.mxu1 %vm28678_vm5, %v16120_v43  ;;  %v16138_v11 = vpack.c.bf16 %v7723_v50, %v7715_v33  ;;  %vm28707_vm3 = vmmov %vm28688_vm1  ;;  %16131 = vmatpush1.bf16.msk.msra.mxu0 %vm28544_vm7, %v16129_v38  ;;  %v25254_v50 = vld [vmem:[%s27920_s2 + $0x10] sm:$0xff]  ;;  %v18783_v38 = vunpack.i.h.bf16 %v25186_v56  ;;  %v18782_v33 = vunpack.i.l.bf16 %v25186_v56 }
 0x88f   : > { %v7722_v47 = vsel %vm28707_vm3, %v28706_v14, %v18762_v40  ;;  %16125 = vmatpush1.bf16.msk.msra.mxu1 %vm28683_vm2, %v16123_v3  ;;  %8395 = vmatprep.mubr.f32.mxu0 %v28233_v46  ;;  %vm28711_vm8 = vmmov %vm28688_vm1  ;;  %v25249_v3 = vpack.i.bf16 %v28233_v46, %v24655_v1  ;;  %v18772_v14 = vunpack.i.l.bf16 %v25205_v58 }
 0x890   : > { %14769 = vmatmul.mubr.msk.f32.gmra.mrb[34].mxu1 %vm28705_vm15, %v25030_v42  ;;  %v25223_v42 = vld [vmem:[%s27920_s2 + $0x8] sm:$0xff]  ;;  %16140 = vmatprep.subr.msk.bf16.mxu1 %vm28546_vm14, %v16138_v11  ;;  %v7714_v40 = vsel %vm28711_vm8, %v28710_v55, %v18752_v51  ;;  %vm28713_vm10 = vmmov %vm28691_vm6  ;;  %v18773_v11 = vunpack.i.h.bf16 %v25205_v58  ;;  %v28716_v55 = vunpack.i.h.bf16 %v25062_v21 }
 0x891   : > { %8478 = vmatprep.mubr.f32.mxu1 %v28233_v46  ;;  %19065 = vrot.lane.b32.xlu1 %v24695_v44, %s19838_s20  ;;  %v25236_v45 = vpop.permute.xlu1 %18785  ;;  %v16141_v25 = vpack.c.bf16 %v7722_v47, %v7714_v40  ;;  %v18801_v8 = vpop.permute.xlu0 %18800  ;;  %vm28714_vm1 = vmmov %vm28691_vm6  ;;  %v28715_v47 = vld [vmem:[#allocation15_spill] sm:$0xff] }
 0x892   : > { %19075 = vrot.lane.b32.xlu0 %v28712_v52, %s19837_s10  ;;  %14779 = vmatmul.mubr.msk.f32.gmra.mrb[22].mxu0 %vm28713_vm10, %v25223_v42  ;;  %v18788_v51 = vunpack.i.h.bf16 %v25236_v45  ;;  %v18787_v24 = vunpack.i.l.bf16 %v25236_v45  ;;  %v18803_v60 = vunpack.i.h.bf16 %v18801_v8  ;;  %v18802_v43 = vunpack.i.l.bf16 %v18801_v8  ;;  %vm28717_vm6 = vmmov %vm28707_vm3 }
 0x893   : > { %8401 = vmatprep.mubr.f32.mxu0 %v28233_v46  ;;  %v7736_v40 = vsel %vm28717_vm6, %v28716_v55, %v18767_v49  ;;  %vm28718_vm15 = vmmov %vm28707_vm3  ;;  %v28719_v8 = vunpack.i.h.bf16 %v25146_v62  ;;  %vm28721_vm10 = vcmask 252928  }
 0x894   : > { %14790 = vmatmul.mubr.msk.f32.vlgmr.msra.gmra.mrb[20].mxu1 %vm28714_vm1, %v25191_v0  ;;  %v7737_v45 = vsel %vm28718_vm15, %v18767_v49, %v18768_v7  ;;  %vm28720_vm8 = vmmov %vm28707_vm3  ;;  %v8767_v19 = vsel %vm28721_vm10, %v18787_v24, %v18788_v51 }
 0x895   : > { %16143 = vmatpush1.bf16.msk.msra.mxu1 %vm28549_vm9, %v16141_v25  ;;  %8484 = vmatprep.mubr.f32.mxu1 %v28233_v46  ;;  %v7728_v1 = vsel %vm28707_vm3, %v28719_v8, %v18802_v43  ;;  %v7729_v56 = vsel %vm28720_vm8, %v18802_v43, %v18803_v60  ;;  %v25273_v58 = vpop.permute.xlu1 %18795  ;;  %v18806_v21 = vpop.permute.xlu0 %18805  ;;  %vm28722_vm6 = vmmov %vm28714_vm1  ;;  %v18792_v8 = vunpack.i.l.bf16 %v25211_v29 }
 0x896   : > { %19090 = vrot.lane.b32.xlu1 %v24703_v13, %s19838_s20  ;;  %v16135_v25 = vpack.c.bf16 %v7736_v40, %v7728_v1  ;;  %19080 = vrot.lane.b32.xlu0 %v25249_v3, %s19837_s10  ;;  %v16132_v62 = vpack.c.bf16 %v7737_v45, %v7729_v56  ;;  %v18808_v49 = vunpack.i.h.bf16 %v18806_v21  ;;  %v18807_v43 = vunpack.i.l.bf16 %v18806_v21  ;;  %v25286_v1 = vld [vmem:[%s27920_s2 + $0x18] sm:$0xff]  ;;  %vm28723_vm15 = vmmov %vm28721_vm10 }
 0x897   : > { %14780 = vmatmul.mubr.msk.f32.gmra.mrb[24].mxu0 %vm28714_vm1, %v25254_v50  ;;  %v8759_v55 = vsel %vm28723_vm15, %v18782_v33, %v18783_v38  ;;  %v18793_v40 = vunpack.i.h.bf16 %v25211_v29  ;;  %v7739_v45 = vsel %vm28707_vm3, %v18772_v14, %v18773_v11  ;;  %vm28724_vm8 = vmmov %vm28707_vm3  ;;  %v28157_v11 = vunpack.i.h.bf16 %v25273_v58 }
 0x898   : > { %14791 = vmatmul.mubr.msk.f32.gmra.mrb[22].mxu1 %vm28722_vm6, %v25223_v42  ;;  %8407 = vmatprep.mubr.f32.mxu0 %v28233_v46  ;;  %v7730_v56 = vsel %vm28724_vm8, %v18803_v60, %v18807_v43  ;;  %vm28725_vm10 = vmmov %vm28707_vm3  ;;  %v16150_v18 = vpack.c.bf16 %v8767_v19, %v8759_v55  ;;  %v18797_v2 = vunpack.i.l.bf16 %v25273_v58 }
 0x899   : > { %8490 = vmatprep.mubr.f32.mxu1 %v28233_v46  ;;  %16134 = vmatprep.subr.msk.bf16.mxu0 %vm20760_vm13, %v16132_v62  ;;  %v7731_v21 = vsel %vm28725_vm10, %v18807_v43, %v18808_v49  ;;  %v18821_v4 = vpop.permute.xlu1 %18820  ;;  %vm28726_vm1 = vmmov %vm28723_vm15  ;;  %v25308_v60 = vpop.permute.xlu0 %18810 }
 0x89a   : > { %19100 = vrot.lane.b32.xlu1 %v24711_v36, %s19838_s20  ;;  %16137 = vmatpush1.bf16.msk.msra.mxu0 %vm28544_vm7, %v16135_v25  ;;  %v8766_v29 = vsel %vm28726_vm1, %v18793_v40, %v18787_v24  ;;  %v16144_v62 = vpack.c.bf16 %v7739_v45, %v7731_v21  ;;  %vm28727_vm15 = vmmov %vm28707_vm3  ;;  %v28158_v19 = vunpack.i.h.bf16 %v25308_v60  ;;  %v18812_v24 = vunpack.i.l.bf16 %v25308_v60  ;;  %v28729_v25 = vld [vmem:[#allocation32_spill] sm:$0xff] }
 0x89b   : > { %19085 = vrot.lane.b32.xlu0 %v24715_v28, %s19838_s20  ;;  %14781 = vmatmul.mubr.msk.f32.gmra.mrb[26].mxu0 %vm28722_vm6, %v25286_v1  ;;  %v7738_v49 = vsel %vm28727_vm15, %v18768_v7, %v18772_v14  ;;  %vm28728_vm3 = vmmov %vm28722_vm6  ;;  %v28749_v39 = vunpack.i.h.bf16 %v25308_v60 }
 0x89c   : > { %14792 = vmatmul.mubr.msk.f32.gmra.mrb[24].mxu1 %vm28728_vm3, %v25254_v50  ;;  %16152 = vmatprep.subr.msk.bf16.mxu0 %vm28485_vm12, %v16150_v18  ;;  %vm28730_vm8 = vmmov %vm28726_vm1  ;;  %v16147_v55 = vpack.c.bf16 %v7738_v49, %v7730_v56  ;;  %v8769_v14 = vsel %vm28726_vm1, %v18812_v24, %v28158_v19  ;;  %v18822_v49 = vunpack.i.l.bf16 %v18821_v4 }
 0x89d   : > { %v8758_v43 = vsel %vm28730_vm8, %v18792_v8, %v18782_v33  ;;  %8496 = vmatprep.mubr.f32.mxu1 %v28233_v46  ;;  %8567 = vmatprep.mubr.f32.mxu0 %v28233_v46  ;;  %vm28731_vm10 = vmmov %vm28726_vm1  ;;  %v25328_v18 = vpop.permute.xlu1 %18825 }
 0x89e   : > { %v16153_v40 = vpack.c.bf16 %v8766_v29, %v8758_v43  ;;  %v8768_v7 = vsel %vm28731_vm10, %v18788_v51, %v18812_v24  ;;  %19110 = vrot.lane.b32.xlu1 %v28667_v53, %s19838_s20  ;;  %16146 = vmatprep.subr.msk.bf16.mxu1 %vm28546_vm14, %v16144_v62  ;;  %vm28732_vm6 = vmmov %vm28726_vm1  ;;  %v18816_v51 = vpop.permute.xlu0 %18815 }
 0x89f   : > { %v8761_v33 = vsel %vm28732_vm6, %v18797_v2, %v28157_v11  ;;  %19095 = vrot.lane.b32.xlu0 %v24719_v32, %s19838_s20  ;;  %vm28733_vm15 = vmmov %vm28728_vm3  ;;  %16149 = vmatpush1.bf16.msk.msra.mxu1 %vm28549_vm9, %v16147_v55  ;;  %v18817_v29 = vunpack.i.l.bf16 %v18816_v51  ;;  %v18818_v62 = vunpack.i.h.bf16 %v18816_v51 }
 0x8a0   : > { %14802 = vmatmul.mubr.msk.f32.vlgmr.msra.gmra.mrb[28].mxu0 %vm28733_vm15, %v25191_v0  ;;  %vm28734_vm3 = vmmov %vm28726_vm1  ;;  %v16162_v56 = vpack.c.bf16 %v8769_v14, %v8761_v33  ;;  %v28739_v14 = vld [vmem:[#allocation40_spill] sm:$0xff]  ;;  %v28742_v33 = vld [vmem:[#allocation41_spill] sm:$0xff] }
 0x8a1   : > { %v8760_v8 = vsel %vm28734_vm3, %v18783_v38, %v18797_v2  ;;  %vm28735_vm8 = vmmov %vm28733_vm15  ;;  %16155 = vmatpush1.bf16.msk.msra.mxu0 %vm28492_vm0, %v16153_v40  ;;  %8573 = vmatprep.mubr.f32.mxu0 %v28233_v46  ;;  %v18836_v2 = vpop.permute.xlu1 %18835  ;;  %v18823_v38 = vunpack.i.h.bf16 %v18821_v4  ;;  %v28160_v40 = vunpack.i.h.bf16 %v25328_v18  ;;  %vm28740_vm6 = vnez %v28739_v14 }
 0x8a2   : > { %14793 = vmatmul.mubr.msk.f32.gmra.mrb[26].mxu1 %vm28735_vm8, %v25286_v1  ;;  %v16165_v21 = vpack.c.bf16 %v8768_v7, %v8760_v8  ;;  %19115 = vrot.lane.b32.xlu1 %v28679_v35, %s19838_s20  ;;  %vm28737_vm10 = vmmov %vm28735_vm8  ;;  %v18831_v24 = vpop.permute.xlu0 %18830  ;;  %v18838_v43 = vunpack.i.h.bf16 %v18836_v2  ;;  %v18837_v55 = vunpack.i.l.bf16 %v18836_v2  ;;  %v18827_v7 = vunpack.i.l.bf16 %v25328_v18 }
 0x8a3   : > { %8656 = vmatprep.mubr.f32.mxu1 %v28233_v46  ;;  %19105 = vrot.lane.b32.xlu0 %v25012_v10, %s19838_s20  ;;  %vm28738_vm1 = vmmov %vm28735_vm8  ;;  %v18832_v11 = vunpack.i.l.bf16 %v18831_v24 }
 0x8a4   : > { %14803 = vmatmul.mubr.msk.f32.gmra.mrb[30].mxu0 %vm28737_vm10, %v25223_v42  ;;  %16164 = vmatprep.subr.msk.bf16.mxu1 %vm28740_vm6, %v16162_v56  ;;  %vm28741_vm15 = vmmov %vm28734_vm3  ;;  %vm28743_vm3 = vnez %v28742_v33  ;;  %v18833_v56 = vunpack.i.h.bf16 %v18831_v24 }
 0x8a5   : > { %v8782_v4 = vsel %vm28741_vm15, %v18823_v38, %v18817_v29  ;;  %vm28744_vm8 = vmmov %vm28741_vm15  ;;  %8579 = vmatprep.mubr.f32.mxu0 %v28233_v46 }
 0x8a6   : > { %14814 = vmatmul.mubr.msk.f32.vlgmr.msra.gmra.mrb[28].mxu1 %vm28738_vm1, %v25191_v0  ;;  %v8774_v51 = vsel %vm28744_vm8, %v18822_v49, %v18837_v55  ;;  %vm28745_vm10 = vmmov %vm28744_vm8  ;;  %19120 = vrot.lane.b32.xlu1 %v25003_v26, %s19838_s20  ;;  %v18841_v0 = vpop.permute.xlu1 %18840 }
 0x8a7   : > { %16167 = vmatpush1.bf16.msk.msra.mxu1 %vm28743_vm3, %v16165_v21  ;;  %v8775_v8 = vsel %vm28745_vm10, %v18837_v55, %v18838_v43  ;;  %vm28746_vm9 = vmmov %vm28744_vm8  ;;  %v16159_v19 = vpack.c.bf16 %v8782_v4, %v8774_v51  ;;  %8662 = vmatprep.mubr.f32.mxu1 %v28233_v46  ;;  %v25372_v21 = vpop.permute.xlu0 %18845  ;;  %v18843_v38 = vunpack.i.h.bf16 %v18841_v0  ;;  %v18842_v49 = vunpack.i.l.bf16 %v18841_v0 }
 0x8a8   : > { %v8783_v2 = vsel %vm28746_vm9, %v18817_v29, %v18818_v62  ;;  %19135 = vrot.lane.b32.xlu0 %v28690_v48, %s19838_s20  ;;  %14804 = vmatmul.mubr.msk.f32.gmra.mrb[32].mxu0 %vm28738_vm1, %v25254_v50  ;;  %vm28747_vm9 = vmmov %vm28744_vm8  ;;  %v28161_v24 = vunpack.i.h.bf16 %v25372_v21  ;;  %v18847_v4 = vunpack.i.l.bf16 %v25372_v21  ;;  %v8784_v51 = vsel %vm28744_vm8, %v18818_v62, %v18827_v7 }
 0x8a9   : > { %v16156_v29 = vpack.c.bf16 %v8783_v2, %v8775_v8  ;;  %v8785_v55 = vsel %vm28747_vm9, %v18827_v7, %v28160_v40  ;;  %vm28748_vm15 = vmmov %vm28738_vm1  ;;  %8585 = vmatprep.mubr.f32.mxu0 %v28233_v46 }
 0x8aa   : > { %14815 = vmatmul.mubr.msk.f32.gmra.mrb[30].mxu1 %vm28748_vm15, %v25223_v42  ;;  %vm28750_vm10 = vmmov %vm28744_vm8  ;;  %v28752_v42 = vunpack.i.h.bf16 %v25273_v58  ;;  %19125 = vrot.lane.b32.xlu1 %v28686_v12, %s19838_s20 }
 0x8ab   : > { %v8770_v0 = vsel %vm28750_vm10, %v28749_v39, %v18842_v49  ;;  %vm28751_vm1 = vmmov %vm28744_vm8  ;;  %8668 = vmatprep.mubr.f32.mxu1 %v28233_v46  ;;  %16158 = vmatprep.subr.msk.bf16.mxu0 %vm28485_vm12, %v16156_v29  ;;  %v18856_v39 = vpop.permute.xlu1 %18855  ;;  %v18851_v58 = vpop.permute.xlu0 %18850 }
 0x8ac   : > { %v8771_v8 = vsel %vm28751_vm1, %v18842_v49, %v18843_v38  ;;  %vm28753_vm9 = vmmov %vm28751_vm1  ;;  %16161 = vmatpush1.bf16.msk.msra.mxu0 %vm28492_vm0, %v16159_v19  ;;  %19140 = vrot.lane.b32.xlu0 %v24689_v23, %s19839_s17  ;;  %v18857_v7 = vunpack.i.l.bf16 %v18856_v39 }
 0x8ad   : > { %v8762_v2 = vsel %vm28753_vm9, %v28752_v42, %v18832_v11  ;;  %vm28754_vm15 = vmmov %vm28751_vm1  ;;  %v18852_v42 = vunpack.i.l.bf16 %v18851_v58 }
 0x8ae   : > { %v8776_v40 = vsel %vm28754_vm15, %v18838_v43, %v18847_v4  ;;  %vm28755_vm8 = vmmov %vm28751_vm1  ;;  %v18858_v43 = vunpack.i.h.bf16 %v18856_v39  ;;  %v16177_v29 = vpack.c.bf16 %v8770_v0, %v8762_v2  ;;  %19130 = vrot.lane.b32.xlu1 %v25151_v61, %s19838_s20  ;;  %v28762_v2 = vld [vmem:[#allocation48_spill] sm:$0xff] }
 0x8af   : > { %v8777_v62 = vsel %vm28755_vm8, %v18847_v4, %v28161_v24  ;;  %vm28756_vm10 = vmmov %vm28751_vm1  ;;  %vm28757_vm1 = vcmask 261120   ;;  %v18853_v4 = vunpack.i.h.bf16 %v18851_v58  ;;  %v16171_v24 = vpack.c.bf16 %v8784_v51, %v8776_v40  ;;  %v25425_v40 = vpop.permute.xlu1 %18860  ;;  %v25431_v51 = vpop.permute.xlu0 %18870  ;;  %v28770_v58 = vld [vmem:[#allocation50_spill] sm:$0xff] }
 0x8b0   : > { %v8763_v60 = vsel %vm28756_vm10, %v18832_v11, %v18833_v56  ;;  %14805 = vmatmul.mubr.msk.f32.gmra.mrb[34].mxu0 %vm28757_vm1, %v25286_v1  ;;  %v16168_v49 = vpack.c.bf16 %v8785_v55, %v8777_v62  ;;  %vm28758_vm9 = vmmov %vm28757_vm1  ;;  %v25412_v11 = vld [vmem:[%s27920_s2 + $0x40] sm:$0xff]  ;;  %19150 = vrot.lane.b32.xlu0 %v24699_v54, %s19839_s17  ;;  %v18862_v39 = vunpack.i.l.bf16 %v25425_v40 }
 0x8b1   : > { %14816 = vmatmul.mubr.msk.f32.gmra.mrb[32].mxu1 %vm28758_vm9, %v25254_v50  ;;  %8930 = vmatprep.mubr.f32.mxu0 %v28233_v46  ;;  %v16174_v19 = vpack.c.bf16 %v8771_v8, %v8763_v60  ;;  %vm28759_vm15 = vmmov %vm28755_vm8  ;;  %v8764_v50 = vsel %vm28755_vm8, %v18833_v56, %v18852_v42  ;;  %vm28763_vm9 = vnez %v28762_v2  ;;  %v28766_v56 = vld [vmem:[#allocation49_spill] sm:$0xff]  ;;  %v18863_v60 = vunpack.i.h.bf16 %v25425_v40 }
 0x8b2   : > { %v8773_v45 = vsel %vm28759_vm15, %v18857_v7, %v18858_v43  ;;  %8674 = vmatprep.mubr.f32.mxu1 %v28233_v46  ;;  %16170 = vmatprep.subr.msk.bf16.mxu1 %vm28740_vm6, %v16168_v49  ;;  %vm28760_vm10 = vmmov %vm28755_vm8  ;;  %vm28764_vm15 = vcmask 261120   ;;  %v25462_v49 = vld [vmem:[%s27920_s2 + $0x50] sm:$0xff]  ;;  %v28777_v40 = vunpack.i.h.bf16 %v25372_v21 }
 0x8b3   : > { %v8765_v55 = vsel %vm28760_vm10, %v18852_v42, %v18853_v4  ;;  %vm28761_vm1 = vmmov %vm28755_vm8  ;;  %16176 = vmatprep.subr.msk.bf16.mxu0 %vm28763_vm9, %v16174_v19  ;;  %vm28767_vm10 = vnez %v28766_v56  ;;  %16173 = vmatpush1.bf16.msk.msra.mxu1 %vm28743_vm3, %v16171_v24  ;;  %v28168_v24 = vunpack.i.h.bf16 %v25431_v51  ;;  %v28772_v4 = vunpack.i.h.bf16 %v25328_v18  ;;  %v28774_v19 = vld [vmem:[#allocation51_spill] sm:$0xff] }
 0x8b4   : > { %v8772_v0 = vsel %vm28761_vm1, %v18843_v38, %v18857_v7  ;;  %14830 = vmatmul.mubr.msk.f32.vlgmr.msra.gmra.mrb[20].mxu0 %vm28764_vm15, %v25412_v11  ;;  %vm28765_vm8 = vmmov %vm28764_vm15  ;;  %v25440_v38 = vld [vmem:[%s27920_s2 + $0x48] sm:$0xff]  ;;  %v16186_v8 = vpack.c.bf16 %v8773_v45, %v8765_v55  ;;  %19145 = vrot.lane.b32.xlu1 %v24685_v5, %s19839_s17  ;;  %v18881_v45 = vpop.permute.xlu0 %18880  ;;  %vm28775_vm3 = vnez %v28774_v19 }
 0x8b5   : > { %14817 = vmatmul.mubr.msk.f32.gmra.mrb[34].mxu1 %vm28765_vm8, %v25286_v1  ;;  %16179 = vmatpush1.bf16.msk.msra.mxu0 %vm28767_vm10, %v16177_v29  ;;  %v16189_v62 = vpack.c.bf16 %v8772_v0, %v8764_v50  ;;  %v18866_v1 = vpop.permute.xlu1 %18865  ;;  %vm28768_vm1 = vmmov %vm28765_vm8  ;;  %vm28771_vm8 = vnez %v28770_v58  ;;  %v18883_v43 = vunpack.i.h.bf16 %v18881_v45  ;;  %v18882_v7 = vunpack.i.l.bf16 %v18881_v45 }
 0x8b6   : > { %8936 = vmatprep.mubr.f32.mxu0 %v28233_v46  ;;  %9019 = vmatprep.mubr.f32.mxu1 %v28233_v46  ;;  %vm28769_vm15 = vmmov %vm28768_vm1  ;;  %v18872_v29 = vunpack.i.l.bf16 %v25431_v51  ;;  %v18868_v50 = vunpack.i.h.bf16 %v18866_v1  ;;  %v18867_v55 = vunpack.i.l.bf16 %v18866_v1 }
 0x8b7   : > { %19160 = vrot.lane.b32.xlu0 %v28712_v52, %s19838_s20  ;;  %16188 = vmatprep.subr.msk.bf16.mxu1 %vm28771_vm8, %v16186_v8 }
 0x8b8   : > { %14831 = vmatmul.mubr.msk.f32.gmra.mrb[22].mxu0 %vm28768_vm1, %v25440_v38  ;;  %vm28773_vm1 = vcmask 252928   ;;  %19155 = vrot.lane.b32.xlu1 %v24695_v44, %s19839_s17 }
 0x8b9   : > { %14842 = vmatmul.mubr.msk.f32.vlgmr.msra.gmra.mrb[20].mxu1 %vm28769_vm15, %v25412_v11  ;;  %v8786_v42 = vsel %vm28773_vm1, %v28772_v4, %v18862_v39  ;;  %8942 = vmatprep.mubr.f32.mxu0 %v28233_v46  ;;  %vm28776_vm15 = vmmov %vm28773_vm1  ;;  %v18876_v18 = vpop.permute.xlu1 %18875 }
 0x8ba   : > { %16191 = vmatpush1.bf16.msk.msra.mxu1 %vm28775_vm3, %v16189_v62  ;;  %v8787_v0 = vsel %vm28776_vm15, %v18862_v39, %v18863_v60  ;;  %vm28778_vm0 = vmmov %vm28773_vm1  ;;  %9025 = vmatprep.mubr.f32.mxu1 %v28233_v46  ;;  %vm28780_vm1 = vcmask 261120   ;;  %v18886_v62 = vpop.permute.xlu0 %18885  ;;  %v18878_v39 = vunpack.i.h.bf16 %v18876_v18  ;;  %v18877_v21 = vunpack.i.l.bf16 %v18876_v18 }
 0x8bb   : > { %v8778_v8 = vsel %vm28778_vm0, %v28777_v40, %v18882_v7  ;;  %vm28779_vm6 = vmmov %vm28778_vm0  ;;  %19165 = vrot.lane.b32.xlu0 %v25249_v3, %s19838_s20  ;;  %v18887_v40 = vunpack.i.l.bf16 %v18886_v62  ;;  %v8789_v33 = vsel %vm28776_vm15, %v18867_v55, %v18868_v50 }
 0x8bc   : > { %v8779_v45 = vsel %vm28779_vm6, %v18882_v7, %v18883_v43  ;;  %v16183_v4 = vpack.c.bf16 %v8786_v42, %v8778_v8  ;;  %14832 = vmatmul.mubr.msk.f32.gmra.mrb[24].mxu0 %vm28780_vm1, %v25462_v49  ;;  %vm28781_vm0 = vmmov %vm28780_vm1  ;;  %v18888_v7 = vunpack.i.h.bf16 %v18886_v62  ;;  %v25489_v42 = vld [vmem:[%s27920_s2 + $0x58] sm:$0xff]  ;;  %vm28782_vm6 = vcmask 7168   ;;  %19180 = vrot.lane.b32.xlu1 %v24703_v13, %s19839_s17 }
 0x8bd   : > { %v16180_v1 = vpack.c.bf16 %v8787_v0, %v8779_v45  ;;  %14843 = vmatmul.mubr.msk.f32.gmra.mrb[22].mxu1 %vm28781_vm0, %v25440_v38  ;;  %8948 = vmatprep.mubr.f32.mxu0 %v28233_v46  ;;  %v9332_v8 = vsel %vm28782_vm6, %v18872_v29, %v28168_v24  ;;  %vm28783_vm1 = vmmov %vm28782_vm6  ;;  %v25505_v62 = vpop.permute.xlu1 %18895  ;;  %vm28786_vm6 = vcmask 261120  }
 0x8be   : > { %v9340_v0 = vsel %vm28783_vm1, %v18877_v21, %v18878_v39  ;;  %9031 = vmatprep.mubr.f32.mxu1 %v28233_v46  ;;  %vm28784_vm0 = vmmov %vm28776_vm15 }
 0x8bf   : > { %16182 = vmatprep.subr.msk.bf16.mxu0 %vm28763_vm9, %v16180_v1  ;;  %v8780_v45 = vsel %vm28784_vm0, %v18883_v43, %v18887_v40  ;;  %vm28785_vm12 = vmmov %vm28784_vm0  ;;  %v16198_v50 = vpack.c.bf16 %v9340_v0, %v9332_v8  ;;  %19170 = vrot.lane.b32.xlu0 %v24707_v20, %s19839_s17  ;;  %v18891_v1 = vpop.permute.xlu0 %18890  ;;  %v18897_v8 = vunpack.i.l.bf16 %v25505_v62 }
 0x8c0   : > { %v8781_v18 = vsel %vm28785_vm12, %v18887_v40, %v18888_v7  ;;  %16185 = vmatpush1.bf16.msk.msra.mxu0 %vm28767_vm10, %v16183_v4  ;;  %vm28787_vm15 = vmmov %vm28784_vm0  ;;  %v18893_v7 = vunpack.i.h.bf16 %v18891_v1  ;;  %v18892_v40 = vunpack.i.l.bf16 %v18891_v1  ;;  %19190 = vrot.lane.b32.xlu1 %v28667_v53, %s19839_s17 }
 0x8c1   : > { %14833 = vmatmul.mubr.msk.f32.gmra.mrb[26].mxu0 %vm28786_vm6, %v25489_v42  ;;  %v16192_v24 = vpack.c.bf16 %v8789_v33, %v8781_v18  ;;  %v8788_v43 = vsel %vm28787_vm15, %v18863_v60, %v18867_v55  ;;  %vm28788_vm12 = vmmov %vm28786_vm6  ;;  %v28169_v60 = vunpack.i.h.bf16 %v25505_v62  ;;  %16200 = vmatprep.subr.msk.bf16.mxu0 %vm20427_vm4, %v16198_v50  ;;  %v18911_v55 = vpop.permute.xlu1 %18910  ;;  %v28791_v18 = vunpack.i.h.bf16 %v25431_v51 }
 0x8c2   : > { %14844 = vmatmul.mubr.msk.f32.gmra.mrb[24].mxu1 %vm28788_vm12, %v25462_v49  ;;  %9108 = vmatprep.mubr.f32.mxu0 %v28233_v46  ;;  %v16195_v4 = vpack.c.bf16 %v8788_v43, %v8780_v45  ;;  %v9331_v0 = vsel %vm28783_vm1, %v18892_v40, %v18872_v29  ;;  %vm28789_vm0 = vmmov %vm28783_vm1  ;;  %v18912_v40 = vunpack.i.l.bf16 %v18911_v55 }
 0x8c3   : > { %9037 = vmatprep.mubr.f32.mxu1 %v28233_v46  ;;  %16194 = vmatprep.subr.msk.bf16.mxu1 %vm28771_vm8, %v16192_v24  ;;  %v9339_v33 = vsel %vm28789_vm0, %v18893_v7, %v18877_v21  ;;  %v25530_v24 = vpop.permute.xlu0 %18900  ;;  %vm28790_vm15 = vmmov %vm28786_vm6 }
 0x8c4   : > { %v16201_v45 = vpack.c.bf16 %v9339_v33, %v9331_v0  ;;  %19175 = vrot.lane.b32.xlu0 %v24715_v28, %s19839_s17  ;;  %v18903_v29 = vunpack.i.h.bf16 %v25530_v24  ;;  %v18902_v21 = vunpack.i.l.bf16 %v25530_v24  ;;  %vm28792_vm12 = vmmov %vm28789_vm0  ;;  %16197 = vmatpush1.bf16.msk.msra.mxu1 %vm28775_vm3, %v16195_v4 }
 0x8c5   : > { %14854 = vmatmul.mubr.msk.f32.vlgmr.msra.gmra.mrb[28].mxu0 %vm28786_vm6, %v25412_v11  ;;  %v9333_v50 = vsel %vm28792_vm12, %v28791_v18, %v18897_v8  ;;  %vm28793_vm1 = vmmov %vm28789_vm0  ;;  %19195 = vrot.lane.b32.xlu1 %v28679_v35, %s19839_s17  ;;  %v18916_v51 = vpop.permute.xlu1 %18915 }
 0x8c6   : > { %14845 = vmatmul.mubr.msk.f32.gmra.mrb[26].mxu1 %vm28790_vm15, %v25489_v42  ;;  %9114 = vmatprep.mubr.f32.mxu0 %v28233_v46  ;;  %v9334_v1 = vsel %vm28793_vm1, %v18897_v8, %v28169_v60  ;;  %v9341_v43 = vsel %vm28789_vm0, %v18878_v39, %v18902_v21  ;;  %vm28794_vm6 = vmmov %vm28789_vm0  ;;  %v18918_v8 = vunpack.i.h.bf16 %v18916_v51  ;;  %v18917_v0 = vunpack.i.l.bf16 %v18916_v51 }
 0x8c7   : > { %9197 = vmatprep.mubr.f32.mxu1 %v28233_v46  ;;  %v9342_v7 = vsel %vm28794_vm6, %v18902_v21, %v18903_v29  ;;  %16203 = vmatpush1.bf16.msk.msra.mxu0 %vm28674_vm11, %v16201_v45  ;;  %v16213_v4 = vpack.c.bf16 %v9341_v43, %v9333_v50  ;;  %v18906_v39 = vpop.permute.xlu0 %18905  ;;  %v18913_v21 = vunpack.i.h.bf16 %v18911_v55  ;;  %vm28795_vm12 = vmmov %vm28790_vm15 }
 0x8c8   : > { %19185 = vrot.lane.b32.xlu0 %v24719_v32, %s19839_s17  ;;  %v16210_v33 = vpack.c.bf16 %v9342_v7, %v9334_v1  ;;  %v18908_v18 = vunpack.i.h.bf16 %v18906_v39  ;;  %v18907_v60 = vunpack.i.l.bf16 %v18906_v39  ;;  %vm28796_vm1 = vmmov %vm28789_vm0  ;;  %v9348_v50 = vsel %vm28789_vm0, %v18917_v0, %v18918_v8 }
 0x8c9   : > { %14855 = vmatmul.mubr.msk.f32.gmra.mrb[30].mxu0 %vm28790_vm15, %v25440_v38  ;;  %v9347_v45 = vsel %vm28796_vm1, %v18912_v40, %v18917_v0  ;;  %vm28797_vm6 = vmmov %vm28789_vm0  ;;  %19200 = vrot.lane.b32.xlu1 %v24711_v36, %s19839_s17 }
 0x8ca   : > { %14866 = vmatmul.mubr.msk.f32.vlgmr.msra.gmra.mrb[28].mxu1 %vm28795_vm12, %v25412_v11  ;;  %9120 = vmatprep.mubr.f32.mxu0 %v28233_v46  ;;  %v9355_v43 = vsel %vm28797_vm6, %v18913_v21, %v18907_v60  ;;  %vm28798_vm15 = vmmov %vm28789_vm0  ;;  %v25572_v11 = vpop.permute.xlu1 %18920 }
 0x8cb   : > { %9203 = vmatprep.mubr.f32.mxu1 %v28233_v46  ;;  %16212 = vmatprep.subr.msk.bf16.mxu1 %vm28678_vm5, %v16210_v33  ;;  %v9356_v55 = vsel %vm28798_vm15, %v18907_v60, %v18908_v18  ;;  %v16207_v1 = vpack.c.bf16 %v9355_v43, %v9347_v45  ;;  %v25578_v7 = vpop.permute.xlu0 %18925  ;;  %v18923_v40 = vunpack.i.h.bf16 %v25572_v11  ;;  %v18922_v60 = vunpack.i.l.bf16 %v25572_v11  ;;  %vm28799_vm1 = vmmov %vm28795_vm12 }
 0x8cc   : > { %16215 = vmatpush1.bf16.msk.msra.mxu1 %vm28683_vm2, %v16213_v4  ;;  %19205 = vrot.lane.b32.xlu0 %v28690_v48, %s19839_s17  ;;  %v16204_v51 = vpack.c.bf16 %v9356_v55, %v9348_v50  ;;  %v18928_v4 = vunpack.i.h.bf16 %v25578_v7  ;;  %v18927_v39 = vunpack.i.l.bf16 %v25578_v7  ;;  %vm28800_vm6 = vmmov %vm28789_vm0 }
 0x8cd   : > { %14856 = vmatmul.mubr.msk.f32.gmra.mrb[32].mxu0 %vm28795_vm12, %v25462_v49  ;;  %v9357_v0 = vsel %vm28789_vm0, %v18908_v18, %v18922_v60  ;;  %v9358_v33 = vsel %vm28800_vm6, %v18922_v60, %v18923_v40  ;;  %vm28801_vm15 = vmmov %vm28789_vm0  ;;  %19215 = vrot.lane.b32.xlu1 %v25003_v26, %s19839_s17 }
 0x8ce   : > { %14867 = vmatmul.mubr.msk.f32.gmra.mrb[30].mxu1 %vm28799_vm1, %v25440_v38  ;;  %9126 = vmatprep.mubr.f32.mxu0 %v28233_v46  ;;  %v9349_v21 = vsel %vm28801_vm15, %v18918_v8, %v18927_v39  ;;  %vm28802_vm12 = vmmov %vm28789_vm0  ;;  %v18936_v18 = vpop.permute.xlu1 %18935 }
 0x8cf   : > { %9209 = vmatprep.mubr.f32.mxu1 %v28233_v46  ;;  %16206 = vmatprep.subr.msk.bf16.mxu0 %vm20427_vm4, %v16204_v51  ;;  %v9350_v38 = vsel %vm28802_vm12, %v18927_v39, %v18928_v4  ;;  %v16219_v45 = vpack.c.bf16 %v9357_v0, %v9349_v21  ;;  %v18931_v50 = vpop.permute.xlu0 %18930  ;;  %v18938_v8 = vunpack.i.h.bf16 %v18936_v18  ;;  %v18937_v43 = vunpack.i.l.bf16 %v18936_v18  ;;  %vm28803_vm0 = vmmov %vm28799_vm1 }
 0x8d0   : > { %16209 = vmatpush1.bf16.msk.msra.mxu0 %vm28674_vm11, %v16207_v1  ;;  %19210 = vrot.lane.b32.xlu0 %v25012_v10, %s19839_s17  ;;  %v16216_v55 = vpack.c.bf16 %v9358_v33, %v9350_v38  ;;  %v18933_v60 = vunpack.i.h.bf16 %v18931_v50  ;;  %v18932_v51 = vunpack.i.l.bf16 %v18931_v50  ;;  %v25612_v1 = vld [vmem:[%s27920_s2 + $0x60] sm:$0xff]  ;;  %vm28804_vm15 = vmmov %vm28800_vm6 }
 0x8d1   : > { %14857 = vmatmul.mubr.msk.f32.gmra.mrb[34].mxu0 %vm28799_vm1, %v25489_v42  ;;  %v9343_v39 = vsel %vm28800_vm6, %v18903_v29, %v18937_v43  ;;  %v9344_v0 = vsel %vm28804_vm15, %v18937_v43, %v18938_v8  ;;  %vm28806_vm12 = vmmov %vm28800_vm6  ;;  %19220 = vrot.lane.b32.xlu1 %v28686_v12, %s19839_s17 }
 0x8d2   : > { %14868 = vmatmul.mubr.msk.f32.gmra.mrb[32].mxu1 %vm28803_vm0, %v25462_v49  ;;  %9503 = vmatprep.mubr.f32.mxu0 %v28233_v46  ;;  %v28805_v49 = vunpack.i.h.bf16 %v25505_v62  ;;  %vm28807_vm1 = vmmov %vm28800_vm6  ;;  %v18946_v24 = vpop.permute.xlu1 %18945 }
 0x8d3   : > { %9215 = vmatprep.mubr.f32.mxu1 %v28233_v46  ;;  %16218 = vmatprep.subr.msk.bf16.mxu1 %vm28678_vm5, %v16216_v55  ;;  %v9336_v21 = vsel %vm28807_vm1, %v18932_v51, %v18933_v60  ;;  %v18941_v38 = vpop.permute.xlu0 %18940  ;;  %v18948_v62 = vunpack.i.h.bf16 %v18946_v24  ;;  %v18947_v18 = vunpack.i.l.bf16 %v18946_v24  ;;  %vm28808_vm6 = vmmov %vm28803_vm0 }
 0x8d4   : > { %v9335_v33 = vsel %vm28806_vm12, %v28805_v49, %v18932_v51  ;;  %16221 = vmatpush1.bf16.msk.msra.mxu1 %vm28683_vm2, %v16219_v45  ;;  %19230 = vrot.lane.b32.xlu0 %v24689_v23, %s19840_s16  ;;  %v16222_v50 = vpack.c.bf16 %v9344_v0, %v9336_v21  ;;  %v18943_v43 = vunpack.i.h.bf16 %v18941_v38  ;;  %v18942_v55 = vunpack.i.l.bf16 %v18941_v38  ;;  %v25639_v45 = vld [vmem:[%s27920_s2 + $0x68] sm:$0xff]  ;;  %vm28809_vm15 = vmmov %vm28807_vm1 }
 0x8d5   : > { %v16225_v29 = vpack.c.bf16 %v9343_v39, %v9335_v33  ;;  %14882 = vmatmul.mubr.msk.f32.vlgmr.msra.gmra.mrb[20].mxu0 %vm28803_vm0, %v25612_v1  ;;  %v9345_v23 = vsel %vm28809_vm15, %v18938_v8, %v18947_v18  ;;  %vm28810_vm12 = vmmov %vm28807_vm1  ;;  %19225 = vrot.lane.b32.xlu1 %v25151_v61, %s19839_s17 }
 0x8d6   : > { %14869 = vmatmul.mubr.msk.f32.gmra.mrb[34].mxu1 %vm28808_vm6, %v25489_v42  ;;  %9509 = vmatprep.mubr.f32.mxu0 %v28233_v46  ;;  %v9346_v51 = vsel %vm28810_vm12, %v18947_v18, %v18948_v62  ;;  %v9337_v42 = vsel %vm28807_vm1, %v18933_v60, %v18942_v55  ;;  %vm28811_vm0 = vmmov %vm28807_vm1  ;;  %v18951_v0 = vpop.permute.xlu1 %18950 }
 0x8d7   : > { %9592 = vmatprep.mubr.f32.mxu1 %v28233_v46  ;;  %16224 = vmatprep.subr.msk.bf16.mxu0 %vm20760_vm13, %v16222_v50  ;;  %v9338_v39 = vsel %vm28811_vm0, %v18942_v55, %v18943_v43  ;;  %v16237_v49 = vpack.c.bf16 %v9345_v23, %v9337_v42  ;;  %v18956_v8 = vpop.permute.xlu0 %18955  ;;  %v18953_v33 = vunpack.i.h.bf16 %v18951_v0  ;;  %v18952_v21 = vunpack.i.l.bf16 %v18951_v0  ;;  %vm28812_vm15 = vmmov %vm28808_vm6  ;;  %v25689_v42 = vld [vmem:[%s27920_s2 + $0x78] sm:$0xff] }
 0x8d8   : > { %16227 = vmatpush1.bf16.msk.msra.mxu0 %vm28544_vm7, %v16225_v29  ;;  %19240 = vrot.lane.b32.xlu0 %v28712_v52, %s19839_s17  ;;  %v16234_v60 = vpack.c.bf16 %v9346_v51, %v9338_v39  ;;  %v18958_v24 = vunpack.i.h.bf16 %v18956_v8  ;;  %v18957_v38 = vunpack.i.l.bf16 %v18956_v8  ;;  %v25662_v29 = vld [vmem:[%s27920_s2 + $0x70] sm:$0xff]  ;;  %vm28813_vm12 = vmmov %vm28811_vm0 }
 0x8d9   : > { %14883 = vmatmul.mubr.msk.f32.gmra.mrb[22].mxu0 %vm28808_vm6, %v25639_v45  ;;  %v9359_v62 = vsel %vm28813_vm12, %v18923_v40, %v18952_v21  ;;  %vm28814_vm1 = vmmov %vm28811_vm0  ;;  %19235 = vrot.lane.b32.xlu1 %v24685_v5, %s19840_s16  ;;  %vm28817_vm12 = vcmask 261120  }
 0x8da   : > { %14894 = vmatmul.mubr.msk.f32.vlgmr.msra.gmra.mrb[20].mxu1 %vm28812_vm15, %v25612_v1  ;;  %9515 = vmatprep.mubr.f32.mxu0 %v28233_v46  ;;  %v9360_v18 = vsel %vm28814_vm1, %v18952_v21, %v18953_v33  ;;  %v9351_v50 = vsel %vm28811_vm0, %v18928_v4, %v18957_v38  ;;  %vm28815_vm6 = vmmov %vm28811_vm0  ;;  %vm28816_vm15 = vnez %v28715_v47  ;;  %v18966_v11 = vpop.permute.xlu1 %18965 }
 0x8db   : > { %9598 = vmatprep.mubr.f32.mxu1 %v28233_v46  ;;  %16236 = vmatprep.subr.msk.bf16.mxu1 %vm28546_vm14, %v16234_v60  ;;  %v9352_v43 = vsel %vm28815_vm6, %v18957_v38, %v18958_v24  ;;  %v16231_v40 = vpack.c.bf16 %v9359_v62, %v9351_v50  ;;  %v18961_v55 = vpop.permute.xlu0 %18960  ;;  %v18968_v7 = vunpack.i.h.bf16 %v18966_v11  ;;  %v18967_v23 = vunpack.i.l.bf16 %v18966_v11  ;;  %vm28818_vm1 = vmmov %vm28817_vm12  ;;  %v28838_v50 = vld [vmem:[#allocation53_spill] sm:$0xff] }
 0x8dc   : > { %16239 = vmatpush1.bf16.msk.msra.mxu1 %vm28816_vm15, %v16237_v49  ;;  %19245 = vrot.lane.b32.xlu0 %v25249_v3, %s19839_s17  ;;  %v16228_v4 = vpack.c.bf16 %v9360_v18, %v9352_v43  ;;  %v18963_v51 = vunpack.i.h.bf16 %v18961_v55  ;;  %v18962_v5 = vunpack.i.l.bf16 %v18961_v55  ;;  %vm28819_vm6 = vmmov %vm28811_vm0 }
 0x8dd   : > { %14884 = vmatmul.mubr.msk.f32.gmra.mrb[24].mxu0 %vm28817_vm12, %v25662_v29  ;;  %v9362_v39 = vsel %vm28811_vm0, %v18967_v23, %v18968_v7  ;;  %vm28820_vm12 = vmmov %vm28811_vm0  ;;  %19255 = vrot.lane.b32.xlu1 %v24695_v44, %s19840_s16  ;;  %v28824_v44 = vpack.c.bf16 %v24389_v6, %v24459_v34  ;;  %v28827_v34 = vld [vmem:[#allocation46_spill] sm:$0xff] }
 0x8de   : > { %14895 = vmatmul.mubr.msk.f32.gmra.mrb[22].mxu1 %vm28818_vm1, %v25639_v45  ;;  %9521 = vmatprep.mubr.f32.mxu0 %v28233_v46  ;;  %v9353_v0 = vsel %vm28819_vm6, %v18958_v24, %v18962_v5  ;;  %v9354_v49 = vsel %vm28820_vm12, %v18962_v5, %v18963_v51  ;;  %vm28821_vm1 = vmmov %vm28811_vm0  ;;  %v25702_v21 = vpop.permute.xlu1 %18975  ;;  %vm28822_vm0 = vcmask 261120   ;;  %v28828_v38 = vpack.c.bf16 %v24387_v30, %v28827_v34  ;;  %v28845_v7 = vld [vmem:[#allocation18_spill] sm:$0xff]  ;;  %v28848_v51 = vld [vmem:[#allocation29_spill] sm:$0xff] }
 0x8df   : > { %9604 = vmatprep.mubr.f32.mxu1 %v28233_v46  ;;  %16230 = vmatprep.subr.msk.bf16.mxu0 %vm20760_vm13, %v16228_v4  ;;  %v9361_v8 = vsel %vm28821_vm1, %v18953_v33, %v18967_v23  ;;  %v25708_v60 = vpop.permute.xlu0 %18970  ;;  %v16240_v24 = vpack.c.bf16 %v9362_v39, %v9354_v49  ;;  %vm28823_vm6 = vmmov %vm28822_vm0  ;;  %v28846_v23 = vld [vmem:[#allocation22_spill] sm:$0xff]  ;;  %v18977_v49 = vunpack.i.l.bf16 %v25702_v21  ;;  %v28858_v34 = vld [vmem:[#allocation20_spill] sm:$0xff] }
 0x8e0   : > { %16233 = vmatpush1.bf16.msk.msra.mxu0 %vm28544_vm7, %v16231_v40  ;;  %19250 = vrot.lane.b32.xlu0 %v24699_v54, %s19840_s16  ;;  %v16243_v33 = vpack.c.bf16 %v9361_v8, %v9353_v0  ;;  %vm28825_vm12 = vmmov %vm28822_vm0  ;;  %v28841_v40 = vld [vmem:[#allocation27_spill] sm:$0xff]  ;;  %v28847_v4 = vpack.c.bf16 %v28845_v7, %v28846_v23  ;;  %v18972_v39 = vunpack.i.l.bf16 %v25708_v60  ;;  %v18978_v0 = vunpack.i.h.bf16 %v25702_v21  ;;  %v28871_v23 = vld [vmem:[#allocation26_spill] sm:$0xff] }
 0x8e1   : > { %14885 = vmatmul.mubr.msk.f32.gmra.mrb[26].mxu0 %vm28822_vm0, %v25689_v42  ;;  %16247 = vmatprep.subr.bf16.mxu0 %v28824_v44  ;;  %vm28826_vm1 = vmmov %vm28822_vm0  ;;  %v28855_v44 = vld [vmem:[#allocation25_spill] sm:$0xff]  ;;  %vm28886_vm7 = vcmask 261120  }
 0x8e2   : > { %14896 = vmatmul.mubr.msk.f32.gmra.mrb[24].mxu1 %vm28823_vm6, %v25662_v29  ;;  %9681 = vmatprep.mubr.f32.mxu0 %v28233_v46  ;;  %v25721_v54 = vpop.permute.xlu1 %18985  ;;  %vm28831_vm6 = vmmov %vm28822_vm0 }
 0x8e3   : > { %9610 = vmatprep.mubr.f32.mxu1 %v28233_v46  ;;  %19270 = vrot.lane.b32.xlu1 %v28667_v53, %s19840_s16  ;;  %v25727_v6 = vpop.permute.xlu0 %18980  ;;  %v28829_v53 = vpack.c.bf16 %v24579_v57, %v24593_v63  ;;  %v28834_v57 = vld [vmem:[#allocation52_spill] sm:$0xff]  ;;  %v28835_v63 = vld [vmem:[#allocation45_spill] sm:$0xff] }
 0x8e4   : > { %16242 = vmatprep.subr.msk.bf16.mxu1 %vm28546_vm14, %v16240_v24  ;;  %19260 = vrot.lane.b32.xlu0 %v24707_v20, %s19840_s16  ;;  %v28830_v20 = vpack.c.bf16 %v24385_v16, %v24545_v59  ;;  %v28832_v16 = vld [vmem:[#allocation17_spill] sm:$0xff]  ;;  %v28836_v18 = vpack.c.bf16 %v28834_v57, %v28835_v63  ;;  %v18988_v63 = vunpack.i.h.bf16 %v25721_v54 }
 0x8e5   : > { %14906 = vmatmul.mubr.msk.f32.vlgmr.msra.gmra.mrb[28].mxu0 %vm28825_vm12, %v25612_v1  ;;  %16245 = vmatpush1.bf16.msk.msra.mxu1 %vm28816_vm15, %v16243_v33  ;;  %v28833_v59 = vpack.c.bf16 %v24577_v37, %v28832_v16  ;;  %vm28843_vm12 = vmmov %vm28822_vm0  ;;  %v28856_v33 = vld [vmem:[#allocation37_spill] sm:$0xff]  ;;  %vm28881_vm15 = vcmask 261120  }
 0x8e6   : > { %14897 = vmatmul.mubr.msk.f32.gmra.mrb[26].mxu1 %vm28826_vm1, %v25689_v42  ;;  %16249 = vmatpush1.bf16.msra.mxu0 %v28828_v38  ;;  %v25743_v62 = vpop.permute.xlu1 %19000  ;;  %vm28844_vm1 = vmmov %vm28822_vm0  ;;  %v28859_v38 = vld [vmem:[#allocation30_spill] sm:$0xff] }
 0x8e7   : > { %16251 = vmatprep.subr.bf16.mxu0 %v28829_v53  ;;  %16255 = vmatprep.subr.bf16.mxu1 %v28830_v20  ;;  %v25748_v30 = vpop.permute.xlu0 %18990  ;;  %v28860_v53 = vpack.c.bf16 %v28858_v34, %v28859_v38  ;;  %v28877_v34 = vld [vmem:[#allocation31_spill] sm:$0xff] }
 0x8e8   : > { %9687 = vmatprep.mubr.f32.mxu0 %v28233_v46  ;;  %9770 = vmatprep.mubr.f32.mxu1 %v28233_v46  ;;  %v18993_v16 = vunpack.i.h.bf16 %v25748_v30 }
 0x8e9   : > { %19265 = vrot.lane.b32.xlu0 %v24715_v28, %s19840_s16  ;;  %19275 = vrot.lane.b32.xlu1 %v28679_v35, %s19840_s16  ;;  %v28837_v28 = vld [vmem:[#allocation21_spill] sm:$0xff]  ;;  %v28840_v35 = vld [vmem:[#allocation16_spill] sm:$0xff] }
 0x8ea   : > { %14907 = vmatmul.mubr.msk.f32.gmra.mrb[30].mxu0 %vm28822_vm0, %v25639_v45  ;;  %14918 = vmatmul.mubr.msk.f32.vlgmr.msra.gmra.mrb[28].mxu1 %vm28831_vm6, %v25612_v1  ;;  %v28839_v43 = vpack.c.bf16 %v28837_v28, %v28838_v50  ;;  %v25765_v11 = vpop.permute.xlu1 %19010  ;;  %v28842_v55 = vpack.c.bf16 %v28840_v35, %v28841_v40  ;;  %vm28851_vm6 = vmmov %vm28822_vm0  ;;  %v28863_v28 = vld [vmem:[#allocation23_spill] sm:$0xff]  ;;  %v28864_v50 = vld [vmem:[#allocation28_spill] sm:$0xff] }
 0x8eb   : > { %16253 = vmatpush1.bf16.msra.mxu0 %v28833_v59  ;;  %16257 = vmatpush1.bf16.msra.mxu1 %v28836_v18  ;;  %v25771_v1 = vpop.permute.xlu0 %18995  ;;  %v18987_v18 = vunpack.i.l.bf16 %v25721_v54  ;;  %v28867_v35 = vld [vmem:[#allocation12_spill] sm:$0xff] }
 0x8ec   : > { %16263 = vmatprep.subr.bf16.mxu0 %v28839_v43  ;;  %16259 = vmatprep.subr.bf16.mxu1 %v28842_v55  ;;  %v28865_v43 = vpack.c.bf16 %v28863_v28, %v28864_v50  ;;  %v18998_v28 = vunpack.i.h.bf16 %v25771_v1  ;;  %v18997_v50 = vunpack.i.l.bf16 %v25771_v1 }
 0x8ed   : > { %9693 = vmatprep.mubr.f32.mxu0 %v28233_v46  ;;  %9776 = vmatprep.mubr.f32.mxu1 %v28233_v46 }
 0x8ee   : > { %19285 = vrot.lane.b32.xlu0 %v28690_v48, %s19840_s16  ;;  %19280 = vrot.lane.b32.xlu1 %v24703_v13, %s19840_s16  ;;  %v25783_v37 = vpop.permute.xlu1 %19020  ;;  %v28849_v13 = vld [vmem:[#allocation14_spill] sm:$0xff] }
 0x8ef   : > { %14908 = vmatmul.mubr.msk.f32.gmra.mrb[32].mxu0 %vm28843_vm12, %v25662_v29  ;;  %14919 = vmatmul.mubr.msk.f32.gmra.mrb[30].mxu1 %vm28844_vm1, %v25639_v45  ;;  %v25789_v48 = vpop.permute.xlu0 %19005  ;;  %v28850_v5 = vpack.c.bf16 %v28848_v51, %v28849_v13  ;;  %v18973_v45 = vunpack.i.h.bf16 %v25708_v60  ;;  %vm28852_vm12 = vmmov %vm28822_vm0  ;;  %vm28853_vm1 = vcmask 1039360   ;;  %v19022_v60 = vunpack.i.l.bf16 %v25783_v37 }
 0x8f0   : > { %9699 = vmatprep.mubr.f32.mxu0 %v28233_v46  ;;  %16261 = vmatpush1.bf16.msra.mxu1 %v28847_v4  ;;  %v28872_v4 = vld [vmem:[#allocation34_spill] sm:$0xff] }
 0x8f1   : > { %9782 = vmatprep.mubr.f32.mxu1 %v28233_v46  ;;  %16271 = vmatprep.subr.bf16.mxu1 %v28850_v5  ;;  %v28873_v51 = vpack.c.bf16 %v28871_v23, %v28872_v4  ;;  %v18983_v5 = vunpack.i.h.bf16 %v25727_v6 }
 0x8f2   : > { %19290 = vrot.lane.b32.xlu0 %v24719_v32, %s19840_s16  ;;  %19295 = vrot.lane.b32.xlu1 %v24711_v36, %s19840_s16  ;;  %v25810_v36 = vld [vmem:[%s27920_s2 + $0x80] sm:$0xff]  ;;  %v25812_v32 = vpop.permute.xlu1 %19025 }
 0x8f3   : > { %14909 = vmatmul.mubr.msk.f32.gmra.mrb[34].mxu0 %vm28822_vm0, %v25689_v42  ;;  %14920 = vmatmul.mubr.msk.f32.gmra.mrb[32].mxu1 %vm28851_vm6, %v25662_v29  ;;  %v25815_v8 = vpop.permute.xlu0 %19015  ;;  %v10382_v29 = vsel %vm28853_vm1, %v18972_v39, %v18973_v45  ;;  %vm28854_vm0 = vmmov %vm28853_vm1 }
 0x8f4   : > { %9908 = vmatprep.mubr.f32.mxu0 %v28233_v46  ;;  %9788 = vmatprep.mubr.f32.mxu1 %v28233_v46  ;;  %v10390_v24 = vsel %vm28854_vm0, %v18977_v49, %v18978_v0  ;;  %vm28862_vm1 = vmmov %vm28851_vm6  ;;  %vm28869_vm0 = vnez %v28729_v25 }
 0x8f5   : > { %v16278_v57 = vpack.c.bf16 %v10390_v24, %v10382_v29  ;;  %v18982_v29 = vunpack.i.l.bf16 %v25727_v6  ;;  %v19027_v6 = vunpack.i.l.bf16 %v25812_v32 }
 0x8f6   : > { %19300 = vrot.lane.b32.xlu0 %v25012_v10, %s19840_s16  ;;  %19305 = vrot.lane.b32.xlu1 %v25003_v26, %s19840_s16  ;;  %v28857_v10 = vpack.c.bf16 %v28855_v44, %v28856_v33  ;;  %v25837_v26 = vld [vmem:[%s27920_s2 + $0x88] sm:$0xff]  ;;  %v25843_v20 = vpop.permute.xlu1 %19030  ;;  %v19028_v44 = vunpack.i.h.bf16 %v25812_v32  ;;  %v25908_v33 = vld [vmem:[%s27920_s2 + $0x98] sm:$0xff] }
 0x8f7   : > { %14926 = vmatmul.mubr.msk.f32.vlgmr.msra.gmra.mrb[20].mxu0 %vm28852_vm12, %v25810_v36  ;;  %14921 = vmatmul.mubr.msk.f32.gmra.mrb[34].mxu1 %vm28851_vm6, %v25689_v42  ;;  %v18992_v42 = vunpack.i.l.bf16 %v25748_v30  ;;  %v25850_v59 = vpop.permute.xlu0 %19045  ;;  %vm28861_vm12 = vmmov %vm28851_vm6  ;;  %vm28870_vm6 = vcmask 1039360  }
 0x8f8   : > { %16265 = vmatpush1.bf16.msra.mxu0 %v28857_v10  ;;  %9914 = vmatprep.mubr.f32.mxu0 %v28233_v46 }
 0x8f9   : > { %16267 = vmatprep.subr.bf16.mxu0 %v28860_v53  ;;  %9997 = vmatprep.mubr.f32.mxu1 %v28233_v46  ;;  %v10392_v7 = vsel %vm28870_vm6, %v18992_v42, %v18993_v16 }
 0x8fa   : > { %19315 = vrot.lane.b32.xlu0 %v28712_v52, %s19840_s16  ;;  %19310 = vrot.lane.b32.xlu1 %v28686_v12, %s19840_s16  ;;  %v28866_v52 = vld [vmem:[#allocation38_spill] sm:$0xff]  ;;  %v25871_v12 = vld [vmem:[%s27920_s2 + $0x90] sm:$0xff]  ;;  %v25873_v55 = vpop.permute.xlu1 %19035 }
 0x8fb   : > { %14927 = vmatmul.mubr.msk.f32.gmra.mrb[22].mxu0 %vm28861_vm12, %v25837_v26  ;;  %14930 = vmatmul.mubr.msk.f32.vlgmr.msra.gmra.mrb[20].mxu1 %vm28862_vm1, %v25810_v36  ;;  %v28868_v40 = vpack.c.bf16 %v28866_v52, %v28867_v35  ;;  %v25884_v13 = vpop.permute.xlu0 %19055  ;;  %vm28874_vm12 = vmmov %vm28870_vm6  ;;  %v19032_v52 = vunpack.i.l.bf16 %v25843_v20  ;;  %v19008_v35 = vunpack.i.h.bf16 %v25789_v48 }
 0x8fc   : > { %16269 = vmatpush1.bf16.msra.mxu0 %v28865_v43  ;;  %9920 = vmatprep.mubr.f32.mxu0 %v28233_v46  ;;  %v10384_v24 = vsel %vm28874_vm12, %v18987_v18, %v18988_v63  ;;  %vm28875_vm6 = vmmov %vm28862_vm1  ;;  %v10381_v53 = vsel %vm28874_vm12, %v18982_v29, %v18972_v39  ;;  %v19033_v43 = vunpack.i.h.bf16 %v25843_v20  ;;  %v19007_v39 = vunpack.i.l.bf16 %v25789_v48 }
 0x8fd   : > { %16273 = vmatpush1.bf16.msra.mxu1 %v28868_v40  ;;  %16280 = vmatprep.subr.msk.bf16.mxu0 %vm28869_vm0, %v16278_v57  ;;  %v19058_v20 = vunpack.i.h.bf16 %v25884_v13  ;;  %v19057_v23 = vunpack.i.l.bf16 %v25884_v13  ;;  %v19013_v29 = vunpack.i.h.bf16 %v25765_v11  ;;  %v26090_v13 = vld [vmem:[%s27920_s2 + $0xa8] sm:$0xff] }
 0x8fe   : > { %16275 = vmatprep.subr.bf16.mxu1 %v28873_v51  ;;  %10003 = vmatprep.mubr.f32.mxu1 %v28233_v46  ;;  %v25910_v10 = vpop.permute.xlu1 %19040  ;;  %v19002_v51 = vunpack.i.l.bf16 %v25743_v62 }
 0x8ff   : > { %19320 = vrot.lane.b32.xlu0 %v25249_v3, %s19840_s16  ;;  %19325 = vrot.lane.b32.xlu1 %v25151_v61, %s19840_s16  ;;  %v16290_v3 = vpack.c.bf16 %v10392_v7, %v10384_v24  ;;  %v28876_v61 = vld [vmem:[#allocation24_spill] sm:$0xff]  ;;  %v25916_v32 = vpop.permute.xlu0 %19060  ;;  %v19003_v7 = vunpack.i.h.bf16 %v25743_v62  ;;  %v19012_v24 = vunpack.i.l.bf16 %v25765_v11  ;;  %v15118_v11 = vld [vmem:[%s27922_s4 + $0x20] sm:$0xff] }
 0x900   : > { %14928 = vmatmul.mubr.msk.f32.gmra.mrb[24].mxu0 %vm28862_vm1, %v25871_v12  ;;  %14931 = vmatmul.mubr.msk.f32.gmra.mrb[22].mxu1 %vm28875_vm6, %v25837_v26  ;;  %v28878_v38 = vpack.c.bf16 %v28876_v61, %v28877_v34  ;;  %vm28879_vm1 = vmmov %vm28874_vm12  ;;  %vm28880_vm6 = vnez %v28739_v14 }
 0x901   : > { %9926 = vmatprep.mubr.f32.mxu0 %v28233_v46  ;;  %10009 = vmatprep.mubr.f32.mxu1 %v28233_v46  ;;  %v10389_v57 = vsel %vm28879_vm1, %v18983_v5, %v18977_v49  ;;  %vm28882_vm12 = vmmov %vm28879_vm1 }
 0x902   : > { %16277 = vmatpush1.bf16.msra.mxu1 %v28878_v38  ;;  %v10398_v49 = vsel %vm28882_vm12, %v19027_v6, %v19028_v44  ;;  %vm28883_vm1 = vmmov %vm28881_vm15  ;;  %v25934_v1 = vpop.permute.xlu1 %19050  ;;  %v16281_v40 = vpack.c.bf16 %v10389_v57, %v10381_v53  ;;  %v19018_v57 = vunpack.i.h.bf16 %v25815_v8 }
 0x903   : > { %16292 = vmatprep.subr.msk.bf16.mxu1 %vm28880_vm6, %v16290_v3  ;;  %v25940_v4 = vpop.permute.xlu0 %19070  ;;  %v10405_v3 = vsel %vm28882_vm12, %v19033_v43, %v18997_v50  ;;  %v19053_v54 = vunpack.i.h.bf16 %v25934_v1  ;;  %12571 = vperm.xlu0 %19329, %v15118_v11   ;;  %v15121_v11 = vld [vmem:[%s27922_s4 + $0x38] sm:$0xff] }
 0x904   : > { %14929 = vmatmul.mubr.msk.f32.gmra.mrb[26].mxu0 %vm28881_vm15, %v25908_v33  ;;  %14932 = vmatmul.mubr.msk.f32.gmra.mrb[24].mxu1 %vm28883_vm1, %v25871_v12  ;;  %vm28884_vm15 = vmmov %vm28882_vm12 }
 0x905   : > { %10086 = vmatprep.mubr.f32.mxu0 %v28233_v46  ;;  %10015 = vmatprep.mubr.f32.mxu1 %v28233_v46  ;;  %v10406_v5 = vsel %vm28884_vm15, %v18997_v50, %v18998_v28  ;;  %vm28885_vm1 = vmmov %vm28882_vm12  ;;  %v19017_v50 = vunpack.i.l.bf16 %v25815_v8 }
 0x906   : > { %v10397_v61 = vsel %vm28885_vm1, %v19032_v52, %v19027_v6  ;;  %v16284_v34 = vpack.c.bf16 %v10406_v5, %v10398_v49  ;;  %vm28887_vm14 = vmmov %vm28885_vm1  ;;  %v28890_v6 = vld [vmem:[#allocation36_spill] sm:$0xff]  ;;  %v19023_v5 = vunpack.i.h.bf16 %v25783_v37 }
 0x907   : > { %v10391_v38 = vsel %vm28887_vm14, %v18978_v0, %v18992_v42  ;;  %vm28888_vm15 = vmmov %vm28885_vm1  ;;  %vm28891_vm1 = vnez %v28890_v6  ;;  %v25972_v0 = vpop.permute.xlu1 %19065  ;;  %v16287_v52 = vpack.c.bf16 %v10405_v3, %v10397_v61  ;;  %v25986_v49 = vpop.permute.xlu0 %19075  ;;  %12586 = vperm.xlu0 %19329, %v15121_v11  }
 0x908   : > { %14934 = vmatmul.mubr.msk.f32.vlgmr.msra.gmra.mrb[28].mxu0 %vm28886_vm7, %v25810_v36  ;;  %v10386_v53 = vsel %vm28888_vm15, %v19007_v39, %v19008_v35  ;;  %vm28889_vm12 = vmmov %vm28886_vm7 }
 0x909   : > { %14933 = vmatmul.mubr.msk.f32.gmra.mrb[26].mxu1 %vm28889_vm12, %v25908_v33  ;;  %16283 = vmatpush1.bf16.msk.msra.mxu0 %vm28891_vm1, %v16281_v40  ;;  %vm28892_vm7 = vmmov %vm28887_vm14 }
 0x90a   : > { %v10400_v21 = vsel %vm28892_vm7, %v19057_v23, %v19058_v20  ;;  %16286 = vmatprep.subr.msk.bf16.mxu0 %vm28869_vm0, %v16284_v34  ;;  %10092 = vmatprep.mubr.f32.mxu0 %v28233_v46  ;;  %vm28893_vm14 = vmmov %vm28892_vm7  ;;  %v28899_v34 = vld [vmem:[#allocation41_spill] sm:$0xff] }
 0x90b   : > { %v10383_v42 = vsel %vm28893_vm14, %v18973_v45, %v18987_v18  ;;  %vm28894_vm15 = vmmov %vm28892_vm7  ;;  %10175 = vmatprep.mubr.f32.mxu1 %v28233_v46  ;;  %vm28900_vm0 = vnez %v28899_v34  ;;  %v26002_v37 = vpop.permute.xlu1 %19090 }
 0x90c   : > { %v10408_v8 = vsel %vm28894_vm15, %v19002_v51, %v19003_v7  ;;  %vm28895_vm12 = vmmov %vm28892_vm7  ;;  %v16293_v40 = vpack.c.bf16 %v10391_v38, %v10383_v42  ;;  %vm28896_vm7 = vcmask 261120   ;;  %v19038_v42 = vunpack.i.h.bf16 %v25873_v55 }
 0x90d   : > { %v10394_v43 = vsel %vm28895_vm12, %v19012_v24, %v19013_v29  ;;  %14935 = vmatmul.mubr.msk.f32.gmra.mrb[30].mxu0 %vm28896_vm7, %v25837_v26  ;;  %vm28897_vm14 = vmmov %vm28895_vm12  ;;  %v16296_v3 = vpack.c.bf16 %v10408_v8, %v10400_v21  ;;  %v10388_v61 = vsel %vm28895_vm12, %v19017_v50, %v19018_v57  ;;  %v19077_v57 = vunpack.i.l.bf16 %v25986_v49 }
 0x90e   : > { %v16302_v45 = vpack.c.bf16 %v10394_v43, %v10386_v53  ;;  %v10399_v18 = vsel %vm28897_vm14, %v19028_v44, %v19057_v23  ;;  %vm28898_vm15 = vmmov %vm28896_vm7  ;;  %16289 = vmatpush1.bf16.msk.msra.mxu0 %vm28891_vm1, %v16287_v52  ;;  %10098 = vmatprep.mubr.f32.mxu0 %v28233_v46  ;;  %v19078_v53 = vunpack.i.h.bf16 %v25986_v49  ;;  %v26051_v52 = vld [vmem:[%s27920_s2 + $0xa0] sm:$0xff] }
 0x90f   : > { %14938 = vmatmul.mubr.msk.f32.vlgmr.msra.gmra.mrb[28].mxu1 %vm28898_vm15, %v25810_v36  ;;  %vm28901_vm7 = vmmov %vm28895_vm12  ;;  %v26008_v36 = vpop.permute.xlu0 %19080 }
 0x910   : > { %16295 = vmatpush1.bf16.msk.msra.mxu1 %vm28900_vm0, %v16293_v40  ;;  %16304 = vmatprep.subr.msk.bf16.mxu0 %vm28763_vm9, %v16302_v45  ;;  %v10407_v38 = vsel %vm28901_vm7, %v18998_v28, %v19002_v51  ;;  %vm28902_vm14 = vmmov %vm28901_vm7  ;;  %v26022_v51 = vpop.permute.xlu1 %19100  ;;  %v10385_v21 = vsel %vm28901_vm7, %v18988_v63, %v19007_v39  ;;  %v19052_v63 = vunpack.i.l.bf16 %v25934_v1  ;;  %v19047_v45 = vunpack.i.l.bf16 %v25850_v59 }
 0x911   : > { %16298 = vmatprep.subr.msk.bf16.mxu1 %vm28880_vm6, %v16296_v3  ;;  %v10396_v44 = vsel %vm28902_vm14, %v19022_v60, %v19023_v5  ;;  %v16299_v23 = vpack.c.bf16 %v10407_v38, %v10399_v18  ;;  %10181 = vmatprep.mubr.f32.mxu1 %v28233_v46  ;;  %vm28903_vm12 = vmmov %vm28898_vm15  ;;  %v19048_v5 = vunpack.i.h.bf16 %v25850_v59  ;;  %v19042_v38 = vunpack.i.l.bf16 %v25910_v10 }
 0x912   : > { %14936 = vmatmul.mubr.msk.f32.gmra.mrb[32].mxu0 %vm28898_vm15, %v25871_v12  ;;  %v16314_v28 = vpack.c.bf16 %v10396_v44, %v10388_v61  ;;  %vm28904_vm14 = vmmov %vm28903_vm12  ;;  %v19043_v61 = vunpack.i.h.bf16 %v25910_v10  ;;  %v15119_v10 = vld [vmem:[%s27922_s4 + $0x28] sm:$0xff]  ;;  %v19092_v59 = vunpack.i.l.bf16 %v26002_v37 }
 0x913   : > { %14939 = vmatmul.mubr.msk.f32.gmra.mrb[30].mxu1 %vm28903_vm12, %v25837_v26  ;;  %10104 = vmatprep.mubr.f32.mxu0 %v28233_v46  ;;  %v19037_v26 = vunpack.i.l.bf16 %v25873_v55  ;;  %v26033_v8 = vpop.permute.xlu0 %19085  ;;  %vm28905_vm15 = vmmov %vm28901_vm7  ;;  %v15120_v55 = vld [vmem:[%s27922_s4 + $0x30] sm:$0xff] }
 0x914   : > { %16301 = vmatpush1.bf16.msk.msra.mxu1 %vm28900_vm0, %v16299_v23  ;;  %10187 = vmatprep.mubr.f32.mxu1 %v28233_v46  ;;  %v10393_v43 = vsel %vm28905_vm15, %v18993_v16, %v19012_v24  ;;  %vm28906_vm12 = vmmov %vm28901_vm7  ;;  %v19083_v16 = vunpack.i.h.bf16 %v26008_v36  ;;  %v19082_v24 = vunpack.i.l.bf16 %v26008_v36  ;;  %v26056_v40 = vpop.permute.xlu1 %19110 }
 0x915   : > { %16316 = vmatprep.subr.msk.bf16.mxu1 %vm28771_vm8, %v16314_v28  ;;  %v10402_v39 = vsel %vm28906_vm12, %v19077_v57, %v19078_v53  ;;  %vm28907_vm7 = vmmov %vm28904_vm14  ;;  %v16305_v30 = vpack.c.bf16 %v10393_v43, %v10385_v21  ;;  %v10401_v48 = vsel %vm28906_vm12, %v19058_v20, %v19077_v57  ;;  %v19068_v20 = vunpack.i.h.bf16 %v25972_v0  ;;  %12576 = vperm.xlu1 %19330, %v15119_v10  }
 0x916   : > { %14937 = vmatmul.mubr.msk.f32.gmra.mrb[34].mxu0 %vm28904_vm14, %v25908_v33  ;;  %vm28908_vm14 = vmmov %vm28906_vm12  ;;  %v19073_v21 = vunpack.i.h.bf16 %v25940_v4 }
 0x917   : > { %14940 = vmatmul.mubr.msk.f32.gmra.mrb[32].mxu1 %vm28907_vm7, %v25871_v12  ;;  %10553 = vmatprep.mubr.f32.mxu0 %v28233_v46  ;;  %v10387_v12 = vsel %vm28908_vm14, %v19008_v35, %v19017_v50  ;;  %vm28909_vm15 = vmmov %vm28906_vm12  ;;  %v26066_v3 = vpop.permute.xlu0 %19095 }
 0x918   : > { %10193 = vmatprep.mubr.f32.mxu1 %v28233_v46  ;;  %v10410_v18 = vsel %vm28909_vm15, %v19037_v26, %v19038_v42  ;;  %vm28910_vm14 = vmmov %vm28906_vm12  ;;  %vm28911_vm15 = vcmask 793600   ;;  %v26107_v44 = vpop.permute.xlu1 %19115 }
 0x919   : > { %v16308_v35 = vpack.c.bf16 %v10410_v18, %v10402_v39  ;;  %v10395_v50 = vsel %vm28910_vm14, %v19013_v29, %v19022_v60  ;;  %v10963_v36 = vsel %vm28911_vm15, %v19052_v63, %v19053_v54  ;;  %vm28912_vm0 = vmmov %vm28907_vm7  ;;  %v19067_v29 = vunpack.i.l.bf16 %v25972_v0  ;;  %12581 = vperm.xlu1 %19330, %v15120_v55   ;;  %v26326_v0 = vld [vmem:[%s27920_s2 + $0xc0] sm:$0xff] }
 0x91a   : > { %14954 = vmatmul.mubr.msk.f32.vlgmr.msra.gmra.mrb[20].mxu0 %vm28907_vm7, %v26051_v52  ;;  %v16317_v23 = vpack.c.bf16 %v10395_v50, %v10387_v12  ;;  %vm28914_vm7 = vmmov %vm28911_vm15  ;;  %vm28916_vm15 = vcmask 261120   ;;  %v19063_v18 = vunpack.i.h.bf16 %v25916_v32 }
 0x91b   : > { %14941 = vmatmul.mubr.msk.f32.gmra.mrb[34].mxu1 %vm28912_vm0, %v25908_v33  ;;  %16307 = vmatpush1.bf16.msk.msra.mxu0 %vm28767_vm10, %v16305_v30  ;;  %v10409_v33 = vsel %vm28906_vm12, %v19003_v7, %v19037_v26  ;;  %vm28913_vm0 = vmmov %vm28906_vm12  ;;  %v10955_v62 = vsel %vm28914_vm7, %v19047_v45, %v19048_v5  ;;  %v26115_v57 = vpop.permute.xlu0 %19105  ;;  %v19072_v26 = vunpack.i.l.bf16 %v25940_v4  ;;  %v10957_v49 = vsel %vm28914_vm7, %v19067_v29, %v19068_v20 }
 0x91c   : > { %v10404_v60 = vsel %vm28913_vm0, %v19082_v24, %v19083_v16  ;;  %16310 = vmatprep.subr.msk.bf16.mxu0 %vm28763_vm9, %v16308_v35  ;;  %10559 = vmatprep.mubr.f32.mxu0 %v28233_v46  ;;  %v16311_v7 = vpack.c.bf16 %v10409_v33, %v10401_v48  ;;  %vm28915_vm14 = vmmov %vm28913_vm0  ;;  %v16326_v43 = vpack.c.bf16 %v10963_v36, %v10955_v62  ;;  %v26132_v16 = vld [vmem:[%s27920_s2 + $0xb0] sm:$0xff]  ;;  %v19112_v35 = vunpack.i.l.bf16 %v26056_v40  ;;  %v26174_v36 = vld [vmem:[%s27920_s2 + $0xb8] sm:$0xff] }
 0x91d   : > { %10642 = vmatprep.mubr.f32.mxu1 %v28233_v46  ;;  %v10412_v28 = vsel %vm28915_vm14, %v19042_v38, %v19043_v61  ;;  %vm28917_vm12 = vmmov %vm28913_vm0  ;;  %v10962_v10 = vsel %vm28914_vm7, %v19063_v18, %v19052_v63  ;;  %v19088_v33 = vunpack.i.h.bf16 %v26033_v8  ;;  %v19118_v62 = vunpack.i.h.bf16 %v26107_v44 }
 0x91e   : > { %14955 = vmatmul.mubr.msk.f32.gmra.mrb[22].mxu0 %vm28916_vm15, %v26090_v13  ;;  %v10403_v39 = vsel %vm28917_vm12, %v19078_v53, %v19082_v24  ;;  %vm28918_vm0 = vmmov %vm28916_vm15  ;;  %v16320_v30 = vpack.c.bf16 %v10412_v28, %v10404_v60  ;;  %v26143_v53 = vpop.permute.xlu1 %19120  ;;  %v19087_v60 = vunpack.i.l.bf16 %v26033_v8  ;;  %v19098_v8 = vunpack.i.h.bf16 %v26066_v3 }
 0x91f   : > { %14966 = vmatmul.mubr.msk.f32.vlgmr.msra.gmra.mrb[20].mxu1 %vm28918_vm0, %v26051_v52  ;;  %16313 = vmatpush1.bf16.msk.msra.mxu0 %vm28767_vm10, %v16311_v7  ;;  %vm28919_vm14 = vmmov %vm28917_vm12  ;;  %v26151_v12 = vpop.permute.xlu0 %19135  ;;  %v19117_v7 = vunpack.i.l.bf16 %v26107_v44  ;;  %v19097_v28 = vunpack.i.l.bf16 %v26066_v3 }
 0x920   : > { %16319 = vmatpush1.bf16.msk.msra.mxu1 %vm28775_vm3, %v16317_v23  ;;  %16328 = vmatprep.subr.msk.bf16.mxu0 %vm20427_vm4, %v16326_v43  ;;  %v10411_v24 = vsel %vm28919_vm14, %v19038_v42, %v19042_v38  ;;  %vm28920_vm15 = vmmov %vm28914_vm7  ;;  %v19062_v42 = vunpack.i.l.bf16 %v25916_v32  ;;  %v19113_v38 = vunpack.i.h.bf16 %v26056_v40 }
 0x921   : > { %16322 = vmatprep.subr.msk.bf16.mxu1 %vm28771_vm8, %v16320_v30  ;;  %10565 = vmatprep.mubr.f32.mxu0 %v28233_v46  ;;  %v10965_v61 = vsel %vm28920_vm15, %v19072_v26, %v19073_v21  ;;  %v16323_v48 = vpack.c.bf16 %v10411_v24, %v10403_v39  ;;  %vm28921_vm12 = vmmov %vm28918_vm0  ;;  %v19138_v39 = vunpack.i.h.bf16 %v26151_v12  ;;  %v19137_v30 = vunpack.i.l.bf16 %v26151_v12  ;;  %v26365_v12 = vld [vmem:[%s27920_s2 + $0xc8] sm:$0xff] }
 0x922   : > { %10648 = vmatprep.mubr.f32.mxu1 %v28233_v46  ;;  %14956 = vmatmul.mubr.msk.f32.gmra.mrb[24].mxu0 %vm28921_vm12, %v26132_v16  ;;  %v16338_v50 = vpack.c.bf16 %v10965_v61, %v10957_v49  ;;  %v26182_v32 = vpop.permute.xlu1 %19125  ;;  %vm28922_vm14 = vmmov %vm28918_vm0  ;;  %v19093_v24 = vunpack.i.h.bf16 %v26002_v37  ;;  %v19103_v61 = vunpack.i.h.bf16 %v26022_v51 }
 0x923   : > { %14967 = vmatmul.mubr.msk.f32.gmra.mrb[22].mxu1 %vm28918_vm0, %v26090_v13  ;;  %10571 = vmatprep.mubr.f32.mxu0 %v28233_v46  ;;  %v26191_v23 = vpop.permute.xlu0 %19140  ;;  %vm28923_vm15 = vmmov %vm28914_vm7 }
 0x924   : > { %16325 = vmatpush1.bf16.msk.msra.mxu1 %vm28775_vm3, %v16323_v48  ;;  %10654 = vmatprep.mubr.f32.mxu1 %v28233_v46  ;;  %v10954_v63 = vsel %vm28923_vm15, %v19062_v42, %v19047_v45  ;;  %vm28924_vm12 = vmmov %vm28914_vm7  ;;  %v10956_v45 = vsel %vm28914_vm7, %v19048_v5, %v19067_v29  ;;  %v19102_v48 = vunpack.i.l.bf16 %v26022_v51 }
 0x925   : > { %16340 = vmatprep.subr.msk.bf16.mxu1 %vm28678_vm5, %v16338_v50  ;;  %v10971_v43 = vsel %vm28924_vm12, %v19112_v35, %v19113_v38  ;;  %v16329_v44 = vpack.c.bf16 %v10962_v10, %v10954_v63  ;;  %vm28926_vm15 = vmmov %vm28914_vm7  ;;  %v10959_v50 = vsel %vm28914_vm7, %v19097_v28, %v19098_v8  ;;  %v19123_v10 = vunpack.i.h.bf16 %v26143_v53 }
 0x926   : > { %14957 = vmatmul.mubr.msk.f32.gmra.mrb[26].mxu0 %vm28922_vm14, %v26174_v36  ;;  %v26216_v49 = vpop.permute.xlu1 %19130  ;;  %vm28925_vm14 = vmmov %vm28914_vm7  ;;  %v10978_v5 = vsel %vm28926_vm15, %v19118_v62, %v19087_v60  ;;  %v19108_v63 = vunpack.i.h.bf16 %v26115_v57 }
 0x927   : > { %14968 = vmatmul.mubr.msk.f32.gmra.mrb[24].mxu1 %vm28918_vm0, %v26132_v16  ;;  %10731 = vmatprep.mubr.f32.mxu0 %v28233_v46  ;;  %v10979_v18 = vsel %vm28925_vm14, %v19087_v60, %v19088_v33  ;;  %v26222_v55 = vpop.permute.xlu0 %19150  ;;  %vm28927_vm12 = vmmov %vm28914_vm7  ;;  %v19122_v60 = vunpack.i.l.bf16 %v26143_v53  ;;  %v19133_v4 = vunpack.i.h.bf16 %v26216_v49 }
 0x928   : > { %10660 = vmatprep.mubr.f32.mxu1 %v28233_v46  ;;  %v10970_v29 = vsel %vm28927_vm12, %v19117_v7, %v19112_v35  ;;  %v16332_v42 = vpack.c.bf16 %v10979_v18, %v10971_v43  ;;  %vm28928_vm14 = vmmov %vm28918_vm0  ;;  %v19107_v43 = vunpack.i.l.bf16 %v26115_v57 }
 0x929   : > { %vm28929_vm15 = vmmov %vm28914_vm7 }
 0x92a   : > { %14978 = vmatmul.mubr.msk.f32.vlgmr.msra.gmra.mrb[28].mxu0 %vm28918_vm0, %v26051_v52  ;;  %v10964_v35 = vsel %vm28929_vm15, %v19053_v54, %v19072_v26  ;;  %vm28930_vm12 = vmmov %vm28914_vm7  ;;  %v26251_v62 = vpop.permute.xlu1 %19145  ;;  %v16335_v54 = vpack.c.bf16 %v10978_v5, %v10970_v29 }
 0x92b   : > { %14969 = vmatmul.mubr.msk.f32.gmra.mrb[26].mxu1 %vm28928_vm14, %v26174_v36  ;;  %16331 = vmatpush1.bf16.msk.msra.mxu0 %vm28674_vm11, %v16329_v44  ;;  %v10973_v11 = vsel %vm28930_vm12, %v19137_v30, %v19138_v39  ;;  %v16341_v7 = vpack.c.bf16 %v10964_v35, %v10956_v45  ;;  %vm28931_vm0 = vmmov %vm28914_vm7  ;;  %v26259_v26 = vpop.permute.xlu0 %19160  ;;  %v19148_v35 = vunpack.i.h.bf16 %v26251_v62 }
 0x92c   : > { %16334 = vmatprep.subr.msk.bf16.mxu0 %vm20427_vm4, %v16332_v42  ;;  %10737 = vmatprep.mubr.f32.mxu0 %v28233_v46  ;;  %v10967_v1 = vsel %vm28931_vm0, %v19102_v48, %v19103_v61  ;;  %vm28932_vm7 = vmmov %vm28931_vm0  ;;  %v10980_v57 = vsel %vm28931_vm0, %v19088_v33, %v19092_v59  ;;  %v19162_v29 = vunpack.i.l.bf16 %v26259_v26  ;;  %v19127_v42 = vunpack.i.l.bf16 %v26182_v32 }
 0x92d   : > { %10820 = vmatprep.mubr.f32.mxu1 %v28233_v46  ;;  %v10981_v15 = vsel %vm28932_vm7, %v19092_v59, %v19093_v24  ;;  %vm28933_vm4 = vmmov %vm28928_vm14  ;;  %v16350_v44 = vpack.c.bf16 %v10967_v1, %v10959_v50  ;;  %v19128_v59 = vunpack.i.h.bf16 %v26182_v32  ;;  %v19147_v32 = vunpack.i.l.bf16 %v26251_v62 }
 0x92e   : > { %14979 = vmatmul.mubr.msk.f32.gmra.mrb[30].mxu0 %vm28933_vm4, %v26090_v13  ;;  %vm28934_vm14 = vmmov %vm28931_vm0  ;;  %v16344_v18 = vpack.c.bf16 %v10981_v15, %v10973_v11  ;;  %v26282_v40 = vpop.permute.xlu1 %19155  ;;  %v19142_v1 = vunpack.i.l.bf16 %v26191_v23 }
 0x92f   : > { %v10972_v45 = vsel %vm28934_vm14, %v19113_v38, %v19137_v30  ;;  %vm28935_vm15 = vmmov %vm28933_vm4  ;;  %16337 = vmatpush1.bf16.msk.msra.mxu0 %vm28674_vm11, %v16335_v54  ;;  %10743 = vmatprep.mubr.f32.mxu0 %v28233_v46  ;;  %v26288_v22 = vpop.permute.xlu0 %19165  ;;  %v19163_v30 = vunpack.i.h.bf16 %v26259_v26  ;;  %v19157_v37 = vunpack.i.l.bf16 %v26282_v40 }
 0x930   : > { %14990 = vmatmul.mubr.msk.f32.vlgmr.msra.gmra.mrb[28].mxu1 %vm28935_vm15, %v26051_v52  ;;  %vm28936_vm12 = vmmov %vm28931_vm0  ;;  %16352 = vmatprep.subr.msk.bf16.mxu0 %vm20760_vm13, %v16350_v44  ;;  %v16347_v38 = vpack.c.bf16 %v10980_v57, %v10972_v45  ;;  %v19167_v11 = vunpack.i.l.bf16 %v26288_v22  ;;  %v26404_v57 = vld [vmem:[%s27920_s2 + $0xd0] sm:$0xff] }
 0x931   : > { %v10969_v5 = vsel %vm28936_vm12, %v19122_v60, %v19123_v10  ;;  %16343 = vmatpush1.bf16.msk.msra.mxu1 %vm28683_vm2, %v16341_v7  ;;  %vm28937_vm11 = vmmov %vm28931_vm0  ;;  %10826 = vmatprep.mubr.f32.mxu1 %v28233_v46  ;;  %v19143_v7 = vunpack.i.h.bf16 %v26191_v23 }
 0x932   : > { %16346 = vmatprep.subr.msk.bf16.mxu1 %vm28678_vm5, %v16344_v18  ;;  %v10961_v52 = vsel %vm28937_vm11, %v19107_v43, %v19108_v63  ;;  %vm28938_vm7 = vmmov %vm28933_vm4  ;;  %v26302_v33 = vpop.permute.xlu1 %19180  ;;  %vm28939_vm5 = vnez %v28709_v17  ;;  %v19153_v17 = vunpack.i.h.bf16 %v26222_v55 }
 0x933   : > { %14980 = vmatmul.mubr.msk.f32.gmra.mrb[32].mxu0 %vm28938_vm7, %v26132_v16  ;;  %v16362_v31 = vpack.c.bf16 %v10969_v5, %v10961_v52  ;;  %v26308_v50 = vpop.permute.xlu0 %19170  ;;  %vm28940_vm14 = vmmov %vm28931_vm0 }
 0x934   : > { %14991 = vmatmul.mubr.msk.f32.gmra.mrb[30].mxu1 %vm28933_vm4, %v26090_v13  ;;  %10749 = vmatprep.mubr.f32.mxu0 %v28233_v46  ;;  %v10958_v41 = vsel %vm28940_vm14, %v19068_v20, %v19097_v28  ;;  %vm28942_vm15 = vmmov %vm28931_vm0  ;;  %v10966_v20 = vsel %vm28931_vm0, %v19073_v21, %v19102_v48  ;;  %v19168_v28 = vunpack.i.h.bf16 %v26288_v22  ;;  %v19132_v21 = vunpack.i.l.bf16 %v26216_v49 }
 0x935   : > { %16349 = vmatpush1.bf16.msk.msra.mxu1 %vm28683_vm2, %v16347_v38  ;;  %10832 = vmatprep.mubr.f32.mxu1 %v28233_v46  ;;  %vm28941_vm2 = vmmov %vm28933_vm4  ;;  %v10975_v13 = vsel %vm28942_vm15, %v19162_v29, %v19163_v30  ;;  %v16353_v10 = vpack.c.bf16 %v10966_v20, %v10958_v41  ;;  %v26440_v20 = vld [vmem:[%s27920_s2 + $0xd8] sm:$0xff] }
 0x936   : > { %16364 = vmatprep.subr.msk.bf16.mxu1 %vm28939_vm5, %v16362_v31  ;;  %vm28943_vm12 = vmmov %vm28941_vm2 }
 0x937   : > { %14981 = vmatmul.mubr.msk.f32.gmra.mrb[34].mxu0 %vm28941_vm2, %v26174_v36  ;;  %vm28944_vm11 = vmmov %vm28931_vm0  ;;  %v26341_v26 = vpop.permute.xlu0 %19175 }
 0x938   : > { %14992 = vmatmul.mubr.msk.f32.gmra.mrb[32].mxu1 %vm28943_vm12, %v26132_v16  ;;  %11126 = vmatprep.mubr.f32.mxu0 %v28233_v46  ;;  %v26336_v16 = vpop.permute.xlu1 %19190  ;;  %v10983_v54 = vsel %vm28944_vm11, %v19127_v42, %v19128_v59  ;;  %vm28945_vm7 = vmmov %vm28931_vm0  ;;  %vm28950_vm12 = vnez %v28708_v9  ;;  %v19178_v31 = vunpack.i.h.bf16 %v26341_v26 }
 0x939   : > { %10838 = vmatprep.mubr.f32.mxu1 %v28233_v46  ;;  %v10974_v48 = vsel %vm28945_vm7, %v19138_v39, %v19162_v29  ;;  %vm28946_vm4 = vmmov %vm28941_vm2  ;;  %v16356_v15 = vpack.c.bf16 %v10983_v54, %v10975_v13  ;;  %v19192_v41 = vunpack.i.l.bf16 %v26336_v16 }
 0x93a   : > { %vm28947_vm14 = vmmov %vm28931_vm0 }
 0x93b   : > { %15006 = vmatmul.mubr.msk.f32.vlgmr.msra.gmra.mrb[20].mxu0 %vm28946_vm4, %v26326_v0  ;;  %v10960_v63 = vsel %vm28947_vm14, %v19098_v8, %v19107_v43  ;;  %vm28948_vm2 = vmmov %vm28931_vm0  ;;  %vm28951_vm0 = vcmask 785408   ;;  %v19172_v8 = vunpack.i.l.bf16 %v26308_v50 }
 0x93c   : > { %v10968_v44 = vsel %vm28948_vm2, %v19103_v61, %v19122_v60  ;;  %vm28949_vm15 = vmmov %vm28946_vm4  ;;  %16355 = vmatpush1.bf16.msk.msra.mxu0 %vm28950_vm12, %v16353_v10  ;;  %v11536_v3 = vsel %vm28951_vm0, %v19147_v32, %v19148_v35  ;;  %11132 = vmatprep.mubr.f32.mxu0 %v28233_v46  ;;  %v26381_v39 = vpop.permute.xlu1 %19195  ;;  %v19158_v61 = vunpack.i.h.bf16 %v26282_v40  ;;  %v26391_v60 = vpop.permute.xlu0 %19185 }
 0x93d   : > { %14993 = vmatmul.mubr.msk.f32.gmra.mrb[34].mxu1 %vm28949_vm15, %v26174_v36  ;;  %vm28952_vm11 = vmmov %vm28948_vm2  ;;  %v19173_v36 = vunpack.i.h.bf16 %v26308_v50  ;;  %16358 = vmatprep.subr.msk.bf16.mxu0 %vm20760_vm13, %v16356_v15  ;;  %v16365_v27 = vpack.c.bf16 %v10968_v44, %v10960_v63  ;;  %v19198_v54 = vunpack.i.h.bf16 %v26381_v39 }
 0x93e   : > { %v10982_v51 = vsel %vm28952_vm11, %v19093_v24, %v19127_v42  ;;  %vm28953_vm7 = vmmov %vm28948_vm2  ;;  %11215 = vmatprep.mubr.f32.mxu1 %v28233_v46  ;;  %vm28960_vm11 = vnez %v28715_v47  ;;  %v19193_v42 = vunpack.i.h.bf16 %v26336_v16 }
 0x93f   : > { %v10977_v53 = vsel %vm28953_vm7, %v19167_v11, %v19168_v28  ;;  %v16359_v49 = vpack.c.bf16 %v10982_v51, %v10974_v48  ;;  %vm28954_vm4 = vmmov %vm28951_vm0  ;;  %v19152_v28 = vunpack.i.l.bf16 %v26222_v55  ;;  %v19188_v51 = vunpack.i.h.bf16 %v26391_v60 }
 0x940   : > { %v11528_v24 = vsel %vm28954_vm4, %v19142_v1, %v19143_v7  ;;  %vm28955_vm13 = vmmov %vm28948_vm2  ;;  %v26414_v9 = vpop.permute.xlu1 %19200  ;;  %v26424_v29 = vpop.permute.xlu0 %19205 }
 0x941   : > { %v10985_v43 = vsel %vm28955_vm13, %v19132_v21, %v19133_v4  ;;  %vm28956_vm14 = vmmov %vm28948_vm2  ;;  %v16374_v18 = vpack.c.bf16 %v11536_v3, %v11528_v24  ;;  %16361 = vmatpush1.bf16.msk.msra.mxu0 %vm28950_vm12, %v16359_v49  ;;  %v19197_v4 = vunpack.i.l.bf16 %v26381_v39  ;;  %v19203_v48 = vunpack.i.h.bf16 %v26414_v9 }
 0x942   : > { %v10976_v45 = vsel %vm28956_vm14, %v19163_v30, %v19167_v11  ;;  %vm28957_vm2 = vmmov %vm28949_vm15  ;;  %v16368_v5 = vpack.c.bf16 %v10985_v43, %v10977_v53  ;;  %v19202_v15 = vunpack.i.l.bf16 %v26414_v9  ;;  %v19183_v3 = vunpack.i.h.bf16 %v26302_v33 }
 0x943   : > { %15007 = vmatmul.mubr.msk.f32.gmra.mrb[22].mxu0 %vm28957_vm2, %v26365_v12  ;;  %vm28958_vm15 = vmmov %vm28957_vm2  ;;  %16375 = vmatprep.subr.bf16.mxu0 %v16374_v18  ;;  %v19187_v53 = vunpack.i.l.bf16 %v26391_v60  ;;  %v19182_v24 = vunpack.i.l.bf16 %v26302_v33  ;;  %v26610_v60 = vld [vmem:[%s27920_s2 + $0xe8] sm:$0xff] }
 0x944   : > { %15018 = vmatmul.mubr.msk.f32.vlgmr.msra.gmra.mrb[20].mxu1 %vm28958_vm15, %v26326_v0  ;;  %vm28959_vm0 = vmmov %vm28953_vm7  ;;  %11138 = vmatprep.mubr.f32.mxu0 %v28233_v46  ;;  %v26446_v11 = vpop.permute.xlu1 %19215  ;;  %v26451_v10 = vpop.permute.xlu0 %19210 }
 0x945   : > { %v10984_v22 = vsel %vm28959_vm0, %v19128_v59, %v19132_v21  ;;  %16367 = vmatpush1.bf16.msk.msra.mxu1 %vm28960_vm11, %v16365_v27  ;;  %vm28961_vm7 = vmmov %vm28954_vm4  ;;  %v19177_v59 = vunpack.i.l.bf16 %v26341_v26  ;;  %11221 = vmatprep.mubr.f32.mxu1 %v28233_v46  ;;  %v19208_v21 = vunpack.i.h.bf16 %v26424_v29  ;;  %v19218_v62 = vunpack.i.h.bf16 %v26446_v11 }
 0x946   : > { %v11538_v52 = vsel %vm28961_vm7, %v19172_v8, %v19173_v36  ;;  %v16371_v38 = vpack.c.bf16 %v10984_v22, %v10976_v45  ;;  %16370 = vmatprep.subr.msk.bf16.mxu1 %vm28939_vm5, %v16368_v5  ;;  %vm28962_vm12 = vmmov %vm28954_vm4  ;;  %v19213_v22 = vunpack.i.h.bf16 %v26451_v10 }
 0x947   : > { %v11530_v30 = vsel %vm28962_vm12, %v19157_v37, %v19158_v61  ;;  %vm28963_vm5 = vmmov %vm28957_vm2 }
 0x948   : > { %15008 = vmatmul.mubr.msk.f32.gmra.mrb[24].mxu0 %vm28963_vm5, %v26404_v57  ;;  %vm28964_vm4 = vmmov %vm28957_vm2  ;;  %v16382_v13 = vpack.c.bf16 %v11538_v52, %v11530_v30  ;;  %v26472_v44 = vpop.permute.xlu1 %19220  ;;  %v26477_v49 = vpop.permute.xlu0 %19230  ;;  %v19212_v52 = vunpack.i.l.bf16 %v26451_v10 }
 0x949   : > { %15019 = vmatmul.mubr.msk.f32.gmra.mrb[22].mxu1 %vm28964_vm4, %v26365_v12  ;;  %11144 = vmatprep.mubr.f32.mxu0 %v28233_v46  ;;  %vm28965_vm13 = vmmov %vm28961_vm7  ;;  %v19233_v40 = vunpack.i.h.bf16 %v26477_v49 }
 0x94a   : > { %16373 = vmatpush1.bf16.msk.msra.mxu1 %vm28960_vm11, %v16371_v38  ;;  %11227 = vmatprep.mubr.f32.mxu1 %v28233_v46  ;;  %v11535_v16 = vsel %vm28965_vm13, %v19153_v17, %v19147_v32  ;;  %vm28966_vm14 = vmmov %vm28957_vm2  ;;  %v19207_v32 = vunpack.i.l.bf16 %v26424_v29 }
 0x94b   : > { %16383 = vmatprep.subr.bf16.mxu1 %v16382_v13  ;;  %vm28967_vm2 = vmmov %vm28961_vm7 }
 0x94c   : > { %15009 = vmatmul.mubr.msk.f32.gmra.mrb[26].mxu0 %vm28966_vm14, %v26440_v20  ;;  %v11544_v47 = vsel %vm28967_vm2, %v19192_v41, %v19193_v42  ;;  %vm28968_vm15 = vmmov %vm28967_vm2  ;;  %v11540_v5 = vsel %vm28967_vm2, %v19202_v15, %v19203_v48 }
 0x94d   : > { %v11552_v55 = vsel %vm28968_vm15, %v19177_v59, %v19178_v31  ;;  %vm28969_vm0 = vmmov %vm28964_vm4  ;;  %11304 = vmatprep.mubr.f32.mxu0 %v28233_v46 }
 0x94e   : > { %15020 = vmatmul.mubr.msk.f32.gmra.mrb[24].mxu1 %vm28969_vm0, %v26404_v57  ;;  %vm28970_vm11 = vmmov %vm28967_vm2 }
 0x94f   : > { %v11527_v63 = vsel %vm28970_vm11, %v19152_v28, %v19142_v1  ;;  %11233 = vmatprep.mubr.f32.mxu1 %v28233_v46  ;;  %vm28971_vm7 = vmmov %vm28967_vm2  ;;  %v16378_v1 = vpack.c.bf16 %v11552_v55, %v11544_v47 }
 0x950   : > { %v16376_v39 = vpack.c.bf16 %v11535_v16, %v11527_v63  ;;  %v11551_v27 = vsel %vm28971_vm7, %v19198_v54, %v19177_v59  ;;  %vm28972_vm12 = vmmov %vm28967_vm2  ;;  %v19223_v63 = vunpack.i.h.bf16 %v26472_v44 }
 0x951   : > { %v11543_v43 = vsel %vm28972_vm12, %v19197_v4, %v19192_v41  ;;  %vm28973_vm5 = vmmov %vm28969_vm0  ;;  %v26513_v41 = vpop.permute.xlu0 %19240 }
 0x952   : > { %15030 = vmatmul.mubr.msk.f32.vlgmr.msra.gmra.mrb[28].mxu0 %vm28973_vm5, %v26326_v0  ;;  %vm28974_vm4 = vmmov %vm28967_vm2  ;;  %v16380_v30 = vpack.c.bf16 %v11551_v27, %v11543_v43  ;;  %v19243_v47 = vunpack.i.h.bf16 %v26513_v41  ;;  %v19242_v55 = vunpack.i.l.bf16 %v26513_v41 }
 0x953   : > { %v11537_v45 = vsel %vm28974_vm4, %v19148_v35, %v19172_v8  ;;  %vm28975_vm13 = vmmov %vm28969_vm0  ;;  %16377 = vmatpush1.bf16.msra.mxu0 %v16376_v39  ;;  %v19217_v35 = vunpack.i.l.bf16 %v26446_v11  ;;  %11310 = vmatprep.mubr.f32.mxu0 %v28233_v46  ;;  %v26502_v8 = vpop.permute.xlu1 %19225  ;;  %v19222_v39 = vunpack.i.l.bf16 %v26472_v44 }
 0x954   : > { %15021 = vmatmul.mubr.msk.f32.gmra.mrb[26].mxu1 %vm28975_vm13, %v26440_v20  ;;  %vm28976_vm14 = vmmov %vm28967_vm2  ;;  %16379 = vmatprep.subr.bf16.mxu0 %v16378_v1  ;;  %v19228_v1 = vunpack.i.h.bf16 %v26502_v8 }
 0x955   : > { %v11546_v18 = vsel %vm28976_vm14, %v19207_v32, %v19208_v21  ;;  %vm28977_vm15 = vmmov %vm28967_vm2  ;;  %11393 = vmatprep.mubr.f32.mxu1 %v28233_v46 }
 0x956   : > { %v11529_v38 = vsel %vm28977_vm15, %v19143_v7, %v19157_v37  ;;  %vm28978_vm0 = vmmov %vm28967_vm2 }
 0x957   : > { %v11532_v59 = vsel %vm28978_vm0, %v19187_v53, %v19188_v51  ;;  %vm28979_vm11 = vmmov %vm28973_vm5  ;;  %v16384_v17 = vpack.c.bf16 %v11537_v45, %v11529_v38  ;;  %16381 = vmatpush1.bf16.msra.mxu0 %v16380_v30  ;;  %v26529_v54 = vpop.permute.xlu1 %19235  ;;  %v19227_v45 = vunpack.i.l.bf16 %v26502_v8 }
 0x958   : > { %15031 = vmatmul.mubr.msk.f32.gmra.mrb[30].mxu0 %vm28979_vm11, %v26365_v12  ;;  %vm28980_vm7 = vmmov %vm28978_vm0  ;;  %v16390_v23 = vpack.c.bf16 %v11540_v5, %v11532_v59  ;;  %15042 = vmatmul.mubr.msk.f32.vlgmr.msra.gmra.mrb[28].mxu1 %vm28973_vm5, %v26326_v0  ;;  %v26535_v0 = vpop.permute.xlu0 %19245  ;;  %v19238_v27 = vunpack.i.h.bf16 %v26529_v54  ;;  %v19237_v50 = vunpack.i.l.bf16 %v26529_v54 }
 0x959   : > { %v11554_v13 = vsel %vm28980_vm7, %v19182_v24, %v19183_v3  ;;  %vm28981_vm12 = vmmov %vm28978_vm0  ;;  %16385 = vmatpush1.bf16.msra.mxu1 %v16384_v17  ;;  %11316 = vmatprep.mubr.f32.mxu0 %v28233_v46  ;;  %v19247_v44 = vunpack.i.l.bf16 %v26535_v0 }
 0x95a   : > { %v11545_v7 = vsel %vm28981_vm12, %v19193_v42, %v19207_v32  ;;  %v16386_v37 = vpack.c.bf16 %v11554_v13, %v11546_v18  ;;  %16391 = vmatprep.subr.bf16.mxu0 %v16390_v23  ;;  %vm28982_vm4 = vmmov %vm28978_vm0  ;;  %11399 = vmatprep.mubr.f32.mxu1 %v28233_v46  ;;  %v11539_v32 = vsel %vm28978_vm0, %v19173_v36, %v19202_v15  ;;  %v26568_v36 = vld [vmem:[%s27920_s2 + $0xe0] sm:$0xff]  ;;  %v26639_v23 = vld [vmem:[%s27920_s2 + $0xf0] sm:$0xff] }
 0x95b   : > { %v11534_v28 = vsel %vm28982_vm4, %v19212_v52, %v19213_v22  ;;  %vm28983_vm13 = vmmov %vm28978_vm0 }
 0x95c   : > { %v11542_v16 = vsel %vm28983_vm13, %v19217_v35, %v19218_v62  ;;  %vm28984_vm14 = vmmov %vm28978_vm0  ;;  %16387 = vmatprep.subr.bf16.mxu1 %v16386_v37 }
 0x95d   : > { %v11553_v42 = vsel %vm28984_vm14, %v19178_v31, %v19182_v24  ;;  %vm28985_vm2 = vmmov %vm28973_vm5  ;;  %v16398_v26 = vpack.c.bf16 %v11542_v16, %v11534_v28  ;;  %v26546_v31 = vpop.permute.xlu1 %19255  ;;  %v26553_v24 = vpop.permute.xlu0 %19250 }
 0x95e   : > { %15032 = vmatmul.mubr.msk.f32.gmra.mrb[32].mxu0 %vm28985_vm2, %v26404_v57  ;;  %v16388_v4 = vpack.c.bf16 %v11553_v42, %v11545_v7  ;;  %vm28986_vm15 = vmmov %vm28985_vm2  ;;  %v19258_v11 = vunpack.i.h.bf16 %v26546_v31  ;;  %v19257_v10 = vunpack.i.l.bf16 %v26546_v31  ;;  %v19252_v28 = vunpack.i.l.bf16 %v26553_v24  ;;  %v15066_v31 = vld [vmem:[%s27920_s2 + $0x100] sm:$0xff] }
 0x95f   : > { %15043 = vmatmul.mubr.msk.f32.gmra.mrb[30].mxu1 %vm28986_vm15, %v26365_v12  ;;  %11322 = vmatprep.mubr.f32.mxu0 %v28233_v46  ;;  %vm28987_vm11 = vmmov %vm28985_vm2  ;;  %v19253_v42 = vunpack.i.h.bf16 %v26553_v24 }
 0x960   : > { %16389 = vmatpush1.bf16.msra.mxu1 %v16388_v4  ;;  %11405 = vmatprep.mubr.f32.mxu1 %v28233_v46  ;;  %vm28988_vm7 = vmmov %vm28978_vm0 }
 0x961   : > { %16399 = vmatprep.subr.bf16.mxu1 %v16398_v26  ;;  %v11531_v12 = vsel %vm28988_vm7, %v19158_v61, %v19187_v53  ;;  %vm28989_vm12 = vmmov %vm28985_vm2  ;;  %v19248_v61 = vunpack.i.h.bf16 %v26535_v0  ;;  %v26575_v43 = vpop.permute.xlu1 %19270  ;;  %v26581_v5 = vpop.permute.xlu0 %19260 }
 0x962   : > { %15033 = vmatmul.mubr.msk.f32.gmra.mrb[34].mxu0 %vm28987_vm11, %v26440_v20  ;;  %vm28990_vm5 = vmmov %vm28978_vm0  ;;  %v16392_v53 = vpack.c.bf16 %v11539_v32, %v11531_v12  ;;  %v19263_v38 = vunpack.i.h.bf16 %v26581_v5  ;;  %v19262_v30 = vunpack.i.l.bf16 %v26581_v5  ;;  %v26667_v32 = vld [vmem:[%s27920_s2 + $0xf8] sm:$0xff]  ;;  %v19272_v24 = vunpack.i.l.bf16 %v26575_v43 }
 0x963   : > { %15044 = vmatmul.mubr.msk.f32.gmra.mrb[32].mxu1 %vm28989_vm12, %v26404_v57  ;;  %11667 = vmatprep.mubr.f32.mxu0 %v28233_v46  ;;  %v11548_v15 = vsel %vm28990_vm5, %v19242_v55, %v19243_v47  ;;  %v19232_v57 = vunpack.i.l.bf16 %v26477_v49  ;;  %vm28991_vm4 = vmmov %vm28978_vm0 }
 0x964   : > { %11411 = vmatprep.mubr.f32.mxu1 %v28233_v46  ;;  %v11556_v18 = vsel %vm28991_vm4, %v19222_v39, %v19223_v63  ;;  %vm28992_vm13 = vmmov %vm28978_vm0 }
 0x965   : > { %v11547_v22 = vsel %vm28992_vm13, %v19208_v21, %v19242_v55  ;;  %vm28993_vm14 = vmmov %vm28985_vm2  ;;  %v16394_v62 = vpack.c.bf16 %v11556_v18, %v11548_v15  ;;  %v19276_v41 = vpop.permute.xlu1 %19275 }
 0x966   : > { %15050 = vmatmul.mubr.msk.f32.vlgmr.msra.gmra.mrb[20].mxu0 %vm28993_vm14, %v26568_v36  ;;  %vm28994_vm2 = vmmov %vm28978_vm0 }
 0x967   : > { %v11533_v8 = vsel %vm28994_vm2, %v19188_v51, %v19212_v52  ;;  %vm28995_vm15 = vmmov %vm28978_vm0  ;;  %vm28996_vm0 = vcmask 777216   ;;  %15045 = vmatmul.mubr.msk.f32.gmra.mrb[34].mxu1 %vm28987_vm11, %v26440_v20  ;;  %16393 = vmatpush1.bf16.msra.mxu0 %v16392_v53  ;;  %v26623_v52 = vpop.permute.xlu0 %19265  ;;  %v11549_v17 = vsel %vm28994_vm2, %v19243_v47, %v19247_v44 }
 0x968   : > { %v11541_v29 = vsel %vm28995_vm15, %v19203_v48, %v19217_v35  ;;  %v12077_v21 = vsel %vm28996_vm0, %v19237_v50, %v19238_v27  ;;  %vm28997_vm7 = vmmov %vm28994_vm2  ;;  %16395 = vmatprep.subr.bf16.mxu0 %v16394_v62  ;;  %11673 = vmatprep.mubr.f32.mxu0 %v28233_v46  ;;  %v12071_v7 = vsel %vm28996_vm0, %v19257_v10, %v19258_v11  ;;  %v19268_v0 = vunpack.i.h.bf16 %v26623_v52 }
 0x969   : > { %v11555_v9 = vsel %vm28997_vm7, %v19183_v3, %v19222_v39  ;;  %vm28998_vm12 = vmmov %vm28994_vm2  ;;  %11756 = vmatprep.mubr.f32.mxu1 %v28233_v46  ;;  %v16400_v3 = vpack.c.bf16 %v11541_v29, %v11533_v8  ;;  %v19267_v4 = vunpack.i.l.bf16 %v26623_v52  ;;  %v26661_v26 = vpop.permute.xlu1 %19280  ;;  %v19273_v39 = vunpack.i.h.bf16 %v26575_v43 }
 0x96a   : > { %v11550_v48 = vsel %vm28998_vm12, %v19247_v44, %v19248_v61  ;;  %vm28999_vm5 = vmmov %vm28996_vm0  ;;  %v16396_v51 = vpack.c.bf16 %v11555_v9, %v11547_v22  ;;  %v19278_v61 = vunpack.i.h.bf16 %v19276_v41  ;;  %v19277_v44 = vunpack.i.l.bf16 %v19276_v41 }
 0x96b   : > { %v12069_v20 = vsel %vm28999_vm5, %v19232_v57, %v19233_v40  ;;  %vm29000_vm4 = vmmov %vm28996_vm0  ;;  %v26657_v55 = vpop.permute.xlu0 %19285  ;;  %v19283_v18 = vunpack.i.h.bf16 %v26661_v26  ;;  %v19282_v22 = vunpack.i.l.bf16 %v26661_v26 }
 0x96c   : > { %v12079_v33 = vsel %vm29000_vm4, %v19262_v30, %v19263_v38  ;;  %vm29001_vm13 = vmmov %vm28987_vm11  ;;  %v16406_v59 = vpack.c.bf16 %v12077_v21, %v12069_v20  ;;  %16397 = vmatpush1.bf16.msra.mxu0 %v16396_v51  ;;  %v19288_v43 = vunpack.i.h.bf16 %v26657_v55  ;;  %v12085_v21 = vsel %vm28996_vm0, %v19272_v24, %v19273_v39 }
 0x96d   : > { %15051 = vmatmul.mubr.msk.f32.gmra.mrb[22].mxu0 %vm29001_vm13, %v26610_v60  ;;  %vm29002_vm14 = vmmov %vm28994_vm2  ;;  %v16418_v16 = vpack.c.bf16 %v12079_v33, %v12071_v7  ;;  %v12095_v54 = vsel %vm28996_vm0, %v19282_v22, %v19283_v18 }
 0x96e   : > { %v11558_v35 = vsel %vm29002_vm14, %v19227_v45, %v19228_v1  ;;  %vm29003_vm15 = vmmov %vm28987_vm11  ;;  %vm29004_vm11 = vnez %v28729_v25  ;;  %11679 = vmatprep.mubr.f32.mxu0 %v28233_v46 }
 0x96f   : > { %15054 = vmatmul.mubr.msk.f32.vlgmr.msra.gmra.mrb[20].mxu1 %vm29003_vm15, %v26568_v36  ;;  %v16402_v13 = vpack.c.bf16 %v11558_v35, %v11550_v48  ;;  %16408 = vmatprep.subr.msk.bf16.mxu0 %vm29004_vm11, %v16406_v59  ;;  %vm29005_vm7 = vmmov %vm28994_vm2  ;;  %v26683_v53 = vpop.permute.xlu0 %19290 }
 0x970   : > { %16401 = vmatpush1.bf16.msra.mxu1 %v16400_v3  ;;  %v11557_v37 = vsel %vm29005_vm7, %v19223_v63, %v19227_v45  ;;  %11762 = vmatprep.mubr.f32.mxu1 %v28233_v46  ;;  %vm29006_vm12 = vmmov %vm29001_vm13  ;;  %v19292_v1 = vunpack.i.l.bf16 %v26683_v53  ;;  %v26691_v45 = vpop.permute.xlu1 %19295 }
 0x971   : > { %16403 = vmatprep.subr.bf16.mxu1 %v16402_v13  ;;  %15052 = vmatmul.mubr.msk.f32.gmra.mrb[24].mxu0 %vm29006_vm12, %v26639_v23  ;;  %v16404_v47 = vpack.c.bf16 %v11557_v37, %v11549_v17  ;;  %vm29007_vm5 = vmmov %vm29006_vm12  ;;  %v19298_v62 = vunpack.i.h.bf16 %v26691_v45  ;;  %v19297_v8 = vunpack.i.l.bf16 %v26691_v45 }
 0x972   : > { %11685 = vmatprep.mubr.f32.mxu0 %v28233_v46  ;;  %vm29008_vm4 = vmmov %vm28996_vm0 }
 0x973   : > { %15055 = vmatmul.mubr.msk.f32.gmra.mrb[22].mxu1 %vm29007_vm5, %v26610_v60  ;;  %v12068_v63 = vsel %vm29008_vm4, %v19252_v28, %v19232_v57  ;;  %vm29009_vm13 = vmmov %vm28996_vm0  ;;  %v19287_v57 = vunpack.i.l.bf16 %v26657_v55  ;;  %v26712_v3 = vpop.permute.xlu0 %19300  ;;  %v15067_v55 = vld [vmem:[%s27920_s2 + $0x108] sm:$0xff] }
 0x974   : > { %16405 = vmatpush1.bf16.msra.mxu1 %v16404_v47  ;;  %11768 = vmatprep.mubr.f32.mxu1 %v28233_v46  ;;  %v12076_v12 = vsel %vm29009_vm13, %v19253_v42, %v19237_v50  ;;  %vm29010_vm14 = vmmov %vm28996_vm0  ;;  %v19293_v50 = vunpack.i.h.bf16 %v26683_v53  ;;  %v19303_v41 = vunpack.i.h.bf16 %v26712_v3  ;;  %v19302_v17 = vunpack.i.l.bf16 %v26712_v3  ;;  %v19306_v13 = vpop.permute.xlu1 %19305 }
 0x975   : > { %16420 = vmatprep.subr.msk.bf16.mxu1 %vm28880_vm6, %v16418_v16  ;;  %v12093_v15 = vsel %vm29010_vm14, %v19267_v4, %v19268_v0  ;;  %vm29011_vm2 = vmmov %vm29007_vm5  ;;  %v16409_v29 = vpack.c.bf16 %v12076_v12, %v12068_v63  ;;  %v19307_v7 = vunpack.i.l.bf16 %v19306_v13 }
 0x976   : > { %15053 = vmatmul.mubr.msk.f32.gmra.mrb[26].mxu0 %vm29011_vm2, %v26667_v32  ;;  %vm29012_vm15 = vmmov %vm29011_vm2  ;;  %v16412_v48 = vpack.c.bf16 %v12093_v15, %v12085_v21 }
 0x977   : > { %15056 = vmatmul.mubr.msk.f32.gmra.mrb[24].mxu1 %vm29012_vm15, %v26639_v23  ;;  %11845 = vmatprep.mubr.f32.mxu0 %v28233_v46  ;;  %vm29013_vm7 = vmmov %vm28996_vm0 }
 0x978   : > { %11774 = vmatprep.mubr.f32.mxu1 %v28233_v46  ;;  %v12073_v9 = vsel %vm29013_vm7, %v19292_v1, %v19293_v50  ;;  %vm29014_vm12 = vmmov %vm28996_vm0 }
 0x979   : > { %v12092_v20 = vsel %vm29014_vm12, %v19278_v61, %v19267_v4  ;;  %vm29015_vm5 = vmmov %vm28996_vm0 }
 0x97a   : > { %v12084_v51 = vsel %vm29015_vm5, %v19277_v44, %v19272_v24  ;;  %vm29016_vm4 = vmmov %vm28996_vm0 }
 0x97b   : > { %v12081_v33 = vsel %vm29016_vm4, %v19297_v8, %v19298_v62  ;;  %vm29017_vm13 = vmmov %vm29011_vm2  ;;  %v16415_v28 = vpack.c.bf16 %v12092_v20, %v12084_v51  ;;  %v15069_v51 = vld [vmem:[%s27920_s2 + $0x118] sm:$0xff] }
 0x97c   : > { %15058 = vmatmul.mubr.msk.f32.vlgmr.msra.gmra.mrb[28].mxu0 %vm29017_vm13, %v26568_v36  ;;  %vm29018_vm14 = vmmov %vm28996_vm0 }
 0x97d   : > { %v12078_v35 = vsel %vm29018_vm14, %v19238_v27, %v19262_v30  ;;  %vm29019_vm2 = vmmov %vm28996_vm0  ;;  %16411 = vmatpush1.bf16.msk.msra.mxu0 %vm28891_vm1, %v16409_v29  ;;  %v16430_v27 = vpack.c.bf16 %v12081_v33, %v12073_v9  ;;  %v19308_v30 = vunpack.i.h.bf16 %v19306_v13  ;;  %11851 = vmatprep.mubr.f32.mxu0 %v28233_v46 }
 0x97e   : > { %v12087_v59 = vsel %vm29019_vm2, %v19287_v57, %v19288_v43  ;;  %vm29020_vm15 = vmmov %vm29017_vm13  ;;  %16414 = vmatprep.subr.msk.bf16.mxu0 %vm29004_vm11, %v16412_v48 }
 0x97f   : > { %15057 = vmatmul.mubr.msk.f32.gmra.mrb[26].mxu1 %vm29020_vm15, %v26667_v32  ;;  %vm29021_vm7 = vmmov %vm28996_vm0  ;;  %v16424_v49 = vpack.c.bf16 %v12095_v54, %v12087_v59  ;;  %vm29028_vm15 = vnez %v28899_v34 }
 0x980   : > { %v12070_v37 = vsel %vm29021_vm7, %v19233_v40, %v19257_v10  ;;  %11934 = vmatprep.mubr.f32.mxu1 %v28233_v46  ;;  %vm29022_vm12 = vmmov %vm28996_vm0  ;;  %v19316_v40 = vpop.permute.xlu0 %19315  ;;  %v19311_v10 = vpop.permute.xlu1 %19310 }
 0x981   : > { %v16421_v16 = vpack.c.bf16 %v12078_v35, %v12070_v37  ;;  %v12075_v42 = vsel %vm29022_vm12, %v19302_v17, %v19303_v41  ;;  %vm29023_vm5 = vmmov %vm28996_vm0  ;;  %16417 = vmatpush1.bf16.msk.msra.mxu0 %vm28891_vm1, %v16415_v28  ;;  %v19313_v24 = vunpack.i.h.bf16 %v19311_v10  ;;  %v19312_v12 = vunpack.i.l.bf16 %v19311_v10 }
 0x982   : > { %v12083_v4 = vsel %vm29023_vm5, %v19307_v7, %v19308_v30  ;;  %vm29024_vm4 = vmmov %vm29017_vm13  ;;  %16432 = vmatprep.subr.msk.bf16.mxu0 %vm28763_vm9, %v16430_v27 }
 0x983   : > { %15059 = vmatmul.mubr.msk.f32.gmra.mrb[30].mxu0 %vm29024_vm4, %v26610_v60  ;;  %vm29025_vm13 = vmmov %vm28996_vm0 }
 0x984   : > { %v12086_v47 = vsel %vm29025_vm13, %v19273_v39, %v19287_v57  ;;  %vm29026_vm14 = vmmov %vm28996_vm0  ;;  %v16442_v39 = vpack.c.bf16 %v12083_v4, %v12075_v42  ;;  %11857 = vmatprep.mubr.f32.mxu0 %v28233_v46  ;;  %v19321_v15 = vpop.permute.xlu0 %19320  ;;  %v19326_v61 = vpop.permute.xlu1 %19325 }
 0x985   : > { %v12094_v63 = vsel %vm29026_vm14, %v19268_v0, %v19282_v22  ;;  %vm29027_vm2 = vmmov %vm29024_vm4  ;;  %v19317_v0 = vunpack.i.l.bf16 %v19316_v40  ;;  %v19322_v5 = vunpack.i.l.bf16 %v19321_v15 }
 0x986   : > { %15062 = vmatmul.mubr.msk.f32.vlgmr.msra.gmra.mrb[28].mxu1 %vm29027_vm2, %v26568_v36  ;;  %v16427_v52 = vpack.c.bf16 %v12094_v63, %v12086_v47  ;;  %vm29029_vm0 = vmmov %vm29027_vm2  ;;  %v19318_v36 = vunpack.i.h.bf16 %v19316_v40 }
 0x987   : > { %16423 = vmatpush1.bf16.msk.msra.mxu1 %vm29028_vm15, %v16421_v16  ;;  %11940 = vmatprep.mubr.f32.mxu1 %v28233_v46  ;;  %vm29030_vm7 = vmmov %vm29029_vm0 }
 0x988   : > { %16426 = vmatprep.subr.msk.bf16.mxu1 %vm28880_vm6, %v16424_v49  ;;  %15060 = vmatmul.mubr.msk.f32.gmra.mrb[32].mxu0 %vm29029_vm0, %v26639_v23  ;;  %vm29031_vm12 = vmmov %vm29023_vm5  ;;  %v12572_v35 = vpop.permute.xlu0 %12571 }
 0x989   : > { %11863 = vmatprep.mubr.f32.mxu0 %v28233_v46  ;;  %v12072_v44 = vsel %vm29031_vm12, %v19258_v11, %v19292_v1  ;;  %vm29032_vm4 = vmmov %vm29029_vm0  ;;  %v19323_v11 = vunpack.i.h.bf16 %v19321_v15  ;;  %v19328_v1 = vunpack.i.h.bf16 %v19326_v61 }
 0x98a   : > { %15063 = vmatmul.mubr.msk.f32.gmra.mrb[30].mxu1 %vm29030_vm7, %v26610_v60  ;;  %v12080_v60 = vsel %vm29023_vm5, %v19263_v38, %v19297_v8  ;;  %vm29033_vm13 = vmmov %vm29023_vm5  ;;  %v19327_v38 = vunpack.i.l.bf16 %v19326_v61 }
 0x98b   : > { %16429 = vmatpush1.bf16.msk.msra.mxu1 %vm29028_vm15, %v16427_v52  ;;  %11946 = vmatprep.mubr.f32.mxu1 %v28233_v46  ;;  %v12089_v57 = vsel %vm29033_vm13, %v19317_v0, %v19318_v36  ;;  %vm29034_vm14 = vmmov %vm29023_vm5  ;;  %v16433_v8 = vpack.c.bf16 %v12080_v60, %v12072_v44 }
 0x98c   : > { %16444 = vmatprep.subr.msk.bf16.mxu1 %vm28771_vm8, %v16442_v39  ;;  %15061 = vmatmul.mubr.msk.f32.gmra.mrb[34].mxu0 %vm29032_vm4, %v26667_v32  ;;  %v12097_v22 = vsel %vm29034_vm14, %v19312_v12, %v19313_v24  ;;  %vm29035_vm2 = vmmov %vm29029_vm0  ;;  %v26891_v61 = vpop.permute.xlu0 %12586 }
 0x98d   : > { %12240 = vmatprep.mubr.f32.mxu0 %v28233_v46  ;;  %vm29036_vm0 = vmmov %vm29023_vm5  ;;  %v16436_v21 = vpack.c.bf16 %v12097_v22, %v12089_v57 }
 0x98e   : > { %15064 = vmatmul.mubr.msk.f32.gmra.mrb[32].mxu1 %vm29035_vm2, %v26639_v23  ;;  %v12088_v29 = vsel %vm29036_vm0, %v19288_v43, %v19317_v0  ;;  %vm29037_vm7 = vmmov %vm29036_vm0 }
 0x98f   : > { %11952 = vmatprep.mubr.f32.mxu1 %v28233_v46  ;;  %v12096_v23 = vsel %vm29037_vm7, %v19283_v18, %v19312_v12  ;;  %vm29038_vm12 = vmmov %vm29035_vm2 }
 0x990   : > { %15078 = vmatmul.mubr.msk.f32.vlgmr.msra.gmra.mrb[20].mxu0 %vm29038_vm12, %v15066_v31  ;;  %vm29039_vm5 = vmmov %vm29036_vm0  ;;  %v16439_v43 = vpack.c.bf16 %v12096_v23, %v12088_v29 }
 0x991   : > { %v12074_v9 = vsel %vm29039_vm5, %v19293_v50, %v19302_v17  ;;  %vm29040_vm4 = vmmov %vm29036_vm0  ;;  %16435 = vmatpush1.bf16.msk.msra.mxu0 %vm28767_vm10, %v16433_v8  ;;  %12246 = vmatprep.mubr.f32.mxu0 %v28233_v46 }
 0x992   : > { %v12082_v48 = vsel %vm29040_vm4, %v19298_v62, %v19307_v7  ;;  %vm29041_vm13 = vmmov %vm29035_vm2  ;;  %16438 = vmatprep.subr.msk.bf16.mxu0 %vm28763_vm9, %v16436_v21  ;;  %v15068_v62 = vld [vmem:[%s27920_s2 + $0x110] sm:$0xff] }
 0x993   : > { %15065 = vmatmul.mubr.msk.f32.gmra.mrb[34].mxu1 %vm29041_vm13, %v26667_v32  ;;  %vm29042_vm14 = vmmov %vm29036_vm0  ;;  %v16445_v32 = vpack.c.bf16 %v12082_v48, %v12074_v9 }
 0x994   : > { %v12091_v26 = vsel %vm29042_vm14, %v19322_v5, %v19323_v11  ;;  %vm29043_vm2 = vmmov %vm29036_vm0  ;;  %12329 = vmatprep.mubr.f32.mxu1 %v28233_v46  ;;  %v26859_v59 = vpop.permute.xlu1 %12576 }
 0x995   : > { %v12099_v53 = vsel %vm29043_vm2, %v19327_v38, %v19328_v1  ;;  %vm29044_vm0 = vmmov %vm29038_vm12  ;;  %16441 = vmatpush1.bf16.msk.msra.mxu0 %vm28767_vm10, %v16439_v43 }
 0x996   : > { %15079 = vmatmul.mubr.msk.f32.gmra.mrb[22].mxu0 %vm29044_vm0, %v15067_v55  ;;  %vm29045_vm7 = vmmov %vm29043_vm2  ;;  %v16448_v18 = vpack.c.bf16 %v12099_v53, %v12091_v26 }
 0x997   : > { %v12090_v50 = vsel %vm29045_vm7, %v19318_v36, %v19322_v5  ;;  %vm29046_vm12 = vmmov %vm29043_vm2  ;;  %12252 = vmatprep.mubr.f32.mxu0 %v28233_v46 }
 0x998   : > { %v12098_v45 = vsel %vm29046_vm12, %v19313_v24, %v19327_v38  ;;  %vm29047_vm5 = vmmov %vm29044_vm0  ;;  %v26871_v28 = vpop.permute.xlu1 %12581 }
 0x999   : > { %15090 = vmatmul.mubr.msk.f32.vlgmr.msra.gmra.mrb[20].mxu1 %vm29047_vm5, %v15066_v31  ;;  %v16451_v20 = vpack.c.bf16 %v12098_v45, %v12090_v50  ;;  %vm29048_vm4 = vmmov %vm29044_vm0 }
 0x99a   : > { %16447 = vmatpush1.bf16.msk.msra.mxu1 %vm28775_vm3, %v16445_v32  ;;  %12335 = vmatprep.mubr.f32.mxu1 %v28233_v46  ;;  %vm29049_vm13 = vmmov %vm29044_vm0 }
 0x99b   : > { %16450 = vmatprep.subr.msk.bf16.mxu1 %vm28771_vm8, %v16448_v18  ;;  %15080 = vmatmul.mubr.msk.f32.gmra.mrb[24].mxu0 %vm29048_vm4, %v15068_v62  ;;  %vm29050_vm14 = vmmov %vm29044_vm0 }
 0x99c   : > { %12258 = vmatprep.mubr.f32.mxu0 %v28233_v46  ;;  %vm29051_vm2 = vmmov %vm29044_vm0 }
 0x99d   : > { %15091 = vmatmul.mubr.msk.f32.gmra.mrb[22].mxu1 %vm29049_vm13, %v15067_v55  ;;  %vm29052_vm7 = vmmov %vm29044_vm0 }
 0x99e   : > { %16453 = vmatpush1.bf16.msk.msra.mxu1 %vm28775_vm3, %v16451_v20  ;;  %12341 = vmatprep.mubr.f32.mxu1 %v28233_v46  ;;  %vm29053_vm12 = vmmov %vm29044_vm0 }
 0x99f   : > { %15081 = vmatmul.mubr.msk.f32.gmra.mrb[26].mxu0 %vm29050_vm14, %v15069_v51  ;;  %vm29054_vm5 = vmmov %vm29044_vm0 }
 0x9a0   : > { %12418 = vmatprep.mubr.f32.mxu0 %v28233_v46  ;;  %vm29055_vm4 = vmmov %vm29044_vm0 }
 0x9a1   : > { %15092 = vmatmul.mubr.msk.f32.gmra.mrb[24].mxu1 %vm29051_vm2, %v15068_v62  ;;  %vm29056_vm13 = vmmov %vm29044_vm0 }
 0x9a2   : > { %12347 = vmatprep.mubr.f32.mxu1 %v28233_v46  ;;  %vm29057_vm14 = vmmov %vm29044_vm0 }
 0x9a3   : > { %15102 = vmatmul.mubr.msk.f32.vlgmr.msra.gmra.mrb[28].mxu0 %vm29044_vm0, %v15066_v31  ;;  %vm29058_vm2 = vmmov %vm29044_vm0 }
 0x9a4   : > { %12424 = vmatprep.mubr.f32.mxu0 %v28233_v46 }
 0x9a5   : > { %15093 = vmatmul.mubr.msk.f32.gmra.mrb[26].mxu1 %vm29052_vm7, %v15069_v51  ;;  %vm29059_vm7 = vmmov %vm29044_vm0 }
 0x9a6   : > { %12507 = vmatprep.mubr.f32.mxu1 %v28233_v46 }
 0x9a7   : > { %15103 = vmatmul.mubr.msk.f32.gmra.mrb[30].mxu0 %vm29053_vm12, %v15067_v55  ;;  %vm29060_vm12 = vmmov %vm29044_vm0 }
 0x9a8   : > { %12430 = vmatprep.mubr.f32.mxu0 %v28233_v46 }
 0x9a9   : > { %15114 = vmatmul.mubr.msk.f32.vlgmr.msra.gmra.mrb[28].mxu1 %vm29054_vm5, %v15066_v31  ;;  %vm29061_vm5 = vmmov %vm29044_vm0 }
 0x9aa   : > { %12513 = vmatprep.mubr.f32.mxu1 %v28233_v46 }
 0x9ab   : > { %15104 = vmatmul.mubr.msk.f32.gmra.mrb[32].mxu0 %vm29055_vm4, %v15068_v62  ;;  %vm29062_vm4 = vmmov %vm29044_vm0 }
 0x9ac   : > { %12436 = vmatprep.mubr.f32.mxu0 %v28233_v46 }
 0x9ad   : > { %15115 = vmatmul.mubr.msk.f32.gmra.mrb[30].mxu1 %vm29056_vm13, %v15067_v55  ;;  %vm29063_vm13 = vmmov %vm29044_vm0 }
 0x9ae   : > { %12519 = vmatprep.mubr.f32.mxu1 %v28233_v46 }
 0x9af   : > { %15105 = vmatmul.mubr.msk.f32.gmra.mrb[34].mxu0 %vm29057_vm14, %v15069_v51  ;;  %vm29066_vm14 = vmmov %vm29044_vm0 }
 0x9b1   : > { %15116 = vmatmul.mubr.msk.f32.gmra.mrb[32].mxu1 %vm29058_vm2, %v15068_v62  ;;  %vm29067_vm2 = vmmov %vm29044_vm0 }
 0x9b2   : > { %12525 = vmatprep.mubr.f32.mxu1 %v28233_v46 }
 0x9b5   : > { %15117 = vmatmul.mubr.msk.f32.gmra.mrb[34].mxu1 %vm29044_vm0, %v15069_v51 }
 0xa63   : > { %v12242_v33 = vpop.f32.mrb[20].mxu0 }
 0xa64   : > { %v12244_v3 = vpop.f32.mrb[21].mxu0  ;;  %v26861_v17 = vadd.f32 %v12572_v35, %v12242_v33 }
 0xa65   : > { %v26863_v13 = vadd.f32 %v12572_v35, %v12244_v3 }
 0xa67   : > { %v12625_v42 = vadd.f32 %v26863_v13, %v26861_v17 }
 0xa69   : > { %v12248_v41 = vpop.f32.mrb[22].mxu0 }
 0xa6a   : > { %v12250_v27 = vpop.f32.mrb[23].mxu0  ;;  %v26866_v7 = vadd.f32 %v26859_v59, %v12248_v41 }
 0xa6b   : > { %v26869_v37 = vadd.f32 %v26859_v59, %v12250_v27 }
 0xa6c   : > { %v12331_v54 = vpop.f32.mrb[20].mxu1 }
 0xa6d   : > { %v12333_v30 = vpop.f32.mrb[21].mxu1  ;;  %v26875_v4 = vadd.f32 %v12572_v35, %v12331_v54  ;;  %v12634_v40 = vadd.f32 %v26869_v37, %v26866_v7 }
 0xa6e   : > { %v12254_v16 = vpop.f32.mrb[24].mxu0  ;;  %v26889_v24 = vadd.f32 %v12572_v35, %v12333_v30 }
 0xa6f   : > { %v12256_v63 = vpop.f32.mrb[25].mxu0  ;;  %v26880_v10 = vadd.f32 %v26871_v28, %v12254_v16  ;;  %v12626_v0 = vadd.f32 %v12625_v42, %v26875_v4 }
 0xa70   : > { %v12337_v47 = vpop.f32.mrb[22].mxu1  ;;  %v26886_v52 = vadd.f32 %v26871_v28, %v12256_v63 }
 0xa71   : > { %v12339_v49 = vpop.f32.mrb[23].mxu1  ;;  %v26883_v39 = vadd.f32 %v26859_v59, %v12337_v47  ;;  %v12627_v5 = vadd.f32 %v12626_v0, %v26889_v24 }
 0xa72   : > { %v12260_v36 = vpop.f32.mrb[26].mxu0  ;;  %v12643_v57 = vadd.f32 %v26886_v52, %v26880_v10  ;;  %v26897_v22 = vadd.f32 %v26859_v59, %v12339_v49 }
 0xa73   : > { %v12262_v15 = vpop.f32.mrb[27].mxu0  ;;  %v12635_v60 = vadd.f32 %v12634_v40, %v26883_v39  ;;  %v26904_v1 = vadd.f32 %v26891_v61, %v12260_v36 }
 0xa74   : > { %v12343_v12 = vpop.f32.mrb[24].mxu1  ;;  %v26907_v38 = vadd.f32 %v26891_v61, %v12262_v15 }
 0xa75   : > { %v12345_v44 = vpop.f32.mrb[25].mxu1  ;;  %v26900_v31 = vadd.f32 %v26871_v28, %v12343_v12  ;;  %v12636_v55 = vadd.f32 %v12635_v60, %v26897_v22 }
 0xa76   : > { %v12420_v11 = vpop.f32.mrb[28].mxu0  ;;  %v26917_v53 = vadd.f32 %v26871_v28, %v12345_v44  ;;  %v12652_v32 = vadd.f32 %v26907_v38, %v26904_v1 }
 0xa77   : > { %v26909_v29 = vadd.f32 %v12572_v35, %v12420_v11  ;;  %v12422_v23 = vpop.f32.mrb[29].mxu0  ;;  %v12644_v26 = vadd.f32 %v12643_v57, %v26900_v31 }
 0xa78   : > { %v12349_v8 = vpop.f32.mrb[26].mxu1  ;;  %v26911_v9 = vadd.f32 %v12572_v35, %v12422_v23 }
 0xa79   : > { %v12351_v21 = vpop.f32.mrb[27].mxu1  ;;  %v12628_v48 = vadd.f32 %v12627_v5, %v26909_v29  ;;  %v26922_v50 = vadd.f32 %v26891_v61, %v12349_v8  ;;  %v12645_v27 = vadd.f32 %v12644_v26, %v26917_v53 }
 0xa7a   : > { %v12426_v43 = vpop.f32.mrb[30].mxu0  ;;  %v26940_v47 = vadd.f32 %v26891_v61, %v12351_v21 }
 0xa7b   : > { %v12629_v45 = vadd.f32 %v12628_v48, %v26911_v9  ;;  %v26926_v18 = vadd.f32 %v26859_v59, %v12426_v43  ;;  %v12428_v20 = vpop.f32.mrb[31].mxu0  ;;  %v12653_v42 = vadd.f32 %v12652_v32, %v26922_v50 }
 0xa7c   : > { %v12509_v62 = vpop.f32.mrb[28].mxu1  ;;  %v26931_v33 = vadd.f32 %v26859_v59, %v12428_v20 }
 0xa7d   : > { %v26928_v51 = vadd.f32 %v12572_v35, %v12509_v62  ;;  %v12511_v3 = vpop.f32.mrb[29].mxu1  ;;  %v12637_v41 = vadd.f32 %v12636_v55, %v26926_v18  ;;  %v12654_v5 = vadd.f32 %v12653_v42, %v26940_v47 }
 0xa7e   : > { %v26934_v54 = vadd.f32 %v12572_v35, %v12511_v3  ;;  %v12432_v16 = vpop.f32.mrb[32].mxu0 }
 0xa7f   : > { %v12630_v30 = vadd.f32 %v12629_v45, %v26928_v51  ;;  %v12638_v63 = vadd.f32 %v12637_v41, %v26931_v33  ;;  %v26944_v49 = vadd.f32 %v26871_v28, %v12432_v16  ;;  %v12434_v36 = vpop.f32.mrb[33].mxu0 }
 0xa80   : > { %v12515_v40 = vpop.f32.mrb[30].mxu1  ;;  %v26951_v12 = vadd.f32 %v26871_v28, %v12434_v36 }
 0xa81   : > { %v12631_v35 = vadd.f32 %v12630_v30, %v26934_v54  ;;  %v26948_v0 = vadd.f32 %v26859_v59, %v12515_v40  ;;  %v12517_v15 = vpop.f32.mrb[31].mxu1  ;;  %v12646_v44 = vadd.f32 %v12645_v27, %v26944_v49 }
 0xa82   : > { %v26955_v60 = vadd.f32 %v26859_v59, %v12517_v15  ;;  %v12438_v11 = vpop.f32.mrb[34].mxu0 }
 0xa83   : > { %v12639_v57 = vadd.f32 %v12638_v63, %v26948_v0  ;;  %12632 = vadd.xlane.f32.xlu1 %v12631_v35  ;;  %v12647_v8 = vadd.f32 %v12646_v44, %v26951_v12  ;;  %v26961_v23 = vadd.f32 %v26891_v61, %v12438_v11  ;;  %v12440_v48 = vpop.f32.mrb[35].mxu0  ;;  %v12621_v63 = vld [vmem:[%s27923_s5] sm:$0xff]  ;;  %v26998_v11 = vld [vmem:[%s27923_s5 + $0x10] sm:$0xff] }
 0xa84   : > { %v12521_v21 = vpop.f32.mrb[32].mxu1  ;;  %v26968_v59 = vadd.f32 %v26891_v61, %v12440_v48  ;;  %15266 = vmatprep.mubr.msk.f32.mxu0 %vm29059_vm7, %v12621_v63  ;;  %15280 = vmatprep.mubr.msk.f32.mxu1 %vm29060_vm12, %v12621_v63 }
 0xa85   : > { %v12640_v55 = vadd.f32 %v12639_v57, %v26955_v60  ;;  %v26965_v26 = vadd.f32 %v26871_v28, %v12521_v21  ;;  %v12523_v43 = vpop.f32.mrb[33].mxu1  ;;  %v12655_v32 = vadd.f32 %v12654_v5, %v26961_v23  ;;  %v26993_v57 = vld [vmem:[%s27923_s5 + $0x8] sm:$0xff]  ;;  %v27007_v5 = vld [vmem:[%s27923_s5 + $0x18] sm:$0xff] }
 0xa86   : > { %v26972_v45 = vadd.f32 %v26871_v28, %v12523_v43 }
 0xa87   : > { %v12648_v62 = vadd.f32 %v12647_v8, %v26965_v26  ;;  %12641 = vadd.xlane.f32.xlu0 %v12640_v55  ;;  %v12656_v20 = vadd.f32 %v12655_v32, %v26968_v59 }
 0xa88   : > { %v12527_v3 = vpop.f32.mrb[34].mxu1 }
 0xa89   : > { %v12649_v41 = vadd.f32 %v12648_v62, %v26972_v45  ;;  %v26978_v27 = vadd.f32 %v26891_v61, %v12527_v3  ;;  %v12529_v30 = vpop.f32.mrb[35].mxu1  ;;  %v29064_v3 = vmov 2  }
 0xa8a   : > { %v26981_v16 = vadd.f32 %v26891_v61, %v12529_v30 }
 0xa8b   : > { %v12657_v42 = vadd.f32 %v12656_v20, %v26978_v27  ;;  %12650 = vadd.xlane.f32.xlu0 %v12649_v41 }
 0xa8d   : > { %v12658_v28 = vadd.f32 %v12657_v42, %v26981_v16 }
 0xa8f   : > { %12659 = vadd.xlane.f32.xlu1 %v12658_v28 }
 0xb10   : > { %v12633_v40 = vpop.xlane.xlu1 %12632 }
 0xb14   : > { %v12642_v36 = vpop.xlane.xlu0 %12641 }
 0xb15   : > { %v16454_v35 = vpack.c.bf16 %v12642_v36, %v12633_v40 }
 0xb17   : > { %16455 = vmatprep.subr.bf16.mxu0 %v16454_v35 }
 0xb18   : > { %16457 = vmatpush3.bf16.msra.mxu0 %v16454_v35  ;;  %v12651_v61 = vpop.xlane.xlu0 %12650 }
 0xb1c   : > { %v12660_v15 = vpop.xlane.xlu1 %12659 }
 0xb1d   : > { %v16458_v44 = vpack.c.bf16 %v12660_v15, %v12651_v61 }
 0xb1f   : > { %16459 = vmatprep.subr.bf16.mxu0 %v16458_v44 }
 0xb20   : > { %16461 = vmatpush3.bf16.msra.mxu0 %v16458_v44 }
 0xb23   : > { %15267 = vmatmul.mubr.msk.f32.vlgmr.msra.gmra.mrb[36].mxu0 %vm29061_vm5, %v26993_v57 }
 0xb24   : > { %15269 = vmatprep.mubr.msk.f32.mxu0 %vm29062_vm4, %v26998_v11 }
 0xb27   : > { %15270 = vmatmul.mubr.msk.f32.gmra.mrb[38].mxu0 %vm29063_vm13, %v27007_v5 }
 0xb28   : > { %13878 = vmatprep.mubr.f32.mxu0 %v28233_v46 }
 0xbf6   : > { %v15268_v8 = vpop.f32.mrb[36].mxu0 }
 0xbf7   : > { %v12759_v21 = vmul.f32 0.00048828125, %v15268_v8  ;;  %v12739_v48 = vpop.f32.mrb[37].mxu0 }
 0xbf8   : > { %v12758_v55 = vmul.f32 0.00048828125, %v12739_v48 }
 0xbf9   : > { %12769 = vperm.xlu1 %19330, %v12759_v21  }
 0xbfa   : > { %12764 = vperm.xlu0 %19329, %v12758_v55   ;;  %v15271_v43 = vpop.f32.mrb[38].mxu0 }
 0xbfb   : > { %v12761_v32 = vmul.f32 0.00048828125, %v15271_v43  ;;  %v12749_v62 = vpop.f32.mrb[39].mxu0 }
 0xbfc   : > { %v12760_v20 = vmul.f32 0.00048828125, %v12749_v62 }
 0xbfe   : > { %12779 = vperm.xlu0 %19329, %v12761_v32   ;;  %12774 = vperm.xlu1 %19330, %v12760_v20  }
 0xc02   : > { %19332 = vset.pattern.permute.xlu0 %v29064_v3  ;;  %19331 = vset.pattern.permute.xlu1 %v29064_v3 }
 0xc78   : > { %v12770_v41 = vpop.permute.xlu1 %12769 }
 0xc79   : > { %v27015_v30 = vsub.f32 %v26866_v7, %v12770_v41  ;;  %v27018_v42 = vsub.f32 %v26869_v37, %v12770_v41  ;;  %v12765_v28 = vpop.permute.xlu0 %12764  ;;  %v27021_v63 = vsub.f32 %v26883_v39, %v12770_v41  ;;  %v27024_v40 = vsub.f32 %v26897_v22, %v12770_v41 }
 0xc7a   : > { %v27031_v61 = vsub.f32 %v26861_v17, %v12765_v28  ;;  %v27034_v7 = vsub.f32 %v26863_v13, %v12765_v28  ;;  %v27037_v37 = vsub.f32 %v26926_v18, %v12770_v41  ;;  %v27040_v39 = vsub.f32 %v26931_v33, %v12770_v41 }
 0xc7b   : > { %v12822_v36 = vmul.f32 %v27015_v30, %v27015_v30  ;;  %v12823_v35 = vmul.f32 %v27018_v42, %v27018_v42  ;;  %v12824_v22 = vmul.f32 %v27021_v63, %v27021_v63  ;;  %v27045_v8 = vsub.f32 %v26948_v0, %v12770_v41 }
 0xc7c   : > { %v27048_v17 = vsub.f32 %v26875_v4, %v12765_v28  ;;  %v27051_v13 = vsub.f32 %v26955_v60, %v12770_v41  ;;  %v12825_v18 = vmul.f32 %v27024_v40, %v27024_v40  ;;  %v12826_v48 = vmul.f32 %v27037_v37, %v27037_v37 }
 0xc7d   : > { %v12855_v15 = vadd.f32 %v12823_v35, %v12822_v36  ;;  %v12780_v44 = vpop.permute.xlu0 %12779  ;;  %v27055_v33 = vpop.permute.xlu1 %12774  ;;  %v27060_v55 = vsub.f32 %v26889_v24, %v12765_v28  ;;  %v12814_v0 = vmul.f32 %v27031_v61, %v27031_v61  ;;  %v12815_v4 = vmul.f32 %v27034_v7, %v27034_v7 }
 0xc7e   : > { %v27067_v60 = vsub.f32 %v26904_v1, %v12780_v44  ;;  %v27070_v43 = vsub.f32 %v26907_v38, %v12780_v44  ;;  %v12827_v32 = vmul.f32 %v27040_v39, %v27040_v39  ;;  %v12828_v24 = vmul.f32 %v27045_v8, %v27045_v8 }
 0xc7f   : > { %v12856_v21 = vadd.f32 %v12855_v15, %v12824_v22  ;;  %v27077_v20 = vsub.f32 %v26909_v29, %v12765_v28  ;;  %v12816_v41 = vmul.f32 %v27048_v17, %v27048_v17  ;;  %v12846_v36 = vadd.f32 %v12815_v4, %v12814_v0 }
 0xc80   : > { %v27083_v1 = vsub.f32 %v26880_v10, %v27055_v33  ;;  %v12829_v38 = vmul.f32 %v27051_v13, %v27051_v13  ;;  %v27088_v22 = vsub.f32 %v26922_v50, %v12780_v44  ;;  %v27091_v15 = vsub.f32 %v26911_v9, %v12765_v28 }
 0xc81   : > { %v12857_v62 = vadd.f32 %v12856_v21, %v12825_v18  ;;  %v27094_v29 = vsub.f32 %v26928_v51, %v12765_v28  ;;  %v12817_v18 = vmul.f32 %v27060_v55, %v27060_v55  ;;  %v12847_v21 = vadd.f32 %v12846_v36, %v12816_v41 }
 0xc82   : > { %v27099_v10 = vsub.f32 %v26940_v47, %v12780_v44  ;;  %v12839_v50 = vmul.f32 %v27070_v43, %v27070_v43  ;;  %v27107_v9 = vsub.f32 %v26886_v52, %v27055_v33  ;;  %v27110_v51 = vsub.f32 %v26934_v54, %v12765_v28 }
 0xc83   : > { %v12858_v35 = vadd.f32 %v12857_v62, %v12826_v48  ;;  %v12838_v48 = vmul.f32 %v27067_v60, %v27067_v60  ;;  %v12818_v4 = vmul.f32 %v27077_v20, %v27077_v20  ;;  %v27115_v47 = vsub.f32 %v26961_v23, %v12780_v44 }
 0xc84   : > { %v12840_v41 = vmul.f32 %v27088_v22, %v27088_v22  ;;  %v12820_v52 = vmul.f32 %v27094_v29, %v27094_v29  ;;  %v27124_v28 = vsub.f32 %v26968_v59, %v12780_v44  ;;  %v12831_v59 = vmul.f32 %v27107_v9, %v27107_v9 }
 0xc85   : > { %v12859_v0 = vadd.f32 %v12858_v35, %v12827_v32  ;;  %v12848_v32 = vadd.f32 %v12847_v21, %v12817_v18  ;;  %v12873_v36 = vadd.f32 %v12839_v50, %v12838_v48  ;;  %v12819_v35 = vmul.f32 %v27091_v15, %v27091_v15 }
 0xc86   : > { %v27130_v18 = vsub.f32 %v26900_v31, %v27055_v33  ;;  %v12830_v48 = vmul.f32 %v27083_v1, %v27083_v1  ;;  %v12821_v31 = vmul.f32 %v27110_v51, %v27110_v51 }
 0xc87   : > { %v12860_v62 = vadd.f32 %v12859_v0, %v12828_v24  ;;  %v12849_v54 = vadd.f32 %v12848_v32, %v12818_v4  ;;  %v12841_v24 = vmul.f32 %v27099_v10, %v27099_v10  ;;  %v12874_v23 = vadd.f32 %v12873_v36, %v12840_v41 }
 0xc88   : > { %v27133_v0 = vsub.f32 %v26978_v27, %v12780_v44  ;;  %v27143_v4 = vsub.f32 %v26917_v53, %v27055_v33  ;;  %v27148_v32 = vsub.f32 %v26981_v16, %v12780_v44  ;;  %v12832_v36 = vmul.f32 %v27130_v18, %v27130_v18 }
 0xc89   : > { %v12861_v56 = vadd.f32 %v12860_v62, %v12829_v38  ;;  %v12850_v21 = vadd.f32 %v12849_v54, %v12819_v35  ;;  %v12842_v38 = vmul.f32 %v27115_v47, %v27115_v47  ;;  %v12875_v50 = vadd.f32 %v12874_v23, %v12841_v24 }
 0xc8a   : > { %v12843_v62 = vmul.f32 %v27124_v28, %v27124_v28  ;;  %v12864_v53 = vadd.f32 %v12831_v59, %v12830_v48  ;;  %v12844_v54 = vmul.f32 %v27133_v0, %v27133_v0  ;;  %v27162_v16 = vsub.f32 %v26951_v12, %v27055_v33 }
 0xc8b   : > { %12862 = vadd.xlane.f32.xlu0 %v12861_v56  ;;  %v12851_v27 = vadd.f32 %v12850_v21, %v12820_v52  ;;  %v12876_v41 = vadd.f32 %v12875_v50, %v12842_v38  ;;  %v27154_v56 = vsub.f32 %v26944_v49, %v27055_v33  ;;  %v12833_v44 = vmul.f32 %v27143_v4, %v27143_v4 }
 0xc8c   : > { %v12865_v24 = vadd.f32 %v12864_v53, %v12832_v36  ;;  %v12845_v49 = vmul.f32 %v27148_v32, %v27148_v32  ;;  %v27170_v21 = vsub.f32 %v26965_v26, %v27055_v33  ;;  %v27176_v12 = vsub.f32 %v26972_v45, %v27055_v33  ;;  %v19820_v45 = vld [vmem:[%s27922_s4 + $0x28] sm:$0xff]  ;;  %v19821_v33 = vld [vmem:[%s27922_s4 + $0x30] sm:$0xff]  ;;  %v19822_v53 = vld [vmem:[%s27922_s4 + $0x20] sm:$0xff] }
 0xc8d   : > { %v12852_v35 = vadd.f32 %v12851_v27, %v12821_v31  ;;  %v12877_v52 = vadd.f32 %v12876_v41, %v12843_v62  ;;  %v12834_v48 = vmul.f32 %v27154_v56, %v27154_v56  ;;  %v12835_v50 = vmul.f32 %v27162_v16, %v27162_v16 }
 0xc8e   : > { %v12866_v59 = vadd.f32 %v12865_v24, %v12833_v44  ;;  %v12836_v27 = vmul.f32 %v27170_v21, %v27170_v21  ;;  %v12837_v26 = vmul.f32 %v27176_v12, %v27176_v12 }
 0xc8f   : > { %12853 = vadd.xlane.f32.xlu1 %v12852_v35  ;;  %v12878_v23 = vadd.f32 %v12877_v52, %v12844_v54  ;;  %v29065_v35 = vmov 0   ;;  %v19823_v54 = vld [vmem:[%s27922_s4 + $0x38] sm:$0xff] }
 0xc90   : > { %v12867_v31 = vadd.f32 %v12866_v59, %v12834_v48 }
 0xc91   : > { %v12879_v38 = vadd.f32 %v12878_v23, %v12845_v49 }
 0xc92   : > { %v12868_v62 = vadd.f32 %v12867_v31, %v12835_v50 }
 0xc93   : > { %12880 = vadd.xlane.f32.xlu1 %v12879_v38 }
 0xc94   : > { %v12869_v41 = vadd.f32 %v12868_v62, %v12836_v27 }
 0xc96   : > { %v12870_v36 = vadd.f32 %v12869_v41, %v12837_v26 }
 0xc98   : > { %12871 = vadd.xlane.f32.xlu0 %v12870_v36 }
 0xca4   : > { %12981 = vrot.lane.b32.xlu1 %v19820_v45, %s19837_s10 }
 0xca8   : > { %12983 = vrot.lane.b32.xlu1 %v19821_v33, %s19837_s10 }
 0xcac   : > { %13048 = vperm.xlu1 %19331, %v19822_v53  }
 0xcae   : > { %12979 = vrot.lane.b32.xlu0 %v19822_v53, %s19837_s10 }
 0xcb0   : > { %19335 = vset.pattern.permute.xlu1 %v29065_v35 }
 0xcb2   : > { %12985 = vrot.lane.b32.xlu0 %v19823_v54, %s19837_s10 }
 0xcb6   : > { %13052 = vperm.xlu0 %19332, %v19820_v45  }
 0xcba   : > { %19333 = vset.pattern.permute.xlu0 %v29065_v35 }
 0xd18   : > { %v12863_v52 = vpop.xlane.xlu0 %12862 }
 0xd1c   : > { %v12854_v44 = vpop.xlane.xlu1 %12853 }
 0xd1d   : > { %v16462_v24 = vpack.c.bf16 %v12863_v52, %v12854_v44 }
 0xd1f   : > { %16463 = vmatprep.subr.bf16.mxu1 %v16462_v24 }
 0xd20   : > { %16465 = vmatpush3.bf16.msra.mxu1 %v16462_v24  ;;  %v12881_v49 = vpop.xlane.xlu1 %12880 }
 0xd25   : > { %v12872_v23 = vpop.xlane.xlu0 %12871 }
 0xd26   : > { %v16466_v48 = vpack.c.bf16 %v12881_v49, %v12872_v23 }
 0xd28   : > { %16467 = vmatprep.subr.bf16.mxu1 %v16466_v48 }
 0xd29   : > { %16469 = vmatpush3.bf16.msra.mxu1 %v16466_v48 }
 0xd2c   : > { %15281 = vmatmul.mubr.msk.f32.vlgmr.msra.gmra.mrb[36].mxu1 %vm29066_vm14, %v26993_v57 }
 0xd2d   : > { %15283 = vmatprep.mubr.msk.f32.mxu1 %vm29067_vm2, %v26998_v11  ;;  %v12980_v11 = vpop.permute.xlu0 %12979 }
 0xd30   : > { %15284 = vmatmul.mubr.msk.f32.gmra.mrb[38].mxu1 %vm29044_vm0, %v27007_v5  ;;  %v12982_v5 = vpop.permute.xlu1 %12981 }
 0xd31   : > { %13949 = vmatprep.mubr.f32.mxu1 %v28233_v46  ;;  %v12986_v23 = vpop.permute.xlu0 %12985 }
 0xdff   : > { %v15282_v59 = vpop.f32.mrb[36].mxu1 }
 0xe00   : > { %v12968_v38 = vmul.f32 0.00048828125, %v15282_v59  ;;  %v12948_v50 = vpop.f32.mrb[37].mxu1 }
 0xe01   : > { %v12967_v31 = vmul.f32 0.00048828125, %v12948_v50  ;;  %v12984_v50 = vpop.permute.xlu1 %12983 }
 0xe02   : > { %v12972_v27 = vadd.f32 1e-05, %v12968_v38 }
 0xe03   : > { %v12971_v62 = vadd.f32 1e-05, %v12967_v31  ;;  %v15285_v26 = vpop.f32.mrb[38].mxu1 }
 0xe04   : > { %19616 = vrsqrt.f32 %v12972_v27  ;;  %v12970_v41 = vmul.f32 0.00048828125, %v15285_v26  ;;  %v12958_v36 = vpop.f32.mrb[39].mxu1  ;;  %v27212_v27 = vpop.permute.xlu0 %13052 }
 0xe05   : > { %19618 = vrsqrt.f32 %v12971_v62  ;;  %v12969_v57 = vmul.f32 0.00048828125, %v12958_v36  ;;  %v27214_v62 = vpop.permute.xlu1 %13048 }
 0xe06   : > { %v12974_v45 = vadd.f32 1e-05, %v12970_v41 }
 0xe07   : > { %v12973_v53 = vadd.f32 1e-05, %v12969_v57 }
 0xe08   : > { %19620 = vrsqrt.f32 %v12974_v45 }
 0xe09   : > { %19622 = vrsqrt.f32 %v12973_v53 }
 0xe0e   : > { %v19617_v52 = vpop.eup %19616 }
 0xe0f   : > { %v19619_v44 = vpop.eup %19618  ;;  %v12992_v24 = vmul.f32 %v19617_v52, %v12982_v5 }
 0xe10   : > { %v12991_v49 = vmul.f32 %v19619_v44, %v12980_v11 }
 0xe11   : > { %13002 = vperm.xlu0 %19333, %v12992_v24  }
 0xe12   : > { %v19621_v48 = vpop.eup %19620  ;;  %12997 = vperm.xlu1 %19335, %v12991_v49  }
 0xe13   : > { %v19623_v59 = vpop.eup %19622  ;;  %v12994_v38 = vmul.f32 %v19621_v48, %v12986_v23 }
 0xe14   : > { %v12993_v31 = vmul.f32 %v19623_v59, %v12984_v50 }
 0xe15   : > { %19334 = vset.pattern.permute.xlu0 %v29064_v3 }
 0xe16   : > { %13012 = vperm.xlu1 %19335, %v12994_v38   ;;  %13056 = vperm.xlu0 %19334, %v19821_v33  }
 0xe1a   : > { %13007 = vperm.xlu1 %19335, %v12993_v31   ;;  %19607 = vset.pattern.permute.xlu0 %v29065_v35 }
 0xe1e   : > { %19336 = vset.pattern.permute.xlu1 %v29064_v3 }
 0xe1f   : > { %13060 = vperm.xlu1 %19336, %v19823_v54  }
 0xe90   : > { %v13003_v26 = vpop.permute.xlu0 %13002 }
 0xe91   : > { %v27216_v41 = vpop.permute.xlu1 %12997  ;;  %v13024_v36 = vmul.f32 %v13003_v26, %v27018_v42  ;;  %v13025_v57 = vmul.f32 %v13003_v26, %v27021_v63  ;;  %v13026_v45 = vmul.f32 %v13003_v26, %v27024_v40  ;;  %v13027_v33 = vmul.f32 %v13003_v26, %v27037_v37 }
 0xe92   : > { %v13016_v35 = vmul.f32 %v27216_v41, %v27034_v7  ;;  %v13018_v3 = vmul.f32 %v27216_v41, %v27060_v55  ;;  %v13015_v54 = vmul.f32 %v27216_v41, %v27031_v61  ;;  %v13023_v53 = vmul.f32 %v13003_v26, %v27015_v30 }
 0xe93   : > { %v13072_v11 = vadd.f32 %v27212_v27, %v13024_v36  ;;  %v13073_v42 = vadd.f32 %v27212_v27, %v13025_v57  ;;  %v13074_v63 = vadd.f32 %v27212_v27, %v13026_v45  ;;  %v13075_v40 = vadd.f32 %v27212_v27, %v13027_v33 }
 0xe94   : > { %v13064_v37 = vadd.f32 %v27214_v62, %v13016_v35  ;;  %v13066_v7 = vadd.f32 %v27214_v62, %v13018_v3  ;;  %v13063_v5 = vadd.f32 %v27214_v62, %v13015_v54  ;;  %v13071_v55 = vadd.f32 %v27212_v27, %v13023_v53 }
 0xe95   : > { %v27237_v52 = vpop.permute.xlu1 %13012  ;;  %vm13104_vm7 = vcmp.ge.f32.partialorder %v13072_v11, 0.0  ;;  %vm13105_vm12 = vcmp.ge.f32.partialorder %v13073_v42, 0.0  ;;  %v13136_v30 = vmul.f32 0.2, %v13072_v11  ;;  %v13137_v61 = vmul.f32 0.2, %v13073_v42 }
 0xe96   : > { %vm13106_vm5 = vcmp.ge.f32.partialorder %v13074_v63, 0.0  ;;  %vm13107_vm4 = vcmp.ge.f32.partialorder %v13075_v40, 0.0  ;;  %v13138_v44 = vmul.f32 0.2, %v13074_v63  ;;  %v13139_v24 = vmul.f32 0.2, %v13075_v40 }
 0xe97   : > { %v13168_v49 = vsel %vm13104_vm7, %v13072_v11, %v13136_v30  ;;  %v13169_v23 = vsel %vm13105_vm12, %v13073_v42, %v13137_v61  ;;  %vm13096_vm13 = vcmp.ge.f32.partialorder %v13064_v37, 0.0  ;;  %v13128_v48 = vmul.f32 0.2, %v13064_v37 }
 0xe98   : > { %v19337_v59 = vpack.i.bf16 %v13169_v23, %v13168_v49  ;;  %v13170_v38 = vsel %vm13106_vm5, %v13074_v63, %v13138_v44  ;;  %v27239_v50 = vsel %vm13107_vm4, %v13075_v40, %v13139_v24  ;;  %vm13098_vm14 = vcmp.ge.f32.partialorder %v13066_v7, 0.0  ;;  %v27258_v40 = vpop.permute.xlu0 %13056 }
 0xe99   : > { %29068 = vst [vmem:[#allocation47_spill] sm:$0xff] %v27239_v50  ;;  %v27241_v31 = vpop.permute.xlu1 %13007  ;;  %v19342_v36 = vpack.i.bf16 %v27239_v50, %v13170_v38  ;;  %v27244_v57 = vsel %vm13096_vm13, %v13064_v37, %v13128_v48  ;;  %v13130_v45 = vmul.f32 0.2, %v13066_v7  ;;  %vm13095_vm2 = vcmp.ge.f32.partialorder %v13063_v5, 0.0 }
 0xe9a   : > { %19338 = vrot.lane.b32.xlu0 %v19337_v59, %s19837_s10  ;;  %v16470_v33 = vpack.c.bf16 %v13168_v49, %v27244_v57  ;;  %vm13103_vm0 = vcmp.ge.f32.partialorder %v13071_v55, 0.0  ;;  %v13127_v35 = vmul.f32 0.2, %v13063_v5  ;;  %v13135_v3 = vmul.f32 0.2, %v13071_v55 }
 0xe9b   : > { %19343 = vrot.lane.b32.xlu1 %v19342_v36, %s19837_s10  ;;  %v27249_v54 = vsel %vm13098_vm14, %v13066_v7, %v13130_v45  ;;  %v13017_v53 = vmul.f32 %v27216_v41, %v27048_v17  ;;  %v13028_v7 = vmul.f32 %v13003_v26, %v27040_v39  ;;  %v13029_v61 = vmul.f32 %v13003_v26, %v27045_v8 }
 0xe9c   : > { %16471 = vmatprep.subr.bf16.mxu0 %v16470_v33  ;;  %v16510_v11 = vpack.c.bf16 %v13170_v38, %v27249_v54  ;;  %v27254_v42 = vsel %vm13095_vm2, %v13063_v5, %v13127_v35  ;;  %v27256_v63 = vsel %vm13103_vm0, %v13071_v55, %v13135_v3  ;;  %v13030_v5 = vmul.f32 %v13003_v26, %v27051_v13 }
 0xe9d   : > { %v16472_v37 = vpack.c.bf16 %v27256_v63, %v27254_v42  ;;  %v13065_v30 = vadd.f32 %v27214_v62, %v13017_v53  ;;  %v13032_v55 = vmul.f32 %v27241_v31, %v27107_v9  ;;  %v13076_v24 = vadd.f32 %v27212_v27, %v13028_v7 }
 0xe9e   : > { %16511 = vmatprep.subr.bf16.mxu1 %v16510_v11  ;;  %19348 = vrot.lane.b32.xlu0 %v19337_v59, %s19839_s17  ;;  %v27265_v17 = vpop.permute.xlu1 %13060  ;;  %v13040_v39 = vmul.f32 %v27237_v52, %v27070_v43  ;;  %v13077_v49 = vadd.f32 %v27212_v27, %v13029_v61  ;;  %v13078_v48 = vadd.f32 %v27212_v27, %v13030_v5 }
 0xe9f   : > { %16473 = vmatpush1.bf16.msra.mxu0 %v16472_v37  ;;  %vm13097_vm7 = vcmp.ge.f32.partialorder %v13065_v30, 0.0  ;;  %v13129_v44 = vmul.f32 0.2, %v13065_v30  ;;  %19353 = vrot.lane.b32.xlu1 %v19342_v36, %s19839_s17  ;;  %v13080_v8 = vadd.f32 %v27258_v40, %v13032_v55  ;;  %v13034_v13 = vmul.f32 %v27241_v31, %v27143_v4 }
 0xea0   : > { %vm13108_vm12 = vcmp.ge.f32.partialorder %v13076_v24, 0.0  ;;  %v13140_v26 = vmul.f32 0.2, %v13076_v24  ;;  %v13088_v38 = vadd.f32 %v27265_v17, %v13040_v39  ;;  %vm13109_vm5 = vcmp.ge.f32.partialorder %v13077_v49, 0.0 }
 0xea1   : > { %v13161_v9 = vsel %vm13097_vm7, %v13065_v30, %v13129_v44  ;;  %v13141_v33 = vmul.f32 0.2, %v13077_v49  ;;  %vm13110_vm4 = vcmp.ge.f32.partialorder %v13078_v48, 0.0  ;;  %v13142_v27 = vmul.f32 0.2, %v13078_v48 }
 0xea2   : > { %v16512_v45 = vpack.c.bf16 %v13169_v23, %v13161_v9  ;;  %19358 = vrot.lane.b32.xlu0 %v19337_v59, %s19840_s16  ;;  %v27283_v43 = vsel %vm13108_vm12, %v13076_v24, %v13140_v26  ;;  %vm13112_vm13 = vcmp.ge.f32.partialorder %v13080_v8, 0.0  ;;  %vm13120_vm14 = vcmp.ge.f32.partialorder %v13088_v38, 0.0 }
 0xea3   : > { %19363 = vrot.lane.b32.xlu1 %v19342_v36, %s19840_s16  ;;  %v27285_v4 = vsel %vm13109_vm5, %v13077_v49, %v13141_v33  ;;  %v13144_v35 = vmul.f32 0.2, %v13080_v8  ;;  %v13152_v3 = vmul.f32 0.2, %v13088_v38  ;;  %v13042_v23 = vmul.f32 %v27237_v52, %v27099_v10 }
 0xea4   : > { %16513 = vmatpush1.bf16.msra.mxu1 %v16512_v45  ;;  %v27291_v59 = vpack.i.bf16 %v27285_v4, %v27283_v43  ;;  %v27293_v53 = vsel %vm13110_vm4, %v13078_v48, %v13142_v27  ;;  %v13082_v36 = vadd.f32 %v27258_v40, %v13034_v13  ;;  %v13031_v11 = vmul.f32 %v27241_v31, %v27083_v1 }
 0xea5   : > { %v27300_v37 = vpack.i.bf16 %v28233_v46, %v27293_v53  ;;  %v27302_v30 = vsel %vm13112_vm13, %v13080_v8, %v13144_v35  ;;  %v27304_v7 = vsel %vm13120_vm14, %v13088_v38, %v13152_v3  ;;  %v13090_v10 = vadd.f32 %v27265_v17, %v13042_v23 }
 0xea6   : > { %19368 = vrot.lane.b32.xlu0 %v27291_v59, %s19837_s10  ;;  %v16474_v61 = vpack.c.bf16 %v27304_v7, %v27302_v30  ;;  %vm13114_vm2 = vcmp.ge.f32.partialorder %v13082_v36, 0.0  ;;  %v13146_v5 = vmul.f32 0.2, %v13082_v36  ;;  %v13039_v1 = vmul.f32 %v27237_v52, %v27067_v60 }
 0xea7   : > { %19373 = vrot.lane.b32.xlu1 %v27300_v37, %s19837_s10  ;;  %vm13122_vm0 = vcmp.ge.f32.partialorder %v13090_v10, 0.0  ;;  %v13154_v55 = vmul.f32 0.2, %v13090_v10  ;;  %v13079_v44 = vadd.f32 %v27258_v40, %v13031_v11  ;;  %v13033_v24 = vmul.f32 %v27241_v31, %v27130_v18 }
 0xea8   : > { %16475 = vmatprep.subr.bf16.mxu0 %v16474_v61  ;;  %v27318_v39 = vsel %vm13114_vm2, %v13082_v36, %v13146_v5  ;;  %v13087_v49 = vadd.f32 %v27265_v17, %v13039_v1  ;;  %v13041_v48 = vmul.f32 %v27237_v52, %v27088_v22  ;;  %v13019_v60 = vmul.f32 %v27216_v41, %v27077_v20 }
 0xea9   : > { %v27325_v8 = vsel %vm13122_vm0, %v13090_v10, %v13154_v55  ;;  %vm13111_vm7 = vcmp.ge.f32.partialorder %v13079_v44, 0.0  ;;  %v13143_v13 = vmul.f32 0.2, %v13079_v44  ;;  %v13081_v26 = vadd.f32 %v27258_v40, %v13033_v24 }
 0xeaa   : > { %v16514_v18 = vpack.c.bf16 %v27325_v8, %v27318_v39  ;;  %vm13119_vm12 = vcmp.ge.f32.partialorder %v13087_v49, 0.0  ;;  %v13151_v38 = vmul.f32 0.2, %v13087_v49  ;;  %v13089_v45 = vadd.f32 %v27265_v17, %v13041_v48 }
 0xeab   : > { %v27331_v33 = vsel %vm13111_vm7, %v13079_v44, %v13143_v13  ;;  %vm13113_vm5 = vcmp.ge.f32.partialorder %v13081_v26, 0.0  ;;  %v13145_v22 = vmul.f32 0.2, %v13081_v26  ;;  %v13067_v27 = vadd.f32 %v27214_v62, %v13019_v60 }
 0xeac   : > { %16515 = vmatprep.subr.bf16.mxu1 %v16514_v18  ;;  %v27334_v20 = vsel %vm13119_vm12, %v13087_v49, %v13151_v38  ;;  %vm13121_vm4 = vcmp.ge.f32.partialorder %v13089_v45, 0.0  ;;  %v13153_v35 = vmul.f32 0.2, %v13089_v45  ;;  %v19377_v3 = vpack.i.bf16 %v13161_v9, %v27244_v57 }
 0xead   : > { %v16476_v23 = vpack.c.bf16 %v27334_v20, %v27331_v33  ;;  %vm13099_vm13 = vcmp.ge.f32.partialorder %v13067_v27, 0.0  ;;  %v13131_v36 = vmul.f32 0.2, %v13067_v27  ;;  %v27339_v11 = vsel %vm13113_vm5, %v13081_v26, %v13145_v22 }
 0xeae   : > { %v13185_v10 = vsel %vm13121_vm4, %v13089_v45, %v13153_v35  ;;  %19378 = vrot.lane.b32.xlu0 %v19377_v3, %s19837_s10  ;;  %v13022_v61 = vmul.f32 %v27216_v41, %v27110_v51  ;;  %v19387_v9 = vpack.i.bf16 %v27256_v63, %v27254_v42  ;;  %v13020_v44 = vmul.f32 %v27216_v41, %v27091_v15 }
 0xeaf   : > { %16477 = vmatpush1.bf16.msra.mxu0 %v16476_v23  ;;  %v16516_v5 = vpack.c.bf16 %v13185_v10, %v27339_v11  ;;  %v27345_v1 = vsel %vm13099_vm13, %v13067_v27, %v13131_v36  ;;  %v13021_v51 = vmul.f32 %v27216_v41, %v27094_v29  ;;  %v13035_v15 = vmul.f32 %v27241_v31, %v27154_v56 }
 0xeb0   : > { %29069 = vst [vmem:[#allocation5_spill] sm:$0xff] %v27345_v1  ;;  %v19382_v57 = vpack.i.bf16 %v27345_v1, %v27249_v54  ;;  %v13070_v55 = vadd.f32 %v27214_v62, %v13022_v61  ;;  %v13068_v49 = vadd.f32 %v27214_v62, %v13020_v44  ;;  %v13043_v42 = vmul.f32 %v27237_v52, %v27115_v47 }
 0xeb1   : > { %16517 = vmatpush1.bf16.msra.mxu1 %v16516_v5  ;;  %v13069_v54 = vadd.f32 %v27214_v62, %v13021_v51  ;;  %v13046_v63 = vmul.f32 %v27237_v52, %v27148_v32  ;;  %v13083_v56 = vadd.f32 %v27258_v40, %v13035_v15  ;;  %v13044_v47 = vmul.f32 %v27237_v52, %v27124_v28 }
 0xeb2   : > { %19383 = vrot.lane.b32.xlu1 %v19382_v57, %s19837_s10  ;;  %19388 = vrot.lane.b32.xlu0 %v19387_v9, %s19837_s10  ;;  %v13134_v24 = vmul.f32 0.2, %v13070_v55  ;;  %vm13102_vm14 = vcmp.ge.f32.partialorder %v13070_v55, 0.0  ;;  %vm13100_vm2 = vcmp.ge.f32.partialorder %v13068_v49, 0.0  ;;  %v13132_v41 = vmul.f32 0.2, %v13068_v49 }
 0xeb3   : > { %v13133_v48 = vmul.f32 0.2, %v13069_v54  ;;  %vm13101_vm0 = vcmp.ge.f32.partialorder %v13069_v54, 0.0  ;;  %v13091_v62 = vadd.f32 %v27265_v17, %v13043_v42  ;;  %v13094_v60 = vadd.f32 %v27265_v17, %v13046_v63 }
 0xeb4   : > { %v27368_v29 = vsel %vm13102_vm14, %v13070_v55, %v13134_v24  ;;  %v13092_v13 = vadd.f32 %v27265_v17, %v13044_v47  ;;  %v27382_v26 = vsel %vm13100_vm2, %v13068_v49, %v13132_v41  ;;  %v13045_v38 = vmul.f32 %v27237_v52, %v27133_v0 }
 0xeb5   : > { %v27378_v32 = vpack.i.bf16 %v28233_v46, %v27368_v29  ;;  %v27384_v18 = vsel %vm13101_vm0, %v13069_v54, %v13133_v48  ;;  %v19432_v28 = vpack.i.bf16 %v13185_v10, %v27304_v7  ;;  %v13155_v45 = vmul.f32 0.2, %v13091_v62 }
 0xeb6   : > { %19398 = vrot.lane.b32.xlu1 %v19382_v57, %s19839_s17  ;;  %19393 = vrot.lane.b32.xlu0 %v19377_v3, %s19839_s17  ;;  %v13147_v22 = vmul.f32 0.2, %v13083_v56  ;;  %vm13123_vm7 = vcmp.ge.f32.partialorder %v13091_v62, 0.0  ;;  %vm13115_vm12 = vcmp.ge.f32.partialorder %v13083_v56, 0.0  ;;  %v13093_v27 = vadd.f32 %v27265_v17, %v13045_v38 }
 0xeb7   : > { %v27395_v35 = vpack.i.bf16 %v27384_v18, %v27382_v26  ;;  %vm13126_vm5 = vcmp.ge.f32.partialorder %v13094_v60, 0.0  ;;  %v13156_v23 = vmul.f32 0.2, %v13092_v13  ;;  %vm13124_vm4 = vcmp.ge.f32.partialorder %v13092_v13, 0.0 }
 0xeb8   : > { %v13036_v0 = vmul.f32 %v27241_v31, %v27162_v16  ;;  %v13037_v52 = vmul.f32 %v27241_v31, %v27170_v21  ;;  %v13038_v7 = vmul.f32 %v27241_v31, %v27176_v12  ;;  %v27405_v17 = vsel %vm13123_vm7, %v13091_v62, %v13155_v45 }
 0xeb9   : > { %29070 = vst [vmem:[#allocation54_spill] sm:$0xff] %v27405_v17  ;;  %v27407_v36 = vsel %vm13115_vm12, %v13083_v56, %v13147_v22  ;;  %v13157_v10 = vmul.f32 0.2, %v13093_v27  ;;  %vm13125_vm13 = vcmp.ge.f32.partialorder %v13093_v27, 0.0  ;;  %v27412_v21 = vsel %vm13124_vm4, %v13092_v13, %v13156_v23 }
 0xeba   : > { %19413 = vrot.lane.b32.xlu1 %v19382_v57, %s19840_s16  ;;  %19403 = vrot.lane.b32.xlu0 %v19387_v9, %s19839_s17  ;;  %29071 = vst [vmem:[#allocation55_spill] sm:$0xff] %v27407_v36  ;;  %v13084_v61 = vadd.f32 %v27258_v40, %v13036_v0  ;;  %v13085_v16 = vadd.f32 %v27258_v40, %v13037_v52  ;;  %29072 = vst [vmem:[#allocation43_spill] sm:$0xff] %v27412_v21  ;;  %vm29077_vm7 = vcmask 1039360  }
 0xebb   : > { %v13086_v5 = vadd.f32 %v27258_v40, %v13038_v7  ;;  %v27428_v24 = vsel %vm13125_vm13, %v13093_v27, %v13157_v10  ;;  %v19437_v54 = vpack.i.bf16 %v27405_v17, %v27325_v8  ;;  %v19462_v8 = vpack.i.bf16 %v27339_v11, %v27302_v30  ;;  %vm29079_vm12 = vmmov %vm29077_vm7 }
 0xebc   : > { %vm13116_vm14 = vcmp.ge.f32.partialorder %v13084_v61, 0.0  ;;  %vm13117_vm2 = vcmp.ge.f32.partialorder %v13085_v16, 0.0  ;;  %v13148_v57 = vmul.f32 0.2, %v13084_v61  ;;  %29073 = vst [vmem:[#allocation10_spill] sm:$0xff] %v27428_v24  ;;  %v19482_v47 = vpack.i.bf16 %v27334_v20, %v27331_v33 }
 0xebd   : > { %vm13118_vm0 = vcmp.ge.f32.partialorder %v13086_v5, 0.0  ;;  %v13150_v40 = vmul.f32 0.2, %v13086_v5  ;;  %v19472_v30 = vpack.i.bf16 %v27428_v24, %v27412_v21  ;;  %v13808_v20 = vld [vmem:[%s27924_s6] sm:$0xf]  ;;  %v29138_v25 = vpack.c.bf16 %v27293_v53, %v27368_v29 }
 0xebe   : > { %19428 = vrot.lane.b32.xlu1 %v27378_v32, %s19837_s10  ;;  %19408 = vrot.lane.b32.xlu0 %v19377_v3, %s19840_s16  ;;  %v13158_v3 = vmul.f32 0.2, %v13094_v60  ;;  %v27434_v15 = vsel %vm13116_vm14, %v13084_v61, %v13148_v57  ;;  %v29140_v34 = vpack.c.bf16 %v27283_v43, %v27382_v26  ;;  %v29144_v6 = vpack.c.bf16 %v27285_v4, %v27384_v18 }
 0xebf   : > { %29074 = vst [vmem:[#allocation19_spill] sm:$0xff] %v27434_v15  ;;  %v27438_v63 = vsel %vm13118_vm0, %v13086_v5, %v13150_v40 }
 0xec0   : > { %v27426_v51 = vsel %vm13126_vm5, %v13094_v60, %v13158_v3  ;;  %v19467_v60 = vpack.i.bf16 %v27407_v36, %v27318_v39  ;;  %v19567_v33 = vpack.i.bf16 %v28233_v46, %v27438_v63  ;;  %vm29081_vm5 = vmmov %vm29077_vm7 }
 0xec1   : > { %v19477_v56 = vpack.i.bf16 %v28233_v46, %v27426_v51  ;;  %vm29082_vm4 = vmmov %vm29081_vm5  ;;  %v29147_v4 = vpack.c.bf16 %v27426_v51, %v27438_v63 }
 0xec2   : > { %19433 = vrot.lane.b32.xlu1 %v19432_v28, %s19837_s10  ;;  %19418 = vrot.lane.b32.xlu0 %v19387_v9, %s19840_s16  ;;  %v13149_v9 = vmul.f32 0.2, %v13085_v16  ;;  %vm29083_vm13 = vmmov %vm29082_vm4 }
 0xec3   : > { %vm29084_vm14 = vmmov %vm29082_vm4 }
 0xec4   : > { %v27436_v42 = vsel %vm13117_vm2, %v13085_v16, %v13149_v9  ;;  %vm29085_vm2 = vmmov %vm29082_vm4 }
 0xec5   : > { %29075 = vst [vmem:[#allocation33_spill] sm:$0xff] %v27436_v42  ;;  %v19557_v39 = vpack.i.bf16 %v27436_v42, %v27434_v15  ;;  %vm29086_vm0 = vmmov %vm29085_vm2 }
 0xec6   : > { %19443 = vrot.lane.b32.xlu1 %v19432_v28, %s19839_s17  ;;  %19423 = vrot.lane.b32.xlu0 %v27395_v35, %s19837_s10 }
 0xeca   : > { %19453 = vrot.lane.b32.xlu1 %v19432_v28, %s19840_s16  ;;  %19438 = vrot.lane.b32.xlu0 %v19437_v54, %s19837_s10 }
 0xece   : > { %19463 = vrot.lane.b32.xlu1 %v19462_v8, %s19837_s10  ;;  %19448 = vrot.lane.b32.xlu0 %v19437_v54, %s19839_s17 }
 0xed2   : > { %19478 = vrot.lane.b32.xlu1 %v19477_v56, %s19837_s10  ;;  %19458 = vrot.lane.b32.xlu0 %v19437_v54, %s19840_s16 }
 0xed6   : > { %19483 = vrot.lane.b32.xlu1 %v19482_v47, %s19837_s10  ;;  %19468 = vrot.lane.b32.xlu0 %v19467_v60, %s19837_s10 }
 0xeda   : > { %19488 = vrot.lane.b32.xlu1 %v19462_v8, %s19839_s17  ;;  %19473 = vrot.lane.b32.xlu0 %v19472_v30, %s19837_s10 }
 0xede   : > { %19503 = vrot.lane.b32.xlu1 %v27378_v32, %s19839_s17  ;;  %19493 = vrot.lane.b32.xlu0 %v19467_v60, %s19839_s17 }
 0xee2   : > { %19508 = vrot.lane.b32.xlu1 %v19482_v47, %s19839_s17  ;;  %19498 = vrot.lane.b32.xlu0 %v27395_v35, %s19839_s17 }
 0xee6   : > { %19513 = vrot.lane.b32.xlu1 %v19462_v8, %s19840_s16  ;;  %19518 = vrot.lane.b32.xlu0 %v19467_v60, %s19840_s16 }
 0xeea   : > { %19528 = vrot.lane.b32.xlu1 %v19482_v47, %s19840_s16  ;;  %19523 = vrot.lane.b32.xlu0 %v27291_v59, %s19839_s17 }
 0xeee   : > { %19533 = vrot.lane.b32.xlu1 %v27300_v37, %s19839_s17  ;;  %19538 = vrot.lane.b32.xlu0 %v19472_v30, %s19839_s17 }
 0xef2   : > { %19543 = vrot.lane.b32.xlu1 %v19477_v56, %s19839_s17  ;;  %19548 = vrot.lane.b32.xlu0 %v27395_v35, %s19840_s16 }
 0xef6   : > { %19553 = vrot.lane.b32.xlu1 %v27378_v32, %s19840_s16  ;;  %19558 = vrot.lane.b32.xlu0 %v19557_v39, %s19837_s10 }
 0xefa   : > { %19568 = vrot.lane.b32.xlu1 %v19567_v33, %s19837_s10  ;;  %19563 = vrot.lane.b32.xlu0 %v27291_v59, %s19840_s16 }
 0xefe   : > { %19573 = vrot.lane.b32.xlu1 %v27300_v37, %s19840_s16  ;;  %19578 = vrot.lane.b32.xlu0 %v19557_v39, %s19839_s17 }
 0xf02   : > { %19583 = vrot.lane.b32.xlu1 %v19567_v33, %s19839_s17  ;;  %19588 = vrot.lane.b32.xlu0 %v19557_v39, %s19840_s16 }
 0xf06   : > { %19598 = vrot.lane.b32.xlu1 %v19567_v33, %s19840_s16  ;;  %19593 = vrot.lane.b32.xlu0 %v19472_v30, %s19840_s16 }
 0xf0a   : > { %19603 = vrot.lane.b32.xlu1 %v19477_v56, %s19840_s16  ;;  %13811 = vperm.xlu0 %19607, %v13808_v20   ;;  %s15197_s16 = sshll.u32 %s29216_s25, 5 }
 0xf0b   : > { %s278_s22 = scalar_lea.vmem %s27925_s7, %s15197_s16 }
 0xf0c   : > { %v19339_v59 = vpop.permute.xlu0 %19338 }
 0xf0d   : > { %v19344_v11 = vpop.permute.xlu1 %19343  ;;  %v19341_v7 = vunpack.i.h.bf16 %v19339_v59  ;;  %v19340_v3 = vunpack.i.l.bf16 %v19339_v59 }
 0xf0e   : > { %v19346_v45 = vunpack.i.h.bf16 %v19344_v11  ;;  %v19345_v5 = vunpack.i.l.bf16 %v19344_v11 }
 0xf0f   : > { %v13416_v57 = vsel %vm29081_vm5, %v19340_v3, %v19341_v7  ;;  %vm29090_vm5 = vmmov %vm29086_vm0 }
 0xf10   : > { %v27504_v37 = vpop.permute.xlu0 %19348  ;;  %v13417_v39 = vsel %vm29083_vm13, %v19341_v7, %v19345_v5  ;;  %v13418_v33 = vsel %vm29084_vm14, %v19345_v5, %v19346_v45  ;;  %vm29094_vm13 = vmmov %vm29086_vm0  ;;  %vm29095_vm14 = vcmask 785408  }
 0xf11   : > { %v27506_v32 = vpop.permute.xlu1 %19353  ;;  %v19351_v62 = vunpack.i.h.bf16 %v27504_v37  ;;  %v19350_v41 = vunpack.i.l.bf16 %v27504_v37 }
 0xf12   : > { %29076 = vst [vmem:[#allocation6_spill] sm:$0xff] %v27506_v32  ;;  %v19355_v55 = vunpack.i.l.bf16 %v27506_v32 }
 0xf13   : > { %v13752_v31 = vsel %vm29095_vm14, %v19350_v41, %v19351_v62 }
 0xf14   : > { %v27508_v13 = vpop.permute.xlu0 %19358 }
 0xf15   : > { %v27510_v38 = vpop.permute.xlu1 %19363 }
 0xf18   : > { %v27512_v28 = vpop.permute.xlu0 %19368 }
 0xf19   : > { %v28177_v22 = vunpack.i.h.bf16 %v27512_v28  ;;  %v28176_v27 = vunpack.i.l.bf16 %v27512_v28  ;;  %v27516_v35 = vpop.permute.xlu1 %19373  ;;  %v29148_v18 = vunpack.i.h.bf16 %v27512_v28 }
 0xf1a   : > { %v28178_v23 = vunpack.i.l.bf16 %v27516_v35  ;;  %v29145_v43 = vunpack.i.l.bf16 %v27516_v35 }
 0xf1b   : > { %v27522_v0 = vsel %vm29077_vm7, %v19346_v45, %v28176_v27  ;;  %vm29087_vm7 = vmmov %vm29086_vm0 }
 0xf1c   : > { %29078 = vst [vmem:[#allocation7_spill] sm:$0xff] %v27522_v0  ;;  %v27529_v52 = vsel %vm29079_vm12, %v28177_v22, %v28178_v23  ;;  %vm29088_vm12 = vmmov %vm29086_vm0 }
 0xf1d   : > { %29080 = vst [vmem:[#allocation35_spill] sm:$0xff] %v27529_v52 }
 0xf20   : > { %v19379_v10 = vpop.permute.xlu0 %19378 }
 0xf21   : > { %v19381_v61 = vunpack.i.h.bf16 %v19379_v10  ;;  %v19380_v16 = vunpack.i.l.bf16 %v19379_v10 }
 0xf23   : > { %v13408_v9 = vsel %vm29082_vm4, %v19380_v16, %v19381_v61  ;;  %vm29093_vm4 = vmmov %vm29086_vm0 }
 0xf24   : > { %v16478_v40 = vpack.c.bf16 %v13416_v57, %v13408_v9  ;;  %v19384_v54 = vpop.permute.xlu1 %19383  ;;  %v19389_v8 = vpop.permute.xlu0 %19388 }
 0xf25   : > { %v19386_v56 = vunpack.i.h.bf16 %v19384_v54  ;;  %v19385_v47 = vunpack.i.l.bf16 %v19384_v54  ;;  %v19391_v60 = vunpack.i.h.bf16 %v19389_v8  ;;  %v19390_v30 = vunpack.i.l.bf16 %v19389_v8 }
 0xf26   : > { %16480 = vmatprep.subr.msk.bf16.mxu0 %vm29004_vm11, %v16478_v40 }
 0xf27   : > { %v13409_v20 = vsel %vm29085_vm2, %v19381_v61, %v19385_v47  ;;  %v13410_v59 = vsel %vm29086_vm0, %v19385_v47, %v19386_v56  ;;  %v13415_v11 = vsel %vm29087_vm7, %v19391_v60, %v19340_v3  ;;  %v13407_v10 = vsel %vm29088_vm12, %v19390_v30, %v19380_v16  ;;  %vm29097_vm2 = vmmov %vm29095_vm14 }
 0xf28   : > { %v16518_v57 = vpack.c.bf16 %v13418_v33, %v13410_v59  ;;  %v16521_v9 = vpack.c.bf16 %v13417_v39, %v13409_v20  ;;  %v16481_v54 = vpack.c.bf16 %v13415_v11, %v13407_v10  ;;  %v27541_v49 = vpop.permute.xlu1 %19398  ;;  %v27543_v8 = vpop.permute.xlu0 %19393  ;;  %v19361_v39 = vunpack.i.h.bf16 %v27508_v13  ;;  %vm29098_vm0 = vmmov %vm29097_vm2 }
 0xf29   : > { %29089 = vst [vmem:[#allocation8_spill] sm:$0xff] %v27541_v49  ;;  %v19396_v48 = vunpack.i.h.bf16 %v27543_v8  ;;  %v29099_v2 = vunpack.i.h.bf16 %v27541_v49  ;;  %vm29100_vm7 = vmmov %vm29098_vm0 }
 0xf2a   : > { %16520 = vmatprep.subr.msk.bf16.mxu1 %vm28880_vm6, %v16518_v57  ;;  %16483 = vmatpush1.bf16.msk.msra.mxu0 %vm28891_vm1, %v16481_v54  ;;  %vm29101_vm12 = vmmov %vm29093_vm4 }
 0xf2b   : > { %16523 = vmatpush1.bf16.msk.msra.mxu1 %vm29028_vm15, %v16521_v9  ;;  %vm29105_vm14 = vmmov %vm29093_vm4 }
 0xf2c   : > { %v27551_v45 = vpop.permute.xlu1 %19413  ;;  %v27553_v7 = vpop.permute.xlu0 %19403 }
 0xf30   : > { %v27555_v3 = vpop.permute.xlu1 %19428  ;;  %v27557_v61 = vpop.permute.xlu0 %19408 }
 0xf34   : > { %v19434_v16 = vpop.permute.xlu1 %19433  ;;  %v27559_v5 = vpop.permute.xlu0 %19418 }
 0xf35   : > { %v19436_v59 = vunpack.i.h.bf16 %v19434_v16  ;;  %v19435_v11 = vunpack.i.l.bf16 %v19434_v16  ;;  %v19400_v16 = vunpack.i.l.bf16 %v27541_v49 }
 0xf37   : > { %v13432_v27 = vsel %vm29093_vm4, %v19435_v11, %v19436_v59  ;;  %v13746_v36 = vsel %vm29100_vm7, %v19400_v16, %v29099_v2  ;;  %vm29107_vm7 = vmmov %vm29098_vm0 }
 0xf38   : > { %v27561_v40 = vpop.permute.xlu1 %19443  ;;  %v27563_v47 = vpop.permute.xlu0 %19423 }
 0xf39   : > { %v28179_v60 = vunpack.i.l.bf16 %v27563_v47 }
 0xf3b   : > { %v27569_v30 = vsel %vm29090_vm5, %v19386_v56, %v28179_v60  ;;  %v19405_v60 = vunpack.i.l.bf16 %v27553_v7  ;;  %vm29103_vm5 = vmmov %vm29093_vm4 }
 0xf3c   : > { %29091 = vst [vmem:[#allocation39_spill] sm:$0xff] %v27569_v30  ;;  %v27573_v33 = vpop.permute.xlu1 %19453  ;;  %v27575_v20 = vpop.permute.xlu0 %19438  ;;  %v19406_v30 = vunpack.i.h.bf16 %v27553_v7 }
 0xf3d   : > { %29092 = vst [vmem:[#allocation42_spill] sm:$0xff] %v27575_v20  ;;  %v19440_v12 = vunpack.i.l.bf16 %v27575_v20  ;;  %v29102_v42 = vunpack.i.h.bf16 %v27575_v20 }
 0xf3e   : > { %v13751_v20 = vsel %vm29098_vm0, %v19406_v30, %v19350_v41  ;;  %v19410_v30 = vunpack.i.l.bf16 %v27557_v61 }
 0xf3f   : > { %v13433_v7 = vsel %vm29101_vm12, %v19436_v59, %v19440_v12  ;;  %v13434_v24 = vsel %vm29103_vm5, %v19440_v12, %v29102_v42  ;;  %vm29108_vm12 = vmmov %vm29098_vm0 }
 0xf40   : > { %v19464_v10 = vpop.permute.xlu1 %19463  ;;  %v27577_v57 = vpop.permute.xlu0 %19448  ;;  %vm29109_vm5 = vmmov %vm29098_vm0 }
 0xf41   : > { %v19466_v9 = vunpack.i.h.bf16 %v19464_v10  ;;  %v19465_v54 = vunpack.i.l.bf16 %v19464_v10  ;;  %v19395_v10 = vunpack.i.l.bf16 %v27543_v8 }
 0xf43   : > { %v13424_v22 = vsel %vm29094_vm13, %v19465_v54, %v19466_v9  ;;  %vm29104_vm13 = vmmov %vm29093_vm4  ;;  %v13743_v12 = vsel %vm29107_vm7, %v19405_v60, %v19395_v10 }
 0xf44   : > { %v16484_v23 = vpack.c.bf16 %v13432_v27, %v13424_v22  ;;  %v27589_v44 = vpop.permute.xlu1 %19478  ;;  %v27591_v37 = vpop.permute.xlu0 %19458  ;;  %v29096_v22 = vunpack.i.h.bf16 %v27506_v32 }
 0xf45   : > { %v19481_v26 = vunpack.i.h.bf16 %v27589_v44 }
 0xf46   : > { %16486 = vmatprep.subr.msk.bf16.mxu0 %vm29004_vm11, %v16484_v23  ;;  %v13754_v27 = vsel %vm29097_vm2, %v19355_v55, %v29096_v22  ;;  %v13744_v23 = vsel %vm29098_vm0, %v19395_v10, %v19396_v48  ;;  %v19446_v22 = vunpack.i.h.bf16 %v27561_v40  ;;  %vm29106_vm2 = vmmov %vm29093_vm4 }
 0xf47   : > { %v16490_v50 = vpack.c.bf16 %v13752_v31, %v13744_v23  ;;  %v16530_v31 = vpack.c.bf16 %v13754_v27, %v13746_v36 }
 0xf48   : > { %v19484_v0 = vpop.permute.xlu1 %19483  ;;  %v27606_v19 = vpop.permute.xlu0 %19468 }
 0xf49   : > { %v19486_v56 = vunpack.i.h.bf16 %v19484_v0  ;;  %v19485_v17 = vunpack.i.l.bf16 %v19484_v0  ;;  %v19471_v8 = vunpack.i.h.bf16 %v27606_v19  ;;  %v19470_v32 = vunpack.i.l.bf16 %v27606_v19 }
 0xf4b   : > { %v13423_v49 = vsel %vm29093_vm4, %v19485_v17, %v19465_v54  ;;  %v13431_v2 = vsel %vm29104_vm13, %v19486_v56, %v19435_v11  ;;  %v13425_v0 = vsel %vm29105_vm14, %v19466_v9, %v19470_v32  ;;  %v13426_v15 = vsel %vm29106_vm2, %v19470_v32, %v19471_v8  ;;  %vm29111_vm4 = vmmov %vm29098_vm0 }
 0xf4c   : > { %v16487_v21 = vpack.c.bf16 %v13431_v2, %v13423_v49  ;;  %v16524_v52 = vpack.c.bf16 %v13434_v24, %v13426_v15  ;;  %v16527_v1 = vpack.c.bf16 %v13433_v7, %v13425_v0  ;;  %v19489_v58 = vpop.permute.xlu1 %19488  ;;  %v27626_v59 = vpop.permute.xlu0 %19473  ;;  %v13745_v11 = vsel %vm29108_vm12, %v19396_v48, %v19400_v16  ;;  %vm29112_vm13 = vmmov %vm29098_vm0 }
 0xf4d   : > { %v19491_v17 = vunpack.i.h.bf16 %v19489_v58  ;;  %v19490_v42 = vunpack.i.l.bf16 %v19489_v58  ;;  %v19416_v9 = vunpack.i.h.bf16 %v27551_v45  ;;  %v19415_v54 = vunpack.i.l.bf16 %v27551_v45  ;;  %vm29118_vm7 = vmmov %vm29111_vm4 }
 0xf4e   : > { %16489 = vmatpush1.bf16.msk.msra.mxu0 %vm28891_vm1, %v16487_v21  ;;  %16526 = vmatprep.subr.msk.bf16.mxu1 %vm28880_vm6, %v16524_v52  ;;  %v19451_v24 = vunpack.i.h.bf16 %v27577_v57  ;;  %v19450_v49 = vunpack.i.l.bf16 %v27577_v57  ;;  %v29110_v15 = vunpack.i.l.bf16 %v27561_v40  ;;  %v13753_v48 = vsel %vm29112_vm13, %v19351_v62, %v19355_v55  ;;  %vm29119_vm12 = vmmov %vm29111_vm4 }
 0xf4f   : > { %16491 = vmatprep.subr.bf16.mxu0 %v16490_v50  ;;  %v13760_v58 = vsel %vm29109_vm5, %v19490_v42, %v19491_v17  ;;  %v19366_v32 = vunpack.i.h.bf16 %v27510_v38  ;;  %v16492_v21 = vpack.c.bf16 %v13751_v20, %v13743_v12  ;;  %16529 = vmatpush1.bf16.msk.msra.mxu1 %vm29028_vm15, %v16527_v1  ;;  %v19411_v50 = vunpack.i.h.bf16 %v27557_v61  ;;  %vm29120_vm5 = vmmov %vm29111_vm4 }
 0xf50   : > { %v13768_v41 = vsel %vm29111_vm4, %v29110_v15, %v19446_v22  ;;  %v27645_v60 = vpop.permute.xlu1 %19503  ;;  %v27649_v36 = vpop.permute.xlu0 %19493  ;;  %16531 = vmatprep.subr.bf16.mxu1 %v16530_v31  ;;  %v29113_v55 = vunpack.i.l.bf16 %v27508_v13  ;;  %vm29114_vm14 = vcmask 777216   ;;  %v29115_v20 = vunpack.i.l.bf16 %v27510_v38 }
 0xf51   : > { %v16494_v52 = vpack.c.bf16 %v13768_v41, %v13760_v58  ;;  %v19496_v56 = vunpack.i.h.bf16 %v27649_v36  ;;  %v19495_v16 = vunpack.i.l.bf16 %v27649_v36  ;;  %vm29116_vm2 = vmmov %vm29114_vm14  ;;  %v16532_v1 = vpack.c.bf16 %v13753_v48, %v13745_v11 }
 0xf52   : > { %v13584_v62 = vsel %vm29114_vm14, %v29113_v55, %v19361_v39  ;;  %v13585_v10 = vsel %vm29116_vm2, %v19361_v39, %v29115_v20  ;;  %vm29117_vm0 = vmmov %vm29116_vm2  ;;  %16493 = vmatpush1.bf16.msra.mxu0 %v16492_v21  ;;  %v13769_v61 = vsel %vm29118_vm7, %v19446_v22, %v19450_v49  ;;  %v13770_v2 = vsel %vm29111_vm4, %v19450_v49, %v19451_v24 }
 0xf53   : > { %v13578_v27 = vsel %vm29117_vm0, %v19415_v54, %v19416_v9  ;;  %16495 = vmatprep.subr.bf16.mxu0 %v16494_v52  ;;  %v13761_v23 = vsel %vm29119_vm12, %v19491_v17, %v19495_v16  ;;  %v13762_v7 = vsel %vm29120_vm5, %v19495_v16, %v19496_v56  ;;  %v19421_v39 = vunpack.i.h.bf16 %v27559_v5  ;;  %16533 = vmatpush1.bf16.msra.mxu1 %v16532_v1  ;;  %vm29122_vm13 = vmmov %vm29117_vm0 }
 0xf54   : > { %v19420_v0 = vunpack.i.l.bf16 %v27559_v5  ;;  %v16536_v12 = vpack.c.bf16 %v13769_v61, %v13761_v23  ;;  %v19509_v11 = vpop.permute.xlu1 %19508  ;;  %v27674_v31 = vpop.permute.xlu0 %19498  ;;  %v16534_v22 = vpack.c.bf16 %v13770_v2, %v13762_v7  ;;  %v29121_v17 = vmov %v29115_v20  ;;  %vm29123_vm14 = vmmov %vm29117_vm0 }
 0xf55   : > { %v13586_v58 = vsel %vm29122_vm13, %v29121_v17, %v19366_v32  ;;  %v13576_v15 = vsel %vm29123_vm14, %v19410_v30, %v19411_v50  ;;  %v19511_v41 = vunpack.i.h.bf16 %v19509_v11  ;;  %v19510_v49 = vunpack.i.l.bf16 %v19509_v11  ;;  %vm29124_vm2 = vmmov %vm29117_vm0 }
 0xf56   : > { %v16538_v48 = vpack.c.bf16 %v13586_v58, %v13578_v27  ;;  %v19456_v21 = vunpack.i.h.bf16 %v27573_v33  ;;  %v19455_v5 = vunpack.i.l.bf16 %v27573_v33  ;;  %v19460_v52 = vunpack.i.l.bf16 %v27591_v37  ;;  %16535 = vmatprep.subr.bf16.mxu1 %v16534_v22  ;;  %vm29125_vm0 = vmmov %vm29111_vm4 }
 0xf57   : > { %v13577_v16 = vsel %vm29124_vm2, %v19411_v50, %v19415_v54  ;;  %v19461_v55 = vunpack.i.h.bf16 %v27591_v37  ;;  %v13759_v20 = vsel %vm29125_vm0, %v19510_v49, %v19490_v42  ;;  %v29126_v1 = vunpack.i.l.bf16 %v27561_v40  ;;  %vm29127_vm7 = vmmov %vm29125_vm0  ;;  %16537 = vmatpush1.bf16.msra.mxu1 %v16536_v12 }
 0xf58   : > { %v16498_v23 = vpack.c.bf16 %v13584_v62, %v13576_v15  ;;  %v29128_v27 = vunpack.i.l.bf16 %v27508_v13  ;;  %vm29129_vm12 = vmmov %vm29124_vm2  ;;  %v19514_v11 = vpop.permute.xlu1 %19513  ;;  %v27695_v22 = vpop.permute.xlu0 %19518  ;;  %16540 = vmatprep.subr.msk.bf16.mxu1 %vm28880_vm6, %v16538_v48  ;;  %v16541_v62 = vpack.c.bf16 %v13585_v10, %v13577_v16  ;;  %v19431_v16 = vunpack.i.h.bf16 %v27555_v3 }
 0xf59   : > { %v13767_v61 = vsel %vm29127_vm7, %v19511_v41, %v29126_v1  ;;  %vm29130_vm5 = vmmov %vm29124_vm2  ;;  %v19516_v54 = vunpack.i.h.bf16 %v19514_v11  ;;  %v19515_v50 = vunpack.i.l.bf16 %v19514_v11  ;;  %v19521_v42 = vunpack.i.h.bf16 %v27695_v22 }
 0xf5a   : > { %v13583_v7 = vsel %vm29129_vm12, %v19421_v39, %v29128_v27  ;;  %v13575_v33 = vsel %vm29130_vm5, %v19420_v0, %v19410_v30  ;;  %v16496_v2 = vpack.c.bf16 %v13767_v61, %v13759_v20  ;;  %v19520_v40 = vunpack.i.l.bf16 %v27695_v22  ;;  %vm29131_vm4 = vmmov %vm29124_vm2 }
 0xf5b   : > { %v13600_v13 = vsel %vm29131_vm4, %v19455_v5, %v19456_v21  ;;  %vm29132_vm13 = vmmov %vm29124_vm2  ;;  %v13592_v0 = vsel %vm29124_vm2, %v19515_v50, %v19516_v54  ;;  %v16501_v17 = vpack.c.bf16 %v13583_v7, %v13575_v33  ;;  %16543 = vmatpush1.bf16.msk.msra.mxu1 %vm29028_vm15, %v16541_v62  ;;  %v19430_v20 = vunpack.i.l.bf16 %v27555_v3  ;;  %v27737_v3 = vld [vmem:[%s27921_s3] sm:$0xf] }
 0xf5c   : > { %v13601_v39 = vsel %vm29132_vm13, %v19456_v21, %v19460_v52  ;;  %16497 = vmatpush1.bf16.msra.mxu0 %v16496_v2  ;;  %vm29133_vm14 = vmmov %vm29124_vm2  ;;  %v16504_v58 = vpack.c.bf16 %v13600_v13, %v13592_v0  ;;  %v19529_v49 = vpop.permute.xlu1 %19528  ;;  %v27715_v48 = vpop.permute.xlu0 %19523  ;;  %v29141_v2 = vunpack.i.l.bf16 %v27563_v47  ;;  %v29149_v62 = vunpack.i.l.bf16 %v27512_v28  ;;  %v29152_v0 = vld [vmem:[#allocation5_spill] sm:$0xff]  ;;  %v29156_v28 = vld [vmem:[#allocation19_spill] sm:$0xff] }
 0xf5d   : > { %v13602_v30 = vsel %vm29133_vm14, %v19460_v52, %v19461_v55  ;;  %16500 = vmatprep.subr.msk.bf16.mxu0 %vm29004_vm11, %v16498_v23  ;;  %vm29134_vm0 = vmmov %vm29124_vm2  ;;  %v19531_v21 = vunpack.i.h.bf16 %v19529_v49  ;;  %v19530_v52 = vunpack.i.l.bf16 %v19529_v49  ;;  %v19426_v23 = vunpack.i.h.bf16 %v27563_v47 }
 0xf5e   : > { %v13593_v12 = vsel %vm29134_vm0, %v19516_v54, %v19520_v40  ;;  %vm29135_vm7 = vmmov %vm29134_vm0  ;;  %v19480_v47 = vunpack.i.l.bf16 %v27589_v44  ;;  %v19526_v51 = vunpack.i.h.bf16 %v27715_v48  ;;  %v19525_v63 = vunpack.i.l.bf16 %v27715_v48 }
 0xf5f   : > { %v13594_v10 = vsel %vm29135_vm7, %v19520_v40, %v19521_v42  ;;  %v16547_v41 = vpack.c.bf16 %v13601_v39, %v13593_v12  ;;  %vm29136_vm12 = vmmov %vm29134_vm0  ;;  %v19475_v40 = vunpack.i.l.bf16 %v27626_v59  ;;  %v19476_v39 = vunpack.i.h.bf16 %v27626_v59 }
 0xf60   : > { %v16544_v15 = vpack.c.bf16 %v13602_v30, %v13594_v10  ;;  %16503 = vmatpush1.bf16.msk.msra.mxu0 %vm28891_vm1, %v16501_v17  ;;  %v13591_v1 = vsel %vm29136_vm12, %v19530_v52, %v19515_v50  ;;  %vm29137_vm5 = vmmov %vm29134_vm0  ;;  %v27728_v7 = vpop.permute.xlu1 %19533  ;;  %v27732_v14 = vpop.permute.xlu0 %19538  ;;  %v29151_v30 = vld [vmem:[#allocation47_spill] sm:$0xff]  ;;  %v19505_v59 = vunpack.i.l.bf16 %v27645_v60  ;;  %v19501_v49 = vunpack.i.h.bf16 %v27674_v31  ;;  %v29158_v52 = vld [vmem:[#allocation10_spill] sm:$0xff] }
 0xf61   : > { %v13599_v61 = vsel %vm29137_vm5, %v19531_v21, %v19455_v5  ;;  %16506 = vmatprep.subr.msk.bf16.mxu0 %vm29004_vm11, %v16504_v58  ;;  %v19376_v5 = vunpack.i.h.bf16 %v27516_v35  ;;  %v29153_v44 = vpack.c.bf16 %v29151_v30, %v29152_v0  ;;  %v29154_v10 = vld [vmem:[#allocation35_spill] sm:$0xff]  ;;  %v19500_v21 = vunpack.i.l.bf16 %v27674_v31 }
 0xf62   : > { %16546 = vmatprep.subr.msk.bf16.mxu1 %vm28880_vm6, %v16544_v15  ;;  %v16507_v27 = vpack.c.bf16 %v13599_v61, %v13591_v1  ;;  %vm29139_vm6 = vcmask 1039360   ;;  %v29155_v58 = vld [vmem:[#allocation43_spill] sm:$0xff]  ;;  %v29162_v61 = vld [vmem:[#allocation42_spill] sm:$0xff]  ;;  %vm29173_vm7 = vcmask 785408  }
 0xf63   : > { %16549 = vmatpush1.bf16.msk.msra.mxu1 %vm29028_vm15, %v16547_v41  ;;  %v13414_v33 = vsel %vm29139_vm6, %v19430_v20, %v19431_v16  ;;  %vm29142_vm11 = vmmov %vm29139_vm6  ;;  %v29157_v15 = vpack.c.bf16 %v29155_v58, %v29156_v28  ;;  %v19506_v41 = vunpack.i.h.bf16 %v27645_v60  ;;  %v29159_v16 = vld [vmem:[#allocation33_spill] sm:$0xff] }
 0xf64   : > { %16591 = vmatprep.subr.bf16.mxu1 %v29138_v25  ;;  %16509 = vmatpush1.bf16.msk.msra.mxu0 %vm28891_vm1, %v16507_v27  ;;  %v13412_v11 = vsel %vm29142_vm11, %v29141_v2, %v19426_v23  ;;  %vm29143_vm15 = vmmov %vm29139_vm6  ;;  %v27754_v50 = vpop.permute.xlu1 %19543  ;;  %v27759_v53 = vpop.permute.xlu0 %19548  ;;  %v19535_v2 = vunpack.i.l.bf16 %v27728_v7 }
 0xf65   : > { %16551 = vmatprep.subr.bf16.mxu0 %v29140_v34  ;;  %v13413_v54 = vsel %vm29143_vm15, %v19426_v23, %v19430_v20  ;;  %vm29146_vm1 = vmmov %vm29139_vm6  ;;  %v29160_v20 = vpack.c.bf16 %v29158_v52, %v29159_v16  ;;  %v29163_v23 = vunpack.i.h.bf16 %v29162_v61  ;;  %v19536_v34 = vunpack.i.h.bf16 %v27728_v7  ;;  %v29178_v7 = vld [vmem:[#allocation8_spill] sm:$0xff]  ;;  %v29186_v52 = vld [vmem:[#allocation39_spill] sm:$0xff] }
 0xf66   : > { %13950 = vmatmul.mubr.f32.vlgmr.msra.gmra.mrb[40].mxu1 %v27737_v3  ;;  %v13422_v29 = vsel %vm29146_vm1, %v29145_v43, %v19376_v5  ;;  %vm29150_vm4 = vmmov %vm29146_vm1  ;;  %v16601_v17 = vpack.c.bf16 %v29154_v10, %v13413_v54  ;;  %v29169_v54 = vld [vmem:[#allocation55_spill] sm:$0xff]  ;;  %v29171_v43 = vld [vmem:[#allocation6_spill] sm:$0xff]  ;;  %v19551_v57 = vunpack.i.h.bf16 %v27759_v53 }
 0xf67   : > { %16593 = vmatpush1.bf16.msra.mxu1 %v29144_v6  ;;  %14091 = vmatprep.mubr.f32.mxu1 %v28233_v46  ;;  %v13420_v35 = vsel %vm29150_vm4, %v29149_v62, %v29148_v18  ;;  %v16598_v13 = vpack.c.bf16 %v13422_v29, %v13414_v33  ;;  %vm29161_vm13 = vmmov %vm29146_vm1  ;;  %v29172_v29 = vunpack.i.h.bf16 %v29171_v43  ;;  %v29179_v62 = vunpack.i.h.bf16 %v29178_v7 }
 0xf68   : > { %13879 = vmatmul.mubr.f32.vlgmr.msra.gmra.mrb[40].mxu0 %v27737_v3  ;;  %16595 = vmatprep.subr.bf16.mxu1 %v29147_v4  ;;  %v16558_v12 = vpack.c.bf16 %v13420_v35, %v13412_v11  ;;  %v19559_v1 = vpop.permute.xlu0 %19558  ;;  %v13438_v48 = vsel %vm29161_vm13, %v19480_v47, %v19481_v26  ;;  %vm29164_vm14 = vmmov %vm29146_vm1  ;;  %v29168_v11 = vld [vmem:[#allocation54_spill] sm:$0xff] }
 0xf69   : > { %16553 = vmatpush1.bf16.msra.mxu0 %v29153_v44  ;;  %14020 = vmatprep.mubr.f32.mxu0 %v28233_v46  ;;  %v27792_v46 = vpop.permute.xlu1 %19553  ;;  %v13435_v27 = vsel %vm29164_vm14, %v29163_v23, %v19475_v40  ;;  %v19561_v5 = vunpack.i.h.bf16 %v19559_v1  ;;  %v19560_v25 = vunpack.i.l.bf16 %v19559_v1  ;;  %vm29166_vm2 = vmmov %vm29146_vm1  ;;  %v29170_v6 = vpack.c.bf16 %v29168_v11, %v29169_v54 }
 0xf6a   : > { %16555 = vmatprep.subr.bf16.mxu0 %v29157_v15  ;;  %v13436_v31 = vsel %vm29166_vm2, %v19475_v40, %v19476_v39  ;;  %vm29167_vm0 = vmmov %vm29146_vm1  ;;  %v13755_v26 = vsel %vm29173_vm7, %v29172_v29, %v19525_v63  ;;  %v29185_v15 = vld [vmem:[#allocation7_spill] sm:$0xff]  ;;  %v19550_v29 = vunpack.i.l.bf16 %v27759_v53  ;;  %v19556_v7 = vunpack.i.h.bf16 %v27792_v46 }
 0xf6b   : > { %16597 = vmatpush1.bf16.msra.mxu1 %v29160_v20  ;;  %v13437_v33 = vsel %vm29167_vm0, %v19476_v39, %v19480_v47  ;;  %vm29175_vm12 = vmmov %vm29167_vm0  ;;  %v29187_v16 = vpack.c.bf16 %v29185_v15, %v29186_v52  ;;  %v19555_v36 = vunpack.i.l.bf16 %v27792_v46 }
 0xf6c   : > { %16600 = vmatprep.subr.msk.bf16.mxu1 %vm28771_vm8, %v16598_v13  ;;  %v13427_v40 = vsel %vm29175_vm12, %v19471_v8, %v19560_v25  ;;  %vm29176_vm5 = vmmov %vm29167_vm0  ;;  %v27826_v44 = vpop.permute.xlu0 %19563  ;;  %v19540_v8 = vunpack.i.l.bf16 %v27732_v14 }
 0xf6d   : > { %16557 = vmatpush1.bf16.msra.mxu0 %v29170_v6  ;;  %v13428_v47 = vsel %vm29176_vm5, %v19560_v25, %v19561_v5  ;;  %vm29177_vm6 = vmmov %vm29173_vm7  ;;  %v19569_v30 = vpop.permute.xlu1 %19568  ;;  %v16567_v28 = vpack.c.bf16 %v13435_v27, %v13427_v40  ;;  %v19565_v54 = vunpack.i.l.bf16 %v27826_v44 }
 0xf6e   : > { %16560 = vmatprep.subr.msk.bf16.mxu0 %vm28763_vm9, %v16558_v12  ;;  %v13756_v18 = vsel %vm29177_vm6, %v19525_v63, %v19526_v51  ;;  %vm29180_vm11 = vmmov %vm29177_vm6  ;;  %v16564_v39 = vpack.c.bf16 %v13436_v31, %v13428_v47  ;;  %v19571_v12 = vunpack.i.h.bf16 %v19569_v30  ;;  %v19570_v10 = vunpack.i.l.bf16 %v19569_v30 }
 0xf6f   : > { %v13747_v35 = vsel %vm29180_vm11, %v29179_v62, %v19500_v21  ;;  %vm29181_vm15 = vmmov %vm29177_vm6  ;;  %16603 = vmatpush1.bf16.msk.msra.mxu1 %vm28775_vm3, %v16601_v17 }
 0xf70   : > { %v13749_v13 = vsel %vm29181_vm15, %v19501_v49, %v19505_v59  ;;  %vm29183_vm1 = vmmov %vm29177_vm6  ;;  %v16572_v58 = vpack.c.bf16 %v13755_v26, %v13747_v35  ;;  %v13430_v23 = vsel %vm29167_vm0, %v19570_v10, %v19571_v12  ;;  %v19579_v11 = vpop.permute.xlu0 %19578 }
 0xf71   : > { %v13750_v19 = vsel %vm29183_vm1, %v19505_v59, %v19506_v41  ;;  %vm29184_vm4 = vmmov %vm29183_vm1  ;;  %16563 = vmatpush1.bf16.msk.msra.mxu0 %vm28767_vm10, %v29187_v16  ;;  %v19541_v41 = vunpack.i.h.bf16 %v27732_v14  ;;  %v16604_v27 = vpack.c.bf16 %v13438_v48, %v13430_v23  ;;  %v19574_v31 = vpop.permute.xlu1 %19573  ;;  %v19581_v14 = vunpack.i.h.bf16 %v19579_v11 }
 0xf72   : > { %v13748_v63 = vsel %vm29184_vm4, %v19500_v21, %v19501_v49  ;;  %vm29189_vm13 = vmmov %vm29183_vm1  ;;  %16566 = vmatprep.subr.msk.bf16.mxu0 %vm28763_vm9, %v16564_v39  ;;  %v19546_v49 = vunpack.i.h.bf16 %v27754_v50  ;;  %v19545_v21 = vunpack.i.l.bf16 %v27754_v50  ;;  %v19576_v6 = vunpack.i.h.bf16 %v19574_v31 }
 0xf73   : > { %v16570_v1 = vpack.c.bf16 %v13756_v18, %v13748_v63  ;;  %v13758_v17 = vsel %vm29189_vm13, %v19535_v2, %v19536_v34  ;;  %vm29190_vm14 = vmmov %vm29183_vm1  ;;  %v19580_v34 = vunpack.i.l.bf16 %v19579_v11  ;;  %v19575_v43 = vunpack.i.l.bf16 %v19574_v31  ;;  %16606 = vmatprep.subr.msk.bf16.mxu1 %vm28771_vm8, %v16604_v27 }
 0xf74   : > { %v13757_v61 = vsel %vm29190_vm14, %v19526_v51, %v19535_v2  ;;  %vm29191_vm2 = vmmov %vm29167_vm0  ;;  %v19566_v2 = vunpack.i.h.bf16 %v27826_v44  ;;  %v19589_v40 = vpop.permute.xlu0 %19588 }
 0xf75   : > { %v13429_v59 = vsel %vm29191_vm2, %v19561_v5, %v19570_v10  ;;  %vm29192_vm7 = vmmov %vm29183_vm1  ;;  %v16610_v5 = vpack.c.bf16 %v13758_v17, %v13750_v19  ;;  %16569 = vmatpush1.bf16.msk.msra.mxu0 %vm28767_vm10, %v16567_v28  ;;  %v16612_v50 = vpack.c.bf16 %v13757_v61, %v13749_v13  ;;  %v19584_v26 = vpop.permute.xlu1 %19583  ;;  %v19591_v44 = vunpack.i.h.bf16 %v19589_v40 }
 0xf76   : > { %v16607_v25 = vpack.c.bf16 %v13437_v33, %v13429_v59  ;;  %v13771_v51 = vsel %vm29192_vm7, %v19451_v24, %v19540_v8  ;;  %vm29193_vm12 = vmmov %vm29183_vm1  ;;  %16571 = vmatprep.subr.bf16.mxu0 %v16570_v1  ;;  %v19586_v62 = vunpack.i.h.bf16 %v19584_v26  ;;  %v19590_v19 = vunpack.i.l.bf16 %v19589_v40 }
 0xf77   : > { %v13763_v24 = vsel %vm29193_vm12, %v19496_v56, %v19580_v34  ;;  %vm29194_vm5 = vmmov %vm29183_vm1  ;;  %v19585_v56 = vunpack.i.l.bf16 %v19584_v26 }
 0xf78   : > { %16609 = vmatpush1.bf16.msk.msra.mxu1 %vm28775_vm3, %v16607_v25  ;;  %v13772_v48 = vsel %vm29194_vm5, %v19540_v8, %v19541_v41  ;;  %vm29195_vm6 = vmmov %vm29183_vm1  ;;  %v16576_v39 = vpack.c.bf16 %v13771_v51, %v13763_v24  ;;  %v19594_v15 = vpop.permute.xlu0 %19593 }
 0xf79   : > { %v13773_v33 = vsel %vm29195_vm6, %v19541_v41, %v19545_v21  ;;  %16611 = vmatprep.subr.bf16.mxu1 %v16610_v5  ;;  %vm29196_vm11 = vmmov %vm29183_vm1  ;;  %16573 = vmatpush1.bf16.msra.mxu0 %v16572_v58  ;;  %v19599_v63 = vpop.permute.xlu1 %19598  ;;  %v19596_v16 = vunpack.i.h.bf16 %v19594_v15  ;;  %v19595_v1 = vunpack.i.l.bf16 %v19594_v15 }
 0xf7a   : > { %v13764_v47 = vsel %vm29196_vm11, %v19580_v34, %v19581_v14  ;;  %vm29197_vm15 = vmmov %vm29183_vm1  ;;  %vm29198_vm1 = vcmask 777216   ;;  %v19601_v59 = vunpack.i.h.bf16 %v19599_v63 }
 0xf7b   : > { %v13774_v18 = vsel %vm29197_vm15, %v19545_v21, %v19546_v49  ;;  %v13588_v35 = vsel %vm29198_vm1, %v19565_v54, %v19566_v2  ;;  %vm29199_vm4 = vmmov %vm29198_vm1  ;;  %v16574_v53 = vpack.c.bf16 %v13772_v48, %v13764_v47 }
 0xf7c   : > { %v13590_v13 = vsel %vm29199_vm4, %v19575_v43, %v19576_v6  ;;  %vm29200_vm13 = vmmov %vm29194_vm5  ;;  %16613 = vmatpush1.bf16.msra.mxu1 %v16612_v50 }
 0xf7d   : > { %v13765_v30 = vsel %vm29200_vm13, %v19581_v14, %v19585_v56  ;;  %vm29201_vm14 = vmmov %vm29194_vm5  ;;  %16575 = vmatprep.subr.bf16.mxu0 %v16574_v53  ;;  %v19604_v27 = vpop.permute.xlu1 %19603 }
 0xf7e   : > { %v13766_v8 = vsel %vm29201_vm14, %v19585_v56, %v19586_v62  ;;  %vm29202_vm2 = vmmov %vm29198_vm1  ;;  %v16616_v10 = vpack.c.bf16 %v13773_v33, %v13765_v30  ;;  %16577 = vmatpush1.bf16.msra.mxu0 %v16576_v39  ;;  %v19606_v31 = vunpack.i.h.bf16 %v19604_v27 }
 0xf7f   : > { %v13579_v46 = vsel %vm29202_vm2, %v19416_v9, %v19550_v29  ;;  %vm29203_vm0 = vmmov %vm29198_vm1  ;;  %v16614_v28 = vpack.c.bf16 %v13774_v18, %v13766_v8  ;;  %v19600_v9 = vunpack.i.l.bf16 %v19599_v63 }
 0xf80   : > { %v13580_v12 = vsel %vm29203_vm0, %v19550_v29, %v19551_v57  ;;  %vm29204_vm7 = vmmov %vm29203_vm0 }
 0xf81   : > { %v13582_v58 = vsel %vm29204_vm7, %v19555_v36, %v19556_v7  ;;  %vm29205_vm12 = vmmov %vm29203_vm0  ;;  %v16578_v17 = vpack.c.bf16 %v13588_v35, %v13580_v12  ;;  %16615 = vmatprep.subr.bf16.mxu1 %v16614_v28 }
 0xf82   : > { %v13587_v52 = vsel %vm29205_vm12, %v19366_v32, %v19565_v54  ;;  %vm29206_vm5 = vmmov %vm29203_vm0  ;;  %v16618_v61 = vpack.c.bf16 %v13590_v13, %v13582_v58  ;;  %16617 = vmatpush1.bf16.msra.mxu1 %v16616_v10 }
 0xf83   : > { %v13589_v45 = vsel %vm29206_vm5, %v19566_v2, %v19575_v43  ;;  %vm29207_vm6 = vmmov %vm29203_vm0  ;;  %v16581_v49 = vpack.c.bf16 %v13587_v52, %v13579_v46  ;;  %16580 = vmatprep.subr.msk.bf16.mxu0 %vm28763_vm9, %v16578_v17 }
 0xf84   : > { %v13596_v41 = vsel %vm29207_vm6, %v19590_v19, %v19591_v44  ;;  %vm29208_vm11 = vmmov %vm29203_vm0  ;;  %16620 = vmatprep.subr.msk.bf16.mxu1 %vm28771_vm8, %v16618_v61 }
 0xf85   : > { %v13603_v23 = vsel %vm29208_vm11, %v19461_v55, %v19595_v1  ;;  %vm29209_vm15 = vmmov %vm29203_vm0  ;;  %v19605_v55 = vunpack.i.l.bf16 %v19604_v27  ;;  %16583 = vmatpush1.bf16.msk.msra.mxu0 %vm28767_vm10, %v16581_v49 }
 0xf86   : > { %v13604_v38 = vsel %vm29209_vm15, %v19595_v1, %v19596_v16  ;;  %vm29210_vm1 = vmmov %vm29203_vm0 }
 0xf87   : > { %v13581_v32 = vsel %vm29210_vm1, %v19551_v57, %v19555_v36  ;;  %v16584_v21 = vpack.c.bf16 %v13604_v38, %v13596_v41  ;;  %vm29211_vm4 = vmmov %vm29203_vm0  ;;  %v13606_v5 = vsel %vm29203_vm0, %v19605_v55, %v19606_v31 }
 0xf88   : > { %v16621_v25 = vpack.c.bf16 %v13589_v45, %v13581_v32  ;;  %v13595_v37 = vsel %vm29211_vm4, %v19521_v42, %v19590_v19  ;;  %vm29212_vm13 = vmmov %vm29203_vm0 }
 0xf89   : > { %v13597_v11 = vsel %vm29212_vm13, %v19591_v44, %v19600_v9  ;;  %v16587_v51 = vpack.c.bf16 %v13603_v23, %v13595_v37  ;;  %vm29213_vm14 = vmmov %vm29203_vm0  ;;  %16586 = vmatprep.subr.msk.bf16.mxu0 %vm28763_vm9, %v16584_v21  ;;  %v13812_v2 = vpop.permute.xlu0 %13811 }
 0xf8a   : > { %v13598_v14 = vsel %vm29213_vm14, %v19600_v9, %v19601_v59  ;;  %vm29214_vm2 = vmmov %vm29203_vm0  ;;  %16623 = vmatpush1.bf16.msk.msra.mxu1 %vm28775_vm3, %v16621_v25 }
 0xf8b   : > { %v13605_v34 = vsel %vm29214_vm2, %v19596_v16, %v19605_v55  ;;  %v16624_v22 = vpack.c.bf16 %v13606_v5, %v13598_v14  ;;  %16589 = vmatpush1.bf16.msk.msra.mxu0 %vm28767_vm10, %v16587_v51 }
 0xf8c   : > { %v16627_v42 = vpack.c.bf16 %v13605_v34, %v13597_v11 }
 0xf8d   : > { %16626 = vmatprep.subr.msk.bf16.mxu1 %vm28771_vm8, %v16624_v22 }
 0xf8e   : > { %16629 = vmatpush1.bf16.msk.msra.mxu1 %vm28775_vm3, %v16627_v42  ;;  %14021 = vmatmul.mubr.f32.vlgmr.msra.gmra.mrb[42].mxu0 %v27737_v3 }
 0xf91   : > { %14092 = vmatmul.mubr.f32.vlgmr.msra.gmra.mrb[42].mxu1 %v27737_v3 }
0x1039   : > { %v13951_v54 = vpop.f32.mrb[40].mxu1 }
0x103a   : > { %v13952_v4 = vadd.f32 %v13951_v54, %v13812_v2  ;;  %v13953_v6 = vpop.f32.mrb[41].mxu1 }
0x103b   : > { %v13880_v43 = vpop.f32.mrb[40].mxu0  ;;  %v13954_v50 = vadd.f32 %v13953_v6, %v13812_v2 }
0x103c   : > { %v13881_v60 = vadd.f32 %v13880_v43, %v13812_v2  ;;  %v13882_v20 = vpop.f32.mrb[41].mxu0 }
0x103d   : > { %v13883_v57 = vadd.f32 %v13882_v20, %v13812_v2  ;;  %v14107_v0 = vcombine.low %v13952_v4, %v13954_v50 }
0x103f   : > { %v14106_v24 = vcombine.low %v13881_v60, %v13883_v57  ;;  %14115 = vst [vmem:[%s278_s22 + $0x8] sm:$0xff] %v14107_v0 }
0x1041   : > { %14114 = vst [vmem:[%s278_s22] sm:$0xff] %v14106_v24 }
0x1061   : > { %v14022_v48 = vpop.f32.mrb[42].mxu0 }
0x1062   : > { %v14023_v3 = vadd.f32 %v14022_v48, %v13812_v2  ;;  %v14024_v29 = vpop.f32.mrb[43].mxu0 }
0x1063   : > { %v14025_v40 = vadd.f32 %v14024_v29, %v13812_v2 }
0x1064   : > { %v14093_v33 = vpop.f32.mrb[42].mxu1 }
0x1065   : > { %v14094_v26 = vadd.f32 %v14093_v33, %v13812_v2  ;;  %v14095_v47 = vpop.f32.mrb[43].mxu1  ;;  %v14108_v7 = vcombine.low %v14023_v3, %v14025_v40 }
0x1066   : > { %v14096_v18 = vadd.f32 %v14095_v47, %v13812_v2 }
0x1067   : > { %14116 = vst [vmem:[%s278_s22 + $0x10] sm:$0xff] %v14108_v7 }
0x1068   : > { %v14109_v36 = vcombine.low %v14094_v26, %v14096_v18 }
0x106a   : > { %14117 = vst [vmem:[%s278_s22 + $0x18] sm:$0xff] %v14109_v36 }
0x106b PF: > { %s17_s24 = sadd.s32 1, %s19830_s24  }
0x106c   : > { %p14_p4 = scmp.ge.s32.totalorder %s17_s24, 4  }
0x106e   :  { %16 = sbr.rel (!%p14_p4) target bundleno = 1 (0x1), region = 95 }

</bundles_post_ra>
